<compile_context>
chip_gen: v5e
topology: v5e:2x2
jax: 0.10.0
libtpu: 0.0.40
codegen_flags: <defaults>
</compile_context>

<pallas_src>
import functools
import math

import jax
import jax.numpy as jnp
from jax.experimental import pallas as pl
from jax.experimental.pallas import tpu as pltpu


# ------------------------------ shape helpers ------------------------------ #

def _output_size(h, w, k, s=1, p=0):
    return (int((h - k + 2 * p) / s) + 1, int((w - k + 2 * p) / s) + 1)


def _conv_out_dims(im_h, im_w):
    d1 = _output_size(im_h, im_w, 7, 2)   # rgb_conv / depth_conv
    d1 = _output_size(*d1, 1, 1)          # cn_1 (1x1) keeps dims
    d2 = _output_size(*d1, 3, 1)          # cn_2
    d3 = _output_size(*d2, 3, 1)          # cn_3
    return d1, d2, d3


def _im2col(x_nhwc, k, s):
    """k x k / stride-s valid patches -> (B*OH*OW, k*k*C), cols in (i, j, c) order."""
    B, H, W, C = x_nhwc.shape
    OH = (H - k) // s + 1
    OW = (W - k) // s + 1
    patches = []
    for i in range(k):
        for j in range(k):
            patches.append(x_nhwc[:, i:i + s * OH:s, j:j + s * OW:s, :])
    p = jnp.stack(patches, axis=3)                      # (B, OH, OW, k*k, C)
    return p.reshape(B * OH * OW, k * k * C)


def _vmem_spec():
    return pl.BlockSpec(memory_space=pltpu.MemorySpace.VMEM)


# --------------------------------------------------------------------------- #
# Kernel 1: fused conv stack                                                   #
#   rgb_conv(7x7,s2)+ReLU, depth_conv(7x7,s2)+ReLU, channel concat (folded),   #
#   cn_1(1x1)+ReLU, cn_2(3x3)+ReLU, cn_3(3x3)+ReLU.                            #
# Output rows are (b, h, w)-ordered with channels last, so the (B, H*W*C)      #
# flatten is a free row-major reshape done by the caller.                      #
# --------------------------------------------------------------------------- #
def _conv_stack_kernel(rgb_cols_ref, dep_cols_ref,
                       w_rgb_ref, b_rgb_ref, w_dep_ref, b_dep_ref,
                       w1r_ref, w1d_ref, b1_ref,
                       w2_ref, b2_ref, w3_ref, b3_ref,
                       out_ref,
                       c1_s, c2_s, gather_s,
                       *, B, H1, W1, H2, W2, H3, W3, C):
    f32 = jnp.float32

    def relu(x):
        return jnp.maximum(x, 0.0)

    m2 = B * H2 * W2
    m3 = B * H3 * W3

    # TODO(synk): pass precision=lax.Precision.HIGHEST to the dots if bit-level
    # parity with PyTorch f32 conv/linear is required.

    # 7x7 stride-2 convs (pre-im2col'd in the wrapper) + ReLU.
    rgb_enc = relu(jnp.dot(rgb_cols_ref[...], w_rgb_ref[...],
                           preferred_element_type=f32) + b_rgb_ref[...])
    dep_enc = relu(jnp.dot(dep_cols_ref[...], w_dep_ref[...],
                           preferred_element_type=f32) + b_dep_ref[...])

    # cn_1 (1x1): the rgb/depth channel concat is folded into a row-split weight.
    c1_s[...] = relu(jnp.dot(rgb_enc, w1r_ref[...], preferred_element_type=f32)
                     + jnp.dot(dep_enc, w1d_ref[...], preferred_element_type=f32)
                     + b1_ref[...])

    # cn_2 (3x3, valid): accumulate over the 9 taps; each tap's shifted rows are
    # gathered with contiguous row-block copies inside VMEM scratch.
    acc2 = jnp.zeros((m2, C), f32)
    for i in range(3):
        for j in range(3):
            for b in range(B):
                for oh in range(H2):
                    src = b * H1 * W1 + (oh + i) * W1 + j
                    dst = b * H2 * W2 + oh * W2
                    gather_s[dst:dst + W2, :] = c1_s[src:src + W2, :]
            acc2 = acc2 + jnp.dot(gather_s[...], w2_ref[i * 3 + j],
                                  preferred_element_type=f32)
    c2_s[...] = relu(acc2 + b2_ref[...])

    # cn_3 (3x3, valid): same pattern.
    acc3 = jnp.zeros((m3, C), f32)
    for i in range(3):
        for j in range(3):
            for b in range(B):
                for oh in range(H3):
                    src = b * H2 * W2 + (oh + i) * W2 + j
                    dst = b * H3 * W3 + oh * W3
                    gather_s[dst:dst + W3, :] = c2_s[src:src + W3, :]
            acc3 = acc3 + jnp.dot(gather_s[0:m3, :], w3_ref[i * 3 + j],
                                  preferred_element_type=f32)

    out_ref[...] = relu(acc3 + b3_ref[...])


def conv_stack(rgb_cols, dep_cols, kp, *, B, H1, W1, H2, W2, H3, W3, C):
    kern = functools.partial(_conv_stack_kernel, B=B, H1=H1, W1=W1,
                             H2=H2, W2=W2, H3=H3, W3=W3, C=C)
    operands = (rgb_cols, dep_cols,
                kp["w_rgb"], kp["b_rgb"], kp["w_dep"], kp["b_dep"],
                kp["w_c1_rgb"], kp["w_c1_dep"], kp["b_c1"],
                kp["w_c2"], kp["b_c2"], kp["w_c3"], kp["b_c3"])
    m1, m2, m3 = B * H1 * W1, B * H2 * W2, B * H3 * W3
    flops = int(2 * (m1 * (kp["w_rgb"].size + kp["w_dep"].size
                           + kp["w_c1_rgb"].size + kp["w_c1_dep"].size)
                     + m2 * kp["w_c2"].size + m3 * kp["w_c3"].size))
    bytes_accessed = int(4 * (sum(int(x.size) for x in operands) + m3 * C))
    return pl.pallas_call(
        kern,
        out_shape=jax.ShapeDtypeStruct((m3, C), jnp.float32),
        in_specs=[_vmem_spec() for _ in operands],
        out_specs=_vmem_spec(),
        scratch_shapes=[
            pltpu.VMEM((m1, C), jnp.float32),   # c1 (post cn_1)
            pltpu.VMEM((m2, C), jnp.float32),   # c2 (post cn_2)
            pltpu.VMEM((m2, C), jnp.float32),   # per-tap gather buffer
        ],
        compiler_params=pltpu.CompilerParams(vmem_limit_bytes=16 * 1024 * 1024),
        cost_estimate=pl.CostEstimate(flops=flops, transcendentals=0,
                                      bytes_accessed=bytes_accessed),
    )(*operands)


# --------------------------------------------------------------------------- #
# Kernel 2: fused 9-layer MLP (ff_enc -> ff_aux -> ff_out).                    #
# The concat([img_enc, past, aux]) feeding ff_out_0 is computed as three       #
# matmuls against a row-split weight, so no concat is ever materialized.       #
# --------------------------------------------------------------------------- #
def _mlp_kernel(flat_ref, past_ref,
                we0_ref, be0_ref, we1_ref, be1_ref, we2_ref, be2_ref,
                wa0_ref, ba0_ref, wa1_ref, ba1_ref, wa2_ref, ba2_ref,
                wo0i_ref, wo0p_ref, wo0a_ref, bo0_ref,
                wo1_ref, bo1_ref, wo2_ref, bo2_ref,
                out_ref, aux_ref):
    f32 = jnp.float32

    def fc(x, w_ref, b_ref, relu=True):
        y = jnp.dot(x, w_ref[...], preferred_element_type=f32) + b_ref[...]
        return jnp.maximum(y, 0.0) if relu else y

    h = fc(flat_ref[...], we0_ref, be0_ref)
    h = fc(h, we1_ref, be1_ref)
    img_enc = fc(h, we2_ref, be2_ref)

    a = fc(img_enc, wa0_ref, ba0_ref)
    a = fc(a, wa1_ref, ba1_ref)
    aux = fc(a, wa2_ref, ba2_ref, relu=False)

    full = (jnp.dot(img_enc, wo0i_ref[...], preferred_element_type=f32)
            + jnp.dot(past_ref[...], wo0p_ref[...], preferred_element_type=f32)
            + jnp.dot(aux, wo0a_ref[...], preferred_element_type=f32)
            + bo0_ref[...])
    o = jnp.maximum(full, 0.0)
    o = fc(o, wo1_ref, bo1_ref)
    out = fc(o, wo2_ref, bo2_ref, relu=False)

    out_ref[...] = out
    aux_ref[...] = aux


def mlp_stack(flat_im, flat_past, kp):
    B = flat_im.shape[0]
    ee = kp["w_o2"].shape[1]
    operands = (flat_im, flat_past,
                kp["w_e0"], kp["b_e0"], kp["w_e1"], kp["b_e1"],
                kp["w_e2"], kp["b_e2"],
                kp["w_a0"], kp["b_a0"], kp["w_a1"], kp["b_a1"],
                kp["w_a2"], kp["b_a2"],
                kp["w_o0_img"], kp["w_o0_past"], kp["w_o0_aux"], kp["b_o0"],
                kp["w_o1"], kp["b_o1"], kp["w_o2"], kp["b_o2"])
    mlp_ws = (kp["w_e0"], kp["w_e1"], kp["w_e2"], kp["w_a0"], kp["w_a1"],
              kp["w_a2"], kp["w_o0_img"], kp["w_o0_past"], kp["w_o0_aux"],
              kp["w_o1"], kp["w_o2"])
    flops = int(2 * B * sum(int(w.size) for w in mlp_ws))
    bytes_accessed = int(4 * (sum(int(x.size) for x in operands) + 2 * B * ee))
    return pl.pallas_call(
        _mlp_kernel,
        out_shape=(jax.ShapeDtypeStruct((B, ee), jnp.float32),
                   jax.ShapeDtypeStruct((B, ee), jnp.float32)),
        in_specs=[_vmem_spec() for _ in operands],
        out_specs=(_vmem_spec(), _vmem_spec()),
        compiler_params=pltpu.CompilerParams(vmem_limit_bytes=16 * 1024 * 1024),
        cost_estimate=pl.CostEstimate(flops=flops, transcendentals=0,
                                      bytes_accessed=bytes_accessed),
    )(*operands)


# ------------------------------- parameters -------------------------------- #

def init_params(key, im_h, im_w):
    """Synthetic parameters in PyTorch layouts (Conv2d: OIHW; Linear: (in, out))."""
    def lin(k, fan_in, fan_out):
        k1, k2 = jax.random.split(k)
        bnd = 1.0 / math.sqrt(fan_in)
        w = jax.random.uniform(k1, (fan_in, fan_out), jnp.float32, -bnd, bnd)
        b = jax.random.uniform(k2, (fan_out,), jnp.float32, -bnd, bnd)
        return w, b

    def conv(k, cout, cin, ksz):
        k1, k2 = jax.random.split(k)
        bnd = 1.0 / math.sqrt(cin * ksz * ksz)
        w = jax.random.uniform(k1, (cout, cin, ksz, ksz), jnp.float32, -bnd, bnd)
        b = jax.random.uniform(k2, (cout,), jnp.float32, -bnd, bnd)
        return w, b

    _, _, d3 = _conv_out_dims(im_h, im_w)
    flattened_dims = d3[0] * d3[1] * 32
    hidden, img_enc_dim, ee_dim = 50, 64, 6
    past_hist_dim = 5 * ee_dim

    keys = jax.random.split(key, 14)
    return {
        "rgb_conv":   conv(keys[0], 64, 3, 7),
        "depth_conv": conv(keys[1], 16, 1, 7),
        "cn_1":       conv(keys[2], 32, 80, 1),
        "cn_2":       conv(keys[3], 32, 32, 3),
        "cn_3":       conv(keys[4], 32, 32, 3),
        "ff_enc_0":   lin(keys[5], flattened_dims, hidden),
        "ff_enc_1":   lin(keys[6], hidden, hidden),
        "ff_enc_2":   lin(keys[7], hidden, img_enc_dim),
        "ff_aux_0":   lin(keys[8], img_enc_dim, hidden),
        "ff_aux_1":   lin(keys[9], hidden, hidden),
        "ff_aux_2":   lin(keys[10], hidden, ee_dim),
        "ff_out_0":   lin(keys[11], img_enc_dim + past_hist_dim + ee_dim, hidden),
        "ff_out_1":   lin(keys[12], hidden, hidden),
        "ff_out_2":   lin(keys[13], hidden, ee_dim),
    }


def prepare_params(params, im_h, im_w):
    """One-time conversion of PyTorch-layout params into kernel-ready matrices.
    Hoists every layout transform out of the jitted forward path."""
    def conv_mat(w):  # (Cout, Cin, kh, kw) -> (kh*kw*Cin, Cout), rows in (i, j, ci)
        co, ci, kh, kw = w.shape
        return jnp.transpose(w, (2, 3, 1, 0)).reshape(kh * kw * ci, co)

    def row(b):
        return b.reshape(1, -1)

    _, _, (c3_h, c3_w) = _conv_out_dims(im_h, im_w)

    w_rgb, b_rgb = params["rgb_conv"]
    w_dep, b_dep = params["depth_conv"]
    w_c1, b_c1 = params["cn_1"]
    w_c2, b_c2 = params["cn_2"]
    w_c3, b_c3 = params["cn_3"]

    rgb_ch = w_rgb.shape[0]           # 64
    c_ch = w_c3.shape[0]              # 32
    w_c1m = conv_mat(w_c1)            # (80, 32): rows = [rgb channels | depth channels]

    # ff_enc_0: torch.flatten on NCHW is (c, h, w) order; kernel 1 emits (h, w, c).
    w_e0, b_e0 = params["ff_enc_0"]
    w_e0 = jnp.transpose(w_e0.reshape(c_ch, c3_h, c3_w, -1),
                         (1, 2, 0, 3)).reshape(c3_h * c3_w * c_ch, -1)

    # ff_out_0: split rows to fold the [img_enc | past | aux] concat.
    w_o0, b_o0 = params["ff_out_0"]
    img_dim = params["ff_aux_0"][0].shape[0]
    ee_dim = params["ff_aux_2"][0].shape[1]
    past_dim = w_o0.shape[0] - img_dim - ee_dim

    return {
        "w_rgb": conv_mat(w_rgb), "b_rgb": row(b_rgb),
        "w_dep": conv_mat(w_dep), "b_dep": row(b_dep),
        "w_c1_rgb": w_c1m[:rgb_ch], "w_c1_dep": w_c1m[rgb_ch:], "b_c1": row(b_c1),
        "w_c2": conv_mat(w_c2).reshape(9, c_ch, c_ch), "b_c2": row(b_c2),
        "w_c3": conv_mat(w_c3).reshape(9, c_ch, c_ch), "b_c3": row(b_c3),
        "w_e0": w_e0, "b_e0": row(b_e0),
        "w_e1": params["ff_enc_1"][0], "b_e1": row(params["ff_enc_1"][1]),
        "w_e2": params["ff_enc_2"][0], "b_e2": row(params["ff_enc_2"][1]),
        "w_a0": params["ff_aux_0"][0], "b_a0": row(params["ff_aux_0"][1]),
        "w_a1": params["ff_aux_1"][0], "b_a1": row(params["ff_aux_1"][1]),
        "w_a2": params["ff_aux_2"][0], "b_a2": row(params["ff_aux_2"][1]),
        "w_o0_img": w_o0[:img_dim],
        "w_o0_past": w_o0[img_dim:img_dim + past_dim],
        "w_o0_aux": w_o0[img_dim + past_dim:],
        "b_o0": row(b_o0),
        "w_o1": params["ff_out_1"][0], "b_o1": row(params["ff_out_1"][1]),
        "w_o2": params["ff_out_2"][0], "b_o2": row(params["ff_out_2"][1]),
    }


# --------------------------------- forward --------------------------------- #

def zhangnet_forward(kp, rgb_nchw, depth_nchw, past_poses):
    B, _, im_h, im_w = rgb_nchw.shape
    (H1, W1), (H2, W2), (H3, W3) = _conv_out_dims(im_h, im_w)
    C = kp["w_c3"].shape[-1]

    # NCHW (PyTorch) -> NHWC, then im2col for the two 7x7/stride-2 convs.
    rgb_cols = _im2col(jnp.transpose(rgb_nchw, (0, 2, 3, 1)), 7, 2)
    dep_cols = _im2col(jnp.transpose(depth_nchw, (0, 2, 3, 1)), 7, 2)

    conv_out = conv_stack(rgb_cols, dep_cols, kp, B=B, H1=H1, W1=W1,
                          H2=H2, W2=W2, H3=H3, W3=W3, C=C)   # (B*H3*W3, C)
    flat_im = conv_out.reshape(B, H3 * W3 * C)               # free row-major reshape
    flat_past = past_poses.reshape(B, -1)

    output, aux_out = mlp_stack(flat_im, flat_past, kp)
    return output, aux_out


# ----------------------------------- main ----------------------------------- #

if __name__ == "__main__":
    B, IM_H, IM_W = 2, 23, 23   # conv stack output: 5x5x32 = 800 features
    key = jax.random.PRNGKey(0)
    k_params, k_rgb, k_depth, k_past = jax.random.split(key, 4)

    params_pt = init_params(k_params, IM_H, IM_W)        # PyTorch-layout params
    kparams = prepare_params(params_pt, IM_H, IM_W)      # one-time kernel layout

    rgb_ims = jax.random.normal(k_rgb, (B, 3, IM_H, IM_W), jnp.float32)
    depth_ims = jax.random.normal(k_depth, (B, 1, IM_H, IM_W), jnp.float32)
    past_poses = jax.random.normal(k_past, (B, 5, 6), jnp.float32)

    fwd = jax.jit(zhangnet_forward)
    output, aux_out = fwd(kparams, rgb_ims, depth_ims, past_poses)
    jax.block_until_ready((output, aux_out))

    assert output.shape == (B, 6), output.shape
    assert aux_out.shape == (B, 6), aux_out.shape
    assert jnp.all(jnp.isfinite(output)) and jnp.all(jnp.isfinite(aux_out))
    print("KERNEL_OK")
</pallas_src>

<mosaic_0001>
module attributes {stable_mosaic.version = 11 : i64} {
  func.func @_conv_stack_kernel(%arg0: memref<162x147xf32, #tpu.memory_space<vmem>>, %arg1: memref<162x49xf32, #tpu.memory_space<vmem>>, %arg2: memref<147x64xf32, #tpu.memory_space<vmem>>, %arg3: memref<1x64xf32, #tpu.memory_space<vmem>>, %arg4: memref<49x16xf32, #tpu.memory_space<vmem>>, %arg5: memref<1x16xf32, #tpu.memory_space<vmem>>, %arg6: memref<64x32xf32, #tpu.memory_space<vmem>>, %arg7: memref<16x32xf32, #tpu.memory_space<vmem>>, %arg8: memref<1x32xf32, #tpu.memory_space<vmem>>, %arg9: memref<9x32x32xf32, #tpu.memory_space<vmem>>, %arg10: memref<1x32xf32, #tpu.memory_space<vmem>>, %arg11: memref<9x32x32xf32, #tpu.memory_space<vmem>>, %arg12: memref<1x32xf32, #tpu.memory_space<vmem>>, %arg13: memref<50x32xf32, #tpu.memory_space<vmem>>, %arg14: memref<162x32xf32, #tpu.memory_space<vmem>>, %arg15: memref<98x32xf32, #tpu.memory_space<vmem>>, %arg16: memref<98x32xf32, #tpu.memory_space<vmem>>) attributes {dimension_semantics = [], scalar_prefetch = 0 : i64, scratch_operands = 3 : i64, tpu.core_type = #tpu.core_type<tc>} {
    %c0 = arith.constant 0 : index
    %c0_0 = arith.constant 0 : index
    %0 = vector.load %arg0[%c0, %c0_0] : memref<162x147xf32, #tpu.memory_space<vmem>>, vector<162x147xf32>
    %c0_1 = arith.constant 0 : index
    %c0_2 = arith.constant 0 : index
    %1 = vector.load %arg2[%c0_1, %c0_2] : memref<147x64xf32, #tpu.memory_space<vmem>>, vector<147x64xf32>
    %cst = arith.constant dense<0.000000e+00> : vector<162x64xf32>
    %2 = tpu.matmul %0, %1, %cst {dimension_numbers = #tpu.dot_dimension_numbers<[1], [0], [0], [1], [0, 0, 1, 1], [], []>} : vector<162x147xf32>, vector<147x64xf32>, vector<162x64xf32> -> vector<162x64xf32>
    %c0_3 = arith.constant 0 : index
    %c0_4 = arith.constant 0 : index
    %3 = vector.load %arg3[%c0_3, %c0_4] : memref<1x64xf32, #tpu.memory_space<vmem>>, vector<1x64xf32>
    %4 = vector.broadcast %3 : vector<1x64xf32> to vector<162x64xf32>
    %5 = arith.addf %2, %4 : vector<162x64xf32>
    %cst_5 = arith.constant 0.000000e+00 : f32
    %6 = vector.broadcast %cst_5 : f32 to vector<162x64xf32>
    %7 = arith.maximumf %5, %6 : vector<162x64xf32>
    %c0_6 = arith.constant 0 : index
    %c0_7 = arith.constant 0 : index
    %8 = vector.load %arg1[%c0_6, %c0_7] : memref<162x49xf32, #tpu.memory_space<vmem>>, vector<162x49xf32>
    %c0_8 = arith.constant 0 : index
    %c0_9 = arith.constant 0 : index
    %9 = vector.load %arg4[%c0_8, %c0_9] : memref<49x16xf32, #tpu.memory_space<vmem>>, vector<49x16xf32>
    %cst_10 = arith.constant dense<0.000000e+00> : vector<162x16xf32>
    %10 = tpu.matmul %8, %9, %cst_10 {dimension_numbers = #tpu.dot_dimension_numbers<[1], [0], [0], [1], [0, 0, 1, 1], [], []>} : vector<162x49xf32>, vector<49x16xf32>, vector<162x16xf32> -> vector<162x16xf32>
    %c0_11 = arith.constant 0 : index
    %c0_12 = arith.constant 0 : index
    %11 = vector.load %arg5[%c0_11, %c0_12] : memref<1x16xf32, #tpu.memory_space<vmem>>, vector<1x16xf32>
    %12 = vector.broadcast %11 : vector<1x16xf32> to vector<162x16xf32>
    %13 = arith.addf %10, %12 : vector<162x16xf32>
    %cst_13 = arith.constant 0.000000e+00 : f32
    %14 = vector.broadcast %cst_13 : f32 to vector<162x16xf32>
    %15 = arith.maximumf %13, %14 : vector<162x16xf32>
    %c0_14 = arith.constant 0 : index
    %c0_15 = arith.constant 0 : index
    %16 = vector.load %arg6[%c0_14, %c0_15] : memref<64x32xf32, #tpu.memory_space<vmem>>, vector<64x32xf32>
    %cst_16 = arith.constant dense<0.000000e+00> : vector<162x32xf32>
    %17 = tpu.matmul %7, %16, %cst_16 {dimension_numbers = #tpu.dot_dimension_numbers<[1], [0], [0], [1], [0, 0, 1, 1], [], []>} : vector<162x64xf32>, vector<64x32xf32>, vector<162x32xf32> -> vector<162x32xf32>
    %c0_17 = arith.constant 0 : index
    %c0_18 = arith.constant 0 : index
    %18 = vector.load %arg7[%c0_17, %c0_18] : memref<16x32xf32, #tpu.memory_space<vmem>>, vector<16x32xf32>
    %cst_19 = arith.constant dense<0.000000e+00> : vector<162x32xf32>
    %19 = tpu.matmul %15, %18, %cst_19 {dimension_numbers = #tpu.dot_dimension_numbers<[1], [0], [0], [1], [0, 0, 1, 1], [], []>} : vector<162x16xf32>, vector<16x32xf32>, vector<162x32xf32> -> vector<162x32xf32>
    %20 = arith.addf %17, %19 : vector<162x32xf32>
    %c0_20 = arith.constant 0 : index
    %c0_21 = arith.constant 0 : index
    %21 = vector.load %arg8[%c0_20, %c0_21] : memref<1x32xf32, #tpu.memory_space<vmem>>, vector<1x32xf32>
    %22 = vector.broadcast %21 : vector<1x32xf32> to vector<162x32xf32>
    %23 = arith.addf %20, %22 : vector<162x32xf32>
    %cst_22 = arith.constant 0.000000e+00 : f32
    %24 = vector.broadcast %cst_22 : f32 to vector<162x32xf32>
    %25 = arith.maximumf %23, %24 : vector<162x32xf32>
    %c0_23 = arith.constant 0 : index
    %c0_24 = arith.constant 0 : index
    %26 = vector.load %arg14[%c0_23, %c0_24] : memref<162x32xf32, #tpu.memory_space<vmem>>, vector<162x32xf32>
    tpu.vector_store %arg14[%c0_23, %c0_24], %25 {strides = array<i32>} : memref<162x32xf32, #tpu.memory_space<vmem>>, vector<162x32xf32>,
    %cst_25 = arith.constant 0.000000e+00 : f32
    %27 = vector.broadcast %cst_25 : f32 to vector<98x32xf32>
    %c0_26 = arith.constant 0 : index
    %c0_27 = arith.constant 0 : index
    %28 = vector.load %arg14[%c0_26, %c0_27] : memref<162x32xf32, #tpu.memory_space<vmem>>, vector<7x32xf32>
    %c0_28 = arith.constant 0 : index
    %c0_29 = arith.constant 0 : index
    %29 = vector.load %arg16[%c0_28, %c0_29] : memref<98x32xf32, #tpu.memory_space<vmem>>, vector<7x32xf32>
    tpu.vector_store %arg16[%c0_28, %c0_29], %28 {strides = array<i32>} : memref<98x32xf32, #tpu.memory_space<vmem>>, vector<7x32xf32>,
    %c9 = arith.constant 9 : index
    %c0_30 = arith.constant 0 : index
    %30 = vector.load %arg14[%c9, %c0_30] : memref<162x32xf32, #tpu.memory_space<vmem>>, vector<7x32xf32>
    %c7 = arith.constant 7 : index
    %c0_31 = arith.constant 0 : index
    %31 = vector.load %arg16[%c7, %c0_31] : memref<98x32xf32, #tpu.memory_space<vmem>>, vector<7x32xf32>
    tpu.vector_store %arg16[%c7, %c0_31], %30 {strides = array<i32>} : memref<98x32xf32, #tpu.memory_space<vmem>>, vector<7x32xf32>,
    %c18 = arith.constant 18 : index
    %c0_32 = arith.constant 0 : index
    %32 = vector.load %arg14[%c18, %c0_32] : memref<162x32xf32, #tpu.memory_space<vmem>>, vector<7x32xf32>
    %c14 = arith.constant 14 : index
    %c0_33 = arith.constant 0 : index
    %33 = vector.load %arg16[%c14, %c0_33] : memref<98x32xf32, #tpu.memory_space<vmem>>, vector<7x32xf32>
    tpu.vector_store %arg16[%c14, %c0_33], %32 {strides = array<i32>} : memref<98x32xf32, #tpu.memory_space<vmem>>, vector<7x32xf32>,
    %c27 = arith.constant 27 : index
    %c0_34 = arith.constant 0 : index
    %34 = vector.load %arg14[%c27, %c0_34] : memref<162x32xf32, #tpu.memory_space<vmem>>, vector<7x32xf32>
    %c21 = arith.constant 21 : index
    %c0_35 = arith.constant 0 : index
    %35 = vector.load %arg16[%c21, %c0_35] : memref<98x32xf32, #tpu.memory_space<vmem>>, vector<7x32xf32>
    tpu.vector_store %arg16[%c21, %c0_35], %34 {strides = array<i32>} : memref<98x32xf32, #tpu.memory_space<vmem>>, vector<7x32xf32>,
    %c36 = arith.constant 36 : index
    %c0_36 = arith.constant 0 : index
    %36 = vector.load %arg14[%c36, %c0_36] : memref<162x32xf32, #tpu.memory_space<vmem>>, vector<7x32xf32>
    %c28 = arith.constant 28 : index
    %c0_37 = arith.constant 0 : index
    %37 = vector.load %arg16[%c28, %c0_37] : memref<98x32xf32, #tpu.memory_space<vmem>>, vector<7x32xf32>
    tpu.vector_store %arg16[%c28, %c0_37], %36 {strides = array<i32>} : memref<98x32xf32, #tpu.memory_space<vmem>>, vector<7x32xf32>,
    %c45 = arith.constant 45 : index
    %c0_38 = arith.constant 0 : index
    %38 = vector.load %arg14[%c45, %c0_38] : memref<162x32xf32, #tpu.memory_space<vmem>>, vector<7x32xf32>
    %c35 = arith.constant 35 : index
    %c0_39 = arith.constant 0 : index
    %39 = vector.load %arg16[%c35, %c0_39] : memref<98x32xf32, #tpu.memory_space<vmem>>, vector<7x32xf32>
    tpu.vector_store %arg16[%c35, %c0_39], %38 {strides = array<i32>} : memref<98x32xf32, #tpu.memory_space<vmem>>, vector<7x32xf32>,
    %c54 = arith.constant 54 : index
    %c0_40 = arith.constant 0 : index
    %40 = vector.load %arg14[%c54, %c0_40] : memref<162x32xf32, #tpu.memory_space<vmem>>, vector<7x32xf32>
    %c42 = arith.constant 42 : index
    %c0_41 = arith.constant 0 : index
    %41 = vector.load %arg16[%c42, %c0_41] : memref<98x32xf32, #tpu.memory_space<vmem>>, vector<7x32xf32>
    tpu.vector_store %arg16[%c42, %c0_41], %40 {strides = array<i32>} : memref<98x32xf32, #tpu.memory_space<vmem>>, vector<7x32xf32>,
    %c81 = arith.constant 81 : index
    %c0_42 = arith.constant 0 : index
    %42 = vector.load %arg14[%c81, %c0_42] : memref<162x32xf32, #tpu.memory_space<vmem>>, vector<7x32xf32>
    %c49 = arith.constant 49 : index
    %c0_43 = arith.constant 0 : index
    %43 = vector.load %arg16[%c49, %c0_43] : memref<98x32xf32, #tpu.memory_space<vmem>>, vector<7x32xf32>
    tpu.vector_store %arg16[%c49, %c0_43], %42 {strides = array<i32>} : memref<98x32xf32, #tpu.memory_space<vmem>>, vector<7x32xf32>,
    %c90 = arith.constant 90 : index
    %c0_44 = arith.constant 0 : index
    %44 = vector.load %arg14[%c90, %c0_44] : memref<162x32xf32, #tpu.memory_space<vmem>>, vector<7x32xf32>
    %c56 = arith.constant 56 : index
    %c0_45 = arith.constant 0 : index
    %45 = vector.load %arg16[%c56, %c0_45] : memref<98x32xf32, #tpu.memory_space<vmem>>, vector<7x32xf32>
    tpu.vector_store %arg16[%c56, %c0_45], %44 {strides = array<i32>} : memref<98x32xf32, #tpu.memory_space<vmem>>, vector<7x32xf32>,
    %c99 = arith.constant 99 : index
    %c0_46 = arith.constant 0 : index
    %46 = vector.load %arg14[%c99, %c0_46] : memref<162x32xf32, #tpu.memory_space<vmem>>, vector<7x32xf32>
    %c63 = arith.constant 63 : index
    %c0_47 = arith.constant 0 : index
    %47 = vector.load %arg16[%c63, %c0_47] : memref<98x32xf32, #tpu.memory_space<vmem>>, vector<7x32xf32>
    tpu.vector_store %arg16[%c63, %c0_47], %46 {strides = array<i32>} : memref<98x32xf32, #tpu.memory_space<vmem>>, vector<7x32xf32>,
    %c108 = arith.constant 108 : index
    %c0_48 = arith.constant 0 : index
    %48 = vector.load %arg14[%c108, %c0_48] : memref<162x32xf32, #tpu.memory_space<vmem>>, vector<7x32xf32>
    %c70 = arith.constant 70 : index
    %c0_49 = arith.constant 0 : index
    %49 = vector.load %arg16[%c70, %c0_49] : memref<98x32xf32, #tpu.memory_space<vmem>>, vector<7x32xf32>
    tpu.vector_store %arg16[%c70, %c0_49], %48 {strides = array<i32>} : memref<98x32xf32, #tpu.memory_space<vmem>>, vector<7x32xf32>,
    %c117 = arith.constant 117 : index
    %c0_50 = arith.constant 0 : index
    %50 = vector.load %arg14[%c117, %c0_50] : memref<162x32xf32, #tpu.memory_space<vmem>>, vector<7x32xf32>
    %c77 = arith.constant 77 : index
    %c0_51 = arith.constant 0 : index
    %51 = vector.load %arg16[%c77, %c0_51] : memref<98x32xf32, #tpu.memory_space<vmem>>, vector<7x32xf32>
    tpu.vector_store %arg16[%c77, %c0_51], %50 {strides = array<i32>} : memref<98x32xf32, #tpu.memory_space<vmem>>, vector<7x32xf32>,
    %c126 = arith.constant 126 : index
    %c0_52 = arith.constant 0 : index
    %52 = vector.load %arg14[%c126, %c0_52] : memref<162x32xf32, #tpu.memory_space<vmem>>, vector<7x32xf32>
    %c84 = arith.constant 84 : index
    %c0_53 = arith.constant 0 : index
    %53 = vector.load %arg16[%c84, %c0_53] : memref<98x32xf32, #tpu.memory_space<vmem>>, vector<7x32xf32>
    tpu.vector_store %arg16[%c84, %c0_53], %52 {strides = array<i32>} : memref<98x32xf32, #tpu.memory_space<vmem>>, vector<7x32xf32>,
    %c135 = arith.constant 135 : index
    %c0_54 = arith.constant 0 : index
    %54 = vector.load %arg14[%c135, %c0_54] : memref<162x32xf32, #tpu.memory_space<vmem>>, vector<7x32xf32>
    %c91 = arith.constant 91 : index
    %c0_55 = arith.constant 0 : index
    %55 = vector.load %arg16[%c91, %c0_55] : memref<98x32xf32, #tpu.memory_space<vmem>>, vector<7x32xf32>
    tpu.vector_store %arg16[%c91, %c0_55], %54 {strides = array<i32>} : memref<98x32xf32, #tpu.memory_space<vmem>>, vector<7x32xf32>,
    %c0_56 = arith.constant 0 : index
    %c0_57 = arith.constant 0 : index
    %56 = vector.load %arg16[%c0_56, %c0_57] : memref<98x32xf32, #tpu.memory_space<vmem>>, vector<98x32xf32>
    %c0_58 = arith.constant 0 : index
    %c0_59 = arith.constant 0 : index
    %c0_60 = arith.constant 0 : index
    %57 = vector.load %arg9[%c0_58, %c0_59, %c0_60] : memref<9x32x32xf32, #tpu.memory_space<vmem>>, vector<1x32x32xf32>
    %58 = vector.shape_cast %57 : vector<1x32x32xf32> to vector<32x32xf32>
    %cst_61 = arith.constant dense<0.000000e+00> : vector<98x32xf32>
    %59 = tpu.matmul %56, %58, %cst_61 {dimension_numbers = #tpu.dot_dimension_numbers<[1], [0], [0], [1], [0, 0, 1, 1], [], []>} : vector<98x32xf32>, vector<32x32xf32>, vector<98x32xf32> -> vector<98x32xf32>
    %60 = arith.addf %27, %59 : vector<98x32xf32>
    %c1 = arith.constant 1 : index
    %c0_62 = arith.constant 0 : index
    %61 = vector.load %arg14[%c1, %c0_62] : memref<162x32xf32, #tpu.memory_space<vmem>>, vector<7x32xf32>
    %c0_63 = arith.constant 0 : index
    %c0_64 = arith.constant 0 : index
    %62 = vector.load %arg16[%c0_63, %c0_64] : memref<98x32xf32, #tpu.memory_space<vmem>>, vector<7x32xf32>
    tpu.vector_store %arg16[%c0_63, %c0_64], %61 {strides = array<i32>} : memref<98x32xf32, #tpu.memory_space<vmem>>, vector<7x32xf32>,
    %c10 = arith.constant 10 : index
    %c0_65 = arith.constant 0 : index
    %63 = vector.load %arg14[%c10, %c0_65] : memref<162x32xf32, #tpu.memory_space<vmem>>, vector<7x32xf32>
    %c7_66 = arith.constant 7 : index
    %c0_67 = arith.constant 0 : index
    %64 = vector.load %arg16[%c7_66, %c0_67] : memref<98x32xf32, #tpu.memory_space<vmem>>, vector<7x32xf32>
    tpu.vector_store %arg16[%c7_66, %c0_67], %63 {strides = array<i32>} : memref<98x32xf32, #tpu.memory_space<vmem>>, vector<7x32xf32>,
    %c19 = arith.constant 19 : index
    %c0_68 = arith.constant 0 : index
    %65 = vector.load %arg14[%c19, %c0_68] : memref<162x32xf32, #tpu.memory_space<vmem>>, vector<7x32xf32>
    %c14_69 = arith.constant 14 : index
    %c0_70 = arith.constant 0 : index
    %66 = vector.load %arg16[%c14_69, %c0_70] : memref<98x32xf32, #tpu.memory_space<vmem>>, vector<7x32xf32>
    tpu.vector_store %arg16[%c14_69, %c0_70], %65 {strides = array<i32>} : memref<98x32xf32, #tpu.memory_space<vmem>>, vector<7x32xf32>,
    %c28_71 = arith.constant 28 : index
    %c0_72 = arith.constant 0 : index
    %67 = vector.load %arg14[%c28_71, %c0_72] : memref<162x32xf32, #tpu.memory_space<vmem>>, vector<7x32xf32>
    %c21_73 = arith.constant 21 : index
    %c0_74 = arith.constant 0 : index
    %68 = vector.load %arg16[%c21_73, %c0_74] : memref<98x32xf32, #tpu.memory_space<vmem>>, vector<7x32xf32>
    tpu.vector_store %arg16[%c21_73, %c0_74], %67 {strides = array<i32>} : memref<98x32xf32, #tpu.memory_space<vmem>>, vector<7x32xf32>,
    %c37 = arith.constant 37 : index
    %c0_75 = arith.constant 0 : index
    %69 = vector.load %arg14[%c37, %c0_75] : memref<162x32xf32, #tpu.memory_space<vmem>>, vector<7x32xf32>
    %c28_76 = arith.constant 28 : index
    %c0_77 = arith.constant 0 : index
    %70 = vector.load %arg16[%c28_76, %c0_77] : memref<98x32xf32, #tpu.memory_space<vmem>>, vector<7x32xf32>
    tpu.vector_store %arg16[%c28_76, %c0_77], %69 {strides = array<i32>} : memref<98x32xf32, #tpu.memory_space<vmem>>, vector<7x32xf32>,
    %c46 = arith.constant 46 : index
    %c0_78 = arith.constant 0 : index
    %71 = vector.load %arg14[%c46, %c0_78] : memref<162x32xf32, #tpu.memory_space<vmem>>, vector<7x32xf32>
    %c35_79 = arith.constant 35 : index
    %c0_80 = arith.constant 0 : index
    %72 = vector.load %arg16[%c35_79, %c0_80] : memref<98x32xf32, #tpu.memory_space<vmem>>, vector<7x32xf32>
    tpu.vector_store %arg16[%c35_79, %c0_80], %71 {strides = array<i32>} : memref<98x32xf32, #tpu.memory_space<vmem>>, vector<7x32xf32>,
    %c55 = arith.constant 55 : index
    %c0_81 = arith.constant 0 : index
    %73 = vector.load %arg14[%c55, %c0_81] : memref<162x32xf32, #tpu.memory_space<vmem>>, vector<7x32xf32>
    %c42_82 = arith.constant 42 : index
    %c0_83 = arith.constant 0 : index
    %74 = vector.load %arg16[%c42_82, %c0_83] : memref<98x32xf32, #tpu.memory_space<vmem>>, vector<7x32xf32>
    tpu.vector_store %arg16[%c42_82, %c0_83], %73 {strides = array<i32>} : memref<98x32xf32, #tpu.memory_space<vmem>>, vector<7x32xf32>,
    %c82 = arith.constant 82 : index
    %c0_84 = arith.constant 0 : index
    %75 = vector.load %arg14[%c82, %c0_84] : memref<162x32xf32, #tpu.memory_space<vmem>>, vector<7x32xf32>
    %c49_85 = arith.constant 49 : index
    %c0_86 = arith.constant 0 : index
    %76 = vector.load %arg16[%c49_85, %c0_86] : memref<98x32xf32, #tpu.memory_space<vmem>>, vector<7x32xf32>
    tpu.vector_store %arg16[%c49_85, %c0_86], %75 {strides = array<i32>} : memref<98x32xf32, #tpu.memory_space<vmem>>, vector<7x32xf32>,
    %c91_87 = arith.constant 91 : index
    %c0_88 = arith.constant 0 : index
    %77 = vector.load %arg14[%c91_87, %c0_88] : memref<162x32xf32, #tpu.memory_space<vmem>>, vector<7x32xf32>
    %c56_89 = arith.constant 56 : index
    %c0_90 = arith.constant 0 : index
    %78 = vector.load %arg16[%c56_89, %c0_90] : memref<98x32xf32, #tpu.memory_space<vmem>>, vector<7x32xf32>
    tpu.vector_store %arg16[%c56_89, %c0_90], %77 {strides = array<i32>} : memref<98x32xf32, #tpu.memory_space<vmem>>, vector<7x32xf32>,
    %c100 = arith.constant 100 : index
    %c0_91 = arith.constant 0 : index
    %79 = vector.load %arg14[%c100, %c0_91] : memref<162x32xf32, #tpu.memory_space<vmem>>, vector<7x32xf32>
    %c63_92 = arith.constant 63 : index
    %c0_93 = arith.constant 0 : index
    %80 = vector.load %arg16[%c63_92, %c0_93] : memref<98x32xf32, #tpu.memory_space<vmem>>, vector<7x32xf32>
    tpu.vector_store %arg16[%c63_92, %c0_93], %79 {strides = array<i32>} : memref<98x32xf32, #tpu.memory_space<vmem>>, vector<7x32xf32>,
    %c109 = arith.constant 109 : index
    %c0_94 = arith.constant 0 : index
    %81 = vector.load %arg14[%c109, %c0_94] : memref<162x32xf32, #tpu.memory_space<vmem>>, vector<7x32xf32>
    %c70_95 = arith.constant 70 : index
    %c0_96 = arith.constant 0 : index
    %82 = vector.load %arg16[%c70_95, %c0_96] : memref<98x32xf32, #tpu.memory_space<vmem>>, vector<7x32xf32>
    tpu.vector_store %arg16[%c70_95, %c0_96], %81 {strides = array<i32>} : memref<98x32xf32, #tpu.memory_space<vmem>>, vector<7x32xf32>,
    %c118 = arith.constant 118 : index
    %c0_97 = arith.constant 0 : index
    %83 = vector.load %arg14[%c118, %c0_97] : memref<162x32xf32, #tpu.memory_space<vmem>>, vector<7x32xf32>
    %c77_98 = arith.constant 77 : index
    %c0_99 = arith.constant 0 : index
    %84 = vector.load %arg16[%c77_98, %c0_99] : memref<98x32xf32, #tpu.memory_space<vmem>>, vector<7x32xf32>
    tpu.vector_store %arg16[%c77_98, %c0_99], %83 {strides = array<i32>} : memref<98x32xf32, #tpu.memory_space<vmem>>, vector<7x32xf32>,
    %c127 = arith.constant 127 : index
    %c0_100 = arith.constant 0 : index
    %85 = vector.load %arg14[%c127, %c0_100] : memref<162x32xf32, #tpu.memory_space<vmem>>, vector<7x32xf32>
    %c84_101 = arith.constant 84 : index
    %c0_102 = arith.constant 0 : index
    %86 = vector.load %arg16[%c84_101, %c0_102] : memref<98x32xf32, #tpu.memory_space<vmem>>, vector<7x32xf32>
    tpu.vector_store %arg16[%c84_101, %c0_102], %85 {strides = array<i32>} : memref<98x32xf32, #tpu.memory_space<vmem>>, vector<7x32xf32>,
    %c136 = arith.constant 136 : index
    %c0_103 = arith.constant 0 : index
    %87 = vector.load %arg14[%c136, %c0_103] : memref<162x32xf32, #tpu.memory_space<vmem>>, vector<7x32xf32>
    %c91_104 = arith.constant 91 : index
    %c0_105 = arith.constant 0 : index
    %88 = vector.load %arg16[%c91_104, %c0_105] : memref<98x32xf32, #tpu.memory_space<vmem>>, vector<7x32xf32>
    tpu.vector_store %arg16[%c91_104, %c0_105], %87 {strides = array<i32>} : memref<98x32xf32, #tpu.memory_space<vmem>>, vector<7x32xf32>,
    %c0_106 = arith.constant 0 : index
    %c0_107 = arith.constant 0 : index
    %89 = vector.load %arg16[%c0_106, %c0_107] : memref<98x32xf32, #tpu.memory_space<vmem>>, vector<98x32xf32>
    %c1_108 = arith.constant 1 : index
    %c0_109 = arith.constant 0 : index
    %c0_110 = arith.constant 0 : index
    %90 = vector.load %arg9[%c1_108, %c0_109, %c0_110] : memref<9x32x32xf32, #tpu.memory_space<vmem>>, vector<1x32x32xf32>
    %91 = vector.shape_cast %90 : vector<1x32x32xf32> to vector<32x32xf32>
    %cst_111 = arith.constant dense<0.000000e+00> : vector<98x32xf32>
    %92 = tpu.matmul %89, %91, %cst_111 {dimension_numbers = #tpu.dot_dimension_numbers<[1], [0], [0], [1], [0, 0, 1, 1], [], []>} : vector<98x32xf32>, vector<32x32xf32>, vector<98x32xf32> -> vector<98x32xf32>
    %93 = arith.addf %60, %92 : vector<98x32xf32>
    %c2 = arith.constant 2 : index
    %c0_112 = arith.constant 0 : index
    %94 = vector.load %arg14[%c2, %c0_112] : memref<162x32xf32, #tpu.memory_space<vmem>>, vector<7x32xf32>
    %c0_113 = arith.constant 0 : index
    %c0_114 = arith.constant 0 : index
    %95 = vector.load %arg16[%c0_113, %c0_114] : memref<98x32xf32, #tpu.memory_space<vmem>>, vector<7x32xf32>
    tpu.vector_store %arg16[%c0_113, %c0_114], %94 {strides = array<i32>} : memref<98x32xf32, #tpu.memory_space<vmem>>, vector<7x32xf32>,
    %c11 = arith.constant 11 : index
    %c0_115 = arith.constant 0 : index
    %96 = vector.load %arg14[%c11, %c0_115] : memref<162x32xf32, #tpu.memory_space<vmem>>, vector<7x32xf32>
    %c7_116 = arith.constant 7 : index
    %c0_117 = arith.constant 0 : index
    %97 = vector.load %arg16[%c7_116, %c0_117] : memref<98x32xf32, #tpu.memory_space<vmem>>, vector<7x32xf32>
    tpu.vector_store %arg16[%c7_116, %c0_117], %96 {strides = array<i32>} : memref<98x32xf32, #tpu.memory_space<vmem>>, vector<7x32xf32>,
    %c20 = arith.constant 20 : index
    %c0_118 = arith.constant 0 : index
    %98 = vector.load %arg14[%c20, %c0_118] : memref<162x32xf32, #tpu.memory_space<vmem>>, vector<7x32xf32>
    %c14_119 = arith.constant 14 : index
    %c0_120 = arith.constant 0 : index
    %99 = vector.load %arg16[%c14_119, %c0_120] : memref<98x32xf32, #tpu.memory_space<vmem>>, vector<7x32xf32>
    tpu.vector_store %arg16[%c14_119, %c0_120], %98 {strides = array<i32>} : memref<98x32xf32, #tpu.memory_space<vmem>>, vector<7x32xf32>,
    %c29 = arith.constant 29 : index
    %c0_121 = arith.constant 0 : index
    %100 = vector.load %arg14[%c29, %c0_121] : memref<162x32xf32, #tpu.memory_space<vmem>>, vector<7x32xf32>
    %c21_122 = arith.constant 21 : index
    %c0_123 = arith.constant 0 : index
    %101 = vector.load %arg16[%c21_122, %c0_123] : memref<98x32xf32, #tpu.memory_space<vmem>>, vector<7x32xf32>
    tpu.vector_store %arg16[%c21_122, %c0_123], %100 {strides = array<i32>} : memref<98x32xf32, #tpu.memory_space<vmem>>, vector<7x32xf32>,
    %c38 = arith.constant 38 : index
    %c0_124 = arith.constant 0 : index
    %102 = vector.load %arg14[%c38, %c0_124] : memref<162x32xf32, #tpu.memory_space<vmem>>, vector<7x32xf32>
    %c28_125 = arith.constant 28 : index
    %c0_126 = arith.constant 0 : index
    %103 = vector.load %arg16[%c28_125, %c0_126] : memref<98x32xf32, #tpu.memory_space<vmem>>, vector<7x32xf32>
    tpu.vector_store %arg16[%c28_125, %c0_126], %102 {strides = array<i32>} : memref<98x32xf32, #tpu.memory_space<vmem>>, vector<7x32xf32>,
    %c47 = arith.constant 47 : index
    %c0_127 = arith.constant 0 : index
    %104 = vector.load %arg14[%c47, %c0_127] : memref<162x32xf32, #tpu.memory_space<vmem>>, vector<7x32xf32>
    %c35_128 = arith.constant 35 : index
    %c0_129 = arith.constant 0 : index
    %105 = vector.load %arg16[%c35_128, %c0_129] : memref<98x32xf32, #tpu.memory_space<vmem>>, vector<7x32xf32>
    tpu.vector_store %arg16[%c35_128, %c0_129], %104 {strides = array<i32>} : memref<98x32xf32, #tpu.memory_space<vmem>>, vector<7x32xf32>,
    %c56_130 = arith.constant 56 : index
    %c0_131 = arith.constant 0 : index
    %106 = vector.load %arg14[%c56_130, %c0_131] : memref<162x32xf32, #tpu.memory_space<vmem>>, vector<7x32xf32>
    %c42_132 = arith.constant 42 : index
    %c0_133 = arith.constant 0 : index
    %107 = vector.load %arg16[%c42_132, %c0_133] : memref<98x32xf32, #tpu.memory_space<vmem>>, vector<7x32xf32>
    tpu.vector_store %arg16[%c42_132, %c0_133], %106 {strides = array<i32>} : memref<98x32xf32, #tpu.memory_space<vmem>>, vector<7x32xf32>,
    %c83 = arith.constant 83 : index
    %c0_134 = arith.constant 0 : index
    %108 = vector.load %arg14[%c83, %c0_134] : memref<162x32xf32, #tpu.memory_space<vmem>>, vector<7x32xf32>
    %c49_135 = arith.constant 49 : index
    %c0_136 = arith.constant 0 : index
    %109 = vector.load %arg16[%c49_135, %c0_136] : memref<98x32xf32, #tpu.memory_space<vmem>>, vector<7x32xf32>
    tpu.vector_store %arg16[%c49_135, %c0_136], %108 {strides = array<i32>} : memref<98x32xf32, #tpu.memory_space<vmem>>, vector<7x32xf32>,
    %c92 = arith.constant 92 : index
    %c0_137 = arith.constant 0 : index
    %110 = vector.load %arg14[%c92, %c0_137] : memref<162x32xf32, #tpu.memory_space<vmem>>, vector<7x32xf32>
    %c56_138 = arith.constant 56 : index
    %c0_139 = arith.constant 0 : index
    %111 = vector.load %arg16[%c56_138, %c0_139] : memref<98x32xf32, #tpu.memory_space<vmem>>, vector<7x32xf32>
    tpu.vector_store %arg16[%c56_138, %c0_139], %110 {strides = array<i32>} : memref<98x32xf32, #tpu.memory_space<vmem>>, vector<7x32xf32>,
    %c101 = arith.constant 101 : index
    %c0_140 = arith.constant 0 : index
    %112 = vector.load %arg14[%c101, %c0_140] : memref<162x32xf32, #tpu.memory_space<vmem>>, vector<7x32xf32>
    %c63_141 = arith.constant 63 : index
    %c0_142 = arith.constant 0 : index
    %113 = vector.load %arg16[%c63_141, %c0_142] : memref<98x32xf32, #tpu.memory_space<vmem>>, vector<7x32xf32>
    tpu.vector_store %arg16[%c63_141, %c0_142], %112 {strides = array<i32>} : memref<98x32xf32, #tpu.memory_space<vmem>>, vector<7x32xf32>,
    %c110 = arith.constant 110 : index
    %c0_143 = arith.constant 0 : index
    %114 = vector.load %arg14[%c110, %c0_143] : memref<162x32xf32, #tpu.memory_space<vmem>>, vector<7x32xf32>
    %c70_144 = arith.constant 70 : index
    %c0_145 = arith.constant 0 : index
    %115 = vector.load %arg16[%c70_144, %c0_145] : memref<98x32xf32, #tpu.memory_space<vmem>>, vector<7x32xf32>
    tpu.vector_store %arg16[%c70_144, %c0_145], %114 {strides = array<i32>} : memref<98x32xf32, #tpu.memory_space<vmem>>, vector<7x32xf32>,
    %c119 = arith.constant 119 : index
    %c0_146 = arith.constant 0 : index
    %116 = vector.load %arg14[%c119, %c0_146] : memref<162x32xf32, #tpu.memory_space<vmem>>, vector<7x32xf32>
    %c77_147 = arith.constant 77 : index
    %c0_148 = arith.constant 0 : index
    %117 = vector.load %arg16[%c77_147, %c0_148] : memref<98x32xf32, #tpu.memory_space<vmem>>, vector<7x32xf32>
    tpu.vector_store %arg16[%c77_147, %c0_148], %116 {strides = array<i32>} : memref<98x32xf32, #tpu.memory_space<vmem>>, vector<7x32xf32>,
    %c128 = arith.constant 128 : index
    %c0_149 = arith.constant 0 : index
    %118 = vector.load %arg14[%c128, %c0_149] : memref<162x32xf32, #tpu.memory_space<vmem>>, vector<7x32xf32>
    %c84_150 = arith.constant 84 : index
    %c0_151 = arith.constant 0 : index
    %119 = vector.load %arg16[%c84_150, %c0_151] : memref<98x32xf32, #tpu.memory_space<vmem>>, vector<7x32xf32>
    tpu.vector_store %arg16[%c84_150, %c0_151], %118 {strides = array<i32>} : memref<98x32xf32, #tpu.memory_space<vmem>>, vector<7x32xf32>,
    %c137 = arith.constant 137 : index
    %c0_152 = arith.constant 0 : index
    %120 = vector.load %arg14[%c137, %c0_152] : memref<162x32xf32, #tpu.memory_space<vmem>>, vector<7x32xf32>
    %c91_153 = arith.constant 91 : index
    %c0_154 = arith.constant 0 : index
    %121 = vector.load %arg16[%c91_153, %c0_154] : memref<98x32xf32, #tpu.memory_space<vmem>>, vector<7x32xf32>
    tpu.vector_store %arg16[%c91_153, %c0_154], %120 {strides = array<i32>} : memref<98x32xf32, #tpu.memory_space<vmem>>, vector<7x32xf32>,
    %c0_155 = arith.constant 0 : index
    %c0_156 = arith.constant 0 : index
    %122 = vector.load %arg16[%c0_155, %c0_156] : memref<98x32xf32, #tpu.memory_space<vmem>>, vector<98x32xf32>
    %c2_157 = arith.constant 2 : index
    %c0_158 = arith.constant 0 : index
    %c0_159 = arith.constant 0 : index
    %123 = vector.load %arg9[%c2_157, %c0_158, %c0_159] : memref<9x32x32xf32, #tpu.memory_space<vmem>>, vector<1x32x32xf32>
    %124 = vector.shape_cast %123 : vector<1x32x32xf32> to vector<32x32xf32>
    %cst_160 = arith.constant dense<0.000000e+00> : vector<98x32xf32>
    %125 = tpu.matmul %122, %124, %cst_160 {dimension_numbers = #tpu.dot_dimension_numbers<[1], [0], [0], [1], [0, 0, 1, 1], [], []>} : vector<98x32xf32>, vector<32x32xf32>, vector<98x32xf32> -> vector<98x32xf32>
    %126 = arith.addf %93, %125 : vector<98x32xf32>
    %c9_161 = arith.constant 9 : index
    %c0_162 = arith.constant 0 : index
    %127 = vector.load %arg14[%c9_161, %c0_162] : memref<162x32xf32, #tpu.memory_space<vmem>>, vector<7x32xf32>
    %c0_163 = arith.constant 0 : index
    %c0_164 = arith.constant 0 : index
    %128 = vector.load %arg16[%c0_163, %c0_164] : memref<98x32xf32, #tpu.memory_space<vmem>>, vector<7x32xf32>
    tpu.vector_store %arg16[%c0_163, %c0_164], %127 {strides = array<i32>} : memref<98x32xf32, #tpu.memory_space<vmem>>, vector<7x32xf32>,
    %c18_165 = arith.constant 18 : index
    %c0_166 = arith.constant 0 : index
    %129 = vector.load %arg14[%c18_165, %c0_166] : memref<162x32xf32, #tpu.memory_space<vmem>>, vector<7x32xf32>
    %c7_167 = arith.constant 7 : index
    %c0_168 = arith.constant 0 : index
    %130 = vector.load %arg16[%c7_167, %c0_168] : memref<98x32xf32, #tpu.memory_space<vmem>>, vector<7x32xf32>
    tpu.vector_store %arg16[%c7_167, %c0_168], %129 {strides = array<i32>} : memref<98x32xf32, #tpu.memory_space<vmem>>, vector<7x32xf32>,
    %c27_169 = arith.constant 27 : index
    %c0_170 = arith.constant 0 : index
    %131 = vector.load %arg14[%c27_169, %c0_170] : memref<162x32xf32, #tpu.memory_space<vmem>>, vector<7x32xf32>
    %c14_171 = arith.constant 14 : index
    %c0_172 = arith.constant 0 : index
    %132 = vector.load %arg16[%c14_171, %c0_172] : memref<98x32xf32, #tpu.memory_space<vmem>>, vector<7x32xf32>
    tpu.vector_store %arg16[%c14_171, %c0_172], %131 {strides = array<i32>} : memref<98x32xf32, #tpu.memory_space<vmem>>, vector<7x32xf32>,
    %c36_173 = arith.constant 36 : index
    %c0_174 = arith.constant 0 : index
    %133 = vector.load %arg14[%c36_173, %c0_174] : memref<162x32xf32, #tpu.memory_space<vmem>>, vector<7x32xf32>
    %c21_175 = arith.constant 21 : index
    %c0_176 = arith.constant 0 : index
    %134 = vector.load %arg16[%c21_175, %c0_176] : memref<98x32xf32, #tpu.memory_space<vmem>>, vector<7x32xf32>
    tpu.vector_store %arg16[%c21_175, %c0_176], %133 {strides = array<i32>} : memref<98x32xf32, #tpu.memory_space<vmem>>, vector<7x32xf32>,
    %c45_177 = arith.constant 45 : index
    %c0_178 = arith.constant 0 : index
    %135 = vector.load %arg14[%c45_177, %c0_178] : memref<162x32xf32, #tpu.memory_space<vmem>>, vector<7x32xf32>
    %c28_179 = arith.constant 28 : index
    %c0_180 = arith.constant 0 : index
    %136 = vector.load %arg16[%c28_179, %c0_180] : memref<98x32xf32, #tpu.memory_space<vmem>>, vector<7x32xf32>
    tpu.vector_store %arg16[%c28_179, %c0_180], %135 {strides = array<i32>} : memref<98x32xf32, #tpu.memory_space<vmem>>, vector<7x32xf32>,
    %c54_181 = arith.constant 54 : index
    %c0_182 = arith.constant 0 : index
    %137 = vector.load %arg14[%c54_181, %c0_182] : memref<162x32xf32, #tpu.memory_space<vmem>>, vector<7x32xf32>
    %c35_183 = arith.constant 35 : index
    %c0_184 = arith.constant 0 : index
    %138 = vector.load %arg16[%c35_183, %c0_184] : memref<98x32xf32, #tpu.memory_space<vmem>>, vector<7x32xf32>
    tpu.vector_store %arg16[%c35_183, %c0_184], %137 {strides = array<i32>} : memref<98x32xf32, #tpu.memory_space<vmem>>, vector<7x32xf32>,
    %c63_185 = arith.constant 63 : index
    %c0_186 = arith.constant 0 : index
    %139 = vector.load %arg14[%c63_185, %c0_186] : memref<162x32xf32, #tpu.memory_space<vmem>>, vector<7x32xf32>
    %c42_187 = arith.constant 42 : index
    %c0_188 = arith.constant 0 : index
    %140 = vector.load %arg16[%c42_187, %c0_188] : memref<98x32xf32, #tpu.memory_space<vmem>>, vector<7x32xf32>
    tpu.vector_store %arg16[%c42_187, %c0_188], %139 {strides = array<i32>} : memref<98x32xf32, #tpu.memory_space<vmem>>, vector<7x32xf32>,
    %c90_189 = arith.constant 90 : index
    %c0_190 = arith.constant 0 : index
    %141 = vector.load %arg14[%c90_189, %c0_190] : memref<162x32xf32, #tpu.memory_space<vmem>>, vector<7x32xf32>
    %c49_191 = arith.constant 49 : index
    %c0_192 = arith.constant 0 : index
    %142 = vector.load %arg16[%c49_191, %c0_192] : memref<98x32xf32, #tpu.memory_space<vmem>>, vector<7x32xf32>
    tpu.vector_store %arg16[%c49_191, %c0_192], %141 {strides = array<i32>} : memref<98x32xf32, #tpu.memory_space<vmem>>, vector<7x32xf32>,
    %c99_193 = arith.constant 99 : index
    %c0_194 = arith.constant 0 : index
    %143 = vector.load %arg14[%c99_193, %c0_194] : memref<162x32xf32, #tpu.memory_space<vmem>>, vector<7x32xf32>
    %c56_195 = arith.constant 56 : index
    %c0_196 = arith.constant 0 : index
    %144 = vector.load %arg16[%c56_195, %c0_196] : memref<98x32xf32, #tpu.memory_space<vmem>>, vector<7x32xf32>
    tpu.vector_store %arg16[%c56_195, %c0_196], %143 {strides = array<i32>} : memref<98x32xf32, #tpu.memory_space<vmem>>, vector<7x32xf32>,
    %c108_197 = arith.constant 108 : index
    %c0_198 = arith.constant 0 : index
    %145 = vector.load %arg14[%c108_197, %c0_198] : memref<162x32xf32, #tpu.memory_space<vmem>>, vector<7x32xf32>
    %c63_199 = arith.constant 63 : index
    %c0_200 = arith.constant 0 : index
    %146 = vector.load %arg16[%c63_199, %c0_200] : memref<98x32xf32, #tpu.memory_space<vmem>>, vector<7x32xf32>
    tpu.vector_store %arg16[%c63_199, %c0_200], %145 {strides = array<i32>} : memref<98x32xf32, #tpu.memory_space<vmem>>, vector<7x32xf32>,
    %c117_201 = arith.constant 117 : index
    %c0_202 = arith.constant 0 : index
    %147 = vector.load %arg14[%c117_201, %c0_202] : memref<162x32xf32, #tpu.memory_space<vmem>>, vector<7x32xf32>
    %c70_203 = arith.constant 70 : index
    %c0_204 = arith.constant 0 : index
    %148 = vector.load %arg16[%c70_203, %c0_204] : memref<98x32xf32, #tpu.memory_space<vmem>>, vector<7x32xf32>
    tpu.vector_store %arg16[%c70_203, %c0_204], %147 {strides = array<i32>} : memref<98x32xf32, #tpu.memory_space<vmem>>, vector<7x32xf32>,
    %c126_205 = arith.constant 126 : index
    %c0_206 = arith.constant 0 : index
    %149 = vector.load %arg14[%c126_205, %c0_206] : memref<162x32xf32, #tpu.memory_space<vmem>>, vector<7x32xf32>
    %c77_207 = arith.constant 77 : index
    %c0_208 = arith.constant 0 : index
    %150 = vector.load %arg16[%c77_207, %c0_208] : memref<98x32xf32, #tpu.memory_space<vmem>>, vector<7x32xf32>
    tpu.vector_store %arg16[%c77_207, %c0_208], %149 {strides = array<i32>} : memref<98x32xf32, #tpu.memory_space<vmem>>, vector<7x32xf32>,
    %c135_209 = arith.constant 135 : index
    %c0_210 = arith.constant 0 : index
    %151 = vector.load %arg14[%c135_209, %c0_210] : memref<162x32xf32, #tpu.memory_space<vmem>>, vector<7x32xf32>
    %c84_211 = arith.constant 84 : index
    %c0_212 = arith.constant 0 : index
    %152 = vector.load %arg16[%c84_211, %c0_212] : memref<98x32xf32, #tpu.memory_space<vmem>>, vector<7x32xf32>
    tpu.vector_store %arg16[%c84_211, %c0_212], %151 {strides = array<i32>} : memref<98x32xf32, #tpu.memory_space<vmem>>, vector<7x32xf32>,
    %c144 = arith.constant 144 : index
    %c0_213 = arith.constant 0 : index
    %153 = vector.load %arg14[%c144, %c0_213] : memref<162x32xf32, #tpu.memory_space<vmem>>, vector<7x32xf32>
    %c91_214 = arith.constant 91 : index
    %c0_215 = arith.constant 0 : index
    %154 = vector.load %arg16[%c91_214, %c0_215] : memref<98x32xf32, #tpu.memory_space<vmem>>, vector<7x32xf32>
    tpu.vector_store %arg16[%c91_214, %c0_215], %153 {strides = array<i32>} : memref<98x32xf32, #tpu.memory_space<vmem>>, vector<7x32xf32>,
    %c0_216 = arith.constant 0 : index
    %c0_217 = arith.constant 0 : index
    %155 = vector.load %arg16[%c0_216, %c0_217] : memref<98x32xf32, #tpu.memory_space<vmem>>, vector<98x32xf32>
    %c3 = arith.constant 3 : index
    %c0_218 = arith.constant 0 : index
    %c0_219 = arith.constant 0 : index
    %156 = vector.load %arg9[%c3, %c0_218, %c0_219] : memref<9x32x32xf32, #tpu.memory_space<vmem>>, vector<1x32x32xf32>
    %157 = vector.shape_cast %156 : vector<1x32x32xf32> to vector<32x32xf32>
    %cst_220 = arith.constant dense<0.000000e+00> : vector<98x32xf32>
    %158 = tpu.matmul %155, %157, %cst_220 {dimension_numbers = #tpu.dot_dimension_numbers<[1], [0], [0], [1], [0, 0, 1, 1], [], []>} : vector<98x32xf32>, vector<32x32xf32>, vector<98x32xf32> -> vector<98x32xf32>
    %159 = arith.addf %126, %158 : vector<98x32xf32>
    %c10_221 = arith.constant 10 : index
    %c0_222 = arith.constant 0 : index
    %160 = vector.load %arg14[%c10_221, %c0_222] : memref<162x32xf32, #tpu.memory_space<vmem>>, vector<7x32xf32>
    %c0_223 = arith.constant 0 : index
    %c0_224 = arith.constant 0 : index
    %161 = vector.load %arg16[%c0_223, %c0_224] : memref<98x32xf32, #tpu.memory_space<vmem>>, vector<7x32xf32>
    tpu.vector_store %arg16[%c0_223, %c0_224], %160 {strides = array<i32>} : memref<98x32xf32, #tpu.memory_space<vmem>>, vector<7x32xf32>,
    %c19_225 = arith.constant 19 : index
    %c0_226 = arith.constant 0 : index
    %162 = vector.load %arg14[%c19_225, %c0_226] : memref<162x32xf32, #tpu.memory_space<vmem>>, vector<7x32xf32>
    %c7_227 = arith.constant 7 : index
    %c0_228 = arith.constant 0 : index
    %163 = vector.load %arg16[%c7_227, %c0_228] : memref<98x32xf32, #tpu.memory_space<vmem>>, vector<7x32xf32>
    tpu.vector_store %arg16[%c7_227, %c0_228], %162 {strides = array<i32>} : memref<98x32xf32, #tpu.memory_space<vmem>>, vector<7x32xf32>,
    %c28_229 = arith.constant 28 : index
    %c0_230 = arith.constant 0 : index
    %164 = vector.load %arg14[%c28_229, %c0_230] : memref<162x32xf32, #tpu.memory_space<vmem>>, vector<7x32xf32>
    %c14_231 = arith.constant 14 : index
    %c0_232 = arith.constant 0 : index
    %165 = vector.load %arg16[%c14_231, %c0_232] : memref<98x32xf32, #tpu.memory_space<vmem>>, vector<7x32xf32>
    tpu.vector_store %arg16[%c14_231, %c0_232], %164 {strides = array<i32>} : memref<98x32xf32, #tpu.memory_space<vmem>>, vector<7x32xf32>,
    %c37_233 = arith.constant 37 : index
    %c0_234 = arith.constant 0 : index
    %166 = vector.load %arg14[%c37_233, %c0_234] : memref<162x32xf32, #tpu.memory_space<vmem>>, vector<7x32xf32>
    %c21_235 = arith.constant 21 : index
    %c0_236 = arith.constant 0 : index
    %167 = vector.load %arg16[%c21_235, %c0_236] : memref<98x32xf32, #tpu.memory_space<vmem>>, vector<7x32xf32>
    tpu.vector_store %arg16[%c21_235, %c0_236], %166 {strides = array<i32>} : memref<98x32xf32, #tpu.memory_space<vmem>>, vector<7x32xf32>,
    %c46_237 = arith.constant 46 : index
    %c0_238 = arith.constant 0 : index
    %168 = vector.load %arg14[%c46_237, %c0_238] : memref<162x32xf32, #tpu.memory_space<vmem>>, vector<7x32xf32>
    %c28_239 = arith.constant 28 : index
    %c0_240 = arith.constant 0 : index
    %169 = vector.load %arg16[%c28_239, %c0_240] : memref<98x32xf32, #tpu.memory_space<vmem>>, vector<7x32xf32>
    tpu.vector_store %arg16[%c28_239, %c0_240], %168 {strides = array<i32>} : memref<98x32xf32, #tpu.memory_space<vmem>>, vector<7x32xf32>,
    %c55_241 = arith.constant 55 : index
    %c0_242 = arith.constant 0 : index
    %170 = vector.load %arg14[%c55_241, %c0_242] : memref<162x32xf32, #tpu.memory_space<vmem>>, vector<7x32xf32>
    %c35_243 = arith.constant 35 : index
    %c0_244 = arith.constant 0 : index
    %171 = vector.load %arg16[%c35_243, %c0_244] : memref<98x32xf32, #tpu.memory_space<vmem>>, vector<7x32xf32>
    tpu.vector_store %arg16[%c35_243, %c0_244], %170 {strides = array<i32>} : memref<98x32xf32, #tpu.memory_space<vmem>>, vector<7x32xf32>,
    %c64 = arith.constant 64 : index
    %c0_245 = arith.constant 0 : index
    %172 = vector.load %arg14[%c64, %c0_245] : memref<162x32xf32, #tpu.memory_space<vmem>>, vector<7x32xf32>
    %c42_246 = arith.constant 42 : index
    %c0_247 = arith.constant 0 : index
    %173 = vector.load %arg16[%c42_246, %c0_247] : memref<98x32xf32, #tpu.memory_space<vmem>>, vector<7x32xf32>
    tpu.vector_store %arg16[%c42_246, %c0_247], %172 {strides = array<i32>} : memref<98x32xf32, #tpu.memory_space<vmem>>, vector<7x32xf32>,
    %c91_248 = arith.constant 91 : index
    %c0_249 = arith.constant 0 : index
    %174 = vector.load %arg14[%c91_248, %c0_249] : memref<162x32xf32, #tpu.memory_space<vmem>>, vector<7x32xf32>
    %c49_250 = arith.constant 49 : index
    %c0_251 = arith.constant 0 : index
    %175 = vector.load %arg16[%c49_250, %c0_251] : memref<98x32xf32, #tpu.memory_space<vmem>>, vector<7x32xf32>
    tpu.vector_store %arg16[%c49_250, %c0_251], %174 {strides = array<i32>} : memref<98x32xf32, #tpu.memory_space<vmem>>, vector<7x32xf32>,
    %c100_252 = arith.constant 100 : index
    %c0_253 = arith.constant 0 : index
    %176 = vector.load %arg14[%c100_252, %c0_253] : memref<162x32xf32, #tpu.memory_space<vmem>>, vector<7x32xf32>
    %c56_254 = arith.constant 56 : index
    %c0_255 = arith.constant 0 : index
    %177 = vector.load %arg16[%c56_254, %c0_255] : memref<98x32xf32, #tpu.memory_space<vmem>>, vector<7x32xf32>
    tpu.vector_store %arg16[%c56_254, %c0_255], %176 {strides = array<i32>} : memref<98x32xf32, #tpu.memory_space<vmem>>, vector<7x32xf32>,
    %c109_256 = arith.constant 109 : index
    %c0_257 = arith.constant 0 : index
    %178 = vector.load %arg14[%c109_256, %c0_257] : memref<162x32xf32, #tpu.memory_space<vmem>>, vector<7x32xf32>
    %c63_258 = arith.constant 63 : index
    %c0_259 = arith.constant 0 : index
    %179 = vector.load %arg16[%c63_258, %c0_259] : memref<98x32xf32, #tpu.memory_space<vmem>>, vector<7x32xf32>
    tpu.vector_store %arg16[%c63_258, %c0_259], %178 {strides = array<i32>} : memref<98x32xf32, #tpu.memory_space<vmem>>, vector<7x32xf32>,
    %c118_260 = arith.constant 118 : index
    %c0_261 = arith.constant 0 : index
    %180 = vector.load %arg14[%c118_260, %c0_261] : memref<162x32xf32, #tpu.memory_space<vmem>>, vector<7x32xf32>
    %c70_262 = arith.constant 70 : index
    %c0_263 = arith.constant 0 : index
    %181 = vector.load %arg16[%c70_262, %c0_263] : memref<98x32xf32, #tpu.memory_space<vmem>>, vector<7x32xf32>
    tpu.vector_store %arg16[%c70_262, %c0_263], %180 {strides = array<i32>} : memref<98x32xf32, #tpu.memory_space<vmem>>, vector<7x32xf32>,
    %c127_264 = arith.constant 127 : index
    %c0_265 = arith.constant 0 : index
    %182 = vector.load %arg14[%c127_264, %c0_265] : memref<162x32xf32, #tpu.memory_space<vmem>>, vector<7x32xf32>
    %c77_266 = arith.constant 77 : index
    %c0_267 = arith.constant 0 : index
    %183 = vector.load %arg16[%c77_266, %c0_267] : memref<98x32xf32, #tpu.memory_space<vmem>>, vector<7x32xf32>
    tpu.vector_store %arg16[%c77_266, %c0_267], %182 {strides = array<i32>} : memref<98x32xf32, #tpu.memory_space<vmem>>, vector<7x32xf32>,
    %c136_268 = arith.constant 136 : index
    %c0_269 = arith.constant 0 : index
    %184 = vector.load %arg14[%c136_268, %c0_269] : memref<162x32xf32, #tpu.memory_space<vmem>>, vector<7x32xf32>
    %c84_270 = arith.constant 84 : index
    %c0_271 = arith.constant 0 : index
    %185 = vector.load %arg16[%c84_270, %c0_271] : memref<98x32xf32, #tpu.memory_space<vmem>>, vector<7x32xf32>
    tpu.vector_store %arg16[%c84_270, %c0_271], %184 {strides = array<i32>} : memref<98x32xf32, #tpu.memory_space<vmem>>, vector<7x32xf32>,
    %c145 = arith.constant 145 : index
    %c0_272 = arith.constant 0 : index
    %186 = vector.load %arg14[%c145, %c0_272] : memref<162x32xf32, #tpu.memory_space<vmem>>, vector<7x32xf32>
    %c91_273 = arith.constant 91 : index
    %c0_274 = arith.constant 0 : index
    %187 = vector.load %arg16[%c91_273, %c0_274] : memref<98x32xf32, #tpu.memory_space<vmem>>, vector<7x32xf32>
    tpu.vector_store %arg16[%c91_273, %c0_274], %186 {strides = array<i32>} : memref<98x32xf32, #tpu.memory_space<vmem>>, vector<7x32xf32>,
    %c0_275 = arith.constant 0 : index
    %c0_276 = arith.constant 0 : index
    %188 = vector.load %arg16[%c0_275, %c0_276] : memref<98x32xf32, #tpu.memory_space<vmem>>, vector<98x32xf32>
    %c4 = arith.constant 4 : index
    %c0_277 = arith.constant 0 : index
    %c0_278 = arith.constant 0 : index
    %189 = vector.load %arg9[%c4, %c0_277, %c0_278] : memref<9x32x32xf32, #tpu.memory_space<vmem>>, vector<1x32x32xf32>
    %190 = vector.shape_cast %189 : vector<1x32x32xf32> to vector<32x32xf32>
    %cst_279 = arith.constant dense<0.000000e+00> : vector<98x32xf32>
    %191 = tpu.matmul %188, %190, %cst_279 {dimension_numbers = #tpu.dot_dimension_numbers<[1], [0], [0], [1], [0, 0, 1, 1], [], []>} : vector<98x32xf32>, vector<32x32xf32>, vector<98x32xf32> -> vector<98x32xf32>
    %192 = arith.addf %159, %191 : vector<98x32xf32>
    %c11_280 = arith.constant 11 : index
    %c0_281 = arith.constant 0 : index
    %193 = vector.load %arg14[%c11_280, %c0_281] : memref<162x32xf32, #tpu.memory_space<vmem>>, vector<7x32xf32>
    %c0_282 = arith.constant 0 : index
    %c0_283 = arith.constant 0 : index
    %194 = vector.load %arg16[%c0_282, %c0_283] : memref<98x32xf32, #tpu.memory_space<vmem>>, vector<7x32xf32>
    tpu.vector_store %arg16[%c0_282, %c0_283], %193 {strides = array<i32>} : memref<98x32xf32, #tpu.memory_space<vmem>>, vector<7x32xf32>,
    %c20_284 = arith.constant 20 : index
    %c0_285 = arith.constant 0 : index
    %195 = vector.load %arg14[%c20_284, %c0_285] : memref<162x32xf32, #tpu.memory_space<vmem>>, vector<7x32xf32>
    %c7_286 = arith.constant 7 : index
    %c0_287 = arith.constant 0 : index
    %196 = vector.load %arg16[%c7_286, %c0_287] : memref<98x32xf32, #tpu.memory_space<vmem>>, vector<7x32xf32>
    tpu.vector_store %arg16[%c7_286, %c0_287], %195 {strides = array<i32>} : memref<98x32xf32, #tpu.memory_space<vmem>>, vector<7x32xf32>,
    %c29_288 = arith.constant 29 : index
    %c0_289 = arith.constant 0 : index
    %197 = vector.load %arg14[%c29_288, %c0_289] : memref<162x32xf32, #tpu.memory_space<vmem>>, vector<7x32xf32>
    %c14_290 = arith.constant 14 : index
    %c0_291 = arith.constant 0 : index
    %198 = vector.load %arg16[%c14_290, %c0_291] : memref<98x32xf32, #tpu.memory_space<vmem>>, vector<7x32xf32>
    tpu.vector_store %arg16[%c14_290, %c0_291], %197 {strides = array<i32>} : memref<98x32xf32, #tpu.memory_space<vmem>>, vector<7x32xf32>,
    %c38_292 = arith.constant 38 : index
    %c0_293 = arith.constant 0 : index
    %199 = vector.load %arg14[%c38_292, %c0_293] : memref<162x32xf32, #tpu.memory_space<vmem>>, vector<7x32xf32>
    %c21_294 = arith.constant 21 : index
    %c0_295 = arith.constant 0 : index
    %200 = vector.load %arg16[%c21_294, %c0_295] : memref<98x32xf32, #tpu.memory_space<vmem>>, vector<7x32xf32>
    tpu.vector_store %arg16[%c21_294, %c0_295], %199 {strides = array<i32>} : memref<98x32xf32, #tpu.memory_space<vmem>>, vector<7x32xf32>,
    %c47_296 = arith.constant 47 : index
    %c0_297 = arith.constant 0 : index
    %201 = vector.load %arg14[%c47_296, %c0_297] : memref<162x32xf32, #tpu.memory_space<vmem>>, vector<7x32xf32>
    %c28_298 = arith.constant 28 : index
    %c0_299 = arith.constant 0 : index
    %202 = vector.load %arg16[%c28_298, %c0_299] : memref<98x32xf32, #tpu.memory_space<vmem>>, vector<7x32xf32>
    tpu.vector_store %arg16[%c28_298, %c0_299], %201 {strides = array<i32>} : memref<98x32xf32, #tpu.memory_space<vmem>>, vector<7x32xf32>,
    %c56_300 = arith.constant 56 : index
    %c0_301 = arith.constant 0 : index
    %203 = vector.load %arg14[%c56_300, %c0_301] : memref<162x32xf32, #tpu.memory_space<vmem>>, vector<7x32xf32>
    %c35_302 = arith.constant 35 : index
    %c0_303 = arith.constant 0 : index
    %204 = vector.load %arg16[%c35_302, %c0_303] : memref<98x32xf32, #tpu.memory_space<vmem>>, vector<7x32xf32>
    tpu.vector_store %arg16[%c35_302, %c0_303], %203 {strides = array<i32>} : memref<98x32xf32, #tpu.memory_space<vmem>>, vector<7x32xf32>,
    %c65 = arith.constant 65 : index
    %c0_304 = arith.constant 0 : index
    %205 = vector.load %arg14[%c65, %c0_304] : memref<162x32xf32, #tpu.memory_space<vmem>>, vector<7x32xf32>
    %c42_305 = arith.constant 42 : index
    %c0_306 = arith.constant 0 : index
    %206 = vector.load %arg16[%c42_305, %c0_306] : memref<98x32xf32, #tpu.memory_space<vmem>>, vector<7x32xf32>
    tpu.vector_store %arg16[%c42_305, %c0_306], %205 {strides = array<i32>} : memref<98x32xf32, #tpu.memory_space<vmem>>, vector<7x32xf32>,
    %c92_307 = arith.constant 92 : index
    %c0_308 = arith.constant 0 : index
    %207 = vector.load %arg14[%c92_307, %c0_308] : memref<162x32xf32, #tpu.memory_space<vmem>>, vector<7x32xf32>
    %c49_309 = arith.constant 49 : index
    %c0_310 = arith.constant 0 : index
    %208 = vector.load %arg16[%c49_309, %c0_310] : memref<98x32xf32, #tpu.memory_space<vmem>>, vector<7x32xf32>
    tpu.vector_store %arg16[%c49_309, %c0_310], %207 {strides = array<i32>} : memref<98x32xf32, #tpu.memory_space<vmem>>, vector<7x32xf32>,
    %c101_311 = arith.constant 101 : index
    %c0_312 = arith.constant 0 : index
    %209 = vector.load %arg14[%c101_311, %c0_312] : memref<162x32xf32, #tpu.memory_space<vmem>>, vector<7x32xf32>
    %c56_313 = arith.constant 56 : index
    %c0_314 = arith.constant 0 : index
    %210 = vector.load %arg16[%c56_313, %c0_314] : memref<98x32xf32, #tpu.memory_space<vmem>>, vector<7x32xf32>
    tpu.vector_store %arg16[%c56_313, %c0_314], %209 {strides = array<i32>} : memref<98x32xf32, #tpu.memory_space<vmem>>, vector<7x32xf32>,
    %c110_315 = arith.constant 110 : index
    %c0_316 = arith.constant 0 : index
    %211 = vector.load %arg14[%c110_315, %c0_316] : memref<162x32xf32, #tpu.memory_space<vmem>>, vector<7x32xf32>
    %c63_317 = arith.constant 63 : index
    %c0_318 = arith.constant 0 : index
    %212 = vector.load %arg16[%c63_317, %c0_318] : memref<98x32xf32, #tpu.memory_space<vmem>>, vector<7x32xf32>
    tpu.vector_store %arg16[%c63_317, %c0_318], %211 {strides = array<i32>} : memref<98x32xf32, #tpu.memory_space<vmem>>, vector<7x32xf32>,
    %c119_319 = arith.constant 119 : index
    %c0_320 = arith.constant 0 : index
    %213 = vector.load %arg14[%c119_319, %c0_320] : memref<162x32xf32, #tpu.memory_space<vmem>>, vector<7x32xf32>
    %c70_321 = arith.constant 70 : index
    %c0_322 = arith.constant 0 : index
    %214 = vector.load %arg16[%c70_321, %c0_322] : memref<98x32xf32, #tpu.memory_space<vmem>>, vector<7x32xf32>
    tpu.vector_store %arg16[%c70_321, %c0_322], %213 {strides = array<i32>} : memref<98x32xf32, #tpu.memory_space<vmem>>, vector<7x32xf32>,
    %c128_323 = arith.constant 128 : index
    %c0_324 = arith.constant 0 : index
    %215 = vector.load %arg14[%c128_323, %c0_324] : memref<162x32xf32, #tpu.memory_space<vmem>>, vector<7x32xf32>
    %c77_325 = arith.constant 77 : index
    %c0_326 = arith.constant 0 : index
    %216 = vector.load %arg16[%c77_325, %c0_326] : memref<98x32xf32, #tpu.memory_space<vmem>>, vector<7x32xf32>
    tpu.vector_store %arg16[%c77_325, %c0_326], %215 {strides = array<i32>} : memref<98x32xf32, #tpu.memory_space<vmem>>, vector<7x32xf32>,
    %c137_327 = arith.constant 137 : index
    %c0_328 = arith.constant 0 : index
    %217 = vector.load %arg14[%c137_327, %c0_328] : memref<162x32xf32, #tpu.memory_space<vmem>>, vector<7x32xf32>
    %c84_329 = arith.constant 84 : index
    %c0_330 = arith.constant 0 : index
    %218 = vector.load %arg16[%c84_329, %c0_330] : memref<98x32xf32, #tpu.memory_space<vmem>>, vector<7x32xf32>
    tpu.vector_store %arg16[%c84_329, %c0_330], %217 {strides = array<i32>} : memref<98x32xf32, #tpu.memory_space<vmem>>, vector<7x32xf32>,
    %c146 = arith.constant 146 : index
    %c0_331 = arith.constant 0 : index
    %219 = vector.load %arg14[%c146, %c0_331] : memref<162x32xf32, #tpu.memory_space<vmem>>, vector<7x32xf32>
    %c91_332 = arith.constant 91 : index
    %c0_333 = arith.constant 0 : index
    %220 = vector.load %arg16[%c91_332, %c0_333] : memref<98x32xf32, #tpu.memory_space<vmem>>, vector<7x32xf32>
    tpu.vector_store %arg16[%c91_332, %c0_333], %219 {strides = array<i32>} : memref<98x32xf32, #tpu.memory_space<vmem>>, vector<7x32xf32>,
    %c0_334 = arith.constant 0 : index
    %c0_335 = arith.constant 0 : index
    %221 = vector.load %arg16[%c0_334, %c0_335] : memref<98x32xf32, #tpu.memory_space<vmem>>, vector<98x32xf32>
    %c5 = arith.constant 5 : index
    %c0_336 = arith.constant 0 : index
    %c0_337 = arith.constant 0 : index
    %222 = vector.load %arg9[%c5, %c0_336, %c0_337] : memref<9x32x32xf32, #tpu.memory_space<vmem>>, vector<1x32x32xf32>
    %223 = vector.shape_cast %222 : vector<1x32x32xf32> to vector<32x32xf32>
    %cst_338 = arith.constant dense<0.000000e+00> : vector<98x32xf32>
    %224 = tpu.matmul %221, %223, %cst_338 {dimension_numbers = #tpu.dot_dimension_numbers<[1], [0], [0], [1], [0, 0, 1, 1], [], []>} : vector<98x32xf32>, vector<32x32xf32>, vector<98x32xf32> -> vector<98x32xf32>
    %225 = arith.addf %192, %224 : vector<98x32xf32>
    %c18_339 = arith.constant 18 : index
    %c0_340 = arith.constant 0 : index
    %226 = vector.load %arg14[%c18_339, %c0_340] : memref<162x32xf32, #tpu.memory_space<vmem>>, vector<7x32xf32>
    %c0_341 = arith.constant 0 : index
    %c0_342 = arith.constant 0 : index
    %227 = vector.load %arg16[%c0_341, %c0_342] : memref<98x32xf32, #tpu.memory_space<vmem>>, vector<7x32xf32>
    tpu.vector_store %arg16[%c0_341, %c0_342], %226 {strides = array<i32>} : memref<98x32xf32, #tpu.memory_space<vmem>>, vector<7x32xf32>,
    %c27_343 = arith.constant 27 : index
    %c0_344 = arith.constant 0 : index
    %228 = vector.load %arg14[%c27_343, %c0_344] : memref<162x32xf32, #tpu.memory_space<vmem>>, vector<7x32xf32>
    %c7_345 = arith.constant 7 : index
    %c0_346 = arith.constant 0 : index
    %229 = vector.load %arg16[%c7_345, %c0_346] : memref<98x32xf32, #tpu.memory_space<vmem>>, vector<7x32xf32>
    tpu.vector_store %arg16[%c7_345, %c0_346], %228 {strides = array<i32>} : memref<98x32xf32, #tpu.memory_space<vmem>>, vector<7x32xf32>,
    %c36_347 = arith.constant 36 : index
    %c0_348 = arith.constant 0 : index
    %230 = vector.load %arg14[%c36_347, %c0_348] : memref<162x32xf32, #tpu.memory_space<vmem>>, vector<7x32xf32>
    %c14_349 = arith.constant 14 : index
    %c0_350 = arith.constant 0 : index
    %231 = vector.load %arg16[%c14_349, %c0_350] : memref<98x32xf32, #tpu.memory_space<vmem>>, vector<7x32xf32>
    tpu.vector_store %arg16[%c14_349, %c0_350], %230 {strides = array<i32>} : memref<98x32xf32, #tpu.memory_space<vmem>>, vector<7x32xf32>,
    %c45_351 = arith.constant 45 : index
    %c0_352 = arith.constant 0 : index
    %232 = vector.load %arg14[%c45_351, %c0_352] : memref<162x32xf32, #tpu.memory_space<vmem>>, vector<7x32xf32>
    %c21_353 = arith.constant 21 : index
    %c0_354 = arith.constant 0 : index
    %233 = vector.load %arg16[%c21_353, %c0_354] : memref<98x32xf32, #tpu.memory_space<vmem>>, vector<7x32xf32>
    tpu.vector_store %arg16[%c21_353, %c0_354], %232 {strides = array<i32>} : memref<98x32xf32, #tpu.memory_space<vmem>>, vector<7x32xf32>,
    %c54_355 = arith.constant 54 : index
    %c0_356 = arith.constant 0 : index
    %234 = vector.load %arg14[%c54_355, %c0_356] : memref<162x32xf32, #tpu.memory_space<vmem>>, vector<7x32xf32>
    %c28_357 = arith.constant 28 : index
    %c0_358 = arith.constant 0 : index
    %235 = vector.load %arg16[%c28_357, %c0_358] : memref<98x32xf32, #tpu.memory_space<vmem>>, vector<7x32xf32>
    tpu.vector_store %arg16[%c28_357, %c0_358], %234 {strides = array<i32>} : memref<98x32xf32, #tpu.memory_space<vmem>>, vector<7x32xf32>,
    %c63_359 = arith.constant 63 : index
    %c0_360 = arith.constant 0 : index
    %236 = vector.load %arg14[%c63_359, %c0_360] : memref<162x32xf32, #tpu.memory_space<vmem>>, vector<7x32xf32>
    %c35_361 = arith.constant 35 : index
    %c0_362 = arith.constant 0 : index
    %237 = vector.load %arg16[%c35_361, %c0_362] : memref<98x32xf32, #tpu.memory_space<vmem>>, vector<7x32xf32>
    tpu.vector_store %arg16[%c35_361, %c0_362], %236 {strides = array<i32>} : memref<98x32xf32, #tpu.memory_space<vmem>>, vector<7x32xf32>,
    %c72 = arith.constant 72 : index
    %c0_363 = arith.constant 0 : index
    %238 = vector.load %arg14[%c72, %c0_363] : memref<162x32xf32, #tpu.memory_space<vmem>>, vector<7x32xf32>
    %c42_364 = arith.constant 42 : index
    %c0_365 = arith.constant 0 : index
    %239 = vector.load %arg16[%c42_364, %c0_365] : memref<98x32xf32, #tpu.memory_space<vmem>>, vector<7x32xf32>
    tpu.vector_store %arg16[%c42_364, %c0_365], %238 {strides = array<i32>} : memref<98x32xf32, #tpu.memory_space<vmem>>, vector<7x32xf32>,
    %c99_366 = arith.constant 99 : index
    %c0_367 = arith.constant 0 : index
    %240 = vector.load %arg14[%c99_366, %c0_367] : memref<162x32xf32, #tpu.memory_space<vmem>>, vector<7x32xf32>
    %c49_368 = arith.constant 49 : index
    %c0_369 = arith.constant 0 : index
    %241 = vector.load %arg16[%c49_368, %c0_369] : memref<98x32xf32, #tpu.memory_space<vmem>>, vector<7x32xf32>
    tpu.vector_store %arg16[%c49_368, %c0_369], %240 {strides = array<i32>} : memref<98x32xf32, #tpu.memory_space<vmem>>, vector<7x32xf32>,
    %c108_370 = arith.constant 108 : index
    %c0_371 = arith.constant 0 : index
    %242 = vector.load %arg14[%c108_370, %c0_371] : memref<162x32xf32, #tpu.memory_space<vmem>>, vector<7x32xf32>
    %c56_372 = arith.constant 56 : index
    %c0_373 = arith.constant 0 : index
    %243 = vector.load %arg16[%c56_372, %c0_373] : memref<98x32xf32, #tpu.memory_space<vmem>>, vector<7x32xf32>
    tpu.vector_store %arg16[%c56_372, %c0_373], %242 {strides = array<i32>} : memref<98x32xf32, #tpu.memory_space<vmem>>, vector<7x32xf32>,
    %c117_374 = arith.constant 117 : index
    %c0_375 = arith.constant 0 : index
    %244 = vector.load %arg14[%c117_374, %c0_375] : memref<162x32xf32, #tpu.memory_space<vmem>>, vector<7x32xf32>
    %c63_376 = arith.constant 63 : index
    %c0_377 = arith.constant 0 : index
    %245 = vector.load %arg16[%c63_376, %c0_377] : memref<98x32xf32, #tpu.memory_space<vmem>>, vector<7x32xf32>
    tpu.vector_store %arg16[%c63_376, %c0_377], %244 {strides = array<i32>} : memref<98x32xf32, #tpu.memory_space<vmem>>, vector<7x32xf32>,
    %c126_378 = arith.constant 126 : index
    %c0_379 = arith.constant 0 : index
    %246 = vector.load %arg14[%c126_378, %c0_379] : memref<162x32xf32, #tpu.memory_space<vmem>>, vector<7x32xf32>
    %c70_380 = arith.constant 70 : index
    %c0_381 = arith.constant 0 : index
    %247 = vector.load %arg16[%c70_380, %c0_381] : memref<98x32xf32, #tpu.memory_space<vmem>>, vector<7x32xf32>
    tpu.vector_store %arg16[%c70_380, %c0_381], %246 {strides = array<i32>} : memref<98x32xf32, #tpu.memory_space<vmem>>, vector<7x32xf32>,
    %c135_382 = arith.constant 135 : index
    %c0_383 = arith.constant 0 : index
    %248 = vector.load %arg14[%c135_382, %c0_383] : memref<162x32xf32, #tpu.memory_space<vmem>>, vector<7x32xf32>
    %c77_384 = arith.constant 77 : index
    %c0_385 = arith.constant 0 : index
    %249 = vector.load %arg16[%c77_384, %c0_385] : memref<98x32xf32, #tpu.memory_space<vmem>>, vector<7x32xf32>
    tpu.vector_store %arg16[%c77_384, %c0_385], %248 {strides = array<i32>} : memref<98x32xf32, #tpu.memory_space<vmem>>, vector<7x32xf32>,
    %c144_386 = arith.constant 144 : index
    %c0_387 = arith.constant 0 : index
    %250 = vector.load %arg14[%c144_386, %c0_387] : memref<162x32xf32, #tpu.memory_space<vmem>>, vector<7x32xf32>
    %c84_388 = arith.constant 84 : index
    %c0_389 = arith.constant 0 : index
    %251 = vector.load %arg16[%c84_388, %c0_389] : memref<98x32xf32, #tpu.memory_space<vmem>>, vector<7x32xf32>
    tpu.vector_store %arg16[%c84_388, %c0_389], %250 {strides = array<i32>} : memref<98x32xf32, #tpu.memory_space<vmem>>, vector<7x32xf32>,
    %c153 = arith.constant 153 : index
    %c0_390 = arith.constant 0 : index
    %252 = vector.load %arg14[%c153, %c0_390] : memref<162x32xf32, #tpu.memory_space<vmem>>, vector<7x32xf32>
    %c91_391 = arith.constant 91 : index
    %c0_392 = arith.constant 0 : index
    %253 = vector.load %arg16[%c91_391, %c0_392] : memref<98x32xf32, #tpu.memory_space<vmem>>, vector<7x32xf32>
    tpu.vector_store %arg16[%c91_391, %c0_392], %252 {strides = array<i32>} : memref<98x32xf32, #tpu.memory_space<vmem>>, vector<7x32xf32>,
    %c0_393 = arith.constant 0 : index
    %c0_394 = arith.constant 0 : index
    %254 = vector.load %arg16[%c0_393, %c0_394] : memref<98x32xf32, #tpu.memory_space<vmem>>, vector<98x32xf32>
    %c6 = arith.constant 6 : index
    %c0_395 = arith.constant 0 : index
    %c0_396 = arith.constant 0 : index
    %255 = vector.load %arg9[%c6, %c0_395, %c0_396] : memref<9x32x32xf32, #tpu.memory_space<vmem>>, vector<1x32x32xf32>
    %256 = vector.shape_cast %255 : vector<1x32x32xf32> to vector<32x32xf32>
    %cst_397 = arith.constant dense<0.000000e+00> : vector<98x32xf32>
    %257 = tpu.matmul %254, %256, %cst_397 {dimension_numbers = #tpu.dot_dimension_numbers<[1], [0], [0], [1], [0, 0, 1, 1], [], []>} : vector<98x32xf32>, vector<32x32xf32>, vector<98x32xf32> -> vector<98x32xf32>
    %258 = arith.addf %225, %257 : vector<98x32xf32>
    %c19_398 = arith.constant 19 : index
    %c0_399 = arith.constant 0 : index
    %259 = vector.load %arg14[%c19_398, %c0_399] : memref<162x32xf32, #tpu.memory_space<vmem>>, vector<7x32xf32>
    %c0_400 = arith.constant 0 : index
    %c0_401 = arith.constant 0 : index
    %260 = vector.load %arg16[%c0_400, %c0_401] : memref<98x32xf32, #tpu.memory_space<vmem>>, vector<7x32xf32>
    tpu.vector_store %arg16[%c0_400, %c0_401], %259 {strides = array<i32>} : memref<98x32xf32, #tpu.memory_space<vmem>>, vector<7x32xf32>,
    %c28_402 = arith.constant 28 : index
    %c0_403 = arith.constant 0 : index
    %261 = vector.load %arg14[%c28_402, %c0_403] : memref<162x32xf32, #tpu.memory_space<vmem>>, vector<7x32xf32>
    %c7_404 = arith.constant 7 : index
    %c0_405 = arith.constant 0 : index
    %262 = vector.load %arg16[%c7_404, %c0_405] : memref<98x32xf32, #tpu.memory_space<vmem>>, vector<7x32xf32>
    tpu.vector_store %arg16[%c7_404, %c0_405], %261 {strides = array<i32>} : memref<98x32xf32, #tpu.memory_space<vmem>>, vector<7x32xf32>,
    %c37_406 = arith.constant 37 : index
    %c0_407 = arith.constant 0 : index
    %263 = vector.load %arg14[%c37_406, %c0_407] : memref<162x32xf32, #tpu.memory_space<vmem>>, vector<7x32xf32>
    %c14_408 = arith.constant 14 : index
    %c0_409 = arith.constant 0 : index
    %264 = vector.load %arg16[%c14_408, %c0_409] : memref<98x32xf32, #tpu.memory_space<vmem>>, vector<7x32xf32>
    tpu.vector_store %arg16[%c14_408, %c0_409], %263 {strides = array<i32>} : memref<98x32xf32, #tpu.memory_space<vmem>>, vector<7x32xf32>,
    %c46_410 = arith.constant 46 : index
    %c0_411 = arith.constant 0 : index
    %265 = vector.load %arg14[%c46_410, %c0_411] : memref<162x32xf32, #tpu.memory_space<vmem>>, vector<7x32xf32>
    %c21_412 = arith.constant 21 : index
    %c0_413 = arith.constant 0 : index
    %266 = vector.load %arg16[%c21_412, %c0_413] : memref<98x32xf32, #tpu.memory_space<vmem>>, vector<7x32xf32>
    tpu.vector_store %arg16[%c21_412, %c0_413], %265 {strides = array<i32>} : memref<98x32xf32, #tpu.memory_space<vmem>>, vector<7x32xf32>,
    %c55_414 = arith.constant 55 : index
    %c0_415 = arith.constant 0 : index
    %267 = vector.load %arg14[%c55_414, %c0_415] : memref<162x32xf32, #tpu.memory_space<vmem>>, vector<7x32xf32>
    %c28_416 = arith.constant 28 : index
    %c0_417 = arith.constant 0 : index
    %268 = vector.load %arg16[%c28_416, %c0_417] : memref<98x32xf32, #tpu.memory_space<vmem>>, vector<7x32xf32>
    tpu.vector_store %arg16[%c28_416, %c0_417], %267 {strides = array<i32>} : memref<98x32xf32, #tpu.memory_space<vmem>>, vector<7x32xf32>,
    %c64_418 = arith.constant 64 : index
    %c0_419 = arith.constant 0 : index
    %269 = vector.load %arg14[%c64_418, %c0_419] : memref<162x32xf32, #tpu.memory_space<vmem>>, vector<7x32xf32>
    %c35_420 = arith.constant 35 : index
    %c0_421 = arith.constant 0 : index
    %270 = vector.load %arg16[%c35_420, %c0_421] : memref<98x32xf32, #tpu.memory_space<vmem>>, vector<7x32xf32>
    tpu.vector_store %arg16[%c35_420, %c0_421], %269 {strides = array<i32>} : memref<98x32xf32, #tpu.memory_space<vmem>>, vector<7x32xf32>,
    %c73 = arith.constant 73 : index
    %c0_422 = arith.constant 0 : index
    %271 = vector.load %arg14[%c73, %c0_422] : memref<162x32xf32, #tpu.memory_space<vmem>>, vector<7x32xf32>
    %c42_423 = arith.constant 42 : index
    %c0_424 = arith.constant 0 : index
    %272 = vector.load %arg16[%c42_423, %c0_424] : memref<98x32xf32, #tpu.memory_space<vmem>>, vector<7x32xf32>
    tpu.vector_store %arg16[%c42_423, %c0_424], %271 {strides = array<i32>} : memref<98x32xf32, #tpu.memory_space<vmem>>, vector<7x32xf32>,
    %c100_425 = arith.constant 100 : index
    %c0_426 = arith.constant 0 : index
    %273 = vector.load %arg14[%c100_425, %c0_426] : memref<162x32xf32, #tpu.memory_space<vmem>>, vector<7x32xf32>
    %c49_427 = arith.constant 49 : index
    %c0_428 = arith.constant 0 : index
    %274 = vector.load %arg16[%c49_427, %c0_428] : memref<98x32xf32, #tpu.memory_space<vmem>>, vector<7x32xf32>
    tpu.vector_store %arg16[%c49_427, %c0_428], %273 {strides = array<i32>} : memref<98x32xf32, #tpu.memory_space<vmem>>, vector<7x32xf32>,
    %c109_429 = arith.constant 109 : index
    %c0_430 = arith.constant 0 : index
    %275 = vector.load %arg14[%c109_429, %c0_430] : memref<162x32xf32, #tpu.memory_space<vmem>>, vector<7x32xf32>
    %c56_431 = arith.constant 56 : index
    %c0_432 = arith.constant 0 : index
    %276 = vector.load %arg16[%c56_431, %c0_432] : memref<98x32xf32, #tpu.memory_space<vmem>>, vector<7x32xf32>
    tpu.vector_store %arg16[%c56_431, %c0_432], %275 {strides = array<i32>} : memref<98x32xf32, #tpu.memory_space<vmem>>, vector<7x32xf32>,
    %c118_433 = arith.constant 118 : index
    %c0_434 = arith.constant 0 : index
    %277 = vector.load %arg14[%c118_433, %c0_434] : memref<162x32xf32, #tpu.memory_space<vmem>>, vector<7x32xf32>
    %c63_435 = arith.constant 63 : index
    %c0_436 = arith.constant 0 : index
    %278 = vector.load %arg16[%c63_435, %c0_436] : memref<98x32xf32, #tpu.memory_space<vmem>>, vector<7x32xf32>
    tpu.vector_store %arg16[%c63_435, %c0_436], %277 {strides = array<i32>} : memref<98x32xf32, #tpu.memory_space<vmem>>, vector<7x32xf32>,
    %c127_437 = arith.constant 127 : index
    %c0_438 = arith.constant 0 : index
    %279 = vector.load %arg14[%c127_437, %c0_438] : memref<162x32xf32, #tpu.memory_space<vmem>>, vector<7x32xf32>
    %c70_439 = arith.constant 70 : index
    %c0_440 = arith.constant 0 : index
    %280 = vector.load %arg16[%c70_439, %c0_440] : memref<98x32xf32, #tpu.memory_space<vmem>>, vector<7x32xf32>
    tpu.vector_store %arg16[%c70_439, %c0_440], %279 {strides = array<i32>} : memref<98x32xf32, #tpu.memory_space<vmem>>, vector<7x32xf32>,
    %c136_441 = arith.constant 136 : index
    %c0_442 = arith.constant 0 : index
    %281 = vector.load %arg14[%c136_441, %c0_442] : memref<162x32xf32, #tpu.memory_space<vmem>>, vector<7x32xf32>
    %c77_443 = arith.constant 77 : index
    %c0_444 = arith.constant 0 : index
    %282 = vector.load %arg16[%c77_443, %c0_444] : memref<98x32xf32, #tpu.memory_space<vmem>>, vector<7x32xf32>
    tpu.vector_store %arg16[%c77_443, %c0_444], %281 {strides = array<i32>} : memref<98x32xf32, #tpu.memory_space<vmem>>, vector<7x32xf32>,
    %c145_445 = arith.constant 145 : index
    %c0_446 = arith.constant 0 : index
    %283 = vector.load %arg14[%c145_445, %c0_446] : memref<162x32xf32, #tpu.memory_space<vmem>>, vector<7x32xf32>
    %c84_447 = arith.constant 84 : index
    %c0_448 = arith.constant 0 : index
    %284 = vector.load %arg16[%c84_447, %c0_448] : memref<98x32xf32, #tpu.memory_space<vmem>>, vector<7x32xf32>
    tpu.vector_store %arg16[%c84_447, %c0_448], %283 {strides = array<i32>} : memref<98x32xf32, #tpu.memory_space<vmem>>, vector<7x32xf32>,
    %c154 = arith.constant 154 : index
    %c0_449 = arith.constant 0 : index
    %285 = vector.load %arg14[%c154, %c0_449] : memref<162x32xf32, #tpu.memory_space<vmem>>, vector<7x32xf32>
    %c91_450 = arith.constant 91 : index
    %c0_451 = arith.constant 0 : index
    %286 = vector.load %arg16[%c91_450, %c0_451] : memref<98x32xf32, #tpu.memory_space<vmem>>, vector<7x32xf32>
    tpu.vector_store %arg16[%c91_450, %c0_451], %285 {strides = array<i32>} : memref<98x32xf32, #tpu.memory_space<vmem>>, vector<7x32xf32>,
    %c0_452 = arith.constant 0 : index
    %c0_453 = arith.constant 0 : index
    %287 = vector.load %arg16[%c0_452, %c0_453] : memref<98x32xf32, #tpu.memory_space<vmem>>, vector<98x32xf32>
    %c7_454 = arith.constant 7 : index
    %c0_455 = arith.constant 0 : index
    %c0_456 = arith.constant 0 : index
    %288 = vector.load %arg9[%c7_454, %c0_455, %c0_456] : memref<9x32x32xf32, #tpu.memory_space<vmem>>, vector<1x32x32xf32>
    %289 = vector.shape_cast %288 : vector<1x32x32xf32> to vector<32x32xf32>
    %cst_457 = arith.constant dense<0.000000e+00> : vector<98x32xf32>
    %290 = tpu.matmul %287, %289, %cst_457 {dimension_numbers = #tpu.dot_dimension_numbers<[1], [0], [0], [1], [0, 0, 1, 1], [], []>} : vector<98x32xf32>, vector<32x32xf32>, vector<98x32xf32> -> vector<98x32xf32>
    %291 = arith.addf %258, %290 : vector<98x32xf32>
    %c20_458 = arith.constant 20 : index
    %c0_459 = arith.constant 0 : index
    %292 = vector.load %arg14[%c20_458, %c0_459] : memref<162x32xf32, #tpu.memory_space<vmem>>, vector<7x32xf32>
    %c0_460 = arith.constant 0 : index
    %c0_461 = arith.constant 0 : index
    %293 = vector.load %arg16[%c0_460, %c0_461] : memref<98x32xf32, #tpu.memory_space<vmem>>, vector<7x32xf32>
    tpu.vector_store %arg16[%c0_460, %c0_461], %292 {strides = array<i32>} : memref<98x32xf32, #tpu.memory_space<vmem>>, vector<7x32xf32>,
    %c29_462 = arith.constant 29 : index
    %c0_463 = arith.constant 0 : index
    %294 = vector.load %arg14[%c29_462, %c0_463] : memref<162x32xf32, #tpu.memory_space<vmem>>, vector<7x32xf32>
    %c7_464 = arith.constant 7 : index
    %c0_465 = arith.constant 0 : index
    %295 = vector.load %arg16[%c7_464, %c0_465] : memref<98x32xf32, #tpu.memory_space<vmem>>, vector<7x32xf32>
    tpu.vector_store %arg16[%c7_464, %c0_465], %294 {strides = array<i32>} : memref<98x32xf32, #tpu.memory_space<vmem>>, vector<7x32xf32>,
    %c38_466 = arith.constant 38 : index
    %c0_467 = arith.constant 0 : index
    %296 = vector.load %arg14[%c38_466, %c0_467] : memref<162x32xf32, #tpu.memory_space<vmem>>, vector<7x32xf32>
    %c14_468 = arith.constant 14 : index
    %c0_469 = arith.constant 0 : index
    %297 = vector.load %arg16[%c14_468, %c0_469] : memref<98x32xf32, #tpu.memory_space<vmem>>, vector<7x32xf32>
    tpu.vector_store %arg16[%c14_468, %c0_469], %296 {strides = array<i32>} : memref<98x32xf32, #tpu.memory_space<vmem>>, vector<7x32xf32>,
    %c47_470 = arith.constant 47 : index
    %c0_471 = arith.constant 0 : index
    %298 = vector.load %arg14[%c47_470, %c0_471] : memref<162x32xf32, #tpu.memory_space<vmem>>, vector<7x32xf32>
    %c21_472 = arith.constant 21 : index
    %c0_473 = arith.constant 0 : index
    %299 = vector.load %arg16[%c21_472, %c0_473] : memref<98x32xf32, #tpu.memory_space<vmem>>, vector<7x32xf32>
    tpu.vector_store %arg16[%c21_472, %c0_473], %298 {strides = array<i32>} : memref<98x32xf32, #tpu.memory_space<vmem>>, vector<7x32xf32>,
    %c56_474 = arith.constant 56 : index
    %c0_475 = arith.constant 0 : index
    %300 = vector.load %arg14[%c56_474, %c0_475] : memref<162x32xf32, #tpu.memory_space<vmem>>, vector<7x32xf32>
    %c28_476 = arith.constant 28 : index
    %c0_477 = arith.constant 0 : index
    %301 = vector.load %arg16[%c28_476, %c0_477] : memref<98x32xf32, #tpu.memory_space<vmem>>, vector<7x32xf32>
    tpu.vector_store %arg16[%c28_476, %c0_477], %300 {strides = array<i32>} : memref<98x32xf32, #tpu.memory_space<vmem>>, vector<7x32xf32>,
    %c65_478 = arith.constant 65 : index
    %c0_479 = arith.constant 0 : index
    %302 = vector.load %arg14[%c65_478, %c0_479] : memref<162x32xf32, #tpu.memory_space<vmem>>, vector<7x32xf32>
    %c35_480 = arith.constant 35 : index
    %c0_481 = arith.constant 0 : index
    %303 = vector.load %arg16[%c35_480, %c0_481] : memref<98x32xf32, #tpu.memory_space<vmem>>, vector<7x32xf32>
    tpu.vector_store %arg16[%c35_480, %c0_481], %302 {strides = array<i32>} : memref<98x32xf32, #tpu.memory_space<vmem>>, vector<7x32xf32>,
    %c74 = arith.constant 74 : index
    %c0_482 = arith.constant 0 : index
    %304 = vector.load %arg14[%c74, %c0_482] : memref<162x32xf32, #tpu.memory_space<vmem>>, vector<7x32xf32>
    %c42_483 = arith.constant 42 : index
    %c0_484 = arith.constant 0 : index
    %305 = vector.load %arg16[%c42_483, %c0_484] : memref<98x32xf32, #tpu.memory_space<vmem>>, vector<7x32xf32>
    tpu.vector_store %arg16[%c42_483, %c0_484], %304 {strides = array<i32>} : memref<98x32xf32, #tpu.memory_space<vmem>>, vector<7x32xf32>,
    %c101_485 = arith.constant 101 : index
    %c0_486 = arith.constant 0 : index
    %306 = vector.load %arg14[%c101_485, %c0_486] : memref<162x32xf32, #tpu.memory_space<vmem>>, vector<7x32xf32>
    %c49_487 = arith.constant 49 : index
    %c0_488 = arith.constant 0 : index
    %307 = vector.load %arg16[%c49_487, %c0_488] : memref<98x32xf32, #tpu.memory_space<vmem>>, vector<7x32xf32>
    tpu.vector_store %arg16[%c49_487, %c0_488], %306 {strides = array<i32>} : memref<98x32xf32, #tpu.memory_space<vmem>>, vector<7x32xf32>,
    %c110_489 = arith.constant 110 : index
    %c0_490 = arith.constant 0 : index
    %308 = vector.load %arg14[%c110_489, %c0_490] : memref<162x32xf32, #tpu.memory_space<vmem>>, vector<7x32xf32>
    %c56_491 = arith.constant 56 : index
    %c0_492 = arith.constant 0 : index
    %309 = vector.load %arg16[%c56_491, %c0_492] : memref<98x32xf32, #tpu.memory_space<vmem>>, vector<7x32xf32>
    tpu.vector_store %arg16[%c56_491, %c0_492], %308 {strides = array<i32>} : memref<98x32xf32, #tpu.memory_space<vmem>>, vector<7x32xf32>,
    %c119_493 = arith.constant 119 : index
    %c0_494 = arith.constant 0 : index
    %310 = vector.load %arg14[%c119_493, %c0_494] : memref<162x32xf32, #tpu.memory_space<vmem>>, vector<7x32xf32>
    %c63_495 = arith.constant 63 : index
    %c0_496 = arith.constant 0 : index
    %311 = vector.load %arg16[%c63_495, %c0_496] : memref<98x32xf32, #tpu.memory_space<vmem>>, vector<7x32xf32>
    tpu.vector_store %arg16[%c63_495, %c0_496], %310 {strides = array<i32>} : memref<98x32xf32, #tpu.memory_space<vmem>>, vector<7x32xf32>,
    %c128_497 = arith.constant 128 : index
    %c0_498 = arith.constant 0 : index
    %312 = vector.load %arg14[%c128_497, %c0_498] : memref<162x32xf32, #tpu.memory_space<vmem>>, vector<7x32xf32>
    %c70_499 = arith.constant 70 : index
    %c0_500 = arith.constant 0 : index
    %313 = vector.load %arg16[%c70_499, %c0_500] : memref<98x32xf32, #tpu.memory_space<vmem>>, vector<7x32xf32>
    tpu.vector_store %arg16[%c70_499, %c0_500], %312 {strides = array<i32>} : memref<98x32xf32, #tpu.memory_space<vmem>>, vector<7x32xf32>,
    %c137_501 = arith.constant 137 : index
    %c0_502 = arith.constant 0 : index
    %314 = vector.load %arg14[%c137_501, %c0_502] : memref<162x32xf32, #tpu.memory_space<vmem>>, vector<7x32xf32>
    %c77_503 = arith.constant 77 : index
    %c0_504 = arith.constant 0 : index
    %315 = vector.load %arg16[%c77_503, %c0_504] : memref<98x32xf32, #tpu.memory_space<vmem>>, vector<7x32xf32>
    tpu.vector_store %arg16[%c77_503, %c0_504], %314 {strides = array<i32>} : memref<98x32xf32, #tpu.memory_space<vmem>>, vector<7x32xf32>,
    %c146_505 = arith.constant 146 : index
    %c0_506 = arith.constant 0 : index
    %316 = vector.load %arg14[%c146_505, %c0_506] : memref<162x32xf32, #tpu.memory_space<vmem>>, vector<7x32xf32>
    %c84_507 = arith.constant 84 : index
    %c0_508 = arith.constant 0 : index
    %317 = vector.load %arg16[%c84_507, %c0_508] : memref<98x32xf32, #tpu.memory_space<vmem>>, vector<7x32xf32>
    tpu.vector_store %arg16[%c84_507, %c0_508], %316 {strides = array<i32>} : memref<98x32xf32, #tpu.memory_space<vmem>>, vector<7x32xf32>,
    %c155 = arith.constant 155 : index
    %c0_509 = arith.constant 0 : index
    %318 = vector.load %arg14[%c155, %c0_509] : memref<162x32xf32, #tpu.memory_space<vmem>>, vector<7x32xf32>
    %c91_510 = arith.constant 91 : index
    %c0_511 = arith.constant 0 : index
    %319 = vector.load %arg16[%c91_510, %c0_511] : memref<98x32xf32, #tpu.memory_space<vmem>>, vector<7x32xf32>
    tpu.vector_store %arg16[%c91_510, %c0_511], %318 {strides = array<i32>} : memref<98x32xf32, #tpu.memory_space<vmem>>, vector<7x32xf32>,
    %c0_512 = arith.constant 0 : index
    %c0_513 = arith.constant 0 : index
    %320 = vector.load %arg16[%c0_512, %c0_513] : memref<98x32xf32, #tpu.memory_space<vmem>>, vector<98x32xf32>
    %c8 = arith.constant 8 : index
    %c0_514 = arith.constant 0 : index
    %c0_515 = arith.constant 0 : index
    %321 = vector.load %arg9[%c8, %c0_514, %c0_515] : memref<9x32x32xf32, #tpu.memory_space<vmem>>, vector<1x32x32xf32>
    %322 = vector.shape_cast %321 : vector<1x32x32xf32> to vector<32x32xf32>
    %cst_516 = arith.constant dense<0.000000e+00> : vector<98x32xf32>
    %323 = tpu.matmul %320, %322, %cst_516 {dimension_numbers = #tpu.dot_dimension_numbers<[1], [0], [0], [1], [0, 0, 1, 1], [], []>} : vector<98x32xf32>, vector<32x32xf32>, vector<98x32xf32> -> vector<98x32xf32>
    %324 = arith.addf %291, %323 : vector<98x32xf32>
    %c0_517 = arith.constant 0 : index
    %c0_518 = arith.constant 0 : index
    %325 = vector.load %arg10[%c0_517, %c0_518] : memref<1x32xf32, #tpu.memory_space<vmem>>, vector<1x32xf32>
    %326 = vector.broadcast %325 : vector<1x32xf32> to vector<98x32xf32>
    %327 = arith.addf %324, %326 : vector<98x32xf32>
    %cst_519 = arith.constant 0.000000e+00 : f32
    %328 = vector.broadcast %cst_519 : f32 to vector<98x32xf32>
    %329 = arith.maximumf %327, %328 : vector<98x32xf32>
    %c0_520 = arith.constant 0 : index
    %c0_521 = arith.constant 0 : index
    %330 = vector.load %arg15[%c0_520, %c0_521] : memref<98x32xf32, #tpu.memory_space<vmem>>, vector<98x32xf32>
    tpu.vector_store %arg15[%c0_520, %c0_521], %329 {strides = array<i32>} : memref<98x32xf32, #tpu.memory_space<vmem>>, vector<98x32xf32>,
    %cst_522 = arith.constant 0.000000e+00 : f32
    %331 = vector.broadcast %cst_522 : f32 to vector<50x32xf32>
    %c0_523 = arith.constant 0 : index
    %c0_524 = arith.constant 0 : index
    %332 = vector.load %arg15[%c0_523, %c0_524] : memref<98x32xf32, #tpu.memory_space<vmem>>, vector<5x32xf32>
    %c0_525 = arith.constant 0 : index
    %c0_526 = arith.constant 0 : index
    %333 = vector.load %arg16[%c0_525, %c0_526] : memref<98x32xf32, #tpu.memory_space<vmem>>, vector<5x32xf32>
    tpu.vector_store %arg16[%c0_525, %c0_526], %332 {strides = array<i32>} : memref<98x32xf32, #tpu.memory_space<vmem>>, vector<5x32xf32>,
    %c7_527 = arith.constant 7 : index
    %c0_528 = arith.constant 0 : index
    %334 = vector.load %arg15[%c7_527, %c0_528] : memref<98x32xf32, #tpu.memory_space<vmem>>, vector<5x32xf32>
    %c5_529 = arith.constant 5 : index
    %c0_530 = arith.constant 0 : index
    %335 = vector.load %arg16[%c5_529, %c0_530] : memref<98x32xf32, #tpu.memory_space<vmem>>, vector<5x32xf32>
    tpu.vector_store %arg16[%c5_529, %c0_530], %334 {strides = array<i32>} : memref<98x32xf32, #tpu.memory_space<vmem>>, vector<5x32xf32>,
    %c14_531 = arith.constant 14 : index
    %c0_532 = arith.constant 0 : index
    %336 = vector.load %arg15[%c14_531, %c0_532] : memref<98x32xf32, #tpu.memory_space<vmem>>, vector<5x32xf32>
    %c10_533 = arith.constant 10 : index
    %c0_534 = arith.constant 0 : index
    %337 = vector.load %arg16[%c10_533, %c0_534] : memref<98x32xf32, #tpu.memory_space<vmem>>, vector<5x32xf32>
    tpu.vector_store %arg16[%c10_533, %c0_534], %336 {strides = array<i32>} : memref<98x32xf32, #tpu.memory_space<vmem>>, vector<5x32xf32>,
    %c21_535 = arith.constant 21 : index
    %c0_536 = arith.constant 0 : index
    %338 = vector.load %arg15[%c21_535, %c0_536] : memref<98x32xf32, #tpu.memory_space<vmem>>, vector<5x32xf32>
    %c15 = arith.constant 15 : index
    %c0_537 = arith.constant 0 : index
    %339 = vector.load %arg16[%c15, %c0_537] : memref<98x32xf32, #tpu.memory_space<vmem>>, vector<5x32xf32>
    tpu.vector_store %arg16[%c15, %c0_537], %338 {strides = array<i32>} : memref<98x32xf32, #tpu.memory_space<vmem>>, vector<5x32xf32>,
    %c28_538 = arith.constant 28 : index
    %c0_539 = arith.constant 0 : index
    %340 = vector.load %arg15[%c28_538, %c0_539] : memref<98x32xf32, #tpu.memory_space<vmem>>, vector<5x32xf32>
    %c20_540 = arith.constant 20 : index
    %c0_541 = arith.constant 0 : index
    %341 = vector.load %arg16[%c20_540, %c0_541] : memref<98x32xf32, #tpu.memory_space<vmem>>, vector<5x32xf32>
    tpu.vector_store %arg16[%c20_540, %c0_541], %340 {strides = array<i32>} : memref<98x32xf32, #tpu.memory_space<vmem>>, vector<5x32xf32>,
    %c49_542 = arith.constant 49 : index
    %c0_543 = arith.constant 0 : index
    %342 = vector.load %arg15[%c49_542, %c0_543] : memref<98x32xf32, #tpu.memory_space<vmem>>, vector<5x32xf32>
    %c25 = arith.constant 25 : index
    %c0_544 = arith.constant 0 : index
    %343 = vector.load %arg16[%c25, %c0_544] : memref<98x32xf32, #tpu.memory_space<vmem>>, vector<5x32xf32>
    tpu.vector_store %arg16[%c25, %c0_544], %342 {strides = array<i32>} : memref<98x32xf32, #tpu.memory_space<vmem>>, vector<5x32xf32>,
    %c56_545 = arith.constant 56 : index
    %c0_546 = arith.constant 0 : index
    %344 = vector.load %arg15[%c56_545, %c0_546] : memref<98x32xf32, #tpu.memory_space<vmem>>, vector<5x32xf32>
    %c30 = arith.constant 30 : index
    %c0_547 = arith.constant 0 : index
    %345 = vector.load %arg16[%c30, %c0_547] : memref<98x32xf32, #tpu.memory_space<vmem>>, vector<5x32xf32>
    tpu.vector_store %arg16[%c30, %c0_547], %344 {strides = array<i32>} : memref<98x32xf32, #tpu.memory_space<vmem>>, vector<5x32xf32>,
    %c63_548 = arith.constant 63 : index
    %c0_549 = arith.constant 0 : index
    %346 = vector.load %arg15[%c63_548, %c0_549] : memref<98x32xf32, #tpu.memory_space<vmem>>, vector<5x32xf32>
    %c35_550 = arith.constant 35 : index
    %c0_551 = arith.constant 0 : index
    %347 = vector.load %arg16[%c35_550, %c0_551] : memref<98x32xf32, #tpu.memory_space<vmem>>, vector<5x32xf32>
    tpu.vector_store %arg16[%c35_550, %c0_551], %346 {strides = array<i32>} : memref<98x32xf32, #tpu.memory_space<vmem>>, vector<5x32xf32>,
    %c70_552 = arith.constant 70 : index
    %c0_553 = arith.constant 0 : index
    %348 = vector.load %arg15[%c70_552, %c0_553] : memref<98x32xf32, #tpu.memory_space<vmem>>, vector<5x32xf32>
    %c40 = arith.constant 40 : index
    %c0_554 = arith.constant 0 : index
    %349 = vector.load %arg16[%c40, %c0_554] : memref<98x32xf32, #tpu.memory_space<vmem>>, vector<5x32xf32>
    tpu.vector_store %arg16[%c40, %c0_554], %348 {strides = array<i32>} : memref<98x32xf32, #tpu.memory_space<vmem>>, vector<5x32xf32>,
    %c77_555 = arith.constant 77 : index
    %c0_556 = arith.constant 0 : index
    %350 = vector.load %arg15[%c77_555, %c0_556] : memref<98x32xf32, #tpu.memory_space<vmem>>, vector<5x32xf32>
    %c45_557 = arith.constant 45 : index
    %c0_558 = arith.constant 0 : index
    %351 = vector.load %arg16[%c45_557, %c0_558] : memref<98x32xf32, #tpu.memory_space<vmem>>, vector<5x32xf32>
    tpu.vector_store %arg16[%c45_557, %c0_558], %350 {strides = array<i32>} : memref<98x32xf32, #tpu.memory_space<vmem>>, vector<5x32xf32>,
    %c0_559 = arith.constant 0 : index
    %c0_560 = arith.constant 0 : index
    %352 = vector.load %arg16[%c0_559, %c0_560] : memref<98x32xf32, #tpu.memory_space<vmem>>, vector<50x32xf32>
    %c0_561 = arith.constant 0 : index
    %c0_562 = arith.constant 0 : index
    %c0_563 = arith.constant 0 : index
    %353 = vector.load %arg11[%c0_561, %c0_562, %c0_563] : memref<9x32x32xf32, #tpu.memory_space<vmem>>, vector<1x32x32xf32>
    %354 = vector.shape_cast %353 : vector<1x32x32xf32> to vector<32x32xf32>
    %cst_564 = arith.constant dense<0.000000e+00> : vector<50x32xf32>
    %355 = tpu.matmul %352, %354, %cst_564 {dimension_numbers = #tpu.dot_dimension_numbers<[1], [0], [0], [1], [0, 0, 1, 1], [], []>} : vector<50x32xf32>, vector<32x32xf32>, vector<50x32xf32> -> vector<50x32xf32>
    %356 = arith.addf %331, %355 : vector<50x32xf32>
    %c1_565 = arith.constant 1 : index
    %c0_566 = arith.constant 0 : index
    %357 = vector.load %arg15[%c1_565, %c0_566] : memref<98x32xf32, #tpu.memory_space<vmem>>, vector<5x32xf32>
    %c0_567 = arith.constant 0 : index
    %c0_568 = arith.constant 0 : index
    %358 = vector.load %arg16[%c0_567, %c0_568] : memref<98x32xf32, #tpu.memory_space<vmem>>, vector<5x32xf32>
    tpu.vector_store %arg16[%c0_567, %c0_568], %357 {strides = array<i32>} : memref<98x32xf32, #tpu.memory_space<vmem>>, vector<5x32xf32>,
    %c8_569 = arith.constant 8 : index
    %c0_570 = arith.constant 0 : index
    %359 = vector.load %arg15[%c8_569, %c0_570] : memref<98x32xf32, #tpu.memory_space<vmem>>, vector<5x32xf32>
    %c5_571 = arith.constant 5 : index
    %c0_572 = arith.constant 0 : index
    %360 = vector.load %arg16[%c5_571, %c0_572] : memref<98x32xf32, #tpu.memory_space<vmem>>, vector<5x32xf32>
    tpu.vector_store %arg16[%c5_571, %c0_572], %359 {strides = array<i32>} : memref<98x32xf32, #tpu.memory_space<vmem>>, vector<5x32xf32>,
    %c15_573 = arith.constant 15 : index
    %c0_574 = arith.constant 0 : index
    %361 = vector.load %arg15[%c15_573, %c0_574] : memref<98x32xf32, #tpu.memory_space<vmem>>, vector<5x32xf32>
    %c10_575 = arith.constant 10 : index
    %c0_576 = arith.constant 0 : index
    %362 = vector.load %arg16[%c10_575, %c0_576] : memref<98x32xf32, #tpu.memory_space<vmem>>, vector<5x32xf32>
    tpu.vector_store %arg16[%c10_575, %c0_576], %361 {strides = array<i32>} : memref<98x32xf32, #tpu.memory_space<vmem>>, vector<5x32xf32>,
    %c22 = arith.constant 22 : index
    %c0_577 = arith.constant 0 : index
    %363 = vector.load %arg15[%c22, %c0_577] : memref<98x32xf32, #tpu.memory_space<vmem>>, vector<5x32xf32>
    %c15_578 = arith.constant 15 : index
    %c0_579 = arith.constant 0 : index
    %364 = vector.load %arg16[%c15_578, %c0_579] : memref<98x32xf32, #tpu.memory_space<vmem>>, vector<5x32xf32>
    tpu.vector_store %arg16[%c15_578, %c0_579], %363 {strides = array<i32>} : memref<98x32xf32, #tpu.memory_space<vmem>>, vector<5x32xf32>,
    %c29_580 = arith.constant 29 : index
    %c0_581 = arith.constant 0 : index
    %365 = vector.load %arg15[%c29_580, %c0_581] : memref<98x32xf32, #tpu.memory_space<vmem>>, vector<5x32xf32>
    %c20_582 = arith.constant 20 : index
    %c0_583 = arith.constant 0 : index
    %366 = vector.load %arg16[%c20_582, %c0_583] : memref<98x32xf32, #tpu.memory_space<vmem>>, vector<5x32xf32>
    tpu.vector_store %arg16[%c20_582, %c0_583], %365 {strides = array<i32>} : memref<98x32xf32, #tpu.memory_space<vmem>>, vector<5x32xf32>,
    %c50 = arith.constant 50 : index
    %c0_584 = arith.constant 0 : index
    %367 = vector.load %arg15[%c50, %c0_584] : memref<98x32xf32, #tpu.memory_space<vmem>>, vector<5x32xf32>
    %c25_585 = arith.constant 25 : index
    %c0_586 = arith.constant 0 : index
    %368 = vector.load %arg16[%c25_585, %c0_586] : memref<98x32xf32, #tpu.memory_space<vmem>>, vector<5x32xf32>
    tpu.vector_store %arg16[%c25_585, %c0_586], %367 {strides = array<i32>} : memref<98x32xf32, #tpu.memory_space<vmem>>, vector<5x32xf32>,
    %c57 = arith.constant 57 : index
    %c0_587 = arith.constant 0 : index
    %369 = vector.load %arg15[%c57, %c0_587] : memref<98x32xf32, #tpu.memory_space<vmem>>, vector<5x32xf32>
    %c30_588 = arith.constant 30 : index
    %c0_589 = arith.constant 0 : index
    %370 = vector.load %arg16[%c30_588, %c0_589] : memref<98x32xf32, #tpu.memory_space<vmem>>, vector<5x32xf32>
    tpu.vector_store %arg16[%c30_588, %c0_589], %369 {strides = array<i32>} : memref<98x32xf32, #tpu.memory_space<vmem>>, vector<5x32xf32>,
    %c64_590 = arith.constant 64 : index
    %c0_591 = arith.constant 0 : index
    %371 = vector.load %arg15[%c64_590, %c0_591] : memref<98x32xf32, #tpu.memory_space<vmem>>, vector<5x32xf32>
    %c35_592 = arith.constant 35 : index
    %c0_593 = arith.constant 0 : index
    %372 = vector.load %arg16[%c35_592, %c0_593] : memref<98x32xf32, #tpu.memory_space<vmem>>, vector<5x32xf32>
    tpu.vector_store %arg16[%c35_592, %c0_593], %371 {strides = array<i32>} : memref<98x32xf32, #tpu.memory_space<vmem>>, vector<5x32xf32>,
    %c71 = arith.constant 71 : index
    %c0_594 = arith.constant 0 : index
    %373 = vector.load %arg15[%c71, %c0_594] : memref<98x32xf32, #tpu.memory_space<vmem>>, vector<5x32xf32>
    %c40_595 = arith.constant 40 : index
    %c0_596 = arith.constant 0 : index
    %374 = vector.load %arg16[%c40_595, %c0_596] : memref<98x32xf32, #tpu.memory_space<vmem>>, vector<5x32xf32>
    tpu.vector_store %arg16[%c40_595, %c0_596], %373 {strides = array<i32>} : memref<98x32xf32, #tpu.memory_space<vmem>>, vector<5x32xf32>,
    %c78 = arith.constant 78 : index
    %c0_597 = arith.constant 0 : index
    %375 = vector.load %arg15[%c78, %c0_597] : memref<98x32xf32, #tpu.memory_space<vmem>>, vector<5x32xf32>
    %c45_598 = arith.constant 45 : index
    %c0_599 = arith.constant 0 : index
    %376 = vector.load %arg16[%c45_598, %c0_599] : memref<98x32xf32, #tpu.memory_space<vmem>>, vector<5x32xf32>
    tpu.vector_store %arg16[%c45_598, %c0_599], %375 {strides = array<i32>} : memref<98x32xf32, #tpu.memory_space<vmem>>, vector<5x32xf32>,
    %c0_600 = arith.constant 0 : index
    %c0_601 = arith.constant 0 : index
    %377 = vector.load %arg16[%c0_600, %c0_601] : memref<98x32xf32, #tpu.memory_space<vmem>>, vector<50x32xf32>
    %c1_602 = arith.constant 1 : index
    %c0_603 = arith.constant 0 : index
    %c0_604 = arith.constant 0 : index
    %378 = vector.load %arg11[%c1_602, %c0_603, %c0_604] : memref<9x32x32xf32, #tpu.memory_space<vmem>>, vector<1x32x32xf32>
    %379 = vector.shape_cast %378 : vector<1x32x32xf32> to vector<32x32xf32>
    %cst_605 = arith.constant dense<0.000000e+00> : vector<50x32xf32>
    %380 = tpu.matmul %377, %379, %cst_605 {dimension_numbers = #tpu.dot_dimension_numbers<[1], [0], [0], [1], [0, 0, 1, 1], [], []>} : vector<50x32xf32>, vector<32x32xf32>, vector<50x32xf32> -> vector<50x32xf32>
    %381 = arith.addf %356, %380 : vector<50x32xf32>
    %c2_606 = arith.constant 2 : index
    %c0_607 = arith.constant 0 : index
    %382 = vector.load %arg15[%c2_606, %c0_607] : memref<98x32xf32, #tpu.memory_space<vmem>>, vector<5x32xf32>
    %c0_608 = arith.constant 0 : index
    %c0_609 = arith.constant 0 : index
    %383 = vector.load %arg16[%c0_608, %c0_609] : memref<98x32xf32, #tpu.memory_space<vmem>>, vector<5x32xf32>
    tpu.vector_store %arg16[%c0_608, %c0_609], %382 {strides = array<i32>} : memref<98x32xf32, #tpu.memory_space<vmem>>, vector<5x32xf32>,
    %c9_610 = arith.constant 9 : index
    %c0_611 = arith.constant 0 : index
    %384 = vector.load %arg15[%c9_610, %c0_611] : memref<98x32xf32, #tpu.memory_space<vmem>>, vector<5x32xf32>
    %c5_612 = arith.constant 5 : index
    %c0_613 = arith.constant 0 : index
    %385 = vector.load %arg16[%c5_612, %c0_613] : memref<98x32xf32, #tpu.memory_space<vmem>>, vector<5x32xf32>
    tpu.vector_store %arg16[%c5_612, %c0_613], %384 {strides = array<i32>} : memref<98x32xf32, #tpu.memory_space<vmem>>, vector<5x32xf32>,
    %c16 = arith.constant 16 : index
    %c0_614 = arith.constant 0 : index
    %386 = vector.load %arg15[%c16, %c0_614] : memref<98x32xf32, #tpu.memory_space<vmem>>, vector<5x32xf32>
    %c10_615 = arith.constant 10 : index
    %c0_616 = arith.constant 0 : index
    %387 = vector.load %arg16[%c10_615, %c0_616] : memref<98x32xf32, #tpu.memory_space<vmem>>, vector<5x32xf32>
    tpu.vector_store %arg16[%c10_615, %c0_616], %386 {strides = array<i32>} : memref<98x32xf32, #tpu.memory_space<vmem>>, vector<5x32xf32>,
    %c23 = arith.constant 23 : index
    %c0_617 = arith.constant 0 : index
    %388 = vector.load %arg15[%c23, %c0_617] : memref<98x32xf32, #tpu.memory_space<vmem>>, vector<5x32xf32>
    %c15_618 = arith.constant 15 : index
    %c0_619 = arith.constant 0 : index
    %389 = vector.load %arg16[%c15_618, %c0_619] : memref<98x32xf32, #tpu.memory_space<vmem>>, vector<5x32xf32>
    tpu.vector_store %arg16[%c15_618, %c0_619], %388 {strides = array<i32>} : memref<98x32xf32, #tpu.memory_space<vmem>>, vector<5x32xf32>,
    %c30_620 = arith.constant 30 : index
    %c0_621 = arith.constant 0 : index
    %390 = vector.load %arg15[%c30_620, %c0_621] : memref<98x32xf32, #tpu.memory_space<vmem>>, vector<5x32xf32>
    %c20_622 = arith.constant 20 : index
    %c0_623 = arith.constant 0 : index
    %391 = vector.load %arg16[%c20_622, %c0_623] : memref<98x32xf32, #tpu.memory_space<vmem>>, vector<5x32xf32>
    tpu.vector_store %arg16[%c20_622, %c0_623], %390 {strides = array<i32>} : memref<98x32xf32, #tpu.memory_space<vmem>>, vector<5x32xf32>,
    %c51 = arith.constant 51 : index
    %c0_624 = arith.constant 0 : index
    %392 = vector.load %arg15[%c51, %c0_624] : memref<98x32xf32, #tpu.memory_space<vmem>>, vector<5x32xf32>
    %c25_625 = arith.constant 25 : index
    %c0_626 = arith.constant 0 : index
    %393 = vector.load %arg16[%c25_625, %c0_626] : memref<98x32xf32, #tpu.memory_space<vmem>>, vector<5x32xf32>
    tpu.vector_store %arg16[%c25_625, %c0_626], %392 {strides = array<i32>} : memref<98x32xf32, #tpu.memory_space<vmem>>, vector<5x32xf32>,
    %c58 = arith.constant 58 : index
    %c0_627 = arith.constant 0 : index
    %394 = vector.load %arg15[%c58, %c0_627] : memref<98x32xf32, #tpu.memory_space<vmem>>, vector<5x32xf32>
    %c30_628 = arith.constant 30 : index
    %c0_629 = arith.constant 0 : index
    %395 = vector.load %arg16[%c30_628, %c0_629] : memref<98x32xf32, #tpu.memory_space<vmem>>, vector<5x32xf32>
    tpu.vector_store %arg16[%c30_628, %c0_629], %394 {strides = array<i32>} : memref<98x32xf32, #tpu.memory_space<vmem>>, vector<5x32xf32>,
    %c65_630 = arith.constant 65 : index
    %c0_631 = arith.constant 0 : index
    %396 = vector.load %arg15[%c65_630, %c0_631] : memref<98x32xf32, #tpu.memory_space<vmem>>, vector<5x32xf32>
    %c35_632 = arith.constant 35 : index
    %c0_633 = arith.constant 0 : index
    %397 = vector.load %arg16[%c35_632, %c0_633] : memref<98x32xf32, #tpu.memory_space<vmem>>, vector<5x32xf32>
    tpu.vector_store %arg16[%c35_632, %c0_633], %396 {strides = array<i32>} : memref<98x32xf32, #tpu.memory_space<vmem>>, vector<5x32xf32>,
    %c72_634 = arith.constant 72 : index
    %c0_635 = arith.constant 0 : index
    %398 = vector.load %arg15[%c72_634, %c0_635] : memref<98x32xf32, #tpu.memory_space<vmem>>, vector<5x32xf32>
    %c40_636 = arith.constant 40 : index
    %c0_637 = arith.constant 0 : index
    %399 = vector.load %arg16[%c40_636, %c0_637] : memref<98x32xf32, #tpu.memory_space<vmem>>, vector<5x32xf32>
    tpu.vector_store %arg16[%c40_636, %c0_637], %398 {strides = array<i32>} : memref<98x32xf32, #tpu.memory_space<vmem>>, vector<5x32xf32>,
    %c79 = arith.constant 79 : index
    %c0_638 = arith.constant 0 : index
    %400 = vector.load %arg15[%c79, %c0_638] : memref<98x32xf32, #tpu.memory_space<vmem>>, vector<5x32xf32>
    %c45_639 = arith.constant 45 : index
    %c0_640 = arith.constant 0 : index
    %401 = vector.load %arg16[%c45_639, %c0_640] : memref<98x32xf32, #tpu.memory_space<vmem>>, vector<5x32xf32>
    tpu.vector_store %arg16[%c45_639, %c0_640], %400 {strides = array<i32>} : memref<98x32xf32, #tpu.memory_space<vmem>>, vector<5x32xf32>,
    %c0_641 = arith.constant 0 : index
    %c0_642 = arith.constant 0 : index
    %402 = vector.load %arg16[%c0_641, %c0_642] : memref<98x32xf32, #tpu.memory_space<vmem>>, vector<50x32xf32>
    %c2_643 = arith.constant 2 : index
    %c0_644 = arith.constant 0 : index
    %c0_645 = arith.constant 0 : index
    %403 = vector.load %arg11[%c2_643, %c0_644, %c0_645] : memref<9x32x32xf32, #tpu.memory_space<vmem>>, vector<1x32x32xf32>
    %404 = vector.shape_cast %403 : vector<1x32x32xf32> to vector<32x32xf32>
    %cst_646 = arith.constant dense<0.000000e+00> : vector<50x32xf32>
    %405 = tpu.matmul %402, %404, %cst_646 {dimension_numbers = #tpu.dot_dimension_numbers<[1], [0], [0], [1], [0, 0, 1, 1], [], []>} : vector<50x32xf32>, vector<32x32xf32>, vector<50x32xf32> -> vector<50x32xf32>
    %406 = arith.addf %381, %405 : vector<50x32xf32>
    %c7_647 = arith.constant 7 : index
    %c0_648 = arith.constant 0 : index
    %407 = vector.load %arg15[%c7_647, %c0_648] : memref<98x32xf32, #tpu.memory_space<vmem>>, vector<5x32xf32>
    %c0_649 = arith.constant 0 : index
    %c0_650 = arith.constant 0 : index
    %408 = vector.load %arg16[%c0_649, %c0_650] : memref<98x32xf32, #tpu.memory_space<vmem>>, vector<5x32xf32>
    tpu.vector_store %arg16[%c0_649, %c0_650], %407 {strides = array<i32>} : memref<98x32xf32, #tpu.memory_space<vmem>>, vector<5x32xf32>,
    %c14_651 = arith.constant 14 : index
    %c0_652 = arith.constant 0 : index
    %409 = vector.load %arg15[%c14_651, %c0_652] : memref<98x32xf32, #tpu.memory_space<vmem>>, vector<5x32xf32>
    %c5_653 = arith.constant 5 : index
    %c0_654 = arith.constant 0 : index
    %410 = vector.load %arg16[%c5_653, %c0_654] : memref<98x32xf32, #tpu.memory_space<vmem>>, vector<5x32xf32>
    tpu.vector_store %arg16[%c5_653, %c0_654], %409 {strides = array<i32>} : memref<98x32xf32, #tpu.memory_space<vmem>>, vector<5x32xf32>,
    %c21_655 = arith.constant 21 : index
    %c0_656 = arith.constant 0 : index
    %411 = vector.load %arg15[%c21_655, %c0_656] : memref<98x32xf32, #tpu.memory_space<vmem>>, vector<5x32xf32>
    %c10_657 = arith.constant 10 : index
    %c0_658 = arith.constant 0 : index
    %412 = vector.load %arg16[%c10_657, %c0_658] : memref<98x32xf32, #tpu.memory_space<vmem>>, vector<5x32xf32>
    tpu.vector_store %arg16[%c10_657, %c0_658], %411 {strides = array<i32>} : memref<98x32xf32, #tpu.memory_space<vmem>>, vector<5x32xf32>,
    %c28_659 = arith.constant 28 : index
    %c0_660 = arith.constant 0 : index
    %413 = vector.load %arg15[%c28_659, %c0_660] : memref<98x32xf32, #tpu.memory_space<vmem>>, vector<5x32xf32>
    %c15_661 = arith.constant 15 : index
    %c0_662 = arith.constant 0 : index
    %414 = vector.load %arg16[%c15_661, %c0_662] : memref<98x32xf32, #tpu.memory_space<vmem>>, vector<5x32xf32>
    tpu.vector_store %arg16[%c15_661, %c0_662], %413 {strides = array<i32>} : memref<98x32xf32, #tpu.memory_space<vmem>>, vector<5x32xf32>,
    %c35_663 = arith.constant 35 : index
    %c0_664 = arith.constant 0 : index
    %415 = vector.load %arg15[%c35_663, %c0_664] : memref<98x32xf32, #tpu.memory_space<vmem>>, vector<5x32xf32>
    %c20_665 = arith.constant 20 : index
    %c0_666 = arith.constant 0 : index
    %416 = vector.load %arg16[%c20_665, %c0_666] : memref<98x32xf32, #tpu.memory_space<vmem>>, vector<5x32xf32>
    tpu.vector_store %arg16[%c20_665, %c0_666], %415 {strides = array<i32>} : memref<98x32xf32, #tpu.memory_space<vmem>>, vector<5x32xf32>,
    %c56_667 = arith.constant 56 : index
    %c0_668 = arith.constant 0 : index
    %417 = vector.load %arg15[%c56_667, %c0_668] : memref<98x32xf32, #tpu.memory_space<vmem>>, vector<5x32xf32>
    %c25_669 = arith.constant 25 : index
    %c0_670 = arith.constant 0 : index
    %418 = vector.load %arg16[%c25_669, %c0_670] : memref<98x32xf32, #tpu.memory_space<vmem>>, vector<5x32xf32>
    tpu.vector_store %arg16[%c25_669, %c0_670], %417 {strides = array<i32>} : memref<98x32xf32, #tpu.memory_space<vmem>>, vector<5x32xf32>,
    %c63_671 = arith.constant 63 : index
    %c0_672 = arith.constant 0 : index
    %419 = vector.load %arg15[%c63_671, %c0_672] : memref<98x32xf32, #tpu.memory_space<vmem>>, vector<5x32xf32>
    %c30_673 = arith.constant 30 : index
    %c0_674 = arith.constant 0 : index
    %420 = vector.load %arg16[%c30_673, %c0_674] : memref<98x32xf32, #tpu.memory_space<vmem>>, vector<5x32xf32>
    tpu.vector_store %arg16[%c30_673, %c0_674], %419 {strides = array<i32>} : memref<98x32xf32, #tpu.memory_space<vmem>>, vector<5x32xf32>,
    %c70_675 = arith.constant 70 : index
    %c0_676 = arith.constant 0 : index
    %421 = vector.load %arg15[%c70_675, %c0_676] : memref<98x32xf32, #tpu.memory_space<vmem>>, vector<5x32xf32>
    %c35_677 = arith.constant 35 : index
    %c0_678 = arith.constant 0 : index
    %422 = vector.load %arg16[%c35_677, %c0_678] : memref<98x32xf32, #tpu.memory_space<vmem>>, vector<5x32xf32>
    tpu.vector_store %arg16[%c35_677, %c0_678], %421 {strides = array<i32>} : memref<98x32xf32, #tpu.memory_space<vmem>>, vector<5x32xf32>,
    %c77_679 = arith.constant 77 : index
    %c0_680 = arith.constant 0 : index
    %423 = vector.load %arg15[%c77_679, %c0_680] : memref<98x32xf32, #tpu.memory_space<vmem>>, vector<5x32xf32>
    %c40_681 = arith.constant 40 : index
    %c0_682 = arith.constant 0 : index
    %424 = vector.load %arg16[%c40_681, %c0_682] : memref<98x32xf32, #tpu.memory_space<vmem>>, vector<5x32xf32>
    tpu.vector_store %arg16[%c40_681, %c0_682], %423 {strides = array<i32>} : memref<98x32xf32, #tpu.memory_space<vmem>>, vector<5x32xf32>,
    %c84_683 = arith.constant 84 : index
    %c0_684 = arith.constant 0 : index
    %425 = vector.load %arg15[%c84_683, %c0_684] : memref<98x32xf32, #tpu.memory_space<vmem>>, vector<5x32xf32>
    %c45_685 = arith.constant 45 : index
    %c0_686 = arith.constant 0 : index
    %426 = vector.load %arg16[%c45_685, %c0_686] : memref<98x32xf32, #tpu.memory_space<vmem>>, vector<5x32xf32>
    tpu.vector_store %arg16[%c45_685, %c0_686], %425 {strides = array<i32>} : memref<98x32xf32, #tpu.memory_space<vmem>>, vector<5x32xf32>,
    %c0_687 = arith.constant 0 : index
    %c0_688 = arith.constant 0 : index
    %427 = vector.load %arg16[%c0_687, %c0_688] : memref<98x32xf32, #tpu.memory_space<vmem>>, vector<50x32xf32>
    %c3_689 = arith.constant 3 : index
    %c0_690 = arith.constant 0 : index
    %c0_691 = arith.constant 0 : index
    %428 = vector.load %arg11[%c3_689, %c0_690, %c0_691] : memref<9x32x32xf32, #tpu.memory_space<vmem>>, vector<1x32x32xf32>
    %429 = vector.shape_cast %428 : vector<1x32x32xf32> to vector<32x32xf32>
    %cst_692 = arith.constant dense<0.000000e+00> : vector<50x32xf32>
    %430 = tpu.matmul %427, %429, %cst_692 {dimension_numbers = #tpu.dot_dimension_numbers<[1], [0], [0], [1], [0, 0, 1, 1], [], []>} : vector<50x32xf32>, vector<32x32xf32>, vector<50x32xf32> -> vector<50x32xf32>
    %431 = arith.addf %406, %430 : vector<50x32xf32>
    %c8_693 = arith.constant 8 : index
    %c0_694 = arith.constant 0 : index
    %432 = vector.load %arg15[%c8_693, %c0_694] : memref<98x32xf32, #tpu.memory_space<vmem>>, vector<5x32xf32>
    %c0_695 = arith.constant 0 : index
    %c0_696 = arith.constant 0 : index
    %433 = vector.load %arg16[%c0_695, %c0_696] : memref<98x32xf32, #tpu.memory_space<vmem>>, vector<5x32xf32>
    tpu.vector_store %arg16[%c0_695, %c0_696], %432 {strides = array<i32>} : memref<98x32xf32, #tpu.memory_space<vmem>>, vector<5x32xf32>,
    %c15_697 = arith.constant 15 : index
    %c0_698 = arith.constant 0 : index
    %434 = vector.load %arg15[%c15_697, %c0_698] : memref<98x32xf32, #tpu.memory_space<vmem>>, vector<5x32xf32>
    %c5_699 = arith.constant 5 : index
    %c0_700 = arith.constant 0 : index
    %435 = vector.load %arg16[%c5_699, %c0_700] : memref<98x32xf32, #tpu.memory_space<vmem>>, vector<5x32xf32>
    tpu.vector_store %arg16[%c5_699, %c0_700], %434 {strides = array<i32>} : memref<98x32xf32, #tpu.memory_space<vmem>>, vector<5x32xf32>,
    %c22_701 = arith.constant 22 : index
    %c0_702 = arith.constant 0 : index
    %436 = vector.load %arg15[%c22_701, %c0_702] : memref<98x32xf32, #tpu.memory_space<vmem>>, vector<5x32xf32>
    %c10_703 = arith.constant 10 : index
    %c0_704 = arith.constant 0 : index
    %437 = vector.load %arg16[%c10_703, %c0_704] : memref<98x32xf32, #tpu.memory_space<vmem>>, vector<5x32xf32>
    tpu.vector_store %arg16[%c10_703, %c0_704], %436 {strides = array<i32>} : memref<98x32xf32, #tpu.memory_space<vmem>>, vector<5x32xf32>,
    %c29_705 = arith.constant 29 : index
    %c0_706 = arith.constant 0 : index
    %438 = vector.load %arg15[%c29_705, %c0_706] : memref<98x32xf32, #tpu.memory_space<vmem>>, vector<5x32xf32>
    %c15_707 = arith.constant 15 : index
    %c0_708 = arith.constant 0 : index
    %439 = vector.load %arg16[%c15_707, %c0_708] : memref<98x32xf32, #tpu.memory_space<vmem>>, vector<5x32xf32>
    tpu.vector_store %arg16[%c15_707, %c0_708], %438 {strides = array<i32>} : memref<98x32xf32, #tpu.memory_space<vmem>>, vector<5x32xf32>,
    %c36_709 = arith.constant 36 : index
    %c0_710 = arith.constant 0 : index
    %440 = vector.load %arg15[%c36_709, %c0_710] : memref<98x32xf32, #tpu.memory_space<vmem>>, vector<5x32xf32>
    %c20_711 = arith.constant 20 : index
    %c0_712 = arith.constant 0 : index
    %441 = vector.load %arg16[%c20_711, %c0_712] : memref<98x32xf32, #tpu.memory_space<vmem>>, vector<5x32xf32>
    tpu.vector_store %arg16[%c20_711, %c0_712], %440 {strides = array<i32>} : memref<98x32xf32, #tpu.memory_space<vmem>>, vector<5x32xf32>,
    %c57_713 = arith.constant 57 : index
    %c0_714 = arith.constant 0 : index
    %442 = vector.load %arg15[%c57_713, %c0_714] : memref<98x32xf32, #tpu.memory_space<vmem>>, vector<5x32xf32>
    %c25_715 = arith.constant 25 : index
    %c0_716 = arith.constant 0 : index
    %443 = vector.load %arg16[%c25_715, %c0_716] : memref<98x32xf32, #tpu.memory_space<vmem>>, vector<5x32xf32>
    tpu.vector_store %arg16[%c25_715, %c0_716], %442 {strides = array<i32>} : memref<98x32xf32, #tpu.memory_space<vmem>>, vector<5x32xf32>,
    %c64_717 = arith.constant 64 : index
    %c0_718 = arith.constant 0 : index
    %444 = vector.load %arg15[%c64_717, %c0_718] : memref<98x32xf32, #tpu.memory_space<vmem>>, vector<5x32xf32>
    %c30_719 = arith.constant 30 : index
    %c0_720 = arith.constant 0 : index
    %445 = vector.load %arg16[%c30_719, %c0_720] : memref<98x32xf32, #tpu.memory_space<vmem>>, vector<5x32xf32>
    tpu.vector_store %arg16[%c30_719, %c0_720], %444 {strides = array<i32>} : memref<98x32xf32, #tpu.memory_space<vmem>>, vector<5x32xf32>,
    %c71_721 = arith.constant 71 : index
    %c0_722 = arith.constant 0 : index
    %446 = vector.load %arg15[%c71_721, %c0_722] : memref<98x32xf32, #tpu.memory_space<vmem>>, vector<5x32xf32>
    %c35_723 = arith.constant 35 : index
    %c0_724 = arith.constant 0 : index
    %447 = vector.load %arg16[%c35_723, %c0_724] : memref<98x32xf32, #tpu.memory_space<vmem>>, vector<5x32xf32>
    tpu.vector_store %arg16[%c35_723, %c0_724], %446 {strides = array<i32>} : memref<98x32xf32, #tpu.memory_space<vmem>>, vector<5x32xf32>,
    %c78_725 = arith.constant 78 : index
    %c0_726 = arith.constant 0 : index
    %448 = vector.load %arg15[%c78_725, %c0_726] : memref<98x32xf32, #tpu.memory_space<vmem>>, vector<5x32xf32>
    %c40_727 = arith.constant 40 : index
    %c0_728 = arith.constant 0 : index
    %449 = vector.load %arg16[%c40_727, %c0_728] : memref<98x32xf32, #tpu.memory_space<vmem>>, vector<5x32xf32>
    tpu.vector_store %arg16[%c40_727, %c0_728], %448 {strides = array<i32>} : memref<98x32xf32, #tpu.memory_space<vmem>>, vector<5x32xf32>,
    %c85 = arith.constant 85 : index
    %c0_729 = arith.constant 0 : index
    %450 = vector.load %arg15[%c85, %c0_729] : memref<98x32xf32, #tpu.memory_space<vmem>>, vector<5x32xf32>
    %c45_730 = arith.constant 45 : index
    %c0_731 = arith.constant 0 : index
    %451 = vector.load %arg16[%c45_730, %c0_731] : memref<98x32xf32, #tpu.memory_space<vmem>>, vector<5x32xf32>
    tpu.vector_store %arg16[%c45_730, %c0_731], %450 {strides = array<i32>} : memref<98x32xf32, #tpu.memory_space<vmem>>, vector<5x32xf32>,
    %c0_732 = arith.constant 0 : index
    %c0_733 = arith.constant 0 : index
    %452 = vector.load %arg16[%c0_732, %c0_733] : memref<98x32xf32, #tpu.memory_space<vmem>>, vector<50x32xf32>
    %c4_734 = arith.constant 4 : index
    %c0_735 = arith.constant 0 : index
    %c0_736 = arith.constant 0 : index
    %453 = vector.load %arg11[%c4_734, %c0_735, %c0_736] : memref<9x32x32xf32, #tpu.memory_space<vmem>>, vector<1x32x32xf32>
    %454 = vector.shape_cast %453 : vector<1x32x32xf32> to vector<32x32xf32>
    %cst_737 = arith.constant dense<0.000000e+00> : vector<50x32xf32>
    %455 = tpu.matmul %452, %454, %cst_737 {dimension_numbers = #tpu.dot_dimension_numbers<[1], [0], [0], [1], [0, 0, 1, 1], [], []>} : vector<50x32xf32>, vector<32x32xf32>, vector<50x32xf32> -> vector<50x32xf32>
    %456 = arith.addf %431, %455 : vector<50x32xf32>
    %c9_738 = arith.constant 9 : index
    %c0_739 = arith.constant 0 : index
    %457 = vector.load %arg15[%c9_738, %c0_739] : memref<98x32xf32, #tpu.memory_space<vmem>>, vector<5x32xf32>
    %c0_740 = arith.constant 0 : index
    %c0_741 = arith.constant 0 : index
    %458 = vector.load %arg16[%c0_740, %c0_741] : memref<98x32xf32, #tpu.memory_space<vmem>>, vector<5x32xf32>
    tpu.vector_store %arg16[%c0_740, %c0_741], %457 {strides = array<i32>} : memref<98x32xf32, #tpu.memory_space<vmem>>, vector<5x32xf32>,
    %c16_742 = arith.constant 16 : index
    %c0_743 = arith.constant 0 : index
    %459 = vector.load %arg15[%c16_742, %c0_743] : memref<98x32xf32, #tpu.memory_space<vmem>>, vector<5x32xf32>
    %c5_744 = arith.constant 5 : index
    %c0_745 = arith.constant 0 : index
    %460 = vector.load %arg16[%c5_744, %c0_745] : memref<98x32xf32, #tpu.memory_space<vmem>>, vector<5x32xf32>
    tpu.vector_store %arg16[%c5_744, %c0_745], %459 {strides = array<i32>} : memref<98x32xf32, #tpu.memory_space<vmem>>, vector<5x32xf32>,
    %c23_746 = arith.constant 23 : index
    %c0_747 = arith.constant 0 : index
    %461 = vector.load %arg15[%c23_746, %c0_747] : memref<98x32xf32, #tpu.memory_space<vmem>>, vector<5x32xf32>
    %c10_748 = arith.constant 10 : index
    %c0_749 = arith.constant 0 : index
    %462 = vector.load %arg16[%c10_748, %c0_749] : memref<98x32xf32, #tpu.memory_space<vmem>>, vector<5x32xf32>
    tpu.vector_store %arg16[%c10_748, %c0_749], %461 {strides = array<i32>} : memref<98x32xf32, #tpu.memory_space<vmem>>, vector<5x32xf32>,
    %c30_750 = arith.constant 30 : index
    %c0_751 = arith.constant 0 : index
    %463 = vector.load %arg15[%c30_750, %c0_751] : memref<98x32xf32, #tpu.memory_space<vmem>>, vector<5x32xf32>
    %c15_752 = arith.constant 15 : index
    %c0_753 = arith.constant 0 : index
    %464 = vector.load %arg16[%c15_752, %c0_753] : memref<98x32xf32, #tpu.memory_space<vmem>>, vector<5x32xf32>
    tpu.vector_store %arg16[%c15_752, %c0_753], %463 {strides = array<i32>} : memref<98x32xf32, #tpu.memory_space<vmem>>, vector<5x32xf32>,
    %c37_754 = arith.constant 37 : index
    %c0_755 = arith.constant 0 : index
    %465 = vector.load %arg15[%c37_754, %c0_755] : memref<98x32xf32, #tpu.memory_space<vmem>>, vector<5x32xf32>
    %c20_756 = arith.constant 20 : index
    %c0_757 = arith.constant 0 : index
    %466 = vector.load %arg16[%c20_756, %c0_757] : memref<98x32xf32, #tpu.memory_space<vmem>>, vector<5x32xf32>
    tpu.vector_store %arg16[%c20_756, %c0_757], %465 {strides = array<i32>} : memref<98x32xf32, #tpu.memory_space<vmem>>, vector<5x32xf32>,
    %c58_758 = arith.constant 58 : index
    %c0_759 = arith.constant 0 : index
    %467 = vector.load %arg15[%c58_758, %c0_759] : memref<98x32xf32, #tpu.memory_space<vmem>>, vector<5x32xf32>
    %c25_760 = arith.constant 25 : index
    %c0_761 = arith.constant 0 : index
    %468 = vector.load %arg16[%c25_760, %c0_761] : memref<98x32xf32, #tpu.memory_space<vmem>>, vector<5x32xf32>
    tpu.vector_store %arg16[%c25_760, %c0_761], %467 {strides = array<i32>} : memref<98x32xf32, #tpu.memory_space<vmem>>, vector<5x32xf32>,
    %c65_762 = arith.constant 65 : index
    %c0_763 = arith.constant 0 : index
    %469 = vector.load %arg15[%c65_762, %c0_763] : memref<98x32xf32, #tpu.memory_space<vmem>>, vector<5x32xf32>
    %c30_764 = arith.constant 30 : index
    %c0_765 = arith.constant 0 : index
    %470 = vector.load %arg16[%c30_764, %c0_765] : memref<98x32xf32, #tpu.memory_space<vmem>>, vector<5x32xf32>
    tpu.vector_store %arg16[%c30_764, %c0_765], %469 {strides = array<i32>} : memref<98x32xf32, #tpu.memory_space<vmem>>, vector<5x32xf32>,
    %c72_766 = arith.constant 72 : index
    %c0_767 = arith.constant 0 : index
    %471 = vector.load %arg15[%c72_766, %c0_767] : memref<98x32xf32, #tpu.memory_space<vmem>>, vector<5x32xf32>
    %c35_768 = arith.constant 35 : index
    %c0_769 = arith.constant 0 : index
    %472 = vector.load %arg16[%c35_768, %c0_769] : memref<98x32xf32, #tpu.memory_space<vmem>>, vector<5x32xf32>
    tpu.vector_store %arg16[%c35_768, %c0_769], %471 {strides = array<i32>} : memref<98x32xf32, #tpu.memory_space<vmem>>, vector<5x32xf32>,
    %c79_770 = arith.constant 79 : index
    %c0_771 = arith.constant 0 : index
    %473 = vector.load %arg15[%c79_770, %c0_771] : memref<98x32xf32, #tpu.memory_space<vmem>>, vector<5x32xf32>
    %c40_772 = arith.constant 40 : index
    %c0_773 = arith.constant 0 : index
    %474 = vector.load %arg16[%c40_772, %c0_773] : memref<98x32xf32, #tpu.memory_space<vmem>>, vector<5x32xf32>
    tpu.vector_store %arg16[%c40_772, %c0_773], %473 {strides = array<i32>} : memref<98x32xf32, #tpu.memory_space<vmem>>, vector<5x32xf32>,
    %c86 = arith.constant 86 : index
    %c0_774 = arith.constant 0 : index
    %475 = vector.load %arg15[%c86, %c0_774] : memref<98x32xf32, #tpu.memory_space<vmem>>, vector<5x32xf32>
    %c45_775 = arith.constant 45 : index
    %c0_776 = arith.constant 0 : index
    %476 = vector.load %arg16[%c45_775, %c0_776] : memref<98x32xf32, #tpu.memory_space<vmem>>, vector<5x32xf32>
    tpu.vector_store %arg16[%c45_775, %c0_776], %475 {strides = array<i32>} : memref<98x32xf32, #tpu.memory_space<vmem>>, vector<5x32xf32>,
    %c0_777 = arith.constant 0 : index
    %c0_778 = arith.constant 0 : index
    %477 = vector.load %arg16[%c0_777, %c0_778] : memref<98x32xf32, #tpu.memory_space<vmem>>, vector<50x32xf32>
    %c5_779 = arith.constant 5 : index
    %c0_780 = arith.constant 0 : index
    %c0_781 = arith.constant 0 : index
    %478 = vector.load %arg11[%c5_779, %c0_780, %c0_781] : memref<9x32x32xf32, #tpu.memory_space<vmem>>, vector<1x32x32xf32>
    %479 = vector.shape_cast %478 : vector<1x32x32xf32> to vector<32x32xf32>
    %cst_782 = arith.constant dense<0.000000e+00> : vector<50x32xf32>
    %480 = tpu.matmul %477, %479, %cst_782 {dimension_numbers = #tpu.dot_dimension_numbers<[1], [0], [0], [1], [0, 0, 1, 1], [], []>} : vector<50x32xf32>, vector<32x32xf32>, vector<50x32xf32> -> vector<50x32xf32>
    %481 = arith.addf %456, %480 : vector<50x32xf32>
    %c14_783 = arith.constant 14 : index
    %c0_784 = arith.constant 0 : index
    %482 = vector.load %arg15[%c14_783, %c0_784] : memref<98x32xf32, #tpu.memory_space<vmem>>, vector<5x32xf32>
    %c0_785 = arith.constant 0 : index
    %c0_786 = arith.constant 0 : index
    %483 = vector.load %arg16[%c0_785, %c0_786] : memref<98x32xf32, #tpu.memory_space<vmem>>, vector<5x32xf32>
    tpu.vector_store %arg16[%c0_785, %c0_786], %482 {strides = array<i32>} : memref<98x32xf32, #tpu.memory_space<vmem>>, vector<5x32xf32>,
    %c21_787 = arith.constant 21 : index
    %c0_788 = arith.constant 0 : index
    %484 = vector.load %arg15[%c21_787, %c0_788] : memref<98x32xf32, #tpu.memory_space<vmem>>, vector<5x32xf32>
    %c5_789 = arith.constant 5 : index
    %c0_790 = arith.constant 0 : index
    %485 = vector.load %arg16[%c5_789, %c0_790] : memref<98x32xf32, #tpu.memory_space<vmem>>, vector<5x32xf32>
    tpu.vector_store %arg16[%c5_789, %c0_790], %484 {strides = array<i32>} : memref<98x32xf32, #tpu.memory_space<vmem>>, vector<5x32xf32>,
    %c28_791 = arith.constant 28 : index
    %c0_792 = arith.constant 0 : index
    %486 = vector.load %arg15[%c28_791, %c0_792] : memref<98x32xf32, #tpu.memory_space<vmem>>, vector<5x32xf32>
    %c10_793 = arith.constant 10 : index
    %c0_794 = arith.constant 0 : index
    %487 = vector.load %arg16[%c10_793, %c0_794] : memref<98x32xf32, #tpu.memory_space<vmem>>, vector<5x32xf32>
    tpu.vector_store %arg16[%c10_793, %c0_794], %486 {strides = array<i32>} : memref<98x32xf32, #tpu.memory_space<vmem>>, vector<5x32xf32>,
    %c35_795 = arith.constant 35 : index
    %c0_796 = arith.constant 0 : index
    %488 = vector.load %arg15[%c35_795, %c0_796] : memref<98x32xf32, #tpu.memory_space<vmem>>, vector<5x32xf32>
    %c15_797 = arith.constant 15 : index
    %c0_798 = arith.constant 0 : index
    %489 = vector.load %arg16[%c15_797, %c0_798] : memref<98x32xf32, #tpu.memory_space<vmem>>, vector<5x32xf32>
    tpu.vector_store %arg16[%c15_797, %c0_798], %488 {strides = array<i32>} : memref<98x32xf32, #tpu.memory_space<vmem>>, vector<5x32xf32>,
    %c42_799 = arith.constant 42 : index
    %c0_800 = arith.constant 0 : index
    %490 = vector.load %arg15[%c42_799, %c0_800] : memref<98x32xf32, #tpu.memory_space<vmem>>, vector<5x32xf32>
    %c20_801 = arith.constant 20 : index
    %c0_802 = arith.constant 0 : index
    %491 = vector.load %arg16[%c20_801, %c0_802] : memref<98x32xf32, #tpu.memory_space<vmem>>, vector<5x32xf32>
    tpu.vector_store %arg16[%c20_801, %c0_802], %490 {strides = array<i32>} : memref<98x32xf32, #tpu.memory_space<vmem>>, vector<5x32xf32>,
    %c63_803 = arith.constant 63 : index
    %c0_804 = arith.constant 0 : index
    %492 = vector.load %arg15[%c63_803, %c0_804] : memref<98x32xf32, #tpu.memory_space<vmem>>, vector<5x32xf32>
    %c25_805 = arith.constant 25 : index
    %c0_806 = arith.constant 0 : index
    %493 = vector.load %arg16[%c25_805, %c0_806] : memref<98x32xf32, #tpu.memory_space<vmem>>, vector<5x32xf32>
    tpu.vector_store %arg16[%c25_805, %c0_806], %492 {strides = array<i32>} : memref<98x32xf32, #tpu.memory_space<vmem>>, vector<5x32xf32>,
    %c70_807 = arith.constant 70 : index
    %c0_808 = arith.constant 0 : index
    %494 = vector.load %arg15[%c70_807, %c0_808] : memref<98x32xf32, #tpu.memory_space<vmem>>, vector<5x32xf32>
    %c30_809 = arith.constant 30 : index
    %c0_810 = arith.constant 0 : index
    %495 = vector.load %arg16[%c30_809, %c0_810] : memref<98x32xf32, #tpu.memory_space<vmem>>, vector<5x32xf32>
    tpu.vector_store %arg16[%c30_809, %c0_810], %494 {strides = array<i32>} : memref<98x32xf32, #tpu.memory_space<vmem>>, vector<5x32xf32>,
    %c77_811 = arith.constant 77 : index
    %c0_812 = arith.constant 0 : index
    %496 = vector.load %arg15[%c77_811, %c0_812] : memref<98x32xf32, #tpu.memory_space<vmem>>, vector<5x32xf32>
    %c35_813 = arith.constant 35 : index
    %c0_814 = arith.constant 0 : index
    %497 = vector.load %arg16[%c35_813, %c0_814] : memref<98x32xf32, #tpu.memory_space<vmem>>, vector<5x32xf32>
    tpu.vector_store %arg16[%c35_813, %c0_814], %496 {strides = array<i32>} : memref<98x32xf32, #tpu.memory_space<vmem>>, vector<5x32xf32>,
    %c84_815 = arith.constant 84 : index
    %c0_816 = arith.constant 0 : index
    %498 = vector.load %arg15[%c84_815, %c0_816] : memref<98x32xf32, #tpu.memory_space<vmem>>, vector<5x32xf32>
    %c40_817 = arith.constant 40 : index
    %c0_818 = arith.constant 0 : index
    %499 = vector.load %arg16[%c40_817, %c0_818] : memref<98x32xf32, #tpu.memory_space<vmem>>, vector<5x32xf32>
    tpu.vector_store %arg16[%c40_817, %c0_818], %498 {strides = array<i32>} : memref<98x32xf32, #tpu.memory_space<vmem>>, vector<5x32xf32>,
    %c91_819 = arith.constant 91 : index
    %c0_820 = arith.constant 0 : index
    %500 = vector.load %arg15[%c91_819, %c0_820] : memref<98x32xf32, #tpu.memory_space<vmem>>, vector<5x32xf32>
    %c45_821 = arith.constant 45 : index
    %c0_822 = arith.constant 0 : index
    %501 = vector.load %arg16[%c45_821, %c0_822] : memref<98x32xf32, #tpu.memory_space<vmem>>, vector<5x32xf32>
    tpu.vector_store %arg16[%c45_821, %c0_822], %500 {strides = array<i32>} : memref<98x32xf32, #tpu.memory_space<vmem>>, vector<5x32xf32>,
    %c0_823 = arith.constant 0 : index
    %c0_824 = arith.constant 0 : index
    %502 = vector.load %arg16[%c0_823, %c0_824] : memref<98x32xf32, #tpu.memory_space<vmem>>, vector<50x32xf32>
    %c6_825 = arith.constant 6 : index
    %c0_826 = arith.constant 0 : index
    %c0_827 = arith.constant 0 : index
    %503 = vector.load %arg11[%c6_825, %c0_826, %c0_827] : memref<9x32x32xf32, #tpu.memory_space<vmem>>, vector<1x32x32xf32>
    %504 = vector.shape_cast %503 : vector<1x32x32xf32> to vector<32x32xf32>
    %cst_828 = arith.constant dense<0.000000e+00> : vector<50x32xf32>
    %505 = tpu.matmul %502, %504, %cst_828 {dimension_numbers = #tpu.dot_dimension_numbers<[1], [0], [0], [1], [0, 0, 1, 1], [], []>} : vector<50x32xf32>, vector<32x32xf32>, vector<50x32xf32> -> vector<50x32xf32>
    %506 = arith.addf %481, %505 : vector<50x32xf32>
    %c15_829 = arith.constant 15 : index
    %c0_830 = arith.constant 0 : index
    %507 = vector.load %arg15[%c15_829, %c0_830] : memref<98x32xf32, #tpu.memory_space<vmem>>, vector<5x32xf32>
    %c0_831 = arith.constant 0 : index
    %c0_832 = arith.constant 0 : index
    %508 = vector.load %arg16[%c0_831, %c0_832] : memref<98x32xf32, #tpu.memory_space<vmem>>, vector<5x32xf32>
    tpu.vector_store %arg16[%c0_831, %c0_832], %507 {strides = array<i32>} : memref<98x32xf32, #tpu.memory_space<vmem>>, vector<5x32xf32>,
    %c22_833 = arith.constant 22 : index
    %c0_834 = arith.constant 0 : index
    %509 = vector.load %arg15[%c22_833, %c0_834] : memref<98x32xf32, #tpu.memory_space<vmem>>, vector<5x32xf32>
    %c5_835 = arith.constant 5 : index
    %c0_836 = arith.constant 0 : index
    %510 = vector.load %arg16[%c5_835, %c0_836] : memref<98x32xf32, #tpu.memory_space<vmem>>, vector<5x32xf32>
    tpu.vector_store %arg16[%c5_835, %c0_836], %509 {strides = array<i32>} : memref<98x32xf32, #tpu.memory_space<vmem>>, vector<5x32xf32>,
    %c29_837 = arith.constant 29 : index
    %c0_838 = arith.constant 0 : index
    %511 = vector.load %arg15[%c29_837, %c0_838] : memref<98x32xf32, #tpu.memory_space<vmem>>, vector<5x32xf32>
    %c10_839 = arith.constant 10 : index
    %c0_840 = arith.constant 0 : index
    %512 = vector.load %arg16[%c10_839, %c0_840] : memref<98x32xf32, #tpu.memory_space<vmem>>, vector<5x32xf32>
    tpu.vector_store %arg16[%c10_839, %c0_840], %511 {strides = array<i32>} : memref<98x32xf32, #tpu.memory_space<vmem>>, vector<5x32xf32>,
    %c36_841 = arith.constant 36 : index
    %c0_842 = arith.constant 0 : index
    %513 = vector.load %arg15[%c36_841, %c0_842] : memref<98x32xf32, #tpu.memory_space<vmem>>, vector<5x32xf32>
    %c15_843 = arith.constant 15 : index
    %c0_844 = arith.constant 0 : index
    %514 = vector.load %arg16[%c15_843, %c0_844] : memref<98x32xf32, #tpu.memory_space<vmem>>, vector<5x32xf32>
    tpu.vector_store %arg16[%c15_843, %c0_844], %513 {strides = array<i32>} : memref<98x32xf32, #tpu.memory_space<vmem>>, vector<5x32xf32>,
    %c43 = arith.constant 43 : index
    %c0_845 = arith.constant 0 : index
    %515 = vector.load %arg15[%c43, %c0_845] : memref<98x32xf32, #tpu.memory_space<vmem>>, vector<5x32xf32>
    %c20_846 = arith.constant 20 : index
    %c0_847 = arith.constant 0 : index
    %516 = vector.load %arg16[%c20_846, %c0_847] : memref<98x32xf32, #tpu.memory_space<vmem>>, vector<5x32xf32>
    tpu.vector_store %arg16[%c20_846, %c0_847], %515 {strides = array<i32>} : memref<98x32xf32, #tpu.memory_space<vmem>>, vector<5x32xf32>,
    %c64_848 = arith.constant 64 : index
    %c0_849 = arith.constant 0 : index
    %517 = vector.load %arg15[%c64_848, %c0_849] : memref<98x32xf32, #tpu.memory_space<vmem>>, vector<5x32xf32>
    %c25_850 = arith.constant 25 : index
    %c0_851 = arith.constant 0 : index
    %518 = vector.load %arg16[%c25_850, %c0_851] : memref<98x32xf32, #tpu.memory_space<vmem>>, vector<5x32xf32>
    tpu.vector_store %arg16[%c25_850, %c0_851], %517 {strides = array<i32>} : memref<98x32xf32, #tpu.memory_space<vmem>>, vector<5x32xf32>,
    %c71_852 = arith.constant 71 : index
    %c0_853 = arith.constant 0 : index
    %519 = vector.load %arg15[%c71_852, %c0_853] : memref<98x32xf32, #tpu.memory_space<vmem>>, vector<5x32xf32>
    %c30_854 = arith.constant 30 : index
    %c0_855 = arith.constant 0 : index
    %520 = vector.load %arg16[%c30_854, %c0_855] : memref<98x32xf32, #tpu.memory_space<vmem>>, vector<5x32xf32>
    tpu.vector_store %arg16[%c30_854, %c0_855], %519 {strides = array<i32>} : memref<98x32xf32, #tpu.memory_space<vmem>>, vector<5x32xf32>,
    %c78_856 = arith.constant 78 : index
    %c0_857 = arith.constant 0 : index
    %521 = vector.load %arg15[%c78_856, %c0_857] : memref<98x32xf32, #tpu.memory_space<vmem>>, vector<5x32xf32>
    %c35_858 = arith.constant 35 : index
    %c0_859 = arith.constant 0 : index
    %522 = vector.load %arg16[%c35_858, %c0_859] : memref<98x32xf32, #tpu.memory_space<vmem>>, vector<5x32xf32>
    tpu.vector_store %arg16[%c35_858, %c0_859], %521 {strides = array<i32>} : memref<98x32xf32, #tpu.memory_space<vmem>>, vector<5x32xf32>,
    %c85_860 = arith.constant 85 : index
    %c0_861 = arith.constant 0 : index
    %523 = vector.load %arg15[%c85_860, %c0_861] : memref<98x32xf32, #tpu.memory_space<vmem>>, vector<5x32xf32>
    %c40_862 = arith.constant 40 : index
    %c0_863 = arith.constant 0 : index
    %524 = vector.load %arg16[%c40_862, %c0_863] : memref<98x32xf32, #tpu.memory_space<vmem>>, vector<5x32xf32>
    tpu.vector_store %arg16[%c40_862, %c0_863], %523 {strides = array<i32>} : memref<98x32xf32, #tpu.memory_space<vmem>>, vector<5x32xf32>,
    %c92_864 = arith.constant 92 : index
    %c0_865 = arith.constant 0 : index
    %525 = vector.load %arg15[%c92_864, %c0_865] : memref<98x32xf32, #tpu.memory_space<vmem>>, vector<5x32xf32>
    %c45_866 = arith.constant 45 : index
    %c0_867 = arith.constant 0 : index
    %526 = vector.load %arg16[%c45_866, %c0_867] : memref<98x32xf32, #tpu.memory_space<vmem>>, vector<5x32xf32>
    tpu.vector_store %arg16[%c45_866, %c0_867], %525 {strides = array<i32>} : memref<98x32xf32, #tpu.memory_space<vmem>>, vector<5x32xf32>,
    %c0_868 = arith.constant 0 : index
    %c0_869 = arith.constant 0 : index
    %527 = vector.load %arg16[%c0_868, %c0_869] : memref<98x32xf32, #tpu.memory_space<vmem>>, vector<50x32xf32>
    %c7_870 = arith.constant 7 : index
    %c0_871 = arith.constant 0 : index
    %c0_872 = arith.constant 0 : index
    %528 = vector.load %arg11[%c7_870, %c0_871, %c0_872] : memref<9x32x32xf32, #tpu.memory_space<vmem>>, vector<1x32x32xf32>
    %529 = vector.shape_cast %528 : vector<1x32x32xf32> to vector<32x32xf32>
    %cst_873 = arith.constant dense<0.000000e+00> : vector<50x32xf32>
    %530 = tpu.matmul %527, %529, %cst_873 {dimension_numbers = #tpu.dot_dimension_numbers<[1], [0], [0], [1], [0, 0, 1, 1], [], []>} : vector<50x32xf32>, vector<32x32xf32>, vector<50x32xf32> -> vector<50x32xf32>
    %531 = arith.addf %506, %530 : vector<50x32xf32>
    %c16_874 = arith.constant 16 : index
    %c0_875 = arith.constant 0 : index
    %532 = vector.load %arg15[%c16_874, %c0_875] : memref<98x32xf32, #tpu.memory_space<vmem>>, vector<5x32xf32>
    %c0_876 = arith.constant 0 : index
    %c0_877 = arith.constant 0 : index
    %533 = vector.load %arg16[%c0_876, %c0_877] : memref<98x32xf32, #tpu.memory_space<vmem>>, vector<5x32xf32>
    tpu.vector_store %arg16[%c0_876, %c0_877], %532 {strides = array<i32>} : memref<98x32xf32, #tpu.memory_space<vmem>>, vector<5x32xf32>,
    %c23_878 = arith.constant 23 : index
    %c0_879 = arith.constant 0 : index
    %534 = vector.load %arg15[%c23_878, %c0_879] : memref<98x32xf32, #tpu.memory_space<vmem>>, vector<5x32xf32>
    %c5_880 = arith.constant 5 : index
    %c0_881 = arith.constant 0 : index
    %535 = vector.load %arg16[%c5_880, %c0_881] : memref<98x32xf32, #tpu.memory_space<vmem>>, vector<5x32xf32>
    tpu.vector_store %arg16[%c5_880, %c0_881], %534 {strides = array<i32>} : memref<98x32xf32, #tpu.memory_space<vmem>>, vector<5x32xf32>,
    %c30_882 = arith.constant 30 : index
    %c0_883 = arith.constant 0 : index
    %536 = vector.load %arg15[%c30_882, %c0_883] : memref<98x32xf32, #tpu.memory_space<vmem>>, vector<5x32xf32>
    %c10_884 = arith.constant 10 : index
    %c0_885 = arith.constant 0 : index
    %537 = vector.load %arg16[%c10_884, %c0_885] : memref<98x32xf32, #tpu.memory_space<vmem>>, vector<5x32xf32>
    tpu.vector_store %arg16[%c10_884, %c0_885], %536 {strides = array<i32>} : memref<98x32xf32, #tpu.memory_space<vmem>>, vector<5x32xf32>,
    %c37_886 = arith.constant 37 : index
    %c0_887 = arith.constant 0 : index
    %538 = vector.load %arg15[%c37_886, %c0_887] : memref<98x32xf32, #tpu.memory_space<vmem>>, vector<5x32xf32>
    %c15_888 = arith.constant 15 : index
    %c0_889 = arith.constant 0 : index
    %539 = vector.load %arg16[%c15_888, %c0_889] : memref<98x32xf32, #tpu.memory_space<vmem>>, vector<5x32xf32>
    tpu.vector_store %arg16[%c15_888, %c0_889], %538 {strides = array<i32>} : memref<98x32xf32, #tpu.memory_space<vmem>>, vector<5x32xf32>,
    %c44 = arith.constant 44 : index
    %c0_890 = arith.constant 0 : index
    %540 = vector.load %arg15[%c44, %c0_890] : memref<98x32xf32, #tpu.memory_space<vmem>>, vector<5x32xf32>
    %c20_891 = arith.constant 20 : index
    %c0_892 = arith.constant 0 : index
    %541 = vector.load %arg16[%c20_891, %c0_892] : memref<98x32xf32, #tpu.memory_space<vmem>>, vector<5x32xf32>
    tpu.vector_store %arg16[%c20_891, %c0_892], %540 {strides = array<i32>} : memref<98x32xf32, #tpu.memory_space<vmem>>, vector<5x32xf32>,
    %c65_893 = arith.constant 65 : index
    %c0_894 = arith.constant 0 : index
    %542 = vector.load %arg15[%c65_893, %c0_894] : memref<98x32xf32, #tpu.memory_space<vmem>>, vector<5x32xf32>
    %c25_895 = arith.constant 25 : index
    %c0_896 = arith.constant 0 : index
    %543 = vector.load %arg16[%c25_895, %c0_896] : memref<98x32xf32, #tpu.memory_space<vmem>>, vector<5x32xf32>
    tpu.vector_store %arg16[%c25_895, %c0_896], %542 {strides = array<i32>} : memref<98x32xf32, #tpu.memory_space<vmem>>, vector<5x32xf32>,
    %c72_897 = arith.constant 72 : index
    %c0_898 = arith.constant 0 : index
    %544 = vector.load %arg15[%c72_897, %c0_898] : memref<98x32xf32, #tpu.memory_space<vmem>>, vector<5x32xf32>
    %c30_899 = arith.constant 30 : index
    %c0_900 = arith.constant 0 : index
    %545 = vector.load %arg16[%c30_899, %c0_900] : memref<98x32xf32, #tpu.memory_space<vmem>>, vector<5x32xf32>
    tpu.vector_store %arg16[%c30_899, %c0_900], %544 {strides = array<i32>} : memref<98x32xf32, #tpu.memory_space<vmem>>, vector<5x32xf32>,
    %c79_901 = arith.constant 79 : index
    %c0_902 = arith.constant 0 : index
    %546 = vector.load %arg15[%c79_901, %c0_902] : memref<98x32xf32, #tpu.memory_space<vmem>>, vector<5x32xf32>
    %c35_903 = arith.constant 35 : index
    %c0_904 = arith.constant 0 : index
    %547 = vector.load %arg16[%c35_903, %c0_904] : memref<98x32xf32, #tpu.memory_space<vmem>>, vector<5x32xf32>
    tpu.vector_store %arg16[%c35_903, %c0_904], %546 {strides = array<i32>} : memref<98x32xf32, #tpu.memory_space<vmem>>, vector<5x32xf32>,
    %c86_905 = arith.constant 86 : index
    %c0_906 = arith.constant 0 : index
    %548 = vector.load %arg15[%c86_905, %c0_906] : memref<98x32xf32, #tpu.memory_space<vmem>>, vector<5x32xf32>
    %c40_907 = arith.constant 40 : index
    %c0_908 = arith.constant 0 : index
    %549 = vector.load %arg16[%c40_907, %c0_908] : memref<98x32xf32, #tpu.memory_space<vmem>>, vector<5x32xf32>
    tpu.vector_store %arg16[%c40_907, %c0_908], %548 {strides = array<i32>} : memref<98x32xf32, #tpu.memory_space<vmem>>, vector<5x32xf32>,
    %c93 = arith.constant 93 : index
    %c0_909 = arith.constant 0 : index
    %550 = vector.load %arg15[%c93, %c0_909] : memref<98x32xf32, #tpu.memory_space<vmem>>, vector<5x32xf32>
    %c45_910 = arith.constant 45 : index
    %c0_911 = arith.constant 0 : index
    %551 = vector.load %arg16[%c45_910, %c0_911] : memref<98x32xf32, #tpu.memory_space<vmem>>, vector<5x32xf32>
    tpu.vector_store %arg16[%c45_910, %c0_911], %550 {strides = array<i32>} : memref<98x32xf32, #tpu.memory_space<vmem>>, vector<5x32xf32>,
    %c0_912 = arith.constant 0 : index
    %c0_913 = arith.constant 0 : index
    %552 = vector.load %arg16[%c0_912, %c0_913] : memref<98x32xf32, #tpu.memory_space<vmem>>, vector<50x32xf32>
    %c8_914 = arith.constant 8 : index
    %c0_915 = arith.constant 0 : index
    %c0_916 = arith.constant 0 : index
    %553 = vector.load %arg11[%c8_914, %c0_915, %c0_916] : memref<9x32x32xf32, #tpu.memory_space<vmem>>, vector<1x32x32xf32>
    %554 = vector.shape_cast %553 : vector<1x32x32xf32> to vector<32x32xf32>
    %cst_917 = arith.constant dense<0.000000e+00> : vector<50x32xf32>
    %555 = tpu.matmul %552, %554, %cst_917 {dimension_numbers = #tpu.dot_dimension_numbers<[1], [0], [0], [1], [0, 0, 1, 1], [], []>} : vector<50x32xf32>, vector<32x32xf32>, vector<50x32xf32> -> vector<50x32xf32>
    %556 = arith.addf %531, %555 : vector<50x32xf32>
    %c0_918 = arith.constant 0 : index
    %c0_919 = arith.constant 0 : index
    %557 = vector.load %arg12[%c0_918, %c0_919] : memref<1x32xf32, #tpu.memory_space<vmem>>, vector<1x32xf32>
    %558 = vector.broadcast %557 : vector<1x32xf32> to vector<50x32xf32>
    %559 = arith.addf %556, %558 : vector<50x32xf32>
    %cst_920 = arith.constant 0.000000e+00 : f32
    %560 = vector.broadcast %cst_920 : f32 to vector<50x32xf32>
    %561 = arith.maximumf %559, %560 : vector<50x32xf32>
    %c0_921 = arith.constant 0 : index
    %c0_922 = arith.constant 0 : index
    %562 = vector.load %arg13[%c0_921, %c0_922] : memref<50x32xf32, #tpu.memory_space<vmem>>, vector<50x32xf32>
    tpu.vector_store %arg13[%c0_921, %c0_922], %561 {strides = array<i32>} : memref<50x32xf32, #tpu.memory_space<vmem>>, vector<50x32xf32>,
    return
  }
}

module attributes {stable_mosaic.version = 11 : i64} {
  func.func @_mlp_kernel(%arg0: memref<2x800xf32, #tpu.memory_space<vmem>>, %arg1: memref<2x30xf32, #tpu.memory_space<vmem>>, %arg2: memref<800x50xf32, #tpu.memory_space<vmem>>, %arg3: memref<1x50xf32, #tpu.memory_space<vmem>>, %arg4: memref<50x50xf32, #tpu.memory_space<vmem>>, %arg5: memref<1x50xf32, #tpu.memory_space<vmem>>, %arg6: memref<50x64xf32, #tpu.memory_space<vmem>>, %arg7: memref<1x64xf32, #tpu.memory_space<vmem>>, %arg8: memref<64x50xf32, #tpu.memory_space<vmem>>, %arg9: memref<1x50xf32, #tpu.memory_space<vmem>>, %arg10: memref<50x50xf32, #tpu.memory_space<vmem>>, %arg11: memref<1x50xf32, #tpu.memory_space<vmem>>, %arg12: memref<50x6xf32, #tpu.memory_space<vmem>>, %arg13: memref<1x6xf32, #tpu.memory_space<vmem>>, %arg14: memref<64x50xf32, #tpu.memory_space<vmem>>, %arg15: memref<30x50xf32, #tpu.memory_space<vmem>>, %arg16: memref<6x50xf32, #tpu.memory_space<vmem>>, %arg17: memref<1x50xf32, #tpu.memory_space<vmem>>, %arg18: memref<50x50xf32, #tpu.memory_space<vmem>>, %arg19: memref<1x50xf32, #tpu.memory_space<vmem>>, %arg20: memref<50x6xf32, #tpu.memory_space<vmem>>, %arg21: memref<1x6xf32, #tpu.memory_space<vmem>>, %arg22: memref<2x6xf32, #tpu.memory_space<vmem>>, %arg23: memref<2x6xf32, #tpu.memory_space<vmem>>) attributes {dimension_semantics = [], scalar_prefetch = 0 : i64, scratch_operands = 0 : i64, tpu.core_type = #tpu.core_type<tc>} {
    %c0 = arith.constant 0 : index
    %c0_0 = arith.constant 0 : index
    %0 = vector.load %arg0[%c0, %c0_0] : memref<2x800xf32, #tpu.memory_space<vmem>>, vector<2x800xf32>
    %c0_1 = arith.constant 0 : index
    %c0_2 = arith.constant 0 : index
    %1 = vector.load %arg2[%c0_1, %c0_2] : memref<800x50xf32, #tpu.memory_space<vmem>>, vector<800x50xf32>
    %cst = arith.constant dense<0.000000e+00> : vector<2x50xf32>
    %2 = tpu.matmul %0, %1, %cst {dimension_numbers = #tpu.dot_dimension_numbers<[1], [0], [0], [1], [0, 0, 1, 1], [], []>} : vector<2x800xf32>, vector<800x50xf32>, vector<2x50xf32> -> vector<2x50xf32>
    %c0_3 = arith.constant 0 : index
    %c0_4 = arith.constant 0 : index
    %3 = vector.load %arg3[%c0_3, %c0_4] : memref<1x50xf32, #tpu.memory_space<vmem>>, vector<1x50xf32>
    %4 = vector.broadcast %3 : vector<1x50xf32> to vector<2x50xf32>
    %5 = arith.addf %2, %4 : vector<2x50xf32>
    %cst_5 = arith.constant 0.000000e+00 : f32
    %6 = vector.broadcast %cst_5 : f32 to vector<2x50xf32>
    %7 = arith.maximumf %5, %6 : vector<2x50xf32>
    %c0_6 = arith.constant 0 : index
    %c0_7 = arith.constant 0 : index
    %8 = vector.load %arg4[%c0_6, %c0_7] : memref<50x50xf32, #tpu.memory_space<vmem>>, vector<50x50xf32>
    %cst_8 = arith.constant dense<0.000000e+00> : vector<2x50xf32>
    %9 = tpu.matmul %7, %8, %cst_8 {dimension_numbers = #tpu.dot_dimension_numbers<[1], [0], [0], [1], [0, 0, 1, 1], [], []>} : vector<2x50xf32>, vector<50x50xf32>, vector<2x50xf32> -> vector<2x50xf32>
    %c0_9 = arith.constant 0 : index
    %c0_10 = arith.constant 0 : index
    %10 = vector.load %arg5[%c0_9, %c0_10] : memref<1x50xf32, #tpu.memory_space<vmem>>, vector<1x50xf32>
    %11 = vector.broadcast %10 : vector<1x50xf32> to vector<2x50xf32>
    %12 = arith.addf %9, %11 : vector<2x50xf32>
    %cst_11 = arith.constant 0.000000e+00 : f32
    %13 = vector.broadcast %cst_11 : f32 to vector<2x50xf32>
    %14 = arith.maximumf %12, %13 : vector<2x50xf32>
    %c0_12 = arith.constant 0 : index
    %c0_13 = arith.constant 0 : index
    %15 = vector.load %arg6[%c0_12, %c0_13] : memref<50x64xf32, #tpu.memory_space<vmem>>, vector<50x64xf32>
    %cst_14 = arith.constant dense<0.000000e+00> : vector<2x64xf32>
    %16 = tpu.matmul %14, %15, %cst_14 {dimension_numbers = #tpu.dot_dimension_numbers<[1], [0], [0], [1], [0, 0, 1, 1], [], []>} : vector<2x50xf32>, vector<50x64xf32>, vector<2x64xf32> -> vector<2x64xf32>
    %c0_15 = arith.constant 0 : index
    %c0_16 = arith.constant 0 : index
    %17 = vector.load %arg7[%c0_15, %c0_16] : memref<1x64xf32, #tpu.memory_space<vmem>>, vector<1x64xf32>
    %18 = vector.broadcast %17 : vector<1x64xf32> to vector<2x64xf32>
    %19 = arith.addf %16, %18 : vector<2x64xf32>
    %cst_17 = arith.constant 0.000000e+00 : f32
    %20 = vector.broadcast %cst_17 : f32 to vector<2x64xf32>
    %21 = arith.maximumf %19, %20 : vector<2x64xf32>
    %c0_18 = arith.constant 0 : index
    %c0_19 = arith.constant 0 : index
    %22 = vector.load %arg8[%c0_18, %c0_19] : memref<64x50xf32, #tpu.memory_space<vmem>>, vector<64x50xf32>
    %cst_20 = arith.constant dense<0.000000e+00> : vector<2x50xf32>
    %23 = tpu.matmul %21, %22, %cst_20 {dimension_numbers = #tpu.dot_dimension_numbers<[1], [0], [0], [1], [0, 0, 1, 1], [], []>} : vector<2x64xf32>, vector<64x50xf32>, vector<2x50xf32> -> vector<2x50xf32>
    %c0_21 = arith.constant 0 : index
    %c0_22 = arith.constant 0 : index
    %24 = vector.load %arg9[%c0_21, %c0_22] : memref<1x50xf32, #tpu.memory_space<vmem>>, vector<1x50xf32>
    %25 = vector.broadcast %24 : vector<1x50xf32> to vector<2x50xf32>
    %26 = arith.addf %23, %25 : vector<2x50xf32>
    %cst_23 = arith.constant 0.000000e+00 : f32
    %27 = vector.broadcast %cst_23 : f32 to vector<2x50xf32>
    %28 = arith.maximumf %26, %27 : vector<2x50xf32>
    %c0_24 = arith.constant 0 : index
    %c0_25 = arith.constant 0 : index
    %29 = vector.load %arg10[%c0_24, %c0_25] : memref<50x50xf32, #tpu.memory_space<vmem>>, vector<50x50xf32>
    %cst_26 = arith.constant dense<0.000000e+00> : vector<2x50xf32>
    %30 = tpu.matmul %28, %29, %cst_26 {dimension_numbers = #tpu.dot_dimension_numbers<[1], [0], [0], [1], [0, 0, 1, 1], [], []>} : vector<2x50xf32>, vector<50x50xf32>, vector<2x50xf32> -> vector<2x50xf32>
    %c0_27 = arith.constant 0 : index
    %c0_28 = arith.constant 0 : index
    %31 = vector.load %arg11[%c0_27, %c0_28] : memref<1x50xf32, #tpu.memory_space<vmem>>, vector<1x50xf32>
    %32 = vector.broadcast %31 : vector<1x50xf32> to vector<2x50xf32>
    %33 = arith.addf %30, %32 : vector<2x50xf32>
    %cst_29 = arith.constant 0.000000e+00 : f32
    %34 = vector.broadcast %cst_29 : f32 to vector<2x50xf32>
    %35 = arith.maximumf %33, %34 : vector<2x50xf32>
    %c0_30 = arith.constant 0 : index
    %c0_31 = arith.constant 0 : index
    %36 = vector.load %arg12[%c0_30, %c0_31] : memref<50x6xf32, #tpu.memory_space<vmem>>, vector<50x6xf32>
    %cst_32 = arith.constant dense<0.000000e+00> : vector<2x6xf32>
    %37 = tpu.matmul %35, %36, %cst_32 {dimension_numbers = #tpu.dot_dimension_numbers<[1], [0], [0], [1], [0, 0, 1, 1], [], []>} : vector<2x50xf32>, vector<50x6xf32>, vector<2x6xf32> -> vector<2x6xf32>
    %c0_33 = arith.constant 0 : index
    %c0_34 = arith.constant 0 : index
    %38 = vector.load %arg13[%c0_33, %c0_34] : memref<1x6xf32, #tpu.memory_space<vmem>>, vector<1x6xf32>
    %39 = vector.broadcast %38 : vector<1x6xf32> to vector<2x6xf32>
    %40 = arith.addf %37, %39 : vector<2x6xf32>
    %c0_35 = arith.constant 0 : index
    %c0_36 = arith.constant 0 : index
    %41 = vector.load %arg14[%c0_35, %c0_36] : memref<64x50xf32, #tpu.memory_space<vmem>>, vector<64x50xf32>
    %cst_37 = arith.constant dense<0.000000e+00> : vector<2x50xf32>
    %42 = tpu.matmul %21, %41, %cst_37 {dimension_numbers = #tpu.dot_dimension_numbers<[1], [0], [0], [1], [0, 0, 1, 1], [], []>} : vector<2x64xf32>, vector<64x50xf32>, vector<2x50xf32> -> vector<2x50xf32>
    %c0_38 = arith.constant 0 : index
    %c0_39 = arith.constant 0 : index
    %43 = vector.load %arg1[%c0_38, %c0_39] : memref<2x30xf32, #tpu.memory_space<vmem>>, vector<2x30xf32>
    %c0_40 = arith.constant 0 : index
    %c0_41 = arith.constant 0 : index
    %44 = vector.load %arg15[%c0_40, %c0_41] : memref<30x50xf32, #tpu.memory_space<vmem>>, vector<30x50xf32>
    %cst_42 = arith.constant dense<0.000000e+00> : vector<2x50xf32>
    %45 = tpu.matmul %43, %44, %cst_42 {dimension_numbers = #tpu.dot_dimension_numbers<[1], [0], [0], [1], [0, 0, 1, 1], [], []>} : vector<2x30xf32>, vector<30x50xf32>, vector<2x50xf32> -> vector<2x50xf32>
    %46 = arith.addf %42, %45 : vector<2x50xf32>
    %c0_43 = arith.constant 0 : index
    %c0_44 = arith.constant 0 : index
    %47 = vector.load %arg16[%c0_43, %c0_44] : memref<6x50xf32, #tpu.memory_space<vmem>>, vector<6x50xf32>
    %cst_45 = arith.constant dense<0.000000e+00> : vector<2x50xf32>
    %48 = tpu.matmul %40, %47, %cst_45 {dimension_numbers = #tpu.dot_dimension_numbers<[1], [0], [0], [1], [0, 0, 1, 1], [], []>} : vector<2x6xf32>, vector<6x50xf32>, vector<2x50xf32> -> vector<2x50xf32>
    %49 = arith.addf %46, %48 : vector<2x50xf32>
    %c0_46 = arith.constant 0 : index
    %c0_47 = arith.constant 0 : index
    %50 = vector.load %arg17[%c0_46, %c0_47] : memref<1x50xf32, #tpu.memory_space<vmem>>, vector<1x50xf32>
    %51 = vector.broadcast %50 : vector<1x50xf32> to vector<2x50xf32>
    %52 = arith.addf %49, %51 : vector<2x50xf32>
    %cst_48 = arith.constant 0.000000e+00 : f32
    %53 = vector.broadcast %cst_48 : f32 to vector<2x50xf32>
    %54 = arith.maximumf %52, %53 : vector<2x50xf32>
    %c0_49 = arith.constant 0 : index
    %c0_50 = arith.constant 0 : index
    %55 = vector.load %arg18[%c0_49, %c0_50] : memref<50x50xf32, #tpu.memory_space<vmem>>, vector<50x50xf32>
    %cst_51 = arith.constant dense<0.000000e+00> : vector<2x50xf32>
    %56 = tpu.matmul %54, %55, %cst_51 {dimension_numbers = #tpu.dot_dimension_numbers<[1], [0], [0], [1], [0, 0, 1, 1], [], []>} : vector<2x50xf32>, vector<50x50xf32>, vector<2x50xf32> -> vector<2x50xf32>
    %c0_52 = arith.constant 0 : index
    %c0_53 = arith.constant 0 : index
    %57 = vector.load %arg19[%c0_52, %c0_53] : memref<1x50xf32, #tpu.memory_space<vmem>>, vector<1x50xf32>
    %58 = vector.broadcast %57 : vector<1x50xf32> to vector<2x50xf32>
    %59 = arith.addf %56, %58 : vector<2x50xf32>
    %cst_54 = arith.constant 0.000000e+00 : f32
    %60 = vector.broadcast %cst_54 : f32 to vector<2x50xf32>
    %61 = arith.maximumf %59, %60 : vector<2x50xf32>
    %c0_55 = arith.constant 0 : index
    %c0_56 = arith.constant 0 : index
    %62 = vector.load %arg20[%c0_55, %c0_56] : memref<50x6xf32, #tpu.memory_space<vmem>>, vector<50x6xf32>
    %cst_57 = arith.constant dense<0.000000e+00> : vector<2x6xf32>
    %63 = tpu.matmul %61, %62, %cst_57 {dimension_numbers = #tpu.dot_dimension_numbers<[1], [0], [0], [1], [0, 0, 1, 1], [], []>} : vector<2x50xf32>, vector<50x6xf32>, vector<2x6xf32> -> vector<2x6xf32>
    %c0_58 = arith.constant 0 : index
    %c0_59 = arith.constant 0 : index
    %64 = vector.load %arg21[%c0_58, %c0_59] : memref<1x6xf32, #tpu.memory_space<vmem>>, vector<1x6xf32>
    %65 = vector.broadcast %64 : vector<1x6xf32> to vector<2x6xf32>
    %66 = arith.addf %63, %65 : vector<2x6xf32>
    %c0_60 = arith.constant 0 : index
    %c0_61 = arith.constant 0 : index
    %67 = vector.load %arg22[%c0_60, %c0_61] : memref<2x6xf32, #tpu.memory_space<vmem>>, vector<2x6xf32>
    tpu.vector_store %arg22[%c0_60, %c0_61], %66 {strides = array<i32>} : memref<2x6xf32, #tpu.memory_space<vmem>>, vector<2x6xf32>,
    %c0_62 = arith.constant 0 : index
    %c0_63 = arith.constant 0 : index
    %68 = vector.load %arg23[%c0_62, %c0_63] : memref<2x6xf32, #tpu.memory_space<vmem>>, vector<2x6xf32>
    tpu.vector_store %arg23[%c0_62, %c0_63], %40 {strides = array<i32>} : memref<2x6xf32, #tpu.memory_space<vmem>>, vector<2x6xf32>,
    return
  }
}

</mosaic_0001>

<bundles_post_ra>
// kernel: zhangnet_forward.3
= control target key start
LH: loop header
LB: loop body
LE: loop exit
PB: predicated region body
PF: predicated region fallthrough
CT: control target
= control target key end

     0   :  { %s1490_s0 = inlined_call_operand.vmem [shape: f32[2,800], index: 0, kind: input, shape index: {}]   ;;  %s1491_s1 = inlined_call_operand.vmem [shape: f32[2,30], index: 1, kind: input, shape index: {}]   ;;  %s1492_s2 = inlined_call_operand.vmem [shape: f32[800,50], index: 2, kind: input, shape index: {}]   ;;  %s1493_s3 = inlined_call_operand.vmem [shape: f32[1,50], index: 3, kind: input, shape index: {}]   ;;  %s1494_s4 = inlined_call_operand.vmem [shape: f32[50,50], index: 4, kind: input, shape index: {}]   ;;  %s1495_s5 = inlined_call_operand.vmem [shape: f32[1,50], index: 5, kind: input, shape index: {}]   ;;  %s1496_s6 = inlined_call_operand.vmem [shape: f32[50,64], index: 6, kind: input, shape index: {}]   ;;  %s1497_s7 = inlined_call_operand.vmem [shape: f32[1,64], index: 7, kind: input, shape index: {}]   ;;  %s1498_s8 = inlined_call_operand.vmem [shape: f32[64,50], index: 8, kind: input, shape index: {}]   ;;  %s1499_s9 = inlined_call_operand.vmem [shape: f32[1,50], index: 9, kind: input, shape index: {}]   ;;  %s1500_s10 = inlined_call_operand.vmem [shape: f32[50,50], index: 10, kind: input, shape index: {}]   ;;  %s1501_s11 = inlined_call_operand.vmem [shape: f32[1,50], index: 11, kind: input, shape index: {}]   ;;  %s1502_s12 = inlined_call_operand.vmem [shape: f32[50,6], index: 12, kind: input, shape index: {}]   ;;  %s1503_s13 = inlined_call_operand.vmem [shape: f32[1,6], index: 13, kind: input, shape index: {}]   ;;  %s1504_s14 = inlined_call_operand.vmem [shape: f32[64,50], index: 14, kind: input, shape index: {}]   ;;  %s1505_s15 = inlined_call_operand.vmem [shape: f32[30,50], index: 15, kind: input, shape index: {}]   ;;  %s1506_s16 = inlined_call_operand.vmem [shape: f32[6,50], index: 16, kind: input, shape index: {}]   ;;  %s1507_s17 = inlined_call_operand.vmem [shape: f32[1,50], index: 17, kind: input, shape index: {}]   ;;  %s1508_s18 = inlined_call_operand.vmem [shape: f32[50,50], index: 18, kind: input, shape index: {}]   ;;  %s1509_s19 = inlined_call_operand.vmem [shape: f32[1,50], index: 19, kind: input, shape index: {}]   ;;  %s1510_s20 = inlined_call_operand.vmem [shape: f32[50,6], index: 20, kind: input, shape index: {}]   ;;  %s1511_s21 = inlined_call_operand.vmem [shape: f32[1,6], index: 21, kind: input, shape index: {}]   ;;  %s1512_s22 = inlined_call_operand.hbm [shape: f32[2,6], index: 22, kind: output, shape index: {0}]   ;;  %s1513_s23 = inlined_call_operand.hbm [shape: f32[2,6], index: 23, kind: output, shape index: {1}]  }
   0x1   :  { %1518 = sst [smem:[#allocation8_spill]] %s1490_s0 }
   0x2   :  { %1519 = sst [smem:[#allocation9_spill]] %s1491_s1 }
   0x3   :  { %1520 = sst [smem:[#allocation10_spill]] %s1492_s2 }
   0x4   :  { %1521 = sst [smem:[#allocation11_spill]] %s1493_s3 }
   0x5   :  { %1522 = sst [smem:[#allocation12_spill]] %s1494_s4 }
   0x6   :  { %1523 = sst [smem:[#allocation13_spill]] %s1495_s5 }
   0x7   :  { %1524 = sst [smem:[#allocation14_spill]] %s1496_s6 }
   0x8   :  { %1525 = sst [smem:[#allocation15_spill]] %s1497_s7 }
   0x9   :  { %29 = vsyncpa [#allocation3], 0  ;;  %s1526_s24 = sld [smem:[#allocation10_spill]] }
   0xa   :  { %s1527_s3 = sld [smem:[#allocation8_spill]] }
   0xf   :  { %v92_v0 = vld [vmem:[%s1526_s24 + $0x78] sm:$0xff]  ;;  %v91_v1 = vld [vmem:[%s1526_s24 + $0x70] sm:$0xff]  ;;  %v90_v4 = vld [vmem:[%s1526_s24 + $0x68] sm:$0xff] }
  0x10   :  { %v108_v2 = vld [vmem:[%s1526_s24 + $0xf8] sm:$0xff]  ;;  %202 = vmatpush.msra.mxu0 %v92_v0  ;;  %v107_v3 = vld [vmem:[%s1526_s24 + $0xf0] sm:$0xff]  ;;  %v106_v5 = vld [vmem:[%s1526_s24 + $0xe8] sm:$0xff] }
  0x11   :  { %222 = vmatpush.msra.mxu1 %v108_v2  ;;  %v89_v6 = vld [vmem:[%s1526_s24 + $0x60] sm:$0xff]  ;;  %v88_v8 = vld [vmem:[%s1526_s24 + $0x58] sm:$0xff]  ;;  %v123_v11 = vld [vmem:[%s1526_s24 + $0x170] sm:$0xff] }
  0x12   :  { %203 = vmatpush.msra.mxu0 %v91_v1  ;;  %v105_v7 = vld [vmem:[%s1526_s24 + $0xe0] sm:$0xff]  ;;  %v104_v9 = vld [vmem:[%s1526_s24 + $0xd8] sm:$0xff]  ;;  %v87_v13 = vld [vmem:[%s1526_s24 + $0x50] sm:$0xff] }
  0x13   :  { %223 = vmatpush.msra.mxu1 %v107_v3  ;;  %v124_v10 = vld [vmem:[%s1526_s24 + $0x178] sm:$0xff]  ;;  %v103_v14 = vld [vmem:[%s1526_s24 + $0xd0] sm:$0xff]  ;;  %v122_v15 = vld [vmem:[%s1526_s24 + $0x168] sm:$0xff] }
  0x14   :  { %204 = vmatpush.msra.mxu0 %v90_v4  ;;  %v140_v12 = vld [vmem:[%s1526_s24 + $0x1f8] sm:$0xff]  ;;  %242 = vmatpush.msra.mxu2 %v124_v10  ;;  %v139_v16 = vld [vmem:[%s1526_s24 + $0x1f0] sm:$0xff]  ;;  %v86_v17 = vld [vmem:[%s1526_s24 + $0x48] sm:$0xff] }
  0x15   :  { %224 = vmatpush.msra.mxu1 %v106_v5  ;;  %262 = vmatpush.msra.mxu3 %v140_v12  ;;  %v102_v18 = vld [vmem:[%s1526_s24 + $0xc8] sm:$0xff]  ;;  %v121_v20 = vld [vmem:[%s1526_s24 + $0x160] sm:$0xff]  ;;  %v120_v24 = vld [vmem:[%s1526_s24 + $0x158] sm:$0xff] }
  0x16   :  { %205 = vmatpush.msra.mxu0 %v89_v6  ;;  %243 = vmatpush.msra.mxu2 %v123_v11  ;;  %v138_v19 = vld [vmem:[%s1526_s24 + $0x1e8] sm:$0xff]  ;;  %v137_v21 = vld [vmem:[%s1526_s24 + $0x1e0] sm:$0xff]  ;;  %v136_v25 = vld [vmem:[%s1526_s24 + $0x1d8] sm:$0xff] }
  0x17   :  { %225 = vmatpush.msra.mxu1 %v105_v7  ;;  %263 = vmatpush.msra.mxu3 %v139_v16  ;;  %v85_v22 = vld [vmem:[%s1526_s24 + $0x40] sm:$0xff]  ;;  %v84_v26 = vld [vmem:[%s1526_s24 + $0x38] sm:$0xff]  ;;  %v119_v28 = vld [vmem:[%s1526_s24 + $0x150] sm:$0xff] }
  0x18   :  { %206 = vmatpush.msra.mxu0 %v88_v8  ;;  %v101_v23 = vld [vmem:[%s1526_s24 + $0xc0] sm:$0xff]  ;;  %244 = vmatpush.msra.mxu2 %v122_v15  ;;  %v100_v27 = vld [vmem:[%s1526_s24 + $0xb8] sm:$0xff]  ;;  %v135_v29 = vld [vmem:[%s1526_s24 + $0x1d0] sm:$0xff] }
  0x19   :  { %226 = vmatpush.msra.mxu1 %v104_v9  ;;  %264 = vmatpush.msra.mxu3 %v138_v19  ;;  %v83_v30 = vld [vmem:[%s1526_s24 + $0x30] sm:$0xff]  ;;  %v118_v32 = vld [vmem:[%s1526_s24 + $0x148] sm:$0xff]  ;;  %v117_v36 = vld [vmem:[%s1526_s24 + $0x140] sm:$0xff] }
  0x1a   :  { %207 = vmatpush.msra.mxu0 %v87_v13  ;;  %245 = vmatpush.msra.mxu2 %v121_v20  ;;  %v99_v31 = vld [vmem:[%s1526_s24 + $0xb0] sm:$0xff]  ;;  %v134_v33 = vld [vmem:[%s1526_s24 + $0x1c8] sm:$0xff]  ;;  %v133_v37 = vld [vmem:[%s1526_s24 + $0x1c0] sm:$0xff] }
  0x1b   :  { %227 = vmatpush.msra.mxu1 %v103_v14  ;;  %265 = vmatpush.msra.mxu3 %v137_v21  ;;  %v82_v34 = vld [vmem:[%s1526_s24 + $0x28] sm:$0xff]  ;;  %v81_v38 = vld [vmem:[%s1526_s24 + $0x20] sm:$0xff]  ;;  %v116_v40 = vld [vmem:[%s1526_s24 + $0x138] sm:$0xff] }
  0x1c   :  { %208 = vmatpush.msra.mxu0 %v86_v17  ;;  %246 = vmatpush.msra.mxu2 %v120_v24  ;;  %v98_v35 = vld [vmem:[%s1526_s24 + $0xa8] sm:$0xff]  ;;  %v97_v39 = vld [vmem:[%s1526_s24 + $0xa0] sm:$0xff]  ;;  %v132_v41 = vld [vmem:[%s1526_s24 + $0x1b8] sm:$0xff] }
  0x1d   :  { %228 = vmatpush.msra.mxu1 %v102_v18  ;;  %266 = vmatpush.msra.mxu3 %v136_v25  ;;  %v80_v42 = vld [vmem:[%s1526_s24 + $0x18] sm:$0xff]  ;;  %v115_v44 = vld [vmem:[%s1526_s24 + $0x130] sm:$0xff]  ;;  %v114_v48 = vld [vmem:[%s1526_s24 + $0x128] sm:$0xff] }
  0x1e   :  { %209 = vmatpush.msra.mxu0 %v85_v22  ;;  %247 = vmatpush.msra.mxu2 %v119_v28  ;;  %v96_v43 = vld [vmem:[%s1526_s24 + $0x98] sm:$0xff]  ;;  %v131_v45 = vld [vmem:[%s1526_s24 + $0x1b0] sm:$0xff]  ;;  %v130_v49 = vld [vmem:[%s1526_s24 + $0x1a8] sm:$0xff] }
  0x1f   :  { %229 = vmatpush.msra.mxu1 %v101_v23  ;;  %267 = vmatpush.msra.mxu3 %v135_v29  ;;  %v79_v46 = vld [vmem:[%s1526_s24 + $0x10] sm:$0xff]  ;;  %v78_v50 = vld [vmem:[%s1526_s24 + $0x8] sm:$0xff]  ;;  %v113_v52 = vld [vmem:[%s1526_s24 + $0x120] sm:$0xff] }
  0x20   :  { %210 = vmatpush.msra.mxu0 %v84_v26  ;;  %248 = vmatpush.msra.mxu2 %v118_v32  ;;  %v95_v47 = vld [vmem:[%s1526_s24 + $0x90] sm:$0xff]  ;;  %v94_v51 = vld [vmem:[%s1526_s24 + $0x88] sm:$0xff]  ;;  %v129_v53 = vld [vmem:[%s1526_s24 + $0x1a0] sm:$0xff] }
  0x21   :  { %230 = vmatpush.msra.mxu1 %v100_v27  ;;  %268 = vmatpush.msra.mxu3 %v134_v33  ;;  %v75_v54 = vld [vmem:[%s1527_s3] sm:$0xff]  ;;  %v156_v57 = vld [vmem:[%s1526_s24 + $0x278] sm:$0xff]  ;;  %v155_v61 = vld [vmem:[%s1526_s24 + $0x270] sm:$0xff] }
  0x22   :  { %211 = vmatpush.msra.mxu0 %v83_v30  ;;  %249 = vmatpush.msra.mxu2 %v117_v36  ;;  %v77_v55 = vld [vmem:[%s1526_s24] sm:$0xff]  ;;  %183 = vst [vmem:[#allocation1] ss:$4 sm:$0xff] %v75_v54  ;;  %v172_v58 = vld [vmem:[%s1526_s24 + $0x2f8] sm:$0xff]  ;;  %v154_v62 = vld [vmem:[%s1526_s24 + $0x268] sm:$0xff] }
  0x23   :  { %231 = vmatpush.msra.mxu1 %v99_v31  ;;  %269 = vmatpush.msra.mxu3 %v133_v37  ;;  %v93_v56 = vld [vmem:[%s1526_s24 + $0x80] sm:$0xff]  ;;  %v112_v59 = vld [vmem:[%s1526_s24 + $0x118] sm:$0xff]  ;;  %v171_v63 = vld [vmem:[%s1526_s24 + $0x2f0] sm:$0xff] }
  0x24   :  { %212 = vmatpush.msra.mxu0 %v82_v34  ;;  %250 = vmatpush.msra.mxu2 %v116_v40  ;;  %v128_v60 = vld [vmem:[%s1526_s24 + $0x198] sm:$0xff]  ;;  %v111_v0 = vld [vmem:[%s1526_s24 + $0x110] sm:$0xff]  ;;  %v76_v2 = vld [vmem:[%s1527_s3 + $0x8] sm:$0x3f] }
  0x25   :  { %232 = vmatpush.msra.mxu1 %v98_v35  ;;  %270 = vmatpush.msra.mxu3 %v132_v41  ;;  %v127_v1 = vld [vmem:[%s1526_s24 + $0x190] sm:$0xff]  ;;  %v153_v3 = vld [vmem:[%s1526_s24 + $0x260] sm:$0xff]  ;;  %v170_v4 = vld [vmem:[%s1526_s24 + $0x2e8] sm:$0xff]  ;;  %185 = vst [vmem:[#allocation1 + $0x20] ss:$4 sm:$0xff] %v76_v2 }
  0x26   :  { %213 = vmatpush.msra.mxu0 %v81_v38  ;;  %251 = vmatpush.msra.mxu2 %v115_v44  ;;  %v169_v5 = vld [vmem:[%s1526_s24 + $0x2e0] sm:$0xff]  ;;  %v110_v6 = vld [vmem:[%s1526_s24 + $0x108] sm:$0xff]  ;;  %v152_v8 = vld [vmem:[%s1526_s24 + $0x258] sm:$0xff] }
  0x27   :  { %233 = vmatpush.msra.mxu1 %v97_v39  ;;  %271 = vmatpush.msra.mxu3 %v131_v45  ;;  %v126_v7 = vld [vmem:[%s1526_s24 + $0x188] sm:$0xff]  ;;  %v168_v9 = vld [vmem:[%s1526_s24 + $0x2d8] sm:$0xff]  ;;  %v109_v10 = vld [vmem:[%s1526_s24 + $0x100] sm:$0xff] }
  0x28   :  { %214 = vmatpush.msra.mxu0 %v80_v42  ;;  %252 = vmatpush.msra.mxu2 %v114_v48  ;;  %v125_v11 = vld [vmem:[%s1526_s24 + $0x180] sm:$0xff]  ;;  %v151_v14 = vld [vmem:[%s1526_s24 + $0x250] sm:$0xff] }
  0x29   :  { %234 = vmatpush.msra.mxu1 %v96_v43  ;;  %272 = vmatpush.msra.mxu3 %v130_v49  ;;  %v188_v12 = vld.sshfl [vmem:[#allocation1 + $0x10] sm:$0xff pattern:$0x73625140]  ;;  %v186_v13 = vld.sshfl [vmem:[#allocation1] sm:$0xff pattern:$0x73625140] }
  0x2a   :  { %215 = vmatpush.msra.mxu0 %v79_v46  ;;  %253 = vmatpush.msra.mxu2 %v113_v52  ;;  %v167_v15 = vld [vmem:[%s1526_s24 + $0x2d0] sm:$0xff] }
  0x2b   :  { %235 = vmatpush.msra.mxu1 %v95_v47  ;;  %273 = vmatpush.msra.mxu3 %v129_v53 }
  0x2c   :  { %216 = vmatpush.msra.mxu0 %v78_v50  ;;  %254 = vmatpush.msra.mxu2 %v112_v59 }
  0x2d   :  { %236 = vmatpush.msra.mxu1 %v94_v51  ;;  %274 = vmatpush.msra.mxu3 %v128_v60 }
  0x2e   :  { %217 = vmatpush.msra.mxu0 %v77_v55  ;;  %255 = vmatpush.msra.mxu2 %v111_v0 }
  0x2f   :  { %237 = vmatpush.msra.mxu1 %v93_v56  ;;  %275 = vmatpush.msra.mxu3 %v127_v1 }
  0x30   :  { %282 = vmatpush.msrb.mxu0 %v156_v57  ;;  %256 = vmatpush.msra.mxu2 %v110_v6 }
  0x31   :  { %302 = vmatpush.msrb.mxu1 %v172_v58  ;;  %276 = vmatpush.msra.mxu3 %v126_v7 }
  0x32   :  { %283 = vmatpush.msrb.mxu0 %v155_v61  ;;  %257 = vmatpush.msra.mxu2 %v109_v10 }
  0x33   :  { %303 = vmatpush.msrb.mxu1 %v171_v63  ;;  %277 = vmatpush.msra.mxu3 %v125_v11 }
  0x34   :  { %284 = vmatpush.msrb.mxu0 %v154_v62 }
  0x35   :  { %304 = vmatpush.msrb.mxu1 %v170_v4 }
  0x36   :  { %285 = vmatpush.msrb.mxu0 %v153_v3 }
  0x37   :  { %305 = vmatpush.msrb.mxu1 %v169_v5 }
  0x38   :  { %30 = vsyncpa [#allocation5], 0  ;;  %286 = vmatpush.msrb.mxu0 %v152_v8  ;;  %v189_v16 = vld.sshfl [vmem:[#allocation1 + $0x18] sm:$0xff pattern:$0x73625140]  ;;  %v150_v18 = vld [vmem:[%s1526_s24 + $0x248] sm:$0xff]  ;;  %258 = vmatmul.f32.vlgmr.msra.gmra.mxu2 %v188_v12 }
  0x39   :  { %306 = vmatpush.msrb.mxu1 %v168_v9  ;;  %v187_v17 = vld.sshfl [vmem:[#allocation1 + $0x8] sm:$0xff pattern:$0x73625140]  ;;  %218 = vmatmul.f32.vlgmr.msra.gmra.mxu0 %v186_v13  ;;  %v176_v20 = vld [vmem:[%s1526_s24 + $0x318] sm:$0xff]  ;;  %v149_v21 = vld [vmem:[%s1526_s24 + $0x240] sm:$0xff]  ;;  %vm199_vm0 = vcmask 261120  }
  0x3a   :  { %v166_v19 = vld [vmem:[%s1526_s24 + $0x2c8] sm:$0xff]  ;;  %287 = vmatpush.msrb.mxu0 %v151_v14  ;;  %v165_v22 = vld [vmem:[%s1526_s24 + $0x2c0] sm:$0xff]  ;;  %278 = vmatmul.f32.vlgmr.msra.gmra.mxu3 %v189_v16  ;;  %v175_v23 = vld [vmem:[%s1526_s24 + $0x310] sm:$0xff]  ;;  %s1528_s0 = sld [smem:[#allocation12_spill]]  ;;  %vm358_vm1 = vcmask 1041408   ;;  %vm354_vm2 = vcmask 408576  }
  0x3b   :  { %307 = vmatpush.msrb.mxu1 %v167_v15  ;;  %v148_v24 = vld [vmem:[%s1526_s24 + $0x238] sm:$0xff]  ;;  %334 = vmatpush.msrb.mxu3 %v176_v20  ;;  %v174_v26 = vld [vmem:[%s1526_s24 + $0x308] sm:$0xff]  ;;  %v147_v27 = vld [vmem:[%s1526_s24 + $0x230] sm:$0xff]  ;;  %s1529_s4 = sld [smem:[#allocation14_spill]]  ;;  %vm550_vm3 = vcmask 1045504   ;;  %vm546_vm4 = vcmask 244736  }
  0x3c   :  { %238 = vmatmul.f32.vlgmr.msra.gmra.mxu1 %v187_v17  ;;  %288 = vmatpush.msrb.mxu0 %v150_v18  ;;  %v164_v25 = vld [vmem:[%s1526_s24 + $0x2b8] sm:$0xff]  ;;  %v163_v28 = vld [vmem:[%s1526_s24 + $0x2b0] sm:$0xff]  ;;  %v173_v29 = vld [vmem:[%s1526_s24 + $0x300] sm:$0xff]  ;;  %s1530_s2 = sld [smem:[#allocation11_spill]]  ;;  %vm433_vm5 = vcmask 523264   ;;  %vm704_vm6 = vcmask 41984  }
  0x3d   :  { %308 = vmatpush.msrb.mxu1 %v166_v19  ;;  %335 = vmatpush.msrb.mxu3 %v175_v23  ;;  %v146_v30 = vld [vmem:[%s1526_s24 + $0x228] sm:$0xff]  ;;  %v192_v32 = vld.sshfl [vmem:[#allocation1 + $0x30] sm:$0xff pattern:$0x73625140]  ;;  %v145_v33 = vld [vmem:[%s1526_s24 + $0x220] sm:$0xff]  ;;  %s1531_s6 = sld [smem:[#allocation13_spill]] }
  0x3e   :  { %289 = vmatpush.msrb.mxu0 %v149_v21  ;;  %v162_v31 = vld [vmem:[%s1526_s24 + $0x2a8] sm:$0xff]  ;;  %v161_v34 = vld [vmem:[%s1526_s24 + $0x2a0] sm:$0xff]  ;;  %v144_v35 = vld [vmem:[%s1526_s24 + $0x218] sm:$0xff]  ;;  %s1533_s3 = sld [smem:[#allocation15_spill]]  ;;  %vm595_vm7 = vcmask 48128  }
  0x3f   :  { %309 = vmatpush.msrb.mxu1 %v165_v22  ;;  %336 = vmatpush.msrb.mxu3 %v174_v26  ;;  %v160_v36 = vld [vmem:[%s1526_s24 + $0x298] sm:$0xff]  ;;  %v143_v37 = vld [vmem:[%s1526_s24 + $0x210] sm:$0xff]  ;;  %v142_v39 = vld [vmem:[%s1526_s24 + $0x208] sm:$0xff] }
  0x40   :  { %290 = vmatpush.msrb.mxu0 %v148_v24  ;;  %v159_v38 = vld [vmem:[%s1526_s24 + $0x290] sm:$0xff]  ;;  %v158_v40 = vld [vmem:[%s1526_s24 + $0x288] sm:$0xff]  ;;  %v141_v41 = vld [vmem:[%s1526_s24 + $0x200] sm:$0xff] }
  0x41   :  { %310 = vmatpush.msrb.mxu1 %v164_v25  ;;  %337 = vmatpush.msrb.mxu3 %v173_v29  ;;  %v157_v42 = vld [vmem:[%s1526_s24 + $0x280] sm:$0xff]  ;;  %v191_v44 = vld.sshfl [vmem:[#allocation1 + $0x28] sm:$0xff pattern:$0x73625140]  ;;  %v349_v45 = vld [vmem:[%s1528_s0 + $0x30] sm:$0x3] }
  0x42   :  { %291 = vmatpush.msrb.mxu0 %v147_v27  ;;  %739 = vmatmul.msk.f32.vlgmr.msrb.gmra.mxu3 %vm199_vm0, %v192_v32  ;;  %v190_v43 = vld.sshfl [vmem:[#allocation1 + $0x20] sm:$0xff pattern:$0x73625140]  ;;  %v348_v46 = vld [vmem:[%s1528_s0 + $0x28] sm:$0xff]  ;;  %v346_v48 = vld [vmem:[%s1528_s0 + $0x18] sm:$0xff]  ;;  %s1532_s24 = sld [smem:[#allocation9_spill]] }
  0x43   :  { %311 = vmatpush.msrb.mxu1 %v163_v28  ;;  %740 = vmatpush.msk.msra.mxu3 %vm358_vm1, %v349_v45  ;;  %v347_v47 = vld [vmem:[%s1528_s0 + $0x20] sm:$0xff]  ;;  %v345_v49 = vld [vmem:[%s1528_s0 + $0x10] sm:$0xff]  ;;  %v344_v50 = vld [vmem:[%s1528_s0 + $0x8] sm:$0xff] }
  0x44   :  { %292 = vmatpush.msrb.mxu0 %v146_v30  ;;  %v343_v51 = vld [vmem:[%s1528_s0] sm:$0xff]  ;;  %v389_v52 = vld [vmem:[%s1529_s4 + $0x30] sm:$0x3]  ;;  %v388_v53 = vld [vmem:[%s1529_s4 + $0x28] sm:$0xff]  ;;  %s725_s0 = sshll.u32 %s1513_s23, 4  ;;  %s726_s0 = int_to_ptr.hbm [resolvable:$true] %s725_s0 }
  0x45   :  { %312 = vmatpush.msrb.mxu1 %v162_v31  ;;  %372 = vmatpush.msra.mxu3 %v348_v46  ;;  %v387_v54 = vld [vmem:[%s1529_s4 + $0x20] sm:$0xff]  ;;  %v386_v55 = vld [vmem:[%s1529_s4 + $0x18] sm:$0xff]  ;;  %v385_v8 = vld [vmem:[%s1529_s4 + $0x10] sm:$0xff] }
  0x46   :  { %293 = vmatpush.msrb.mxu0 %v145_v33  ;;  %742 = vmatpush.msk.msrb.mxu2 %vm358_vm1, %v389_v52  ;;  %v760_v56 = vld [vmem:[%s1530_s2] ss:$0 sm:$0xff]  ;;  %v384_v9 = vld [vmem:[%s1529_s4 + $0x8] sm:$0xff]  ;;  %v428_v11 = vld [vmem:[%s1498_s8 + $0x38] sm:$0xff] }
  0x47   :  { %313 = vmatpush.msrb.mxu1 %v161_v34  ;;  %373 = vmatpush.msra.mxu3 %v347_v47  ;;  %v383_v10 = vld [vmem:[%s1529_s4] sm:$0xff]  ;;  %v540_v12 = vld [vmem:[%s1504_s14 + $0x38] sm:$0xff]  ;;  %v427_v13 = vld [vmem:[%s1498_s8 + $0x30] sm:$0xff] }
  0x48   :  { %294 = vmatpush.msrb.mxu0 %v144_v35  ;;  %410 = vmatpush.msrb.mxu2 %v388_v53  ;;  %v539_v14 = vld [vmem:[%s1504_s14 + $0x30] sm:$0xff]  ;;  %v426_v15 = vld [vmem:[%s1498_s8 + $0x28] sm:$0xff]  ;;  %v545_v17 = vld [vmem:[%s1505_s15 + $0x18] sm:$0x3f] }
  0x49   :  { %314 = vmatpush.msrb.mxu1 %v160_v36  ;;  %374 = vmatpush.msra.mxu3 %v346_v48  ;;  %v538_v16 = vld [vmem:[%s1504_s14 + $0x28] sm:$0xff]  ;;  %v425_v18 = vld [vmem:[%s1498_s8 + $0x20] sm:$0xff]  ;;  %v424_v20 = vld [vmem:[%s1498_s8 + $0x18] sm:$0xff] }
  0x4a   :  { %295 = vmatpush.msrb.mxu0 %v143_v37  ;;  %411 = vmatpush.msrb.mxu2 %v387_v54  ;;  %v537_v19 = vld [vmem:[%s1504_s14 + $0x20] sm:$0xff]  ;;  %v536_v21 = vld [vmem:[%s1504_s14 + $0x18] sm:$0xff]  ;;  %v423_v26 = vld [vmem:[%s1498_s8 + $0x10] sm:$0xff] }
  0x4b   :  { %315 = vmatpush.msrb.mxu1 %v159_v38  ;;  %375 = vmatpush.msra.mxu3 %v345_v49  ;;  %v761_v22 = vld [vmem:[%s1531_s6] ss:$0 sm:$0xff]  ;;  %v544_v27 = vld [vmem:[%s1505_s15 + $0x10] sm:$0xff]  ;;  %v422_v29 = vld [vmem:[%s1498_s8 + $0x8] sm:$0xff]  ;;  %s714_s6 = sshll.u32 %s1512_s22, 4  ;;  %s715_s6 = int_to_ptr.hbm [resolvable:$true] %s714_s6 }
  0x4c   :  { %296 = vmatpush.msrb.mxu0 %v142_v39  ;;  %412 = vmatpush.msrb.mxu2 %v386_v55  ;;  %v535_v28 = vld [vmem:[%s1504_s14 + $0x10] sm:$0xff]  ;;  %v543_v30 = vld [vmem:[%s1505_s15 + $0x8] sm:$0xff]  ;;  %v421_v32 = vld [vmem:[%s1498_s8] sm:$0xff] }
  0x4d   :  { %316 = vmatpush.msrb.mxu1 %v158_v40  ;;  %376 = vmatpush.msra.mxu3 %v344_v50  ;;  %v534_v31 = vld [vmem:[%s1504_s14 + $0x8] sm:$0xff]  ;;  %v542_v33 = vld [vmem:[%s1505_s15] sm:$0xff]  ;;  %v464_v36 = vld [vmem:[%s1500_s10 + $0x30] sm:$0x3] }
  0x4e   :  { %297 = vmatpush.msrb.mxu0 %v141_v41  ;;  %413 = vmatpush.msrb.mxu2 %v385_v8  ;;  %v533_v34 = vld [vmem:[%s1504_s14] sm:$0xff]  ;;  %v463_v37 = vld [vmem:[%s1500_s10 + $0x28] sm:$0xff]  ;;  %v502_v47 = vld [vmem:[%s1502_s12 + $0x30] sm:$0x3]  ;;  %s821_s14 = smov [#allocation4]  }
  0x4f   :  { %317 = vmatpush.msrb.mxu1 %v157_v42  ;;  %298 = vmatmul.f32.vlgmr.msrb.gmra.mxu0 %v190_v43  ;;  %v541_v35 = vld [vmem:[%s1532_s24] sm:$0x3]  ;;  %v461_v43 = vld [vmem:[%s1500_s10 + $0x18] sm:$0xff]  ;;  %v459_v45 = vld [vmem:[%s1500_s10 + $0x8] sm:$0xff]  ;;  %s723_s15 = sshll.u32 %s821_s14, 4  ;;  %s724_s15 = int_to_ptr.vmem [resolvable:$true] %s723_s15 }
  0x50   :  { %318 = vmatmul.f32.vlgmr.msrb.gmra.mxu1 %v191_v44  ;;  %377 = vmatpush.msra.mxu3 %v343_v51  ;;  %v762_v38 = vld [vmem:[%s1533_s3] ss:$0 sm:$0xff]  ;;  %v460_v44 = vld [vmem:[%s1500_s10 + $0x10] sm:$0xff]  ;;  %v501_v48 = vld [vmem:[%s1502_s12 + $0x28] sm:$0xff] }
  0x51   :  { %414 = vmatpush.msrb.mxu2 %v384_v9  ;;  %582 = vmatpush.msra.mxu1 %v540_v12  ;;  %v462_v42 = vld [vmem:[%s1500_s10 + $0x20] sm:$0xff]  ;;  %v499_v50 = vld [vmem:[%s1502_s12 + $0x18] sm:$0xff]  ;;  %v498_v55 = vld [vmem:[%s1502_s12 + $0x10] sm:$0xff] }
  0x52   :  { %445 = vmatpush.msrb.mxu3 %v428_v11  ;;  %749 = vmatpush.msk.msra.mxu0 %vm550_vm3, %v545_v17  ;;  %v458_v46 = vld [vmem:[%s1500_s10] sm:$0xff]  ;;  %v673_v9 = vld [vmem:[%s1510_s20 + $0x30] sm:$0x3]  ;;  %v670_v12 = vld [vmem:[%s1510_s20 + $0x18] sm:$0xff] }
  0x53   :  { %415 = vmatpush.msrb.mxu2 %v383_v10  ;;  %583 = vmatpush.msra.mxu1 %v539_v14  ;;  %v500_v49 = vld [vmem:[%s1502_s12 + $0x20] sm:$0xff]  ;;  %v672_v10 = vld [vmem:[%s1510_s20 + $0x28] sm:$0xff] }
  0x54   :  { %446 = vmatpush.msrb.mxu3 %v427_v13  ;;  %567 = vmatpush.msra.mxu0 %v544_v27  ;;  %v763_v51 = vld [vmem:[%s1499_s9] ss:$0 sm:$0xff] }
  0x55   :  { %584 = vmatpush.msra.mxu1 %v538_v16  ;;  %745 = vmatpush.msk.msra.mxu2 %vm358_vm1, %v464_v36  ;;  %v629_v8 = vld [vmem:[%s1508_s18] sm:$0xff] }
  0x56   :  { %447 = vmatpush.msrb.mxu3 %v426_v15  ;;  %568 = vmatpush.msra.mxu0 %v543_v30  ;;  %v671_v11 = vld [vmem:[%s1510_s20 + $0x20] sm:$0xff] }
  0x57   :  { %585 = vmatpush.msra.mxu1 %v537_v19  ;;  %485 = vmatpush.msra.mxu2 %v463_v37  ;;  %v766_v16 = vld [vmem:[%s1507_s17] ss:$0 sm:$0xff] }
  0x58   :  { %448 = vmatpush.msrb.mxu3 %v425_v18  ;;  %569 = vmatpush.msra.mxu0 %v542_v33 }
  0x59   :  { %586 = vmatpush.msra.mxu1 %v536_v21  ;;  %750 = vmatmul.msk.f32.vlgmr.msra.gmra.mxu0 %vm546_vm4, %v541_v35  ;;  %v669_v21 = vld [vmem:[%s1510_s20 + $0x10] sm:$0xff] }
  0x5a   :  { %449 = vmatpush.msrb.mxu3 %v424_v20  ;;  %486 = vmatpush.msra.mxu2 %v462_v42 }
  0x5b   :  { %587 = vmatpush.msra.mxu1 %v535_v28  ;;  %v768_v28 = vld [vmem:[%s1511_s21] ss:$0 sm:$0xff] }
  0x5c   :  { %450 = vmatpush.msrb.mxu3 %v423_v26  ;;  %487 = vmatpush.msra.mxu2 %v461_v43 }
  0x5d   :  { %588 = vmatpush.msra.mxu1 %v534_v31 }
  0x5e   :  { %451 = vmatpush.msrb.mxu3 %v422_v29  ;;  %488 = vmatpush.msra.mxu2 %v460_v44 }
  0x5f   :  { %589 = vmatpush.msra.mxu1 %v533_v34 }
  0x60   :  { %452 = vmatpush.msrb.mxu3 %v421_v32  ;;  %489 = vmatpush.msra.mxu2 %v459_v45 }
  0x62   :  { %490 = vmatpush.msra.mxu2 %v458_v46 }
  0xb6   :  { %v219_v57 = vpop.f32.mrf.mxu0 }
  0xb7   :  { %v220_v58 = vadd.f32 %v760_v56, %v219_v57  ;;  %v497_v56 = vld [vmem:[%s1502_s12 + $0x8] sm:$0xff]  ;;  %v496_v57 = vld [vmem:[%s1502_s12] sm:$0xff] }
  0xb9   :  { %v239_v59 = vpop.f32.mrf.mxu1 }
  0xba   :  { %v240_v60 = vadd.f32 %v239_v59, %v220_v58  ;;  %v594_v58 = vld [vmem:[%s1506_s16] sm:$0x3f] }
  0xbb   :  { %v259_v61 = vpop.f32.mrf.mxu2  ;;  %v764_v59 = vld [vmem:[%s1501_s11] ss:$0 sm:$0xff] }
  0xbc   :  { %v260_v63 = vadd.f32 %v259_v61, %v240_v60 }
  0xbd   :  { %v279_v62 = vpop.f32.mrf.mxu3 }
  0xbe   :  { %v280_v0 = vadd.f32 %v279_v62, %v260_v63  ;;  %v635_v63 = vld [vmem:[%s1508_s18 + $0x30] sm:$0x3] }
  0xbf   :  { %754 = vmatpush.msk.msrb.mxu0 %vm358_vm1, %v635_v63 }
  0xc5   :  { %v339_v4 = vpop.f32.mrf.mxu3 }
  0xcc   :  { %v299_v1 = vpop.f32.mrf.mxu0 }
  0xcd   :  { %v319_v2 = vpop.f32.mrf.mxu1  ;;  %v300_v3 = vadd.f32 %v299_v1, %v280_v0  ;;  %v634_v0 = vld [vmem:[%s1508_s18 + $0x28] sm:$0xff]  ;;  %v633_v1 = vld [vmem:[%s1508_s18 + $0x20] sm:$0xff] }
  0xce   :  { %656 = vmatpush.msrb.mxu0 %v634_v0 }
  0xcf   :  { %v320_v5 = vadd.f32 %v319_v2, %v300_v3  ;;  %v765_v2 = vld [vmem:[%s1503_s13] ss:$0 sm:$0xff]  ;;  %s822_s13 = smov [#allocation2]  }
  0xd0   :  { %657 = vmatpush.msrb.mxu0 %v633_v1 }
  0xd1   :  { %v340_v6 = vadd.f32 %v339_v4, %v320_v5  ;;  %v632_v5 = vld [vmem:[%s1508_s18 + $0x18] sm:$0xff] }
  0xd2   :  { %658 = vmatpush.msrb.mxu0 %v632_v5 }
  0xd3   :  { %v342_v7 = vmax.f32 %v340_v6, 0.0  ;;  %v631_v6 = vld [vmem:[%s1508_s18 + $0x10] sm:$0xff] }
  0xd4   :  { %659 = vmatpush.msrb.mxu0 %v631_v6 }
  0xd5   :  { %741 = vmatmul.msk.f32.vlgmr.msra.gmra.mxu3 %vm354_vm2, %v342_v7  ;;  %v630_v7 = vld [vmem:[%s1508_s18 + $0x8] sm:$0xff] }
  0xd6   :  { %747 = vmatpush.msk.msra.mxu3 %vm358_vm1, %v502_v47  ;;  %660 = vmatpush.msrb.mxu0 %v630_v7  ;;  %v571_v13 = vpop.f32.mrf.mxu0 }
  0xd8   :  { %523 = vmatpush.msra.mxu3 %v501_v48  ;;  %661 = vmatpush.msrb.mxu0 %v629_v8 }
  0xda   :  { %524 = vmatpush.msra.mxu3 %v500_v49 }
  0xdc   :  { %525 = vmatpush.msra.mxu3 %v499_v50 }
  0xde   :  { %526 = vmatpush.msra.mxu3 %v498_v55 }
  0xe0   :  { %527 = vmatpush.msra.mxu3 %v497_v56 }
  0xe2   :  { %528 = vmatpush.msra.mxu3 %v496_v57 }
 0x158   :  { %v379_v23 = vpop.f32.mrf.mxu3 }
 0x159   :  { %v380_v24 = vadd.f32 %v761_v22, %v379_v23  ;;  %v668_v22 = vld [vmem:[%s1510_s20 + $0x8] sm:$0xff]  ;;  %v667_v23 = vld [vmem:[%s1510_s20] sm:$0xff] }
 0x15b   :  { %v382_v25 = vmax.f32 %v380_v24, 0.0  ;;  %v767_v24 = vld [vmem:[%s1509_s19] ss:$0 sm:$0xff]  ;;  %s712_s19 = sshll.u32 %s822_s13, 4  ;;  %s713_s19 = int_to_ptr.vmem [resolvable:$true] %s712_s19 }
 0x15d   :  { %743 = vmatmul.msk.f32.vlgmr.msrb.gmra.mxu2 %vm354_vm2, %v382_v25 }
 0x15e   :  { %752 = vmatpush.msk.msrb.mxu2 %vm550_vm3, %v594_v58 }
 0x1e0   :  { %v417_v39 = vpop.f32.mrf.mxu2 }
 0x1e1   :  { %v418_v40 = vadd.f32 %v762_v38, %v417_v39 }
 0x1e3   :  { %v420_v41 = vmax.f32 %v418_v40, 0.0 }
 0x1e5   :  { %744 = vmatmul.msk.f32.vlgmr.msrb.gmra.mxu3 %vm433_vm5, %v420_v41  ;;  %751 = vmatmul.msk.f32.vlgmr.msra.gmra.mxu1 %vm433_vm5, %v420_v41 }
 0x262   :  { %v591_v14 = vpop.f32.mrf.mxu1 }
 0x263   :  { %v592_v15 = vadd.f32 %v591_v14, %v571_v13 }
 0x268   :  { %v454_v52 = vpop.f32.mrf.mxu3 }
 0x269   :  { %v455_v53 = vadd.f32 %v763_v51, %v454_v52 }
 0x26b   :  { %v457_v54 = vmax.f32 %v455_v53, 0.0 }
 0x26d   :  { %746 = vmatmul.msk.f32.vlgmr.msra.gmra.mxu2 %vm354_vm2, %v457_v54 }
 0x26e   :  { %756 = vmatpush.msk.msra.mxu2 %vm358_vm1, %v673_v9 }
 0x270   :  { %694 = vmatpush.msra.mxu2 %v672_v10 }
 0x272   :  { %695 = vmatpush.msra.mxu2 %v671_v11 }
 0x274   :  { %696 = vmatpush.msra.mxu2 %v670_v12 }
 0x276   :  { %697 = vmatpush.msra.mxu2 %v669_v21 }
 0x278   :  { %698 = vmatpush.msra.mxu2 %v668_v22 }
 0x27a   :  { %699 = vmatpush.msra.mxu2 %v667_v23 }
 0x2f0   :  { %v492_v60 = vpop.f32.mrf.mxu2 }
 0x2f1   :  { %v493_v61 = vadd.f32 %v764_v59, %v492_v60 }
 0x2f3   :  { %v495_v62 = vmax.f32 %v493_v61, 0.0 }
 0x2f5   :  { %748 = vmatmul.msk.f32.vlgmr.msra.gmra.mxu3 %vm354_vm2, %v495_v62 }
 0x378   :  { %v530_v3 = vpop.f32.mrf.mxu3 }
 0x379   :  { %v531_v4 = vadd.f32 %v765_v2, %v530_v3 }
 0x37b   :  { %706 = vst.msk [vmem:[#allocation4] sm:$0x3] %vm704_vm6, %v531_v4  ;;  %753 = vmatmul.msk.f32.vlgmr.msrb.gmra.mxu2 %vm595_vm7, %v531_v4 }
 0x37c   :  { %728 = dma.vmem_to_hbm [thread:$0]  %s724_s15, 32, %s726_s0, [#allocation5]  }
 0x3fe   :  { %v619_v17 = vpop.f32.mrf.mxu2 }
 0x3ff   :  { %v622_v18 = vadd.f32 %v619_v17, %v592_v15 }
 0x401   :  { %v627_v19 = vadd.f32 %v766_v16, %v622_v18 }
 0x403   :  { %v628_v20 = vmax.f32 %v627_v19, 0.0 }
 0x405   :  { %755 = vmatmul.msk.f32.vlgmr.msrb.gmra.mxu0 %vm354_vm2, %v628_v20 }
 0x482   :  { %v663_v25 = vpop.f32.mrf.mxu0 }
 0x483   :  { %v664_v26 = vadd.f32 %v767_v24, %v663_v25 }
 0x485   :  { %v666_v27 = vmax.f32 %v664_v26, 0.0 }
 0x487   :  { %757 = vmatmul.msk.f32.vlgmr.msra.gmra.mxu2 %vm354_vm2, %v666_v27 }
 0x50a   :  { %v701_v29 = vpop.f32.mrf.mxu2 }
 0x50b   :  { %v702_v30 = vadd.f32 %v768_v28, %v701_v29 }
 0x50d   :  { %705 = vst.msk [vmem:[#allocation2] sm:$0x3] %vm704_vm6, %v702_v30 }
 0x50e   :  { %717 = dma.vmem_to_hbm [thread:$0]  %s713_s19, 32, %s715_s6, [#allocation3]  }
 0x50f   :  { %817 = dma.done.wait [#allocation3], 32  }
 0x510   :  { %818 = vsyncadd [#allocation3], 4294967264 }
 0x511   :  { %819 = dma.done.wait [#allocation5], 32  }
 0x512   :  { %820 = vsyncadd [#allocation5], 4294967264 }
 0x513   :  { %737 = vsyncpa [#allocation3], 1 }
 0x514   :  { %738 = vsyncpa [#allocation5], 1 }

// kernel: zhangnet_forward.2
= control target key start
LH: loop header
LB: loop body
LE: loop exit
PB: predicated region body
PF: predicated region fallthrough
CT: control target
= control target key end

     0   :  { %vm454_vm0 = vcmask 1040384   ;;  %vm173_vm1 = vcmask 1042432   ;;  %vm390_vm2 = vcmask 400384   ;;  %vm109_vm3 = vcmask 154624   ;;  %s5394_s2 = inlined_call_operand.vmem [shape: f32[147,64], index: 2, kind: input, shape index: {}]   ;;  %s5395_s4 = inlined_call_operand.vmem [shape: f32[49,16], index: 4, kind: input, shape index: {}]   ;;  %s5396_s1 = inlined_call_operand.vmem [shape: f32[162,49], index: 1, kind: input, shape index: {}]   ;;  %s5397_s0 = inlined_call_operand.vmem [shape: f32[162,147], index: 0, kind: input, shape index: {}]   ;;  %s5398_s5 = inlined_call_operand.vmem [shape: f32[1,16], index: 5, kind: input, shape index: {}]   ;;  %s5399_s3 = inlined_call_operand.vmem [shape: f32[1,64], index: 3, kind: input, shape index: {}]   ;;  %s5400_s7 = inlined_call_operand.vmem [shape: f32[16,32], index: 7, kind: input, shape index: {}]   ;;  %s5401_s6 = inlined_call_operand.vmem [shape: f32[64,32], index: 6, kind: input, shape index: {}]   ;;  %s5402_s8 = inlined_call_operand.vmem [shape: f32[1,32], index: 8, kind: input, shape index: {}]   ;;  %s5403_s9 = inlined_call_operand.vmem [shape: f32[9,32,32], index: 9, kind: input, shape index: {}]   ;;  %s5404_s10 = inlined_call_operand.vmem [shape: f32[1,32], index: 10, kind: input, shape index: {}]   ;;  %s5405_s11 = inlined_call_operand.vmem [shape: f32[9,32,32], index: 11, kind: input, shape index: {}]   ;;  %s5406_s12 = inlined_call_operand.vmem [shape: f32[1,32], index: 12, kind: input, shape index: {}]   ;;  %s5407_s13 = inlined_call_operand.vmem [shape: f32[50,32], index: 13, kind: output, shape index: {}]  }
   0x1   :  { %v101_v0 = vld [vmem:[%s5394_s2 + $0x78] sm:$0xff]  ;;  %v385_v1 = vld [vmem:[%s5395_s4 + $0x30] sm:$0x1]  ;;  %v384_v3 = vld [vmem:[%s5395_s4 + $0x28] sm:$0xff]  ;;  %vm569_vm4 = vcmask 130048   ;;  %vm713_vm5 = vcmask 523264  }
   0x2   :  { %v100_v2 = vld [vmem:[%s5394_s2 + $0x70] sm:$0xff]  ;;  %177 = vmatpush.msra.mxu0 %v101_v0  ;;  %3248 = vmatpush.msk.msra.mxu2 %vm454_vm0, %v385_v1  ;;  %v99_v4 = vld [vmem:[%s5394_s2 + $0x68] sm:$0xff]  ;;  %v383_v5 = vld [vmem:[%s5395_s4 + $0x20] sm:$0xff]  ;;  %vm903_vm6 = vcmask 261120   ;;  %vm927_vm7 = vcmask 260096   ;;  %vm924_vm8 = vcmask 254976  }
   0x3   :  { %3559 = vmatpush.msk.msra.mxu3 %vm454_vm0, %v385_v1  ;;  %v98_v6 = vld [vmem:[%s5394_s2 + $0x60] sm:$0xff]  ;;  %v382_v7 = vld [vmem:[%s5395_s4 + $0x18] sm:$0xff]  ;;  %v381_v9 = vld [vmem:[%s5395_s4 + $0x10] sm:$0xff]  ;;  %vm2330_vm9 = vcmask 258048  }
   0x4   :  { %178 = vmatpush.msra.mxu0 %v100_v2  ;;  %468 = vmatpush.msra.mxu2 %v384_v3  ;;  %v97_v8 = vld [vmem:[%s5394_s2 + $0x58] sm:$0xff]  ;;  %v96_v10 = vld [vmem:[%s5394_s2 + $0x50] sm:$0xff]  ;;  %v380_v11 = vld [vmem:[%s5395_s4 + $0x8] sm:$0xff] }
   0x5   :  { %3560 = vmatpush.msra.mxu3 %v384_v3  ;;  %v104_v12 = vld [vmem:[%s5394_s2 + $0x90] sm:$0x7]  ;;  %v103_v13 = vld [vmem:[%s5394_s2 + $0x88] sm:$0xff]  ;;  %v379_v15 = vld [vmem:[%s5395_s4] sm:$0xff] }
   0x6   :  { %179 = vmatpush.msra.mxu0 %v99_v4  ;;  %469 = vmatpush.msra.mxu2 %v383_v5  ;;  %v95_v14 = vld [vmem:[%s5394_s2 + $0x48] sm:$0xff]  ;;  %v358_v16 = vld [vmem:[%s5396_s1] sm:$0xff]  ;;  %v47_v19 = vld [vmem:[%s5397_s0 + $0x18] sm:$0xff] }
   0x7   :  { %3561 = vmatpush.msra.mxu3 %v383_v5  ;;  %3556 = vmatpush.msk.msra.mxu1 %vm173_vm1, %v104_v12  ;;  %v102_v17 = vld [vmem:[%s5394_s2 + $0x80] sm:$0xff]  ;;  %v93_v20 = vld [vmem:[%s5394_s2 + $0x38] sm:$0xff]  ;;  %v92_v21 = vld [vmem:[%s5394_s2 + $0x30] sm:$0xff] }
   0x8   :  { %180 = vmatpush.msra.mxu0 %v98_v6  ;;  %470 = vmatpush.msra.mxu2 %v382_v7  ;;  %v94_v18 = vld [vmem:[%s5394_s2 + $0x40] sm:$0xff]  ;;  %v91_v22 = vld [vmem:[%s5394_s2 + $0x28] sm:$0xff]  ;;  %v89_v26 = vld [vmem:[%s5394_s2 + $0x18] sm:$0xff] }
   0x9   :  { %3562 = vmatpush.msra.mxu3 %v382_v7  ;;  %3557 = vmatpush.msra.mxu1 %v103_v13  ;;  %v359_v23 = vld [vmem:[%s5396_s1 + $0x8] sm:$0xff]  ;;  %v90_v24 = vld [vmem:[%s5394_s2 + $0x20] sm:$0xff]  ;;  %v88_v27 = vld [vmem:[%s5394_s2 + $0x10] sm:$0xff] }
   0xa   :  { %181 = vmatpush.msra.mxu0 %v97_v8  ;;  %471 = vmatpush.msra.mxu2 %v381_v9  ;;  %v49_v25 = vld [vmem:[%s5397_s0 + $0x28] sm:$0xff]  ;;  %v360_v29 = vld [vmem:[%s5396_s1 + $0x10] sm:$0xff]  ;;  %v86_v30 = vld [vmem:[%s5394_s2] sm:$0xff] }
   0xb   :  { %3563 = vmatpush.msra.mxu3 %v381_v9  ;;  %3558 = vmatpush.msra.mxu1 %v102_v17  ;;  %v87_v28 = vld [vmem:[%s5394_s2 + $0x8] sm:$0xff]  ;;  %v51_v31 = vld [vmem:[%s5397_s0 + $0x38] sm:$0xff]  ;;  %v44_v32 = vld [vmem:[%s5397_s0] sm:$0xff] }
   0xc   :  { %182 = vmatpush.msra.mxu0 %v96_v10  ;;  %472 = vmatpush.msra.mxu2 %v380_v11  ;;  %v361_v33 = vld [vmem:[%s5396_s1 + $0x18] sm:$0xff]  ;;  %v53_v34 = vld [vmem:[%s5397_s0 + $0x48] sm:$0xff]  ;;  %v46_v35 = vld [vmem:[%s5397_s0 + $0x10] sm:$0xff] }
   0xd   :  { %3564 = vmatpush.msra.mxu3 %v380_v11  ;;  %3228 = vmatmul.msk.f32.vlgmr.msra.gmra.mxu1 %vm109_vm3, %v47_v19  ;;  %v362_v36 = vld [vmem:[%s5396_s1 + $0x20] sm:$0xff]  ;;  %v55_v37 = vld [vmem:[%s5397_s0 + $0x58] sm:$0xff]  ;;  %v363_v39 = vld [vmem:[%s5396_s1 + $0x28] sm:$0xff] }
   0xe   :  { %183 = vmatpush.msra.mxu0 %v95_v14  ;;  %473 = vmatpush.msra.mxu2 %v379_v15  ;;  %v48_v38 = vld [vmem:[%s5397_s0 + $0x20] sm:$0xff]  ;;  %v57_v40 = vld [vmem:[%s5397_s0 + $0x68] sm:$0xff]  ;;  %v50_v41 = vld [vmem:[%s5397_s0 + $0x30] sm:$0xff] }
   0xf   :  { %3249 = vmatmul.msk.f32.vlgmr.msra.gmra.mxu2 %vm390_vm2, %v358_v16  ;;  %3565 = vmatpush.msra.mxu3 %v379_v15  ;;  %v364_v42 = vld [vmem:[%s5396_s1 + $0x30] sm:$0xff]  ;;  %v59_v43 = vld [vmem:[%s5397_s0 + $0x78] sm:$0xff]  ;;  %v52_v44 = vld [vmem:[%s5397_s0 + $0x40] sm:$0xff] }
  0x10   :  { %184 = vmatpush.msra.mxu0 %v94_v18  ;;  %v365_v45 = vld [vmem:[%s5396_s1 + $0x38] sm:$0xff]  ;;  %v61_v46 = vld [vmem:[%s5397_s0 + $0x88] sm:$0xff]  ;;  %v54_v47 = vld [vmem:[%s5397_s0 + $0x50] sm:$0xff] }
  0x11   :  { %v366_v48 = vld [vmem:[%s5396_s1 + $0x40] sm:$0xff]  ;;  %v63_v49 = vld [vmem:[%s5397_s0 + $0x98] sm:$0xff]  ;;  %v367_v51 = vld [vmem:[%s5396_s1 + $0x48] sm:$0xff] }
  0x12   :  { %185 = vmatpush.msra.mxu0 %v93_v20  ;;  %v56_v50 = vld [vmem:[%s5397_s0 + $0x60] sm:$0xff]  ;;  %v65_v52 = vld [vmem:[%s5397_s0 + $0xa8] sm:$0xff]  ;;  %v58_v53 = vld [vmem:[%s5397_s0 + $0x70] sm:$0xff] }
  0x13   :  { %v368_v54 = vld [vmem:[%s5396_s1 + $0x50] sm:$0xff]  ;;  %v67_v55 = vld [vmem:[%s5397_s0 + $0xb8] sm:$0xff]  ;;  %v60_v56 = vld [vmem:[%s5397_s0 + $0x80] sm:$0xff] }
  0x14   :  { %186 = vmatpush.msra.mxu0 %v92_v21  ;;  %v369_v57 = vld [vmem:[%s5396_s1 + $0x58] sm:$0xff]  ;;  %v69_v58 = vld [vmem:[%s5397_s0 + $0xc8] sm:$0xff]  ;;  %v62_v59 = vld [vmem:[%s5397_s0 + $0x90] sm:$0xff] }
  0x15   :  { %3229 = vmatmul.msk.f32.gmra.mxu1 %vm109_vm3, %v49_v25  ;;  %v377_v60 = vld [vmem:[%s5396_s1 + $0x98] sm:$0xff]  ;;  %v370_v61 = vld [vmem:[%s5396_s1 + $0x60] sm:$0xff]  ;;  %v568_v1 = vld [vmem:[%s5400_s7 + $0x8] sm:$0xff] }
  0x16   :  { %187 = vmatpush.msra.mxu0 %v91_v22  ;;  %3268 = vmatmul.msk.f32.vlgmr.msra.gmra.mxu3 %vm390_vm2, %v377_v60  ;;  %v71_v62 = vld [vmem:[%s5397_s0 + $0xd8] sm:$0xff]  ;;  %v64_v63 = vld [vmem:[%s5397_s0 + $0xa0] sm:$0xff]  ;;  %v371_v2 = vld [vmem:[%s5396_s1 + $0x68] sm:$0xff] }
  0x17   :  { %3250 = vmatmul.msk.f32.gmra.mxu2 %vm390_vm2, %v359_v23  ;;  %v378_v0 = vld [vmem:[%s5396_s1 + $0xa0] sm:$0x3]  ;;  %647 = vmatpush.msrb.mxu3 %v568_v1  ;;  %v73_v3 = vld [vmem:[%s5397_s0 + $0xe8] sm:$0xff]  ;;  %v66_v5 = vld [vmem:[%s5397_s0 + $0xb0] sm:$0xff] }
  0x18   :  { %188 = vmatpush.msra.mxu0 %v90_v24  ;;  %v567_v4 = vld [vmem:[%s5400_s7] sm:$0xff]  ;;  %v372_v6 = vld [vmem:[%s5396_s1 + $0x70] sm:$0xff]  ;;  %v75_v7 = vld [vmem:[%s5397_s0 + $0xf8] sm:$0xff] }
  0x19   :  { %648 = vmatpush.msrb.mxu3 %v567_v4  ;;  %v68_v8 = vld [vmem:[%s5397_s0 + $0xc0] sm:$0xff]  ;;  %v373_v9 = vld [vmem:[%s5396_s1 + $0x78] sm:$0xff]  ;;  %v77_v10 = vld [vmem:[%s5397_s0 + $0x108] sm:$0xff] }
  0x1a   :  { %189 = vmatpush.msra.mxu0 %v89_v26  ;;  %v566_v11 = vld [vmem:[%s5401_s6 + $0x38] sm:$0xff]  ;;  %v72_v15 = vld [vmem:[%s5397_s0 + $0xe0] sm:$0xff]  ;;  %v375_v19 = vld [vmem:[%s5396_s1 + $0x88] sm:$0xff] }
  0x1b   :  { %785 = vmatpush.msra.mxu3 %v566_v11  ;;  %v79_v14 = vld [vmem:[%s5397_s0 + $0x118] sm:$0xff]  ;;  %v3921_v16 = vld [vmem:[%s5398_s5] ss:$0 sm:$0xff]  ;;  %v81_v21 = vld [vmem:[%s5397_s0 + $0x128] sm:$0xff] }
  0x1c   :  { %190 = vmatpush.msra.mxu0 %v88_v27  ;;  %v74_v22 = vld [vmem:[%s5397_s0 + $0xf0] sm:$0xff] }
  0x1d   :  { %3230 = vmatmul.msk.f32.gmra.mxu1 %vm109_vm3, %v51_v31  ;;  %v565_v25 = vld [vmem:[%s5401_s6 + $0x30] sm:$0xff] }
  0x1e   :  { %191 = vmatpush.msra.mxu0 %v87_v28  ;;  %3269 = vmatmul.msk.f32.gmra.mxu3 %vm390_vm2, %v378_v0  ;;  %v376_v26 = vld [vmem:[%s5396_s1 + $0x90] sm:$0xff]  ;;  %v83_v28 = vld [vmem:[%s5397_s0 + $0x138] sm:$0xff] }
  0x1f   :  { %3251 = vmatmul.msk.f32.gmra.mxu2 %vm390_vm2, %v360_v29  ;;  %786 = vmatpush.msra.mxu3 %v565_v25 }
  0x20   :  { %192 = vmatpush.msra.mxu0 %v86_v30  ;;  %v76_v30 = vld [vmem:[%s5397_s0 + $0x100] sm:$0xff] }
  0x21   :  { %193 = vmatmul.f32.vlgmr.msra.gmra.mxu0 %v44_v32 }
  0x22   :  { %3226 = vmatpush.msk.msrb.mxu0 %vm173_vm1, %v104_v12  ;;  %v70_v12 = vld [vmem:[%s5397_s0 + $0xd0] sm:$0xff] }
  0x24   :  { %271 = vmatpush.msrb.mxu0 %v103_v13  ;;  %v374_v13 = vld [vmem:[%s5396_s1 + $0x80] sm:$0xff] }
  0x25   :  { %3231 = vmatmul.msk.f32.gmra.mxu1 %vm109_vm3, %v53_v34  ;;  %v85_v34 = vld [vmem:[%s5397_s0 + $0x148] sm:$0x3] }
  0x26   :  { %272 = vmatpush.msrb.mxu0 %v102_v17 }
  0x27   :  { %3252 = vmatmul.msk.f32.gmra.mxu2 %vm390_vm2, %v361_v33 }
  0x29   :  { %196 = vmatmul.f32.gmra.mxu0 %v46_v35 }
  0x2d   :  { %3232 = vmatmul.msk.f32.gmra.mxu1 %vm109_vm3, %v55_v37 }
  0x2f   :  { %3253 = vmatmul.msk.f32.gmra.mxu2 %vm390_vm2, %v362_v36  ;;  %v78_v36 = vld [vmem:[%s5397_s0 + $0x110] sm:$0xff] }
  0x31   :  { %199 = vmatmul.f32.gmra.mxu0 %v48_v38 }
  0x35   :  { %3233 = vmatmul.msk.f32.gmra.mxu1 %vm109_vm3, %v57_v40  ;;  %v564_v40 = vld [vmem:[%s5401_s6 + $0x28] sm:$0xff] }
  0x36   :  { %787 = vmatpush.msra.mxu3 %v564_v40 }
  0x37   :  { %3254 = vmatmul.msk.f32.gmra.mxu2 %vm390_vm2, %v363_v39 }
  0x39   :  { %202 = vmatmul.f32.gmra.mxu0 %v50_v41 }
  0x3d   :  { %3234 = vmatmul.msk.f32.gmra.mxu1 %vm109_vm3, %v59_v43 }
  0x3f   :  { %3255 = vmatmul.msk.f32.gmra.mxu2 %vm390_vm2, %v364_v42  ;;  %v80_v42 = vld [vmem:[%s5397_s0 + $0x120] sm:$0xff] }
  0x41   :  { %205 = vmatmul.f32.gmra.mxu0 %v52_v44 }
  0x45   :  { %3235 = vmatmul.msk.f32.gmra.mxu1 %vm109_vm3, %v61_v46 }
  0x47   :  { %3256 = vmatmul.msk.f32.gmra.mxu2 %vm390_vm2, %v365_v45 }
  0x49   :  { %208 = vmatmul.f32.gmra.mxu0 %v54_v47  ;;  %v82_v47 = vld [vmem:[%s5397_s0 + $0x130] sm:$0xff] }
  0x4d   :  { %3236 = vmatmul.msk.f32.gmra.mxu1 %vm109_vm3, %v63_v49 }
  0x4f   :  { %3257 = vmatmul.msk.f32.gmra.mxu2 %vm390_vm2, %v366_v48 }
  0x51   :  { %211 = vmatmul.f32.gmra.mxu0 %v56_v50 }
  0x55   :  { %3237 = vmatmul.msk.f32.gmra.mxu1 %vm109_vm3, %v65_v52  ;;  %v84_v52 = vld [vmem:[%s5397_s0 + $0x140] sm:$0x3] }
  0x57   :  { %3258 = vmatmul.msk.f32.gmra.mxu2 %vm390_vm2, %v367_v51 }
  0x59   :  { %214 = vmatmul.f32.gmra.mxu0 %v58_v53 }
  0x5d   :  { %3238 = vmatmul.msk.f32.gmra.mxu1 %vm109_vm3, %v67_v55 }
  0x5f   :  { %3259 = vmatmul.msk.f32.gmra.mxu2 %vm390_vm2, %v368_v54 }
  0x61   :  { %217 = vmatmul.f32.gmra.mxu0 %v60_v56  ;;  %v563_v56 = vld [vmem:[%s5401_s6 + $0x20] sm:$0xff] }
  0x62   :  { %788 = vmatpush.msra.mxu3 %v563_v56 }
  0x65   :  { %3239 = vmatmul.msk.f32.gmra.mxu1 %vm109_vm3, %v69_v58  ;;  %v45_v58 = vld [vmem:[%s5397_s0 + $0x8] sm:$0xff] }
  0x67   :  { %3260 = vmatmul.msk.f32.gmra.mxu2 %vm390_vm2, %v369_v57 }
  0x69   :  { %220 = vmatmul.f32.gmra.mxu0 %v62_v59 }
  0x6d   :  { %3240 = vmatmul.msk.f32.gmra.mxu1 %vm109_vm3, %v71_v62 }
  0x6f   :  { %3261 = vmatmul.msk.f32.gmra.mxu2 %vm390_vm2, %v370_v61 }
  0x71   :  { %223 = vmatmul.f32.gmra.mxu0 %v64_v63 }
  0x75   :  { %3241 = vmatmul.msk.f32.gmra.mxu1 %vm109_vm3, %v73_v3  ;;  %v562_v3 = vld [vmem:[%s5401_s6 + $0x18] sm:$0xff] }
  0x76   :  { %789 = vmatpush.msra.mxu3 %v562_v3 }
  0x77   :  { %3262 = vmatmul.msk.f32.gmra.mxu2 %vm390_vm2, %v371_v2 }
  0x79   :  { %226 = vmatmul.f32.gmra.mxu0 %v66_v5 }
  0x7d   :  { %3242 = vmatmul.msk.f32.gmra.mxu1 %vm109_vm3, %v75_v7 }
  0x7f   :  { %3263 = vmatmul.msk.f32.gmra.mxu2 %vm390_vm2, %v372_v6 }
  0x81   :  { %229 = vmatmul.f32.gmra.mxu0 %v68_v8 }
  0x85   :  { %3243 = vmatmul.msk.f32.gmra.mxu1 %vm109_vm3, %v77_v10 }
  0x87   :  { %3264 = vmatmul.msk.f32.gmra.mxu2 %vm390_vm2, %v373_v9 }
  0x89   :  { %232 = vmatmul.f32.gmra.mxu0 %v70_v12 }
  0x8d   :  { %3244 = vmatmul.msk.f32.gmra.mxu1 %vm109_vm3, %v79_v14 }
  0x8f   :  { %3265 = vmatmul.msk.f32.gmra.mxu2 %vm390_vm2, %v374_v13 }
  0x91   :  { %235 = vmatmul.f32.gmra.mxu0 %v72_v15  ;;  %v561_v15 = vld [vmem:[%s5401_s6 + $0x10] sm:$0xff] }
  0x92   :  { %v475_v17 = vpop.f32.mrf.mxu2  ;;  %790 = vmatpush.msra.mxu3 %v561_v15 }
  0x93   :  { %v476_v18 = vadd.f32 %v3921_v16, %v475_v17 }
  0x95   :  { %v538_v20 = vmax.f32 %v476_v18, 0.0  ;;  %3245 = vmatmul.msk.f32.gmra.mxu1 %vm109_vm3, %v81_v21 }
  0x97   :  { %3266 = vmatmul.msk.f32.gmra.mxu2 %vm390_vm2, %v375_v19  ;;  %3270 = vmatmul.msk.f32.vlgmr.msrb.gmra.mxu3 %vm569_vm4, %v538_v20 }
  0x99   :  { %238 = vmatmul.f32.gmra.mxu0 %v74_v22 }
  0x9a   :  { %v478_v23 = vpop.f32.mrf.mxu2 }
  0x9b   :  { %v479_v24 = vadd.f32 %v3921_v16, %v478_v23 }
  0x9d   :  { %v539_v27 = vmax.f32 %v479_v24, 0.0  ;;  %3246 = vmatmul.msk.f32.gmra.mxu1 %vm109_vm3, %v83_v28  ;;  %v560_v28 = vld [vmem:[%s5401_s6 + $0x8] sm:$0xff] }
  0x9e   :  { %v3947_v29 = vpop.f32.mrf.mxu0  ;;  %791 = vmatpush.msra.mxu3 %v560_v28 }
  0x9f   :  { %3267 = vmatmul.msk.f32.gmra.mxu2 %vm390_vm2, %v376_v26  ;;  %3271 = vmatmul.msk.f32.gmra.mxu3 %vm569_vm4, %v539_v27 }
  0xa1   :  { %241 = vmatmul.f32.gmra.mxu0 %v76_v30 }
  0xa2   :  { %v481_v31 = vpop.f32.mrf.mxu2 }
  0xa3   :  { %v482_v32 = vadd.f32 %v3921_v16, %v481_v31 }
  0xa5   :  { %v540_v33 = vmax.f32 %v482_v32, 0.0  ;;  %3247 = vmatmul.msk.f32.gmra.mxu1 %vm109_vm3, %v85_v34  ;;  %v532_v32 = vpop.f32.mrf.mxu3 }
  0xa6   :  { %v3959_v35 = vpop.f32.mrf.mxu0 }
  0xa7   :  { %3272 = vmatmul.msk.f32.gmra.mxu3 %vm569_vm4, %v540_v33 }
  0xa9   :  { %244 = vmatmul.f32.gmra.mxu0 %v78_v36 }
  0xaa   :  { %v484_v37 = vpop.f32.mrf.mxu2 }
  0xab   :  { %v485_v38 = vadd.f32 %v3921_v16, %v484_v37 }
  0xad   :  { %v541_v39 = vmax.f32 %v485_v38, 0.0  ;;  %v535_v38 = vpop.f32.mrf.mxu3 }
  0xae   :  { %v3970_v41 = vpop.f32.mrf.mxu0 }
  0xaf   :  { %3273 = vmatmul.msk.f32.gmra.mxu3 %vm569_vm4, %v541_v39 }
  0xb1   :  { %247 = vmatmul.f32.gmra.mxu0 %v80_v42 }
  0xb2   :  { %v487_v43 = vpop.f32.mrf.mxu2 }
  0xb3   :  { %v488_v44 = vadd.f32 %v3921_v16, %v487_v43 }
  0xb5   :  { %v542_v45 = vmax.f32 %v488_v44, 0.0  ;;  %v559_v44 = vld [vmem:[%s5401_s6] sm:$0xff] }
  0xb6   :  { %v3977_v46 = vpop.f32.mrf.mxu0  ;;  %792 = vmatpush.msra.mxu3 %v559_v44 }
  0xb7   :  { %3274 = vmatmul.msk.f32.gmra.mxu3 %vm569_vm4, %v542_v45 }
  0xb9   :  { %250 = vmatmul.f32.gmra.mxu0 %v82_v47 }
  0xba   :  { %v490_v48 = vpop.f32.mrf.mxu2 }
  0xbb   :  { %v491_v49 = vadd.f32 %v3921_v16, %v490_v48 }
  0xbd   :  { %v543_v50 = vmax.f32 %v491_v49, 0.0 }
  0xbe   :  { %v3984_v51 = vpop.f32.mrf.mxu0 }
  0xbf   :  { %3275 = vmatmul.msk.f32.gmra.mxu3 %vm569_vm4, %v543_v50 }
  0xc1   :  { %253 = vmatmul.f32.gmra.mxu0 %v84_v52 }
  0xc2   :  { %v493_v53 = vpop.f32.mrf.mxu2 }
  0xc3   :  { %v494_v54 = vadd.f32 %v3921_v16, %v493_v53 }
  0xc5   :  { %v544_v55 = vmax.f32 %v494_v54, 0.0 }
  0xc6   :  { %v3994_v57 = vpop.f32.mrf.mxu0 }
  0xc7   :  { %3276 = vmatmul.msk.f32.gmra.mxu3 %vm569_vm4, %v544_v55  ;;  %v277_v55 = vpop.f32.mrf.mxu1 }
  0xc9   :  { %3227 = vmatmul.msk.f32.vlgmr.msrb.gmra.mxu0 %vm109_vm3, %v45_v58 }
  0xca   :  { %v496_v59 = vpop.f32.mrf.mxu2 }
  0xcb   :  { %v497_v60 = vadd.f32 %v3921_v16, %v496_v59  ;;  %v533_v59 = vadd.f32 %v3921_v16, %v532_v32 }
  0xcd   :  { %v545_v61 = vmax.f32 %v497_v60, 0.0 }
  0xce   :  { %v4002_v62 = vpop.f32.mrf.mxu0 }
  0xcf   :  { %3277 = vmatmul.msk.f32.gmra.mxu3 %vm569_vm4, %v545_v61  ;;  %v557_v61 = vmax.f32 %v533_v59, 0.0 }
  0xd2   :  { %v499_v63 = vpop.f32.mrf.mxu2 }
  0xd3   :  { %v500_v0 = vadd.f32 %v3921_v16, %v499_v63  ;;  %v280_v63 = vpop.f32.mrf.mxu1 }
  0xd5   :  { %v546_v1 = vmax.f32 %v500_v0, 0.0 }
  0xd6   :  { %v4006_v2 = vpop.f32.mrf.mxu0 }
  0xd7   :  { %3278 = vmatmul.msk.f32.gmra.mxu3 %vm569_vm4, %v546_v1  ;;  %v536_v1 = vadd.f32 %v3921_v16, %v535_v38 }
  0xda   :  { %v502_v4 = vpop.f32.mrf.mxu2 }
  0xdb   :  { %v503_v5 = vadd.f32 %v3921_v16, %v502_v4  ;;  %v558_v4 = vmax.f32 %v536_v1, 0.0 }
  0xdd   :  { %v547_v6 = vmax.f32 %v503_v5, 0.0 }
  0xde   :  { %v4013_v7 = vpop.f32.mrf.mxu0 }
  0xdf   :  { %3279 = vmatmul.msk.f32.gmra.mxu3 %vm569_vm4, %v547_v6  ;;  %v283_v6 = vpop.f32.mrf.mxu1 }
  0xe2   :  { %v505_v8 = vpop.f32.mrf.mxu2 }
  0xe3   :  { %v506_v9 = vadd.f32 %v3921_v16, %v505_v8 }
  0xe5   :  { %v548_v10 = vmax.f32 %v506_v9, 0.0 }
  0xe6   :  { %v4017_v11 = vpop.f32.mrf.mxu0 }
  0xe7   :  { %3280 = vmatmul.msk.f32.gmra.mxu3 %vm569_vm4, %v548_v10  ;;  %v4084_v10 = vld [vmem:[%s5399_s3] ss:$0 sm:$0xff] }
  0xe8   :  { %v210_v44 = vadd.f32 %v4084_v10, %v3994_v57  ;;  %v216_v57 = vadd.f32 %v4084_v10, %v4006_v2  ;;  %v222_v2 = vadd.f32 %v4084_v10, %v4017_v11 }
  0xea   :  { %v508_v12 = vpop.f32.mrf.mxu2 }
  0xeb   :  { %v509_v13 = vadd.f32 %v3921_v16, %v508_v12  ;;  %v286_v12 = vpop.f32.mrf.mxu1 }
  0xed   :  { %v549_v14 = vmax.f32 %v509_v13, 0.0 }
  0xee   :  { %v4024_v17 = vpop.f32.mrf.mxu0 }
  0xef   :  { %3281 = vmatmul.msk.f32.gmra.mxu3 %vm569_vm4, %v549_v14 }
  0xf2   :  { %v511_v18 = vpop.f32.mrf.mxu2 }
  0xf3   :  { %v512_v19 = vadd.f32 %v3921_v16, %v511_v18  ;;  %v198_v18 = vadd.f32 %v4084_v10, %v3959_v35  ;;  %v204_v35 = vadd.f32 %v4084_v10, %v3977_v46  ;;  %v971_v46 = vld [vmem:[%s5403_s9 + $0x18] sm:$0xff] }
  0xf4   :  { %1164 = vmatpush.msrb.mxu2 %v971_v46 }
  0xf5   :  { %v550_v20 = vmax.f32 %v512_v19, 0.0 }
  0xf6   :  { %v4028_v21 = vpop.f32.mrf.mxu0 }
  0xf7   :  { %3282 = vmatmul.msk.f32.gmra.mxu3 %vm569_vm4, %v550_v20 }
  0xfa   :  { %v514_v22 = vpop.f32.mrf.mxu2 }
  0xfb   :  { %v515_v23 = vadd.f32 %v3921_v16, %v514_v22  ;;  %v289_v22 = vpop.f32.mrf.mxu1 }
  0xfd   :  { %v551_v24 = vmax.f32 %v515_v23, 0.0  ;;  %v278_v23 = vadd.f32 %v277_v55, %v198_v18  ;;  %v3314_v18 = vld [vmem:[%s5403_s9 + $0x30] sm:$0xff] }
  0xfe   :  { %v4032_v25 = vpop.f32.mrf.mxu0 }
  0xff   :  { %3283 = vmatmul.msk.f32.gmra.mxu3 %vm569_vm4, %v551_v24  ;;  %v338_v24 = vmax.f32 %v278_v23, 0.0  ;;  %v225_v23 = vadd.f32 %v4084_v10, %v4024_v17  ;;  %v231_v17 = vadd.f32 %v4084_v10, %v4032_v25 }
 0x102   :  { %v517_v26 = vpop.f32.mrf.mxu2 }
 0x103   :  { %v518_v27 = vadd.f32 %v3921_v16, %v517_v26  ;;  %v201_v26 = vadd.f32 %v4084_v10, %v3970_v41  ;;  %v292_v28 = vpop.f32.mrf.mxu1  ;;  %v207_v41 = vadd.f32 %v4084_v10, %v3984_v51 }
 0x105   :  { %v552_v30 = vmax.f32 %v518_v27, 0.0 }
 0x106   :  { %v4039_v31 = vpop.f32.mrf.mxu0 }
 0x107   :  { %3284 = vmatmul.msk.f32.gmra.mxu3 %vm569_vm4, %v552_v30 }
 0x10a   :  { %v520_v33 = vpop.f32.mrf.mxu2 }
 0x10b   :  { %v521_v34 = vadd.f32 %v3921_v16, %v520_v33  ;;  %v284_v33 = vadd.f32 %v283_v6, %v204_v35 }
 0x10d   :  { %v553_v36 = vmax.f32 %v521_v34, 0.0  ;;  %v295_v34 = vpop.f32.mrf.mxu1 }
 0x10e   :  { %v4043_v37 = vpop.f32.mrf.mxu0 }
 0x10f   :  { %3285 = vmatmul.msk.f32.gmra.mxu3 %vm569_vm4, %v553_v36  ;;  %v340_v36 = vmax.f32 %v284_v33, 0.0 }
 0x112   :  { %v523_v39 = vpop.f32.mrf.mxu2 }
 0x113   :  { %v524_v40 = vadd.f32 %v3921_v16, %v523_v39  ;;  %v3315_v39 = vld [vmem:[%s5403_s9 + $0x38] sm:$0xff] }
 0x114   :  { %1069 = vmatpush.msrb.mxu1 %v3315_v39 }
 0x115   :  { %v554_v42 = vmax.f32 %v524_v40, 0.0  ;;  %v287_v40 = vadd.f32 %v286_v12, %v207_v41  ;;  %v298_v51 = vpop.f32.mrf.mxu1 }
 0x116   :  { %v4047_v43 = vpop.f32.mrf.mxu0  ;;  %1070 = vmatpush.msrb.mxu1 %v3314_v18  ;;  %v968_v18 = vld [vmem:[%s5403_s9] sm:$0xff] }
 0x117   :  { %3286 = vmatmul.msk.f32.gmra.mxu3 %vm569_vm4, %v554_v42  ;;  %v341_v42 = vmax.f32 %v287_v40, 0.0 }
 0x11a   :  { %v526_v45 = vpop.f32.mrf.mxu2  ;;  %v4053_v47 = vpop.f32.mrf.mxu3 }
 0x11b   :  { %v527_v48 = vadd.f32 %v3921_v16, %v526_v45 }
 0x11d   :  { %v555_v49 = vmax.f32 %v527_v48, 0.0  ;;  %v290_v48 = vadd.f32 %v289_v22, %v210_v44  ;;  %v301_v55 = vpop.f32.mrf.mxu1 }
 0x11e   :  { %v4056_v50 = vpop.f32.mrf.mxu0 }
 0x11f   :  { %3287 = vmatmul.msk.f32.gmra.mxu3 %vm569_vm4, %v555_v49  ;;  %v342_v49 = vmax.f32 %v290_v48, 0.0 }
 0x122   :  { %v529_v52 = vpop.f32.mrf.mxu2  ;;  %v4059_v53 = vpop.f32.mrf.mxu3 }
 0x123   :  { %v530_v54 = vadd.f32 %v3921_v16, %v529_v52  ;;  %v195_v16 = vadd.f32 %v4084_v10, %v3947_v29  ;;  %v281_v29 = vadd.f32 %v280_v63, %v201_v26  ;;  %v213_v52 = vadd.f32 %v4084_v10, %v4002_v62 }
 0x124   :  { %v296_v63 = vadd.f32 %v295_v34, %v216_v57  ;;  %v219_v62 = vadd.f32 %v4084_v10, %v4013_v7  ;;  %v970_v7 = vld [vmem:[%s5403_s9 + $0x10] sm:$0xff] }
 0x125   :  { %v556_v56 = vmax.f32 %v530_v54, 0.0  ;;  %v339_v30 = vmax.f32 %v281_v29, 0.0  ;;  %v304_v1 = vpop.f32.mrf.mxu1  ;;  %1165 = vmatpush.msrb.mxu2 %v970_v7 }
 0x126   :  { %v4062_v58 = vpop.f32.mrf.mxu0  ;;  %v299_v12 = vadd.f32 %v298_v51, %v219_v62  ;;  %v305_v26 = vadd.f32 %v304_v1, %v225_v23  ;;  %v237_v51 = vadd.f32 %v4084_v10, %v4043_v37  ;;  %v969_v37 = vld [vmem:[%s5403_s9 + $0x8] sm:$0xff] }
 0x127   :  { %3288 = vmatmul.msk.f32.gmra.mxu3 %vm569_vm4, %v556_v56  ;;  %v293_v56 = vadd.f32 %v292_v28, %v213_v52  ;;  %v228_v28 = vadd.f32 %v4084_v10, %v4028_v21  ;;  %v234_v21 = vadd.f32 %v4084_v10, %v4039_v31  ;;  %v240_v52 = vadd.f32 %v4084_v10, %v4047_v43 }
 0x128   :  { %v347_v29 = vmax.f32 %v305_v26, 0.0  ;;  %1166 = vmatpush.msrb.mxu2 %v969_v37  ;;  %v243_v43 = vadd.f32 %v4084_v10, %v4056_v50 }
 0x129   :  { %v343_v59 = vmax.f32 %v293_v56, 0.0 }
 0x12a   :  { %v4066_v60 = vpop.f32.mrf.mxu3  ;;  %1167 = vmatpush.msrb.mxu2 %v968_v18 }
 0x12e   :  { %v4068_v0 = vpop.f32.mrf.mxu0 }
 0x12f   :  { %3289 = vmatmul.msk.f32.gmra.mxu3 %vm569_vm4, %v557_v61 }
 0x132   :  { %v4072_v3 = vpop.f32.mrf.mxu3 }
 0x136   :  { %v4074_v5 = vpop.f32.mrf.mxu0 }
 0x137   :  { %3290 = vmatmul.msk.f32.gmra.mxu3 %vm569_vm4, %v558_v4  ;;  %v344_v4 = vmax.f32 %v296_v63, 0.0 }
 0x13a   :  { %v4077_v8 = vpop.f32.mrf.mxu3 }
 0x13e   :  { %v4079_v9 = vpop.f32.mrf.mxu0 }
 0x142   :  { %v4086_v13 = vpop.f32.mrf.mxu3 }
 0x146   :  { %v274_v14 = vpop.f32.mrf.mxu0 }
 0x147   :  { %v275_v15 = vadd.f32 %v274_v14, %v195_v16  ;;  %v307_v16 = vpop.f32.mrf.mxu1  ;;  %v345_v14 = vmax.f32 %v299_v12, 0.0  ;;  %v246_v12 = vadd.f32 %v4084_v10, %v4062_v58  ;;  %v249_v58 = vadd.f32 %v4084_v10, %v4068_v0 }
 0x148   :  { %v308_v35 = vadd.f32 %v307_v16, %v228_v28 }
 0x149   :  { %v337_v19 = vmax.f32 %v275_v15, 0.0 }
 0x14a   :  { %v4092_v20 = vpop.f32.mrf.mxu3  ;;  %v348_v34 = vmax.f32 %v308_v35, 0.0 }
 0x14b   :  { %3291 = vmatmul.msk.f32.vlgmr.msra.gmra.mxu3 %vm713_vm5, %v337_v19  ;;  %v302_v19 = vadd.f32 %v301_v55, %v222_v2 }
 0x14d   :  { %v346_v22 = vmax.f32 %v302_v19, 0.0 }
 0x14f   :  { %v310_v11 = vpop.f32.mrf.mxu1 }
 0x152   :  { %v4097_v27 = vpop.f32.mrf.mxu3 }
 0x153   :  { %3292 = vmatmul.msk.f32.gmra.mxu3 %vm713_vm5, %v338_v24 }
 0x15a   :  { %v4102_v32 = vpop.f32.mrf.mxu3 }
 0x15b   :  { %3293 = vmatmul.msk.f32.gmra.mxu3 %vm713_vm5, %v339_v30  ;;  %v313_v30 = vpop.f32.mrf.mxu1 }
 0x15c   :  { %v314_v40 = vadd.f32 %v313_v30, %v234_v21 }
 0x15e   :  { %v350_v44 = vmax.f32 %v314_v40, 0.0 }
 0x162   :  { %v4107_v38 = vpop.f32.mrf.mxu3 }
 0x163   :  { %3294 = vmatmul.msk.f32.gmra.mxu3 %vm713_vm5, %v340_v36  ;;  %v311_v36 = vadd.f32 %v310_v11, %v231_v17  ;;  %v316_v41 = vpop.f32.mrf.mxu1 }
 0x164   :  { %v317_v25 = vadd.f32 %v316_v41, %v237_v51 }
 0x165   :  { %v349_v46 = vmax.f32 %v311_v36, 0.0 }
 0x16a   :  { %v4118_v45 = vpop.f32.mrf.mxu3 }
 0x16b   :  { %3295 = vmatmul.msk.f32.gmra.mxu3 %vm713_vm5, %v341_v42  ;;  %v319_v42 = vpop.f32.mrf.mxu1 }
 0x16c   :  { %v320_v56 = vadd.f32 %v319_v42, %v240_v52 }
 0x16e   :  { %v352_v57 = vmax.f32 %v320_v56, 0.0 }
 0x172   :  { %v4123_v54 = vpop.f32.mrf.mxu3 }
 0x173   :  { %3296 = vmatmul.msk.f32.gmra.mxu3 %vm713_vm5, %v342_v49  ;;  %v351_v49 = vmax.f32 %v317_v25, 0.0  ;;  %v322_v55 = vpop.f32.mrf.mxu1 }
 0x174   :  { %v323_v1 = vadd.f32 %v322_v55, %v243_v43 }
 0x176   :  { %v353_v62 = vmax.f32 %v323_v1, 0.0  ;;  %v3345_v1 = vld [vmem:[%s5403_s9 + $0x58] sm:$0xff] }
 0x177   :  { %1305 = vmatpush.msra.mxu0 %v3345_v1 }
 0x17a   :  { %v4128_v61 = vpop.f32.mrf.mxu3 }
 0x17b   :  { %3297 = vmatmul.msk.f32.gmra.mxu3 %vm713_vm5, %v343_v59  ;;  %v3313_v59 = vld [vmem:[%s5403_s9 + $0x28] sm:$0xff]  ;;  %v325_v63 = vpop.f32.mrf.mxu1 }
 0x17c   :  { %1071 = vmatpush.msrb.mxu1 %v3313_v59  ;;  %v326_v16 = vadd.f32 %v325_v63, %v246_v12  ;;  %v3343_v12 = vld [vmem:[%s5403_s9 + $0x48] sm:$0xff] }
 0x17e   :  { %v354_v19 = vmax.f32 %v326_v16, 0.0 }
 0x182   :  { %v4133_v6 = vpop.f32.mrf.mxu3 }
 0x183   :  { %3298 = vmatmul.msk.f32.gmra.mxu3 %vm713_vm5, %v344_v4  ;;  %v328_v2 = vpop.f32.mrf.mxu1 }
 0x184   :  { %v329_v11 = vadd.f32 %v328_v2, %v249_v58 }
 0x186   :  { %v355_v30 = vmax.f32 %v329_v11, 0.0 }
 0x18a   :  { %v4138_v15 = vpop.f32.mrf.mxu3 }
 0x18b   :  { %3299 = vmatmul.msk.f32.gmra.mxu3 %vm713_vm5, %v345_v14  ;;  %v4192_v14 = vld [vmem:[%s5402_s8] ss:$0 sm:$0xff]  ;;  %v331_v28 = vpop.f32.mrf.mxu1 }
 0x192   :  { %v4150_v24 = vpop.f32.mrf.mxu3 }
 0x193   :  { %3300 = vmatmul.msk.f32.gmra.mxu3 %vm713_vm5, %v346_v22  ;;  %v334_v21 = vpop.f32.mrf.mxu1 }
 0x19a   :  { %v4155_v33 = vpop.f32.mrf.mxu3 }
 0x19b   :  { %3301 = vmatmul.msk.f32.gmra.mxu3 %vm713_vm5, %v347_v29 }
 0x1a2   :  { %v4160_v39 = vpop.f32.mrf.mxu3 }
 0x1a3   :  { %3302 = vmatmul.msk.f32.gmra.mxu3 %vm713_vm5, %v348_v34 }
 0x1aa   :  { %v4167_v48 = vpop.f32.mrf.mxu3 }
 0x1ab   :  { %3303 = vmatmul.msk.f32.gmra.mxu3 %vm713_vm5, %v349_v46  ;;  %v255_v46 = vadd.f32 %v4084_v10, %v4079_v9  ;;  %v3312_v9 = vld [vmem:[%s5403_s9 + $0x20] sm:$0xff] }
 0x1ac   :  { %1072 = vmatpush.msrb.mxu1 %v3312_v9 }
 0x1ad   :  { %v335_v42 = vadd.f32 %v334_v21, %v255_v46 }
 0x1b2   :  { %v4173_v31 = vpop.f32.mrf.mxu3 }
 0x1b3   :  { %3304 = vmatmul.msk.f32.gmra.mxu3 %vm713_vm5, %v350_v44 }
 0x1ba   :  { %v4184_v4 = vpop.f32.mrf.mxu3 }
 0x1bb   :  { %3305 = vmatmul.msk.f32.gmra.mxu3 %vm713_vm5, %v351_v49 }
 0x1c3   :  { %3306 = vmatmul.msk.f32.gmra.mxu3 %vm713_vm5, %v352_v57 }
 0x1cb   :  { %3307 = vmatmul.msk.f32.gmra.mxu3 %vm713_vm5, %v353_v62  ;;  %v3344_v62 = vld [vmem:[%s5403_s9 + $0x50] sm:$0xff] }
 0x1cc   :  { %1306 = vmatpush.msra.mxu0 %v3344_v62 }
 0x1ce   :  { %v794_v50 = vpop.f32.mrf.mxu3  ;;  %1307 = vmatpush.msra.mxu0 %v3343_v12 }
 0x1cf   :  { %v795_v7 = vadd.f32 %v794_v50, %v4053_v47  ;;  %v252_v47 = vadd.f32 %v4084_v10, %v4074_v5 }
 0x1d1   :  { %v861_v22 = vadd.f32 %v4192_v14, %v795_v7  ;;  %v332_v17 = vadd.f32 %v331_v28, %v252_v47 }
 0x1d3   :  { %v882_v23 = vmax.f32 %v861_v22, 0.0  ;;  %3308 = vmatmul.msk.f32.gmra.mxu3 %vm713_vm5, %v354_v19  ;;  %v356_v41 = vmax.f32 %v332_v17, 0.0 }
 0x1d5   :  { %904 = vst.msk [vmem:[#allocation2] sm:$0xff] %vm903_vm6, %v882_v23 }
 0x1d6   :  { %v797_v26 = vpop.f32.mrf.mxu3 }
 0x1d7   :  { %v798_v29 = vadd.f32 %v797_v26, %v4059_v53 }
 0x1d9   :  { %v862_v35 = vadd.f32 %v4192_v14, %v798_v29 }
 0x1db   :  { %v883_v0 = vmax.f32 %v862_v35, 0.0  ;;  %3309 = vmatmul.msk.f32.gmra.mxu3 %vm713_vm5, %v355_v30 }
 0x1dc   :  { %v926_v34 = vld [vmem:[#allocation2] sm:$0x7f] }
 0x1dd   :  { %928 = vst.msk [vmem:[#allocation4] sm:$0x7f] %vm927_vm7, %v926_v34  ;;  %v972_v52 = vld [vmem:[#allocation2 + $0x1] sm:$0x7f] }
 0x1de   :  { %905 = vst.msk [vmem:[#allocation2 + $0x8] sm:$0xff] %vm903_vm6, %v883_v0  ;;  %v800_v36 = vpop.f32.mrf.mxu3 }
 0x1df   :  { %v801_v53 = vadd.f32 %v800_v36, %v4066_v60  ;;  %v357_v60 = vmax.f32 %v335_v42, 0.0 }
 0x1e1   :  { %v863_v5 = vadd.f32 %v4192_v14, %v801_v53 }
 0x1e3   :  { %v884_v40 = vmax.f32 %v863_v5, 0.0  ;;  %3310 = vmatmul.msk.f32.gmra.mxu3 %vm713_vm5, %v356_v41 }
 0x1e5   :  { %v929_v44 = vld [vmem:[#allocation2 + $0x9] sm:$0x7f]  ;;  %906 = vst.msk [vmem:[#allocation2 + $0x10] sm:$0xff] %vm903_vm6, %v884_v40  ;;  %v1208_v23 = vld [vmem:[#allocation2 + $0x2] sm:$0x7f] }
 0x1e6   :  { %930 = vst.msk [vmem:[#allocation4 + $0x7] sm:$0x7f] %vm927_vm7, %v929_v44  ;;  %v803_v51 = vpop.f32.mrf.mxu3  ;;  %v1362_v42 = vld [vmem:[#allocation2 + $0x9] sm:$0x7f] }
 0x1e7   :  { %v804_v25 = vadd.f32 %v803_v51, %v4072_v3 }
 0x1e9   :  { %v864_v49 = vadd.f32 %v4192_v14, %v804_v25 }
 0x1eb   :  { %v885_v10 = vmax.f32 %v864_v49, 0.0  ;;  %3311 = vmatmul.msk.f32.gmra.mxu3 %vm713_vm5, %v357_v60 }
 0x1ec   :  { %v974_v16 = vld [vmem:[#allocation2 + $0xa] sm:$0x7f] }
 0x1ed   :  { %v955_v55 = vld [vmem:[#allocation4] sm:$0xff]  ;;  %907 = vst.msk [vmem:[#allocation2 + $0x18] sm:$0xff] %vm903_vm6, %v885_v10 }
 0x1ee   :  { %973 = vst.msk [vmem:[#allocation4] sm:$0x7f] %vm927_vm7, %v972_v52  ;;  %3329 = vmatmul.msk.f32.vlgmr.msrb.gmra.mxu2 %vm903_vm6, %v955_v55  ;;  %v806_v3 = vpop.f32.mrf.mxu3  ;;  %v1210_v34 = vld [vmem:[#allocation2 + $0xb] sm:$0x7f] }
 0x1ef   :  { %v807_v56 = vadd.f32 %v806_v3, %v4077_v8 }
 0x1f1   :  { %v865_v59 = vadd.f32 %v4192_v14, %v807_v56 }
 0x1f3   :  { %v886_v37 = vmax.f32 %v865_v59, 0.0 }
 0x1f4   :  { %v931_v57 = vld [vmem:[#allocation2 + $0x12] sm:$0x7f] }
 0x1f5   :  { %932 = vst.msk [vmem:[#allocation4 + $0xe] sm:$0x7f] %vm927_vm7, %v931_v57  ;;  %v976_v26 = vld [vmem:[#allocation2 + $0x13] sm:$0x7f] }
 0x1f6   :  { %v809_v43 = vpop.f32.mrf.mxu3  ;;  %908 = vst.msk [vmem:[#allocation2 + $0x20] sm:$0xff] %vm903_vm6, %v886_v37  ;;  %v1212_v60 = vld [vmem:[#allocation2 + $0x14] sm:$0x7f] }
 0x1f7   :  { %v810_v63 = vadd.f32 %v809_v43, %v4086_v13  ;;  %v3342_v13 = vld [vmem:[%s5403_s9 + $0x40] sm:$0xff]  ;;  %v1364_v37 = vld [vmem:[#allocation2 + $0x12] sm:$0x7f] }
 0x1f8   :  { %1308 = vmatpush.msra.mxu0 %v3342_v13 }
 0x1f9   :  { %v866_v8 = vadd.f32 %v4192_v14, %v810_v63 }
 0x1fb   :  { %v887_v50 = vmax.f32 %v866_v8, 0.0  ;;  %v1516_v8 = vld [vmem:[#allocation2 + $0xa] sm:$0x7f] }
 0x1fc   :  { %v956_v2 = vld [vmem:[#allocation4 + $0x8] sm:$0xff] }
 0x1fd   :  { %975 = vst.msk [vmem:[#allocation4 + $0x7] sm:$0x7f] %vm927_vm7, %v974_v16  ;;  %3330 = vmatmul.msk.f32.gmra.mxu2 %vm903_vm6, %v956_v2  ;;  %v933_v18 = vld [vmem:[#allocation2 + $0x1b] sm:$0x7f] }
 0x1fe   :  { %v812_v7 = vpop.f32.mrf.mxu3  ;;  %934 = vst.msk [vmem:[#allocation4 + $0x15] sm:$0x7f] %vm927_vm7, %v933_v18  ;;  %v978_v41 = vld [vmem:[#allocation2 + $0x1c] sm:$0x7f] }
 0x1ff   :  { %v813_v19 = vadd.f32 %v812_v7, %v4092_v20  ;;  %909 = vst.msk [vmem:[#allocation2 + $0x28] sm:$0xff] %vm903_vm6, %v887_v50  ;;  %v1214_v52 = vld [vmem:[#allocation2 + $0x1d] sm:$0x7f] }
 0x200   :  { %v1366_v1 = vld [vmem:[#allocation2 + $0x1b] sm:$0x7f] }
 0x201   :  { %v867_v58 = vadd.f32 %v4192_v14, %v813_v19  ;;  %v3379_v50 = vld [vmem:[%s5403_s9 + $0x98] sm:$0xff] }
 0x202   :  { %v3362_v18 = vld [vmem:[%s5403_s9 + $0x78] sm:$0xff]  ;;  %1613 = vmatpush.msra.mxu2 %v3379_v50 }
 0x203   :  { %v888_v22 = vmax.f32 %v867_v58, 0.0  ;;  %1459 = vmatpush.msra.mxu1 %v3362_v18  ;;  %v1518_v58 = vld [vmem:[#allocation2 + $0x13] sm:$0x7f] }
 0x204   :  { %v1000_v11 = vld [vmem:[#allocation4] sm:$0xff] }
 0x205   :  { %1209 = vst.msk [vmem:[#allocation4] sm:$0x7f] %vm927_vm7, %v1208_v23  ;;  %3316 = vmatmul.msk.f32.vlgmr.msrb.gmra.mxu1 %vm903_vm6, %v1000_v11  ;;  %v957_v29 = vld [vmem:[#allocation4 + $0x10] sm:$0xff] }
 0x206   :  { %910 = vst.msk [vmem:[#allocation2 + $0x30] sm:$0xff] %vm903_vm6, %v888_v22  ;;  %v815_v28 = vpop.f32.mrf.mxu3  ;;  %3331 = vmatmul.msk.f32.gmra.mxu2 %vm903_vm6, %v957_v29  ;;  %v935_v30 = vld [vmem:[#allocation2 + $0x24] sm:$0x7f] }
 0x207   :  { %977 = vst.msk [vmem:[#allocation4 + $0xe] sm:$0x7f] %vm927_vm7, %v976_v26  ;;  %v816_v20 = vadd.f32 %v815_v28, %v4097_v27  ;;  %v980_v21 = vld [vmem:[#allocation2 + $0x25] sm:$0x7f] }
 0x208   :  { %936 = vst.msk [vmem:[#allocation4 + $0x1c] sm:$0x7f] %vm927_vm7, %v935_v30  ;;  %v1216_v12 = vld [vmem:[#allocation2 + $0x26] sm:$0x7f] }
 0x209   :  { %v868_v47 = vadd.f32 %v4192_v14, %v816_v20  ;;  %v1368_v11 = vld [vmem:[#allocation2 + $0x24] sm:$0x7f] }
 0x20b   :  { %v889_v35 = vmax.f32 %v868_v47, 0.0  ;;  %v1670_v47 = vld [vmem:[#allocation2 + $0xb] sm:$0x7f] }
 0x20d   :  { %v937_v0 = vld [vmem:[#allocation2 + $0x2d] sm:$0x7f]  ;;  %911 = vst.msk [vmem:[#allocation2 + $0x38] sm:$0xff] %vm903_vm6, %v889_v35 }
 0x20e   :  { %v1001_v17 = vld [vmem:[#allocation4 + $0x8] sm:$0xff]  ;;  %938 = vst.msk [vmem:[#allocation4 + $0x23] sm:$0x7f] %vm927_vm7, %v937_v0  ;;  %v818_v36 = vpop.f32.mrf.mxu3  ;;  %v982_v3 = vld [vmem:[#allocation2 + $0x2e] sm:$0x7f] }
 0x20f   :  { %1211 = vst.msk [vmem:[#allocation4 + $0x7] sm:$0x7f] %vm927_vm7, %v1210_v34  ;;  %3317 = vmatmul.msk.f32.gmra.mxu1 %vm903_vm6, %v1001_v17  ;;  %v819_v53 = vadd.f32 %v818_v36, %v4102_v32  ;;  %v958_v27 = vld [vmem:[#allocation4 + $0x18] sm:$0xff]  ;;  %v1520_v17 = vld [vmem:[#allocation2 + $0x1c] sm:$0x7f] }
 0x210   :  { %979 = vst.msk [vmem:[#allocation4 + $0x15] sm:$0x7f] %vm927_vm7, %v978_v41  ;;  %3332 = vmatmul.msk.f32.gmra.mxu2 %vm903_vm6, %v958_v27 }
 0x211   :  { %v869_v46 = vadd.f32 %v4192_v14, %v819_v53 }
 0x213   :  { %v890_v5 = vmax.f32 %v869_v46, 0.0  ;;  %v1218_v46 = vld [vmem:[#allocation2 + $0x2f] sm:$0x7f] }
 0x214   :  { %v939_v51 = vld [vmem:[#allocation2 + $0x36] sm:$0x7f] }
 0x215   :  { %v959_v40 = vld [vmem:[#allocation4 + $0x20] sm:$0xff]  ;;  %912 = vst.msk [vmem:[#allocation2 + $0x40] sm:$0xff] %vm903_vm6, %v890_v5 }
 0x216   :  { %v1236_v44 = vld [vmem:[#allocation4] sm:$0xff]  ;;  %981 = vst.msk [vmem:[#allocation4 + $0x1c] sm:$0x7f] %vm927_vm7, %v980_v21  ;;  %v821_v32 = vpop.f32.mrf.mxu3  ;;  %v1220_v21 = vld [vmem:[#allocation2 + $0x38] sm:$0x7f] }
 0x217   :  { %1363 = vst.msk [vmem:[#allocation4] sm:$0x7f] %vm927_vm7, %v1362_v42  ;;  %3346 = vmatmul.msk.f32.vlgmr.msra.gmra.mxu0 %vm903_vm6, %v1236_v44  ;;  %v822_v25 = vadd.f32 %v821_v32, %v4107_v38  ;;  %v1002_v49 = vld [vmem:[#allocation4 + $0x10] sm:$0xff]  ;;  %v984_v20 = vld [vmem:[#allocation2 + $0x37] sm:$0x7f] }
 0x218   :  { %940 = vst.msk [vmem:[#allocation4 + $0x2a] sm:$0x7f] %vm927_vm7, %v939_v51  ;;  %3318 = vmatmul.msk.f32.gmra.mxu1 %vm903_vm6, %v1002_v49  ;;  %3333 = vmatmul.msk.f32.gmra.mxu2 %vm903_vm6, %v959_v40  ;;  %v1672_v44 = vld [vmem:[#allocation2 + $0x14] sm:$0x7f]  ;;  %v1370_v49 = vld [vmem:[#allocation2 + $0x2d] sm:$0x7f] }
 0x219   :  { %1213 = vst.msk [vmem:[#allocation4 + $0xe] sm:$0x7f] %vm927_vm7, %v1212_v60  ;;  %v870_v9 = vadd.f32 %v4192_v14, %v822_v25 }
 0x21b   :  { %v891_v10 = vmax.f32 %v870_v9, 0.0 }
 0x21d   :  { %v1003_v55 = vld [vmem:[#allocation4 + $0x18] sm:$0xff]  ;;  %913 = vst.msk [vmem:[#allocation2 + $0x48] sm:$0xff] %vm903_vm6, %v891_v10  ;;  %v1824_v10 = vld [vmem:[#allocation2 + $0x12] sm:$0x7f] }
 0x21e   :  { %1215 = vst.msk [vmem:[#allocation4 + $0x15] sm:$0x7f] %vm927_vm7, %v1214_v52  ;;  %v824_v38 = vpop.f32.mrf.mxu3 }
 0x21f   :  { %v960_v56 = vld [vmem:[#allocation4 + $0x28] sm:$0xff]  ;;  %v825_v59 = vadd.f32 %v824_v38, %v4118_v45  ;;  %v3378_v38 = vld [vmem:[%s5403_s9 + $0x90] sm:$0xff] }
 0x220   :  { %v1237_v57 = vld [vmem:[#allocation4 + $0x8] sm:$0xff]  ;;  %983 = vst.msk [vmem:[#allocation4 + $0x23] sm:$0x7f] %vm927_vm7, %v982_v3  ;;  %3319 = vmatmul.msk.f32.gmra.mxu1 %vm903_vm6, %v1003_v55  ;;  %3334 = vmatmul.msk.f32.gmra.mxu2 %vm903_vm6, %v960_v56 }
 0x221   :  { %1365 = vst.msk [vmem:[#allocation4 + $0x7] sm:$0x7f] %vm927_vm7, %v1364_v37  ;;  %v871_v43 = vadd.f32 %v4192_v14, %v825_v59  ;;  %3347 = vmatmul.msk.f32.gmra.mxu0 %vm903_vm6, %v1237_v57  ;;  %1614 = vmatpush.msra.mxu2 %v3378_v38  ;;  %v3413_v37 = vld [vmem:[%s5403_s9 + $0xd8] sm:$0xff] }
 0x222   :  { %1921 = vmatpush.msrb.mxu3 %v3413_v37 }
 0x223   :  { %v892_v63 = vmax.f32 %v871_v43, 0.0  ;;  %v1374_v43 = vld [vmem:[#allocation2 + $0x3f] sm:$0x7f] }
 0x225   :  { %v1238_v62 = vld [vmem:[#allocation4 + $0x10] sm:$0xff]  ;;  %914 = vst.msk [vmem:[#allocation2 + $0x50] sm:$0xff] %vm903_vm6, %v892_v63 }
 0x226   :  { %1367 = vst.msk [vmem:[#allocation4 + $0xe] sm:$0x7f] %vm927_vm7, %v1366_v1  ;;  %v827_v45 = vpop.f32.mrf.mxu3 }
 0x227   :  { %v1004_v13 = vld [vmem:[#allocation4 + $0x20] sm:$0xff]  ;;  %v828_v16 = vadd.f32 %v827_v45, %v4123_v54  ;;  %v1522_v45 = vld [vmem:[#allocation2 + $0x25] sm:$0x7f] }
 0x228   :  { %v4288_v2 = vld [vmem:[#allocation4] sm:$0xff]  ;;  %1217 = vst.msk [vmem:[#allocation4 + $0x1c] sm:$0x7f] %vm927_vm7, %v1216_v12  ;;  %3320 = vmatmul.msk.f32.gmra.mxu1 %vm903_vm6, %v1004_v13 }
 0x229   :  { %1517 = vst.msk [vmem:[#allocation4] sm:$0x7f] %vm927_vm7, %v1516_v8  ;;  %v872_v7 = vadd.f32 %v4192_v14, %v828_v16  ;;  %3348 = vmatmul.msk.f32.gmra.mxu0 %vm903_vm6, %v1238_v62  ;;  %v1524_v16 = vld [vmem:[#allocation2 + $0x2e] sm:$0x7f] }
 0x22b   :  { %v893_v54 = vmax.f32 %v872_v7, 0.0 }
 0x22c   :  { %v941_v19 = vld [vmem:[#allocation2 + $0x51] sm:$0x7f] }
 0x22d   :  { %v4301_v22 = vld [vmem:[#allocation4 + $0x8] sm:$0xff]  ;;  %942 = vst.msk [vmem:[#allocation4 + $0x31] sm:$0x7f] %vm927_vm7, %v941_v19 }
 0x22e   :  { %1519 = vst.msk [vmem:[#allocation4 + $0x7] sm:$0x7f] %vm927_vm7, %v1518_v58  ;;  %v830_v23 = vpop.f32.mrf.mxu3  ;;  %v3412_v58 = vld [vmem:[%s5403_s9 + $0xd0] sm:$0xff] }
 0x22f   :  { %v1239_v26 = vld [vmem:[#allocation4 + $0x18] sm:$0xff]  ;;  %915 = vst.msk [vmem:[#allocation2 + $0x58] sm:$0xff] %vm903_vm6, %v893_v54  ;;  %v831_v29 = vadd.f32 %v830_v23, %v4128_v61  ;;  %v1526_v54 = vld [vmem:[#allocation2 + $0x37] sm:$0x7f]  ;;  %v1528_v23 = vld [vmem:[#allocation2 + $0x40] sm:$0x7f]  ;;  %1922 = vmatpush.msrb.mxu3 %v3412_v58 }
 0x230   :  { %1369 = vst.msk [vmem:[#allocation4 + $0x15] sm:$0x7f] %vm927_vm7, %v1368_v11  ;;  %v1980_v58 = vld [vmem:[#allocation2 + $0x1c] sm:$0x7f] }
 0x231   :  { %v873_v28 = vadd.f32 %v4192_v14, %v831_v29  ;;  %3349 = vmatmul.msk.f32.gmra.mxu0 %vm903_vm6, %v1239_v26  ;;  %v3361_v26 = vld [vmem:[%s5403_s9 + $0x70] sm:$0xff] }
 0x232   :  { %1460 = vmatpush.msra.mxu1 %v3361_v26 }
 0x233   :  { %v894_v0 = vmax.f32 %v873_v28, 0.0 }
 0x234   :  { %v961_v30 = vld [vmem:[#allocation4 + $0x30] sm:$0xff] }
 0x235   :  { %v4310_v35 = vld [vmem:[#allocation4] sm:$0xff]  ;;  %985 = vst.msk [vmem:[#allocation4 + $0x2a] sm:$0x7f] %vm927_vm7, %v984_v20  ;;  %3335 = vmatmul.msk.f32.gmra.mxu2 %vm903_vm6, %v961_v30  ;;  %v1674_v20 = vld [vmem:[#allocation2 + $0x1d] sm:$0x7f] }
 0x236   :  { %1671 = vst.msk [vmem:[#allocation4] sm:$0x7f] %vm927_vm7, %v1670_v47  ;;  %v986_v34 = vld [vmem:[#allocation2 + $0x52] sm:$0x7f]  ;;  %v833_v61 = vpop.f32.mrf.mxu3 }
 0x237   :  { %v4315_v36 = vld [vmem:[#allocation4 + $0x10] sm:$0xff]  ;;  %987 = vst.msk [vmem:[#allocation4 + $0x31] sm:$0x7f] %vm927_vm7, %v986_v34  ;;  %v834_v53 = vadd.f32 %v833_v61, %v4133_v6  ;;  %v1222_v51 = vld [vmem:[#allocation2 + $0x53] sm:$0x7f] }
 0x238   :  { %1521 = vst.msk [vmem:[#allocation4 + $0xe] sm:$0x7f] %vm927_vm7, %v1520_v17 }
 0x239   :  { %916 = vst.msk [vmem:[#allocation2 + $0x60] sm:$0xff] %vm903_vm6, %v894_v0  ;;  %v874_v41 = vadd.f32 %v4192_v14, %v834_v53  ;;  %v1676_v0 = vld [vmem:[#allocation2 + $0x26] sm:$0x7f]  ;;  %v1678_v53 = vld [vmem:[#allocation2 + $0x2f] sm:$0x7f] }
 0x23b   :  { %v895_v27 = vmax.f32 %v874_v41, 0.0 }
 0x23c   :  { %v1005_v5 = vld [vmem:[#allocation4 + $0x28] sm:$0xff] }
 0x23d   :  { %1219 = vst.msk [vmem:[#allocation4 + $0x23] sm:$0x7f] %vm927_vm7, %v1218_v46  ;;  %3321 = vmatmul.msk.f32.gmra.mxu1 %vm903_vm6, %v1005_v5  ;;  %v1680_v46 = vld [vmem:[#allocation2 + $0x38] sm:$0x7f] }
 0x23e   :  { %v1006_v40 = vld [vmem:[#allocation4 + $0x30] sm:$0xff]  ;;  %917 = vst.msk [vmem:[#allocation2 + $0x68] sm:$0xff] %vm903_vm6, %v895_v27  ;;  %v836_v42 = vpop.f32.mrf.mxu3  ;;  %v3377_v27 = vld [vmem:[%s5403_s9 + $0x88] sm:$0xff] }
 0x23f   :  { %v4325_v6 = vld [vmem:[#allocation4 + $0x8] sm:$0xff]  ;;  %1221 = vst.msk [vmem:[#allocation4 + $0x2a] sm:$0x7f] %vm927_vm7, %v1220_v21  ;;  %v837_v32 = vadd.f32 %v836_v42, %v4138_v15  ;;  %1615 = vmatpush.msra.mxu2 %v3377_v27  ;;  %v3411_v21 = vld [vmem:[%s5403_s9 + $0xc8] sm:$0xff] }
 0x240   :  { %1673 = vst.msk [vmem:[#allocation4 + $0x7] sm:$0x7f] %vm927_vm7, %v1672_v44  ;;  %v943_v25 = vld [vmem:[#allocation2 + $0x5a] sm:$0x7f]  ;;  %1923 = vmatpush.msrb.mxu3 %v3411_v21 }
 0x241   :  { %1223 = vst.msk [vmem:[#allocation4 + $0x31] sm:$0x7f] %vm927_vm7, %v1222_v51  ;;  %v875_v60 = vadd.f32 %v4192_v14, %v837_v32  ;;  %v1372_v15 = vld [vmem:[#allocation2 + $0x36] sm:$0x7f]  ;;  %v3410_v44 = vld [vmem:[%s5403_s9 + $0xc0] sm:$0xff] }
 0x242   :  { %944 = vst.msk [vmem:[#allocation4 + $0x38] sm:$0x7f] %vm927_vm7, %v943_v25  ;;  %v1376_v1 = vld [vmem:[#allocation2 + $0x5a] sm:$0x7f]  ;;  %1924 = vmatpush.msrb.mxu3 %v3410_v44 }
 0x243   :  { %v896_v59 = vmax.f32 %v875_v60, 0.0  ;;  %v1530_v29 = vld [vmem:[#allocation2 + $0x5b] sm:$0x7f]  ;;  %v2132_v21 = vld [vmem:[#allocation2 + $0x14] sm:$0x7f] }
 0x244   :  { %v1240_v9 = vld [vmem:[#allocation4 + $0x20] sm:$0xff]  ;;  %v1684_v32 = vld [vmem:[#allocation2 + $0x5c] sm:$0x7f] }
 0x245   :  { %1371 = vst.msk [vmem:[#allocation4 + $0x1c] sm:$0x7f] %vm927_vm7, %v1370_v49  ;;  %v945_v52 = vld [vmem:[#allocation2 + $0x63] sm:$0x7f]  ;;  %3322 = vmatmul.msk.f32.gmra.mxu1 %vm903_vm6, %v1006_v40  ;;  %3350 = vmatmul.msk.f32.gmra.mxu0 %vm903_vm6, %v1240_v9  ;;  %v1826_v25 = vld [vmem:[#allocation2 + $0x1b] sm:$0x7f] }
 0x246   :  { %v1241_v55 = vld [vmem:[#allocation4 + $0x28] sm:$0xff]  ;;  %946 = vst.msk [vmem:[#allocation4 + $0x3f] sm:$0x7f] %vm927_vm7, %v945_v52  ;;  %v839_v3 = vpop.f32.mrf.mxu3  ;;  %v1682_v40 = vld [vmem:[#allocation2 + $0x41] sm:$0x7f]  ;;  %v3360_v49 = vld [vmem:[%s5403_s9 + $0x68] sm:$0xff] }
 0x247   :  { %v4340_v56 = vld [vmem:[#allocation4] sm:$0xff]  ;;  %1373 = vst.msk [vmem:[#allocation4 + $0x23] sm:$0x7f] %vm927_vm7, %v1372_v15  ;;  %v840_v57 = vadd.f32 %v839_v3, %v4150_v24  ;;  %v988_v24 = vld [vmem:[#allocation2 + $0x5b] sm:$0x7f]  ;;  %1461 = vmatpush.msra.mxu1 %v3360_v49 }
 0x248   :  { %1825 = vst.msk [vmem:[#allocation4] sm:$0x7f] %vm927_vm7, %v1824_v10  ;;  %v1242_v63 = vld [vmem:[#allocation4 + $0x30] sm:$0xff] }
 0x249   :  { %1375 = vst.msk [vmem:[#allocation4 + $0x2a] sm:$0x7f] %vm927_vm7, %v1374_v43  ;;  %v876_v62 = vadd.f32 %v4192_v14, %v840_v57  ;;  %v990_v9 = vld [vmem:[#allocation2 + $0x64] sm:$0x7f]  ;;  %v1832_v57 = vld [vmem:[#allocation2 + $0x36] sm:$0x7f] }
 0x24a   :  { %1377 = vst.msk [vmem:[#allocation4 + $0x31] sm:$0x7f] %vm927_vm7, %v1376_v1  ;;  %v1828_v10 = vld [vmem:[#allocation2 + $0x24] sm:$0x7f]  ;;  %v2134_v49 = vld [vmem:[#allocation2 + $0x1d] sm:$0x7f] }
 0x24b   :  { %918 = vst.msk [vmem:[#allocation2 + $0x70] sm:$0xff] %vm903_vm6, %v896_v59  ;;  %v897_v12 = vmax.f32 %v876_v62, 0.0  ;;  %v1830_v59 = vld [vmem:[#allocation2 + $0x2d] sm:$0x7f]  ;;  %v3376_v1 = vld [vmem:[%s5403_s9 + $0x80] sm:$0xff] }
 0x24c   :  { %v4352_v8 = vld [vmem:[#allocation4 + $0x18] sm:$0xff]  ;;  %v1834_v62 = vld [vmem:[#allocation2 + $0x3f] sm:$0x7f]  ;;  %1616 = vmatpush.msra.mxu2 %v3376_v1 }
 0x24d   :  { %1523 = vst.msk [vmem:[#allocation4 + $0x15] sm:$0x7f] %vm927_vm7, %v1522_v45  ;;  %v962_v13 = vld [vmem:[#allocation4 + $0x38] sm:$0xff]  ;;  %3351 = vmatmul.msk.f32.gmra.mxu0 %vm903_vm6, %v1241_v55  ;;  %v3396_v1 = vld [vmem:[%s5403_s9 + $0xb8] sm:$0xff] }
 0x24e   :  { %v4356_v50 = vld [vmem:[#allocation4 + $0x20] sm:$0xff]  ;;  %989 = vst.msk [vmem:[#allocation4 + $0x38] sm:$0x7f] %vm927_vm7, %v988_v24  ;;  %3336 = vmatmul.msk.f32.gmra.mxu2 %vm903_vm6, %v962_v13  ;;  %v842_v18 = vpop.f32.mrf.mxu3  ;;  %v1838_v13 = vld [vmem:[#allocation2 + $0x63] sm:$0x7f]  ;;  %1767 = vmatpush.msrb.mxu0 %v3396_v1 }
 0x24f   :  { %1525 = vst.msk [vmem:[#allocation4 + $0x1c] sm:$0x7f] %vm927_vm7, %v1524_v16  ;;  %v843_v7 = vadd.f32 %v842_v18, %v4155_v33  ;;  %v1978_v18 = vld [vmem:[#allocation2 + $0x13] sm:$0x7f]  ;;  %v3393_v1 = vld [vmem:[%s5403_s9 + $0xa0] sm:$0xff] }
 0x250   :  { %v4362_v19 = vld [vmem:[#allocation4 + $0x28] sm:$0xff]  ;;  %919 = vst.msk [vmem:[#allocation2 + $0x78] sm:$0xff] %vm903_vm6, %v897_v12  ;;  %v1836_v12 = vld [vmem:[#allocation2 + $0x48] sm:$0x7f] }
 0x251   :  { %v4368_v11 = vld [vmem:[#allocation4 + $0x30] sm:$0xff]  ;;  %1527 = vst.msk [vmem:[#allocation4 + $0x23] sm:$0x7f] %vm927_vm7, %v1526_v54  ;;  %v877_v33 = vadd.f32 %v4192_v14, %v843_v7 }
 0x252   :  { %1529 = vst.msk [vmem:[#allocation4 + $0x2a] sm:$0x7f] %vm927_vm7, %v1528_v23  ;;  %v947_v28 = vld [vmem:[#allocation2 + $0x6c] sm:$0x7f] }
 0x253   :  { %1531 = vst.msk [vmem:[#allocation4 + $0x31] sm:$0x7f] %vm927_vm7, %v1530_v29  ;;  %v898_v47 = vmax.f32 %v877_v33, 0.0  ;;  %v992_v55 = vld [vmem:[#allocation2 + $0x6d] sm:$0x7f] }
 0x254   :  { %v4377_v30 = vld [vmem:[#allocation4 + $0x10] sm:$0xff]  ;;  %948 = vst.msk [vmem:[#allocation4 + $0x46] sm:$0x7f] %vm927_vm7, %v947_v28 }
 0x255   :  { %1675 = vst.msk [vmem:[#allocation4 + $0xe] sm:$0x7f] %vm927_vm7, %v1674_v20  ;;  %3352 = vmatmul.msk.f32.gmra.mxu0 %vm903_vm6, %v1242_v63  ;;  %v1982_v28 = vld [vmem:[#allocation2 + $0x25] sm:$0x7f] }
 0x256   :  { %v4382_v34 = vld [vmem:[#allocation4 + $0x18] sm:$0xff]  ;;  %920 = vst.msk [vmem:[#allocation2 + $0x80] sm:$0xff] %vm903_vm6, %v898_v47  ;;  %v845_v61 = vpop.f32.mrf.mxu3 }
 0x257   :  { %1677 = vst.msk [vmem:[#allocation4 + $0x15] sm:$0x7f] %vm927_vm7, %v1676_v0  ;;  %v949_v17 = vld [vmem:[#allocation2 + $0x75] sm:$0x7f]  ;;  %v846_v3 = vadd.f32 %v845_v61, %v4160_v39  ;;  %v3359_v39 = vld [vmem:[%s5403_s9 + $0x60] sm:$0xff] }
 0x258   :  { %v4386_v41 = vld [vmem:[#allocation4 + $0x20] sm:$0xff]  ;;  %950 = vst.msk [vmem:[#allocation4 + $0x4d] sm:$0x7f] %vm927_vm7, %v949_v17  ;;  %1462 = vmatpush.msra.mxu1 %v3359_v39  ;;  %v1224_v17 = vld [vmem:[#allocation2 + $0x5c] sm:$0x7f] }
 0x259   :  { %v4392_v5 = vld [vmem:[#allocation4 + $0x28] sm:$0xff]  ;;  %1679 = vst.msk [vmem:[#allocation4 + $0x1c] sm:$0x7f] %vm927_vm7, %v1678_v53  ;;  %v1984_v47 = vld [vmem:[#allocation2 + $0x2e] sm:$0x7f] }
 0x25a   :  { %v4398_v42 = vld [vmem:[#allocation4 + $0x30] sm:$0xff]  ;;  %1681 = vst.msk [vmem:[#allocation4 + $0x23] sm:$0x7f] %vm927_vm7, %v1680_v46 }
 0x25b   :  { %1683 = vst.msk [vmem:[#allocation4 + $0x2a] sm:$0x7f] %vm927_vm7, %v1682_v40  ;;  %v963_v51 = vld [vmem:[#allocation4 + $0x40] sm:$0xff]  ;;  %v1226_v46 = vld [vmem:[#allocation2 + $0x65] sm:$0x7f] }
 0x25c   :  { %1685 = vst.msk [vmem:[#allocation4 + $0x31] sm:$0x7f] %vm927_vm7, %v1684_v32  ;;  %v4406_v60 = vld [vmem:[#allocation4 + $0x8] sm:$0xff]  ;;  %3337 = vmatmul.msk.f32.gmra.mxu2 %vm903_vm6, %v963_v51 }
 0x25d   :  { %1827 = vst.msk [vmem:[#allocation4 + $0x7] sm:$0x7f] %vm927_vm7, %v1826_v25  ;;  %v951_v7 = vld [vmem:[#allocation2 + $0x7e] sm:$0x7f]  ;;  %v994_v32 = vld [vmem:[#allocation2 + $0x76] sm:$0x7f] }
 0x25e   :  { %v4413_v52 = vld [vmem:[#allocation4 + $0x10] sm:$0xff]  ;;  %991 = vst.msk [vmem:[#allocation4 + $0x3f] sm:$0x7f] %vm927_vm7, %v990_v9  ;;  %v848_v15 = vpop.f32.mrf.mxu3 }
 0x25f   :  { %1829 = vst.msk [vmem:[#allocation4 + $0xe] sm:$0x7f] %vm927_vm7, %v1828_v10  ;;  %v964_v38 = vld [vmem:[#allocation4 + $0x48] sm:$0xff]  ;;  %v849_v63 = vadd.f32 %v848_v15, %v4167_v48  ;;  %v878_v48 = vadd.f32 %v4192_v14, %v846_v3  ;;  %v2136_v10 = vld [vmem:[#allocation2 + $0x26] sm:$0x7f] }
 0x260   :  { %v4418_v37 = vld [vmem:[#allocation4 + $0x18] sm:$0xff]  ;;  %993 = vst.msk [vmem:[#allocation4 + $0x46] sm:$0x7f] %vm927_vm7, %v992_v55  ;;  %v996_v39 = vld [vmem:[#allocation2 + $0x7f] sm:$0x7f] }
 0x261   :  { %v4421_v43 = vld [vmem:[#allocation4 + $0x20] sm:$0xff]  ;;  %1831 = vst.msk [vmem:[#allocation4 + $0x15] sm:$0x7f] %vm927_vm7, %v1830_v59  ;;  %v879_v54 = vadd.f32 %v4192_v14, %v849_v63  ;;  %v899_v29 = vmax.f32 %v878_v48, 0.0 }
 0x262   :  { %v4428_v45 = vld [vmem:[#allocation4 + $0x28] sm:$0xff]  ;;  %1833 = vst.msk [vmem:[#allocation4 + $0x1c] sm:$0x7f] %vm927_vm7, %v1832_v57  ;;  %v1228_v3 = vld [vmem:[#allocation2 + $0x6e] sm:$0x7f] }
 0x263   :  { %v4434_v24 = vld [vmem:[#allocation4 + $0x30] sm:$0xff]  ;;  %1835 = vst.msk [vmem:[#allocation4 + $0x23] sm:$0x7f] %vm927_vm7, %v1834_v62  ;;  %v900_v61 = vmax.f32 %v879_v54, 0.0  ;;  %v3430_v54 = vld [vmem:[%s5403_s9 + $0xf8] sm:$0xff] }
 0x264   :  { %1837 = vst.msk [vmem:[#allocation4 + $0x2a] sm:$0x7f] %vm927_vm7, %v1836_v12  ;;  %v1852_v16 = vld [vmem:[#allocation4] sm:$0xff]  ;;  %3338 = vmatmul.msk.f32.gmra.mxu2 %vm903_vm6, %v964_v38  ;;  %v1378_v62 = vld [vmem:[#allocation2 + $0x63] sm:$0x7f]  ;;  %2075 = vmatpush.msrb.mxu1 %v3430_v54 }
 0x265   :  { %1839 = vst.msk [vmem:[#allocation4 + $0x31] sm:$0x7f] %vm927_vm7, %v1838_v13  ;;  %3414 = vmatmul.msk.f32.vlgmr.msrb.gmra.mxu3 %vm903_vm6, %v1852_v16  ;;  %v1007_v26 = vld [vmem:[#allocation4 + $0x38] sm:$0xff] }
 0x266   :  { %v1853_v23 = vld [vmem:[#allocation4 + $0x8] sm:$0xff]  ;;  %1979 = vst.msk [vmem:[#allocation4] sm:$0x7f] %vm927_vm7, %v1978_v18  ;;  %v851_v33 = vpop.f32.mrf.mxu3  ;;  %3323 = vmatmul.msk.f32.gmra.mxu1 %vm903_vm6, %v1007_v26  ;;  %v1380_v26 = vld [vmem:[#allocation2 + $0x6c] sm:$0x7f] }
 0x267   :  { %1981 = vst.msk [vmem:[#allocation4 + $0x7] sm:$0x7f] %vm927_vm7, %v1980_v58  ;;  %v1008_v53 = vld [vmem:[#allocation4 + $0x40] sm:$0xff]  ;;  %v852_v27 = vadd.f32 %v851_v33, %v4173_v31  ;;  %v1988_v58 = vld [vmem:[#allocation2 + $0x40] sm:$0x7f] }
 0x268   :  { %v1854_v20 = vld [vmem:[#allocation4 + $0x10] sm:$0xff]  ;;  %952 = vst.msk [vmem:[#allocation4 + $0x54] sm:$0x7f] %vm927_vm7, %v951_v7  ;;  %v1986_v18 = vld [vmem:[#allocation2 + $0x37] sm:$0x7f] }
 0x269   :  { %v1855_v0 = vld [vmem:[#allocation4 + $0x18] sm:$0xff]  ;;  %1983 = vst.msk [vmem:[#allocation4 + $0xe] sm:$0x7f] %vm927_vm7, %v1982_v28  ;;  %v880_v31 = vadd.f32 %v4192_v14, %v852_v27 }
 0x26a   :  { %1985 = vst.msk [vmem:[#allocation4 + $0x15] sm:$0x7f] %vm927_vm7, %v1984_v47  ;;  %v1856_v13 = vld [vmem:[#allocation4 + $0x20] sm:$0xff]  ;;  %v1992_v28 = vld [vmem:[#allocation2 + $0x64] sm:$0x7f] }
 0x26b   :  { %921 = vst.msk [vmem:[#allocation2 + $0x88] sm:$0xff] %vm903_vm6, %v899_v29  ;;  %v901_v38 = vmax.f32 %v880_v31, 0.0  ;;  %v1857_v7 = vld [vmem:[#allocation4 + $0x28] sm:$0xff]  ;;  %v1990_v29 = vld [vmem:[#allocation2 + $0x49] sm:$0x7f] }
 0x26c   :  { %1225 = vst.msk [vmem:[#allocation4 + $0x38] sm:$0x7f] %vm927_vm7, %v1224_v17  ;;  %v1232_v47 = vld [vmem:[#allocation2 + $0x80] sm:$0x7f] }
 0x26d   :  { %922 = vst.msk [vmem:[#allocation2 + $0x90] sm:$0xff] %vm903_vm6, %v900_v61  ;;  %3415 = vmatmul.msk.f32.gmra.mxu3 %vm903_vm6, %v1853_v23  ;;  %v4492_v23 = vld [vmem:[#allocation4 + $0x30] sm:$0xff] }
 0x26e   :  { %v4454_v40 = vld [vmem:[#allocation4] sm:$0xff]  ;;  %1227 = vst.msk [vmem:[#allocation4 + $0x3f] sm:$0x7f] %vm927_vm7, %v1226_v46  ;;  %v854_v44 = vpop.f32.mrf.mxu3  ;;  %3324 = vmatmul.msk.f32.gmra.mxu1 %vm903_vm6, %v1008_v53 }
 0x26f   :  { %2133 = vst.msk [vmem:[#allocation4] sm:$0x7f] %vm927_vm7, %v2132_v21  ;;  %v965_v51 = vld [vmem:[#allocation4 + $0x50] sm:$0xff]  ;;  %v855_v25 = vadd.f32 %v854_v44, %v4184_v4  ;;  %v2138_v46 = vld [vmem:[#allocation2 + $0x2f] sm:$0x7f] }
 0x270   :  { %v4461_v9 = vld [vmem:[#allocation4 + $0x8] sm:$0xff]  ;;  %995 = vst.msk [vmem:[#allocation4 + $0x4d] sm:$0x7f] %vm927_vm7, %v994_v32  ;;  %3339 = vmatmul.msk.f32.gmra.mxu2 %vm903_vm6, %v965_v51  ;;  %v2142_v44 = vld [vmem:[#allocation2 + $0x41] sm:$0x7f] }
 0x271   :  { %v4465_v15 = vld [vmem:[#allocation4 + $0x10] sm:$0xff]  ;;  %2135 = vst.msk [vmem:[#allocation4 + $0x7] sm:$0x7f] %vm927_vm7, %v2134_v49  ;;  %v881_v4 = vadd.f32 %v4192_v14, %v855_v25  ;;  %v3447_v14 = vld [vmem:[%s5403_s9 + $0x118] sm:$0xff]  ;;  %v2144_v25 = vld [vmem:[#allocation2 + $0x4a] sm:$0x7f] }
 0x272   :  { %2137 = vst.msk [vmem:[#allocation4 + $0xe] sm:$0x7f] %vm927_vm7, %v2136_v10  ;;  %v953_v55 = vld [vmem:[#allocation2 + $0x87] sm:$0x7f]  ;;  %2229 = vmatpush.msrb.mxu2 %v3447_v14  ;;  %v2140_v21 = vld [vmem:[#allocation2 + $0x38] sm:$0x7f] }
 0x273   :  { %954 = vst.msk [vmem:[#allocation4 + $0x5b] sm:$0x7f] %vm927_vm7, %v953_v55  ;;  %v902_v63 = vmax.f32 %v881_v4, 0.0  ;;  %v998_v16 = vld [vmem:[#allocation2 + $0x88] sm:$0x7f]  ;;  %v3395_v10 = vld [vmem:[%s5403_s9 + $0xb0] sm:$0xff] }
 0x274   :  { %923 = vst.msk [vmem:[#allocation2 + $0x98] sm:$0xff] %vm903_vm6, %v901_v38  ;;  %v1234_v53 = vld [vmem:[#allocation2 + $0x89] sm:$0x7f]  ;;  %v1382_v55 = vld [vmem:[#allocation2 + $0x75] sm:$0x7f]  ;;  %1768 = vmatpush.msrb.mxu0 %v3395_v10 }
 0x275   :  { %3416 = vmatmul.msk.f32.gmra.mxu3 %vm903_vm6, %v1854_v20  ;;  %v1243_v57 = vld [vmem:[#allocation4 + $0x38] sm:$0xff]  ;;  %925 = vst.msk [vmem:[#allocation2 + $0xa0] sm:$0x3] %vm924_vm8, %v902_v63  ;;  %v1230_v20 = vld [vmem:[#allocation2 + $0x77] sm:$0x7f] }
 0x276   :  { %3353 = vmatmul.msk.f32.gmra.mxu0 %vm903_vm6, %v1243_v57  ;;  %1379 = vst.msk [vmem:[#allocation4 + $0x38] sm:$0x7f] %vm927_vm7, %v1378_v62  ;;  %v1532_v51 = vld [vmem:[#allocation2 + $0x64] sm:$0x7f]  ;;  %v1840_v10 = vld [vmem:[#allocation2 + $0x6c] sm:$0x7f] }
 0x277   :  { %v1009_v59 = vld [vmem:[#allocation4 + $0x48] sm:$0xff]  ;;  %1987 = vst.msk [vmem:[#allocation4 + $0x1c] sm:$0x7f] %vm927_vm7, %v1986_v18  ;;  %v3394_v4 = vld [vmem:[%s5403_s9 + $0xa8] sm:$0xff] }
 0x278   :  { %3325 = vmatmul.msk.f32.gmra.mxu1 %vm903_vm6, %v1009_v59  ;;  %1229 = vst.msk [vmem:[#allocation4 + $0x46] sm:$0x7f] %vm927_vm7, %v1228_v3  ;;  %v1384_v3 = vld [vmem:[#allocation2 + $0x7e] sm:$0x7f]  ;;  %v1386_v57 = vld [vmem:[#allocation2 + $0x87] sm:$0x7f]  ;;  %1769 = vmatpush.msrb.mxu0 %v3394_v4 }
 0x279   :  { %1989 = vst.msk [vmem:[#allocation4 + $0x23] sm:$0x7f] %vm927_vm7, %v1988_v58  ;;  %v1538_v18 = vld [vmem:[#allocation2 + $0x7f] sm:$0x7f]  ;;  %v1540_v54 = vld [vmem:[#allocation2 + $0x88] sm:$0x7f] }
 0x27a   :  { %v966_v12 = vld [vmem:[#allocation4 + $0x58] sm:$0xff]  ;;  %v967_v48 = vld [vmem:[#allocation4 + $0x60] sm:$0x3]  ;;  %1991 = vst.msk [vmem:[#allocation4 + $0x2a] sm:$0x7f] %vm927_vm7, %v1990_v29  ;;  %1770 = vmatpush.msrb.mxu0 %v3393_v1 }
 0x27b   :  { %997 = vst.msk [vmem:[#allocation4 + $0x54] sm:$0x7f] %vm927_vm7, %v996_v39  ;;  %3340 = vmatmul.msk.f32.gmra.mxu2 %vm903_vm6, %v966_v12  ;;  %v1388_v39 = vld [vmem:[#allocation2 + $0x90] sm:$0x7f]  ;;  %v1850_v1 = vld [vmem:[#allocation2 + $0x99] sm:$0x7f] }
 0x27c   :  { %999 = vst.msk [vmem:[#allocation4 + $0x5b] sm:$0x7f] %vm927_vm7, %v998_v16  ;;  %v3446_v12 = vld [vmem:[%s5403_s9 + $0x110] sm:$0xff] }
 0x27d   :  { %3417 = vmatmul.msk.f32.gmra.mxu3 %vm903_vm6, %v1855_v0  ;;  %1993 = vst.msk [vmem:[#allocation4 + $0x31] sm:$0x7f] %vm927_vm7, %v1992_v28  ;;  %2230 = vmatpush.msrb.mxu2 %v3446_v12  ;;  %v3429_v29 = vld [vmem:[%s5403_s9 + $0xf0] sm:$0xff] }
 0x27e   :  { %v4503_v27 = vld [vmem:[#allocation4 + $0x18] sm:$0xff]  ;;  %v1542_v28 = vld [vmem:[#allocation2 + $0x91] sm:$0x7f]  ;;  %2076 = vmatpush.msrb.mxu1 %v3429_v29 }
 0x27f   :  { %v1244_v33 = vld [vmem:[#allocation4 + $0x40] sm:$0xff]  ;;  %2139 = vst.msk [vmem:[#allocation4 + $0x15] sm:$0x7f] %vm927_vm7, %v2138_v46  ;;  %v1694_v46 = vld [vmem:[#allocation2 + $0x89] sm:$0x7f] }
 0x280   :  { %3354 = vmatmul.msk.f32.gmra.mxu0 %vm903_vm6, %v1244_v33  ;;  %1381 = vst.msk [vmem:[#allocation4 + $0x3f] sm:$0x7f] %vm927_vm7, %v1380_v26  ;;  %v4507_v32 = vld [vmem:[#allocation4 + $0x20] sm:$0xff] }
 0x281   :  { %2141 = vst.msk [vmem:[#allocation4 + $0x1c] sm:$0x7f] %vm927_vm7, %v2140_v21  ;;  %v4513_v49 = vld [vmem:[#allocation4 + $0x28] sm:$0xff]  ;;  %v1994_v12 = vld [vmem:[#allocation2 + $0x6d] sm:$0x7f] }
 0x282   :  { %v1010_v0 = vld [vmem:[#allocation4 + $0x50] sm:$0xff]  ;;  %2143 = vst.msk [vmem:[#allocation4 + $0x23] sm:$0x7f] %vm927_vm7, %v2142_v44 }
 0x283   :  { %3326 = vmatmul.msk.f32.gmra.mxu1 %vm903_vm6, %v1010_v0  ;;  %1231 = vst.msk [vmem:[#allocation4 + $0x4d] sm:$0x7f] %vm927_vm7, %v1230_v20  ;;  %3341 = vmatmul.msk.f32.gmra.mxu2 %vm903_vm6, %v967_v48  ;;  %v1011_v61 = vld [vmem:[#allocation4 + $0x58] sm:$0xff]  ;;  %v1012_v17 = vld [vmem:[#allocation4 + $0x60] sm:$0x3]  ;;  %v4564_v20 = vpop.f32.mrf.mxu2 }
 0x284   :  { %1233 = vst.msk [vmem:[#allocation4 + $0x54] sm:$0x7f] %vm927_vm7, %v1232_v47  ;;  %v4519_v38 = vld [vmem:[#allocation4 + $0x30] sm:$0xff]  ;;  %v1688_v47 = vld [vmem:[#allocation2 + $0x6e] sm:$0x7f] }
 0x285   :  { %1235 = vst.msk [vmem:[#allocation4 + $0x5b] sm:$0x7f] %vm927_vm7, %v1234_v53  ;;  %3418 = vmatmul.msk.f32.gmra.mxu3 %vm903_vm6, %v1856_v13  ;;  %v2146_v48 = vld [vmem:[#allocation2 + $0x65] sm:$0x7f]  ;;  %v1536_v13 = vld [vmem:[#allocation2 + $0x76] sm:$0x7f] }
 0x286   :  { %2145 = vst.msk [vmem:[#allocation4 + $0x2a] sm:$0x7f] %vm927_vm7, %v2144_v25  ;;  %v1696_v25 = vld [vmem:[#allocation2 + $0x92] sm:$0x7f] }
 0x287   :  { %v4510_v31 = vld [vmem:[#allocation4 + $0x38] sm:$0xff]  ;;  %2147 = vst.msk [vmem:[#allocation4 + $0x31] sm:$0x7f] %vm927_vm7, %v2146_v48  ;;  %v1996_v48 = vld [vmem:[#allocation2 + $0x76] sm:$0x7f] }
 0x288   :  { %1533 = vst.msk [vmem:[#allocation4 + $0x38] sm:$0x7f] %vm927_vm7, %v1532_v51 }
 0x28a   :  { %v1245_v59 = vld [vmem:[#allocation4 + $0x48] sm:$0xff] }
 0x28b   :  { %3327 = vmatmul.msk.f32.gmra.mxu1 %vm903_vm6, %v1011_v61  ;;  %3355 = vmatmul.msk.f32.gmra.mxu0 %vm903_vm6, %v1245_v59  ;;  %1383 = vst.msk [vmem:[#allocation4 + $0x46] sm:$0x7f] %vm927_vm7, %v1382_v55  ;;  %v1246_v63 = vld [vmem:[#allocation4 + $0x50] sm:$0xff]  ;;  %v1690_v61 = vld [vmem:[#allocation2 + $0x77] sm:$0x7f]  ;;  %v4584_v44 = vpop.f32.mrf.mxu2 }
 0x28c   :  { %3380 = vmatmul.msk.f32.vlgmr.msra.gmra.mxu2 %vm903_vm6, %v4310_v35  ;;  %1385 = vst.msk [vmem:[#allocation4 + $0x4d] sm:$0x7f] %vm927_vm7, %v1384_v3  ;;  %v1247_v62 = vld [vmem:[#allocation4 + $0x58] sm:$0xff]  ;;  %v1248_v14 = vld [vmem:[#allocation4 + $0x60] sm:$0x3] }
 0x28d   :  { %1387 = vst.msk [vmem:[#allocation4 + $0x54] sm:$0x7f] %vm927_vm7, %v1386_v57  ;;  %3419 = vmatmul.msk.f32.gmra.mxu3 %vm903_vm6, %v1857_v7  ;;  %v1534_v35 = vld [vmem:[#allocation2 + $0x6d] sm:$0x7f]  ;;  %v1842_v55 = vld [vmem:[#allocation2 + $0x75] sm:$0x7f] }
 0x28e   :  { %1389 = vst.msk [vmem:[#allocation4 + $0x5b] sm:$0x7f] %vm927_vm7, %v1388_v39  ;;  %v1844_v3 = vld [vmem:[#allocation2 + $0x7e] sm:$0x7f]  ;;  %v1846_v57 = vld [vmem:[#allocation2 + $0x87] sm:$0x7f] }
 0x292   :  { %v4542_v16 = vld [vmem:[#allocation4 + $0x40] sm:$0xff] }
 0x293   :  { %3328 = vmatmul.msk.f32.gmra.mxu1 %vm903_vm6, %v1012_v17  ;;  %3356 = vmatmul.msk.f32.gmra.mxu0 %vm903_vm6, %v1246_v63  ;;  %v4546_v7 = vld [vmem:[#allocation4 + $0x48] sm:$0xff]  ;;  %1535 = vst.msk [vmem:[#allocation4 + $0x3f] sm:$0x7f] %vm927_vm7, %v1534_v35  ;;  %v1692_v17 = vld [vmem:[#allocation2 + $0x80] sm:$0x7f]  ;;  %v4616_v39 = vpop.f32.mrf.mxu2 }
 0x294   :  { %3381 = vmatmul.msk.f32.gmra.mxu2 %vm903_vm6, %v4325_v6  ;;  %v4551_v58 = vld [vmem:[#allocation4 + $0x50] sm:$0xff]  ;;  %1537 = vst.msk [vmem:[#allocation4 + $0x46] sm:$0x7f] %vm927_vm7, %v1536_v13 }
 0x295   :  { %1539 = vst.msk [vmem:[#allocation4 + $0x4d] sm:$0x7f] %vm927_vm7, %v1538_v18  ;;  %v4555_v26 = vld [vmem:[#allocation4 + $0x58] sm:$0xff]  ;;  %v4557_v33 = vld [vmem:[#allocation4 + $0x60] sm:$0x3]  ;;  %3420 = vmatmul.msk.f32.gmra.mxu3 %vm903_vm6, %v4492_v23 }
 0x296   :  { %1541 = vst.msk [vmem:[#allocation4 + $0x54] sm:$0x7f] %vm927_vm7, %v1540_v54  ;;  %v1686_v6 = vld [vmem:[#allocation2 + $0x65] sm:$0x7f] }
 0x297   :  { %1543 = vst.msk [vmem:[#allocation4 + $0x5b] sm:$0x7f] %vm927_vm7, %v1542_v28  ;;  %v1998_v54 = vld [vmem:[#allocation2 + $0x7f] sm:$0x7f] }
 0x29a   :  { %v4568_v0 = vld [vmem:[#allocation4 + $0x38] sm:$0xff] }
 0x29b   :  { %3357 = vmatmul.msk.f32.gmra.mxu0 %vm903_vm6, %v1247_v62  ;;  %3363 = vmatmul.msk.f32.vlgmr.msra.gmra.mxu1 %vm903_vm6, %v4288_v2  ;;  %v4573_v23 = vld [vmem:[#allocation4 + $0x40] sm:$0xff]  ;;  %1687 = vst.msk [vmem:[#allocation4 + $0x38] sm:$0x7f] %vm927_vm7, %v1686_v6 }
 0x29c   :  { %3382 = vmatmul.msk.f32.gmra.mxu2 %vm903_vm6, %v4377_v30  ;;  %v4578_v53 = vld [vmem:[#allocation4 + $0x48] sm:$0xff]  ;;  %1689 = vst.msk [vmem:[#allocation4 + $0x3f] sm:$0x7f] %vm927_vm7, %v1688_v47  ;;  %v4593_v30 = vpop.f32.mrf.mxu1 }
 0x29d   :  { %v4581_v21 = vld [vmem:[#allocation4 + $0x50] sm:$0xff]  ;;  %1691 = vst.msk [vmem:[#allocation4 + $0x46] sm:$0x7f] %vm927_vm7, %v1690_v61  ;;  %v2002_v61 = vld [vmem:[#allocation2 + $0x91] sm:$0x7f] }
 0x29e   :  { %v4586_v2 = vld [vmem:[#allocation4 + $0x58] sm:$0xff]  ;;  %v4588_v51 = vld [vmem:[#allocation4 + $0x60] sm:$0x3]  ;;  %1693 = vst.msk [vmem:[#allocation4 + $0x4d] sm:$0x7f] %vm927_vm7, %v1692_v17 }
 0x29f   :  { %1695 = vst.msk [vmem:[#allocation4 + $0x54] sm:$0x7f] %vm927_vm7, %v1694_v46  ;;  %v2004_v17 = vld [vmem:[#allocation2 + $0x9a] sm:$0x7f]  ;;  %v4639_v46 = vpop.f32.mrf.mxu2 }
 0x2a0   :  { %1697 = vst.msk [vmem:[#allocation4 + $0x5b] sm:$0x7f] %vm927_vm7, %v1696_v25  ;;  %v2148_v25 = vld [vmem:[#allocation2 + $0x6e] sm:$0x7f] }
 0x2a3   :  { %3358 = vmatmul.msk.f32.gmra.mxu0 %vm903_vm6, %v1248_v14  ;;  %3364 = vmatmul.msk.f32.gmra.mxu1 %vm903_vm6, %v4301_v22  ;;  %v4598_v4 = vld [vmem:[#allocation4 + $0x38] sm:$0xff] }
 0x2a4   :  { %3383 = vmatmul.msk.f32.gmra.mxu2 %vm903_vm6, %v4382_v34  ;;  %v4602_v59 = vld [vmem:[#allocation4 + $0x40] sm:$0xff]  ;;  %1841 = vst.msk [vmem:[#allocation4 + $0x38] sm:$0x7f] %vm927_vm7, %v1840_v10  ;;  %v4624_v35 = vpop.f32.mrf.mxu1 }
 0x2a5   :  { %1843 = vst.msk [vmem:[#allocation4 + $0x3f] sm:$0x7f] %vm927_vm7, %v1842_v55  ;;  %v4606_v63 = vld [vmem:[#allocation4 + $0x48] sm:$0xff]  ;;  %v1848_v34 = vld [vmem:[#allocation2 + $0x90] sm:$0x7f] }
 0x2a6   :  { %1845 = vst.msk [vmem:[#allocation4 + $0x46] sm:$0x7f] %vm927_vm7, %v1844_v3  ;;  %v4609_v62 = vld [vmem:[#allocation4 + $0x50] sm:$0xff]  ;;  %v2150_v55 = vld [vmem:[#allocation2 + $0x77] sm:$0x7f] }
 0x2a7   :  { %v4611_v22 = vld [vmem:[#allocation4 + $0x58] sm:$0xff]  ;;  %v4613_v14 = vld [vmem:[#allocation4 + $0x60] sm:$0x3]  ;;  %1847 = vst.msk [vmem:[#allocation4 + $0x4d] sm:$0x7f] %vm927_vm7, %v1846_v57 }
 0x2a8   :  { %1851 = vst.msk [vmem:[#allocation4 + $0x5b] sm:$0x7f] %vm927_vm7, %v1850_v1 }
 0x2a9   :  { %1849 = vst.msk [vmem:[#allocation4 + $0x54] sm:$0x7f] %vm927_vm7, %v1848_v34  ;;  %v2156_v34 = vld [vmem:[#allocation2 + $0x92] sm:$0x7f] }
 0x2ab   :  { %3365 = vmatmul.msk.f32.gmra.mxu1 %vm903_vm6, %v4315_v36  ;;  %3397 = vmatmul.msk.f32.vlgmr.msrb.gmra.mxu0 %vm903_vm6, %v4340_v56  ;;  %v3445_v36 = vld [vmem:[%s5403_s9 + $0x108] sm:$0xff] }
 0x2ac   :  { %3384 = vmatmul.msk.f32.gmra.mxu2 %vm903_vm6, %v4386_v41  ;;  %v1859_v13 = vld [vmem:[#allocation4 + $0x38] sm:$0xff]  ;;  %v4652_v3 = vpop.f32.mrf.mxu1 }
 0x2ad   :  { %3421 = vmatmul.msk.f32.gmra.mxu3 %vm903_vm6, %v1859_v13  ;;  %1995 = vst.msk [vmem:[#allocation4 + $0x38] sm:$0x7f] %vm927_vm7, %v1994_v12  ;;  %v1860_v18 = vld [vmem:[#allocation4 + $0x40] sm:$0xff]  ;;  %v3428_v56 = vld [vmem:[%s5403_s9 + $0xe8] sm:$0xff]  ;;  %2231 = vmatpush.msrb.mxu2 %v3445_v36  ;;  %v2158_v13 = vld [vmem:[#allocation2 + $0x9b] sm:$0x7f] }
 0x2ae   :  { %1997 = vst.msk [vmem:[#allocation4 + $0x3f] sm:$0x7f] %vm927_vm7, %v1996_v48  ;;  %v1861_v29 = vld [vmem:[#allocation4 + $0x48] sm:$0xff]  ;;  %2077 = vmatpush.msrb.mxu1 %v3428_v56  ;;  %v2000_v41 = vld [vmem:[#allocation2 + $0x88] sm:$0x7f] }
 0x2af   :  { %1999 = vst.msk [vmem:[#allocation4 + $0x46] sm:$0x7f] %vm927_vm7, %v1998_v54  ;;  %v1864_v47 = vld [vmem:[#allocation4 + $0x60] sm:$0x3]  ;;  %v2163_v54 = vld [vmem:[#allocation4 + $0x18] sm:$0xff] }
 0x2b0   :  { %v1862_v28 = vld [vmem:[#allocation4 + $0x50] sm:$0xff]  ;;  %v1863_v6 = vld [vmem:[#allocation4 + $0x58] sm:$0xff] }
 0x2b1   :  { %2001 = vst.msk [vmem:[#allocation4 + $0x4d] sm:$0x7f] %vm927_vm7, %v2000_v41  ;;  %v2164_v41 = vld [vmem:[#allocation4 + $0x20] sm:$0xff] }
 0x2b2   :  { %2003 = vst.msk [vmem:[#allocation4 + $0x54] sm:$0x7f] %vm927_vm7, %v2002_v61 }
 0x2b3   :  { %3366 = vmatmul.msk.f32.gmra.mxu1 %vm903_vm6, %v4352_v8  ;;  %3398 = vmatmul.msk.f32.gmra.mxu0 %vm903_vm6, %v4406_v60  ;;  %2005 = vst.msk [vmem:[#allocation4 + $0x5b] sm:$0x7f] %vm927_vm7, %v2004_v17  ;;  %v2152_v8 = vld [vmem:[#allocation2 + $0x80] sm:$0x7f]  ;;  %v2154_v60 = vld [vmem:[#allocation2 + $0x89] sm:$0x7f] }
 0x2b4   :  { %3385 = vmatmul.msk.f32.gmra.mxu2 %vm903_vm6, %v4392_v5  ;;  %v4679_v36 = vpop.f32.mrf.mxu1  ;;  %v2166_v17 = vld [vmem:[#allocation4 + $0x30] sm:$0xff] }
 0x2b5   :  { %3422 = vmatmul.msk.f32.gmra.mxu3 %vm903_vm6, %v1860_v18  ;;  %v4650_v10 = vld [vmem:[#allocation4 + $0x38] sm:$0xff]  ;;  %v4673_v18 = vpop.f32.mrf.mxu2 }
 0x2b6   :  { %v4654_v57 = vld [vmem:[#allocation4 + $0x40] sm:$0xff]  ;;  %2149 = vst.msk [vmem:[#allocation4 + $0x38] sm:$0x7f] %vm927_vm7, %v2148_v25 }
 0x2b7   :  { %2151 = vst.msk [vmem:[#allocation4 + $0x3f] sm:$0x7f] %vm927_vm7, %v2150_v55 }
 0x2b8   :  { %v4658_v1 = vld [vmem:[#allocation4 + $0x48] sm:$0xff] }
 0x2b9   :  { %2153 = vst.msk [vmem:[#allocation4 + $0x46] sm:$0x7f] %vm927_vm7, %v2152_v8  ;;  %v4661_v5 = vld [vmem:[#allocation4 + $0x50] sm:$0xff] }
 0x2ba   :  { %2155 = vst.msk [vmem:[#allocation4 + $0x4d] sm:$0x7f] %vm927_vm7, %v2154_v60  ;;  %v4664_v12 = vld [vmem:[#allocation4 + $0x58] sm:$0xff]  ;;  %v4666_v48 = vld [vmem:[#allocation4 + $0x60] sm:$0x3] }
 0x2bb   :  { %3367 = vmatmul.msk.f32.gmra.mxu1 %vm903_vm6, %v4356_v50  ;;  %3399 = vmatmul.msk.f32.gmra.mxu0 %vm903_vm6, %v4413_v52  ;;  %2157 = vst.msk [vmem:[#allocation4 + $0x54] sm:$0x7f] %vm927_vm7, %v2156_v34  ;;  %v3444_v50 = vld [vmem:[%s5403_s9 + $0x100] sm:$0xff] }
 0x2bc   :  { %3386 = vmatmul.msk.f32.gmra.mxu2 %vm903_vm6, %v4398_v42  ;;  %2159 = vst.msk [vmem:[#allocation4 + $0x5b] sm:$0x7f] %vm927_vm7, %v2158_v13  ;;  %v3427_v42 = vld [vmem:[%s5403_s9 + $0xe0] sm:$0xff] }
 0x2bd   :  { %3423 = vmatmul.msk.f32.gmra.mxu3 %vm903_vm6, %v1861_v29  ;;  %2232 = vmatpush.msrb.mxu2 %v3444_v50  ;;  %v4694_v52 = vpop.f32.mrf.mxu2 }
 0x2be   :  { %2078 = vmatpush.msrb.mxu1 %v3427_v42 }
 0x2c1   :  { %v2169_v42 = vld [vmem:[#allocation4 + $0x48] sm:$0xff] }
 0x2c3   :  { %3368 = vmatmul.msk.f32.gmra.mxu1 %vm903_vm6, %v4362_v19  ;;  %3400 = vmatmul.msk.f32.gmra.mxu0 %vm903_vm6, %v4418_v37  ;;  %v4696_v19 = vpop.f32.mrf.mxu1 }
 0x2c4   :  { %3387 = vmatmul.msk.f32.gmra.mxu2 %vm903_vm6, %v4568_v0 }
 0x2c5   :  { %3424 = vmatmul.msk.f32.gmra.mxu3 %vm903_vm6, %v1862_v28  ;;  %v4705_v37 = vpop.f32.mrf.mxu2 }
 0x2cb   :  { %3369 = vmatmul.msk.f32.gmra.mxu1 %vm903_vm6, %v4368_v11  ;;  %3401 = vmatmul.msk.f32.gmra.mxu0 %vm903_vm6, %v4421_v43  ;;  %v4707_v0 = vpop.f32.mrf.mxu1 }
 0x2cc   :  { %3388 = vmatmul.msk.f32.gmra.mxu2 %vm903_vm6, %v4573_v23 }
 0x2cd   :  { %3425 = vmatmul.msk.f32.gmra.mxu3 %vm903_vm6, %v1863_v6 }
 0x2d1   :  { %v4716_v11 = vpop.f32.mrf.mxu2 }
 0x2d3   :  { %3370 = vmatmul.msk.f32.gmra.mxu1 %vm903_vm6, %v4510_v31  ;;  %3402 = vmatmul.msk.f32.gmra.mxu0 %vm903_vm6, %v4428_v45  ;;  %v4722_v43 = vpop.f32.mrf.mxu1  ;;  %v4728_v45 = vpop.f32.mrf.mxu0 }
 0x2d4   :  { %3389 = vmatmul.msk.f32.gmra.mxu2 %vm903_vm6, %v4578_v53  ;;  %v2160_v53 = vld [vmem:[#allocation4] sm:$0xff] }
 0x2d5   :  { %3426 = vmatmul.msk.f32.gmra.mxu3 %vm903_vm6, %v1864_v47 }
 0x2db   :  { %3371 = vmatmul.msk.f32.gmra.mxu1 %vm903_vm6, %v4542_v16  ;;  %3403 = vmatmul.msk.f32.gmra.mxu0 %vm903_vm6, %v4434_v24  ;;  %v4740_v23 = vpop.f32.mrf.mxu0 }
 0x2dc   :  { %3390 = vmatmul.msk.f32.gmra.mxu2 %vm903_vm6, %v4581_v21 }
 0x2df   :  { %v4726_v31 = vpop.f32.mrf.mxu2 }
 0x2e3   :  { %3372 = vmatmul.msk.f32.gmra.mxu1 %vm903_vm6, %v4546_v7  ;;  %3404 = vmatmul.msk.f32.gmra.mxu0 %vm903_vm6, %v4598_v4  ;;  %v4736_v16 = vpop.f32.mrf.mxu1  ;;  %v2161_v4 = vld [vmem:[#allocation4 + $0x8] sm:$0xff] }
 0x2e4   :  { %3391 = vmatmul.msk.f32.gmra.mxu2 %vm903_vm6, %v4586_v2 }
 0x2e7   :  { %v4738_v24 = vpop.f32.mrf.mxu2 }
 0x2eb   :  { %3373 = vmatmul.msk.f32.gmra.mxu1 %vm903_vm6, %v4551_v58  ;;  %3405 = vmatmul.msk.f32.gmra.mxu0 %vm903_vm6, %v4602_v59  ;;  %v4748_v7 = vpop.f32.mrf.mxu1  ;;  %v4757_v58 = vpop.f32.mrf.mxu0 }
 0x2ec   :  { %3392 = vmatmul.msk.f32.gmra.mxu2 %vm903_vm6, %v4588_v51 }
 0x2f3   :  { %3374 = vmatmul.msk.f32.gmra.mxu1 %vm903_vm6, %v4555_v26  ;;  %3406 = vmatmul.msk.f32.gmra.mxu0 %vm903_vm6, %v4606_v63  ;;  %v4755_v21 = vpop.f32.mrf.mxu2  ;;  %v4768_v51 = vpop.f32.mrf.mxu0  ;;  %v2162_v63 = vld [vmem:[#allocation4 + $0x10] sm:$0xff] }
 0x2f4   :  { %3448 = vmatmul.msk.f32.vlgmr.msrb.gmra.mxu2 %vm903_vm6, %v2160_v53  ;;  %5408 = vst [vmem:[#allocation5_spill] sm:$0xff] %v4755_v21 }
 0x2f5   :  { %v4759_v2 = vpop.f32.mrf.mxu1 }
 0x2fb   :  { %3375 = vmatmul.msk.f32.gmra.mxu1 %vm903_vm6, %v4557_v33  ;;  %3407 = vmatmul.msk.f32.gmra.mxu0 %vm903_vm6, %v4609_v62  ;;  %v4779_v62 = vpop.f32.mrf.mxu0 }
 0x2fc   :  { %3449 = vmatmul.msk.f32.gmra.mxu2 %vm903_vm6, %v2161_v4 }
 0x2fe   :  { %v4766_v26 = vpop.f32.mrf.mxu2 }
 0x2ff   :  { %5409 = vst [vmem:[#allocation6_spill] sm:$0xff] %v4766_v26 }
 0x300   :  { %v4770_v59 = vpop.f32.mrf.mxu1 }
 0x301   :  { %5410 = vst [vmem:[#allocation7_spill] sm:$0xff] %v4770_v59 }
 0x303   :  { %3408 = vmatmul.msk.f32.gmra.mxu0 %vm903_vm6, %v4611_v22  ;;  %3431 = vmatmul.msk.f32.vlgmr.msrb.gmra.mxu1 %vm903_vm6, %v4454_v40  ;;  %v4792_v29 = vpop.f32.mrf.mxu0 }
 0x304   :  { %3450 = vmatmul.msk.f32.gmra.mxu2 %vm903_vm6, %v2162_v63  ;;  %v3464_v63 = vld [vmem:[%s5405_s11 + $0x38] sm:$0xff] }
 0x305   :  { %2426 = vmatpush.msra.mxu0 %v3464_v63 }
 0x306   :  { %v4777_v33 = vpop.f32.mrf.mxu2 }
 0x307   :  { %5411 = vst [vmem:[#allocation8_spill] sm:$0xff] %v4777_v33 }
 0x308   :  { %v4781_v56 = vpop.f32.mrf.mxu1 }
 0x309   :  { %5412 = vst [vmem:[#allocation9_spill] sm:$0xff] %v4781_v56 }
 0x30b   :  { %3409 = vmatmul.msk.f32.gmra.mxu0 %vm903_vm6, %v4613_v14  ;;  %3432 = vmatmul.msk.f32.gmra.mxu1 %vm903_vm6, %v4461_v9  ;;  %v4801_v6 = vpop.f32.mrf.mxu0  ;;  %v2165_v9 = vld [vmem:[#allocation4 + $0x28] sm:$0xff] }
 0x30c   :  { %3451 = vmatmul.msk.f32.gmra.mxu2 %vm903_vm6, %v2163_v54  ;;  %v2170_v54 = vld [vmem:[#allocation4 + $0x50] sm:$0xff] }
 0x30f   :  { %v4788_v22 = vpop.f32.mrf.mxu2 }
 0x310   :  { %v4790_v40 = vpop.f32.mrf.mxu1 }
 0x311   :  { %5413 = vst [vmem:[#allocation10_spill] sm:$0xff] %v4790_v40 }
 0x313   :  { %3433 = vmatmul.msk.f32.gmra.mxu1 %vm903_vm6, %v4465_v15  ;;  %v4810_v15 = vpop.f32.mrf.mxu0 }
 0x314   :  { %3452 = vmatmul.msk.f32.gmra.mxu2 %vm903_vm6, %v2164_v41 }
 0x317   :  { %v4797_v28 = vpop.f32.mrf.mxu2 }
 0x318   :  { %v4799_v14 = vpop.f32.mrf.mxu1 }
 0x31b   :  { %3434 = vmatmul.msk.f32.gmra.mxu1 %vm903_vm6, %v4503_v27  ;;  %v2167_v27 = vld [vmem:[#allocation4 + $0x38] sm:$0xff]  ;;  %v4822_v8 = vpop.f32.mrf.mxu0 }
 0x31c   :  { %3453 = vmatmul.msk.f32.gmra.mxu2 %vm903_vm6, %v2165_v9 }
 0x31f   :  { %v4806_v47 = vpop.f32.mrf.mxu2 }
 0x320   :  { %v4808_v61 = vpop.f32.mrf.mxu1 }
 0x323   :  { %3435 = vmatmul.msk.f32.gmra.mxu1 %vm903_vm6, %v4507_v32  ;;  %v2168_v32 = vld [vmem:[#allocation4 + $0x40] sm:$0xff]  ;;  %v4831_v13 = vpop.f32.mrf.mxu0 }
 0x324   :  { %3454 = vmatmul.msk.f32.gmra.mxu2 %vm903_vm6, %v2166_v17  ;;  %v2171_v17 = vld [vmem:[#allocation4 + $0x58] sm:$0xff] }
 0x327   :  { %v4815_v25 = vpop.f32.mrf.mxu2 }
 0x328   :  { %v4817_v55 = vpop.f32.mrf.mxu1 }
 0x32b   :  { %3436 = vmatmul.msk.f32.gmra.mxu1 %vm903_vm6, %v4513_v49 }
 0x32c   :  { %3455 = vmatmul.msk.f32.gmra.mxu2 %vm903_vm6, %v2167_v27 }
 0x32f   :  { %v4824_v60 = vpop.f32.mrf.mxu2 }
 0x330   :  { %v4826_v34 = vpop.f32.mrf.mxu1 }
 0x333   :  { %3437 = vmatmul.msk.f32.gmra.mxu1 %vm903_vm6, %v4519_v38  ;;  %v4844_v38 = vpop.f32.mrf.mxu0 }
 0x334   :  { %3456 = vmatmul.msk.f32.gmra.mxu2 %vm903_vm6, %v2168_v32  ;;  %5414 = vst [vmem:[#allocation11_spill] sm:$0xff] %v4844_v38 }
 0x337   :  { %v4833_v50 = vpop.f32.mrf.mxu2 }
 0x338   :  { %v4835_v49 = vpop.f32.mrf.mxu1 }
 0x33b   :  { %3438 = vmatmul.msk.f32.gmra.mxu1 %vm903_vm6, %v4650_v10  ;;  %v4856_v9 = vpop.f32.mrf.mxu0 }
 0x33c   :  { %3457 = vmatmul.msk.f32.gmra.mxu2 %vm903_vm6, %v2169_v42  ;;  %5415 = vst [vmem:[#allocation12_spill] sm:$0xff] %v4856_v9 }
 0x33f   :  { %v4840_v53 = vpop.f32.mrf.mxu2 }
 0x340   :  { %v4842_v4 = vpop.f32.mrf.mxu1 }
 0x343   :  { %3439 = vmatmul.msk.f32.gmra.mxu1 %vm903_vm6, %v4654_v57  ;;  %v2172_v57 = vld [vmem:[#allocation4 + $0x60] sm:$0x3]  ;;  %v4868_v42 = vpop.f32.mrf.mxu0 }
 0x344   :  { %3458 = vmatmul.msk.f32.gmra.mxu2 %vm903_vm6, %v2170_v54  ;;  %5416 = vst [vmem:[#allocation13_spill] sm:$0xff] %v4868_v42 }
 0x347   :  { %v4852_v10 = vpop.f32.mrf.mxu2 }
 0x348   :  { %v4854_v41 = vpop.f32.mrf.mxu1 }
 0x34b   :  { %3440 = vmatmul.msk.f32.gmra.mxu1 %vm903_vm6, %v4658_v1  ;;  %v3463_v1 = vld [vmem:[%s5405_s11 + $0x30] sm:$0xff] }
 0x34c   :  { %3459 = vmatmul.msk.f32.gmra.mxu2 %vm903_vm6, %v2171_v17  ;;  %2427 = vmatpush.msra.mxu0 %v3463_v1  ;;  %v1772_v17 = vpop.f32.mrf.mxu0 }
 0x34f   :  { %v4861_v27 = vpop.f32.mrf.mxu2 }
 0x350   :  { %v4863_v32 = vpop.f32.mrf.mxu1 }
 0x353   :  { %3441 = vmatmul.msk.f32.gmra.mxu1 %vm903_vm6, %v4661_v5 }
 0x354   :  { %3460 = vmatmul.msk.f32.gmra.mxu2 %vm903_vm6, %v2172_v57  ;;  %v1926_v57 = vpop.f32.mrf.mxu3  ;;  %v1775_v9 = vpop.f32.mrf.mxu0 }
 0x357   :  { %v4870_v63 = vpop.f32.mrf.mxu2 }
 0x358   :  { %5417 = vst [vmem:[#allocation14_spill] sm:$0xff] %v4870_v63  ;;  %v4872_v54 = vpop.f32.mrf.mxu1 }
 0x35b   :  { %3442 = vmatmul.msk.f32.gmra.mxu1 %vm903_vm6, %v4664_v12  ;;  %v1170_v12 = vadd.f32 %v4564_v20, %v4593_v30 }
 0x35c   :  { %v1929_v56 = vpop.f32.mrf.mxu3 }
 0x35d   :  { %v1349_v1 = vadd.f32 %v4728_v45, %v1170_v12 }
 0x35f   :  { %v4879_v33 = vpop.f32.mrf.mxu2  ;;  %v1503_v63 = vadd.f32 %v4799_v14, %v1349_v1  ;;  %v1176_v14 = vadd.f32 %v4616_v39, %v4652_v3  ;;  %v2360_v39 = vld [vmem:[%s5405_s11 + $0x18] sm:$0xff]  ;;  %v3462_v3 = vld [vmem:[%s5405_s11 + $0x28] sm:$0xff] }
 0x360   :  { %5418 = vst [vmem:[#allocation15_spill] sm:$0xff] %v4879_v33  ;;  %v4881_v5 = vpop.f32.mrf.mxu1  ;;  %v1778_v33 = vpop.f32.mrf.mxu0  ;;  %2485 = vmatpush.msra.mxu3 %v2360_v39  ;;  %2428 = vmatpush.msra.mxu0 %v3462_v3 }
 0x361   :  { %5419 = vst [vmem:[#allocation16_spill] sm:$0xff] %v4881_v5 }
 0x363   :  { %3443 = vmatmul.msk.f32.gmra.mxu1 %vm903_vm6, %v4666_v48 }
 0x367   :  { %v4885_v42 = vpop.f32.mrf.mxu2 }
 0x368   :  { %5420 = vst [vmem:[#allocation17_spill] sm:$0xff] %v4885_v42  ;;  %v4887_v40 = vpop.f32.mrf.mxu1  ;;  %v1173_v42 = vadd.f32 %v4584_v44, %v4624_v35  ;;  %v1781_v20 = vpop.f32.mrf.mxu0  ;;  %v4910_v44 = vld [vmem:[%s5404_s10] ss:$0 sm:$0xff]  ;;  %v1351_v35 = vadd.f32 %v4757_v58, %v1176_v14 }
 0x369   :  { %5421 = vst [vmem:[#allocation18_spill] sm:$0xff] %v4887_v40  ;;  %v1657_v40 = vadd.f32 %v4788_v22, %v1503_v63 }
 0x36a   :  { %v1350_v59 = vadd.f32 %v4740_v23, %v1173_v42  ;;  %v1179_v42 = vadd.f32 %v4639_v46, %v4679_v36  ;;  %v2358_v46 = vld [vmem:[%s5405_s11 + $0x8] sm:$0xff] }
 0x36c   :  { %v1504_v5 = vadd.f32 %v4808_v61, %v1350_v59 }
 0x36e   :  { %v1658_v1 = vadd.f32 %v4797_v28, %v1504_v5  ;;  %v3504_v28 = vld [vmem:[%s5405_s11 + $0x98] sm:$0xff]  ;;  %v1352_v5 = vadd.f32 %v4768_v51, %v1179_v42 }
 0x36f   :  { %v4889_v26 = vpop.f32.mrf.mxu2  ;;  %2772 = vmatpush.msra.mxu2 %v3504_v28 }
 0x370   :  { %5422 = vst [vmem:[#allocation19_spill] sm:$0xff] %v4889_v26  ;;  %v4891_v38 = vpop.f32.mrf.mxu1  ;;  %v1932_v26 = vpop.f32.mrf.mxu3  ;;  %v1812_v23 = vadd.f32 %v1775_v9, %v1658_v1  ;;  %v1506_v36 = vadd.f32 %v4826_v34, %v1352_v5 }
 0x371   :  { %5423 = vst [vmem:[#allocation20_spill] sm:$0xff] %v4891_v38  ;;  %v1811_v38 = vadd.f32 %v1772_v17, %v1657_v40  ;;  %v1505_v40 = vadd.f32 %v4817_v55, %v1351_v35  ;;  %v1784_v58 = vpop.f32.mrf.mxu0  ;;  %v1182_v35 = vadd.f32 %v4673_v18, %v4696_v19 }
 0x372   :  { %v1966_v9 = vadd.f32 %v1929_v56, %v1812_v23  ;;  %v3493_v56 = vld [vmem:[%s5405_s11 + $0x78] sm:$0xff]  ;;  %v1660_v23 = vadd.f32 %v4815_v25, %v1506_v36 }
 0x373   :  { %v1965_v45 = vadd.f32 %v1926_v57, %v1811_v38  ;;  %v1659_v63 = vadd.f32 %v4806_v47, %v1505_v40  ;;  %2674 = vmatpush.msra.mxu1 %v3493_v56  ;;  %v1353_v34 = vadd.f32 %v4779_v62, %v1182_v35 }
 0x375   :  { %v1813_v57 = vadd.f32 %v1778_v33, %v1659_v63  ;;  %v1507_v3 = vadd.f32 %v4835_v49, %v1353_v34 }
 0x377   :  { %v2234_v48 = vpop.f32.mrf.mxu2  ;;  %v1661_v62 = vadd.f32 %v4824_v60, %v1507_v3 }
 0x378   :  { %v4897_v21 = vpop.f32.mrf.mxu1  ;;  %v1935_v59 = vpop.f32.mrf.mxu3 }
 0x379   :  { %5424 = vst [vmem:[#allocation21_spill] sm:$0xff] %v4897_v21  ;;  %v1815_v63 = vadd.f32 %v1784_v58, %v1661_v62 }
 0x37f   :  { %v2237_v30 = vpop.f32.mrf.mxu2 }
 0x380   :  { %v2080_v12 = vpop.f32.mrf.mxu1  ;;  %v1938_v33 = vpop.f32.mrf.mxu3 }
 0x381   :  { %v2119_v21 = vadd.f32 %v2080_v12, %v1965_v45  ;;  %v2359_v45 = vld [vmem:[%s5405_s11 + $0x10] sm:$0xff]  ;;  %v1967_v12 = vadd.f32 %v1932_v26, %v1813_v57  ;;  %v2357_v26 = vld [vmem:[%s5405_s11] sm:$0xff] }
 0x382   :  { %2486 = vmatpush.msra.mxu3 %v2359_v45  ;;  %v3492_v45 = vld [vmem:[%s5405_s11 + $0x70] sm:$0xff] }
 0x383   :  { %v2273_v22 = vadd.f32 %v2234_v48, %v2119_v21  ;;  %2675 = vmatpush.msra.mxu1 %v3492_v45 }
 0x384   :  { %2487 = vmatpush.msra.mxu3 %v2358_v46 }
 0x385   :  { %v2290_v61 = vadd.f32 %v4910_v44, %v2273_v22  ;;  %v1787_v22 = vpop.f32.mrf.mxu0 }
 0x386   :  { %2488 = vmatpush.msra.mxu3 %v2357_v26 }
 0x387   :  { %v2303_v38 = vmax.f32 %v2290_v61, 0.0  ;;  %v2240_v21 = vpop.f32.mrf.mxu2  ;;  %v1814_v61 = vadd.f32 %v1781_v20, %v1660_v23 }
 0x388   :  { %v2083_v55 = vpop.f32.mrf.mxu1  ;;  %v1941_v28 = vpop.f32.mrf.mxu3 }
 0x389   :  { %2316 = vst.msk [vmem:[#allocation3] sm:$0xff] %vm903_vm6, %v2303_v38  ;;  %v2120_v17 = vadd.f32 %v2083_v55, %v1966_v9  ;;  %v1968_v25 = vadd.f32 %v1935_v59, %v1814_v61  ;;  %v1185_v55 = vadd.f32 %v4694_v52, %v4707_v0  ;;  %v1969_v52 = vadd.f32 %v1938_v33, %v1815_v63  ;;  %v3461_v0 = vld [vmem:[%s5405_s11 + $0x20] sm:$0xff] }
 0x38a   :  { %2429 = vmatpush.msra.mxu0 %v3461_v0 }
 0x38b   :  { %v2274_v48 = vadd.f32 %v2237_v30, %v2120_v17  ;;  %v1354_v42 = vadd.f32 %v4792_v29, %v1185_v55  ;;  %v1188_v29 = vadd.f32 %v4705_v37, %v4722_v43 }
 0x38d   :  { %v2291_v51 = vadd.f32 %v4910_v44, %v2274_v48  ;;  %v1790_v17 = vpop.f32.mrf.mxu0  ;;  %v1508_v59 = vadd.f32 %v4842_v4, %v1354_v42  ;;  %v3503_v4 = vld [vmem:[%s5405_s11 + $0x90] sm:$0xff] }
 0x38e   :  { %2773 = vmatpush.msra.mxu2 %v3503_v4 }
 0x38f   :  { %v2304_v47 = vmax.f32 %v2291_v51, 0.0  ;;  %v2243_v30 = vpop.f32.mrf.mxu2  ;;  %v1662_v58 = vadd.f32 %v4833_v50, %v1508_v59  ;;  %v1355_v51 = vadd.f32 %v4801_v6, %v1188_v29 }
 0x390   :  { %v2329_v14 = vld [vmem:[#allocation3] sm:$0x1f]  ;;  %v2086_v1 = vpop.f32.mrf.mxu1  ;;  %v1944_v46 = vpop.f32.mrf.mxu3 }
 0x391   :  { %2331 = vst.msk [vmem:[#allocation4] sm:$0x1f] %vm2330_vm9, %v2329_v14  ;;  %v2121_v40 = vadd.f32 %v2086_v1, %v1967_v12  ;;  %v1816_v37 = vadd.f32 %v1787_v22, %v1662_v58  ;;  %v1509_v33 = vadd.f32 %v4854_v41, %v1355_v51  ;;  %v1191_v22 = vadd.f32 %v4716_v11, %v4736_v16 }
 0x392   :  { %2317 = vst.msk [vmem:[#allocation3 + $0x8] sm:$0xff] %vm903_vm6, %v2304_v47 }
 0x393   :  { %v2275_v39 = vadd.f32 %v2240_v21, %v2121_v40  ;;  %v1970_v35 = vadd.f32 %v1941_v28, %v1816_v37  ;;  %v1663_v40 = vadd.f32 %v4840_v53, %v1509_v33  ;;  %v1356_v41 = vadd.f32 %v4810_v15, %v1191_v22 }
 0x395   :  { %v2292_v18 = vadd.f32 %v4910_v44, %v2275_v39  ;;  %v1793_v47 = vpop.f32.mrf.mxu0  ;;  %v1817_v61 = vadd.f32 %v1790_v17, %v1663_v40  ;;  %v1510_v3 = vadd.f32 %v4863_v32, %v1356_v41 }
 0x397   :  { %v2246_v19 = vpop.f32.mrf.mxu2  ;;  %v2305_v38 = vmax.f32 %v2292_v18, 0.0  ;;  %v1664_v15 = vadd.f32 %v4852_v10, %v1510_v3 }
 0x398   :  { %v2089_v9 = vpop.f32.mrf.mxu1  ;;  %v1947_v26 = vpop.f32.mrf.mxu3 }
 0x399   :  { %v2332_v20 = vld [vmem:[#allocation3 + $0x7] sm:$0x1f]  ;;  %v2122_v21 = vadd.f32 %v2089_v9, %v1968_v25  ;;  %2318 = vst.msk [vmem:[#allocation3 + $0x10] sm:$0xff] %vm903_vm6, %v2305_v38  ;;  %v1971_v25 = vadd.f32 %v1944_v46, %v1817_v61  ;;  %v1194_v38 = vadd.f32 %v4726_v31, %v4748_v7  ;;  %v1818_v62 = vadd.f32 %v1793_v47, %v1664_v15  ;;  %v5428_v47 = vld [vmem:[#allocation14_spill] sm:$0xff] }
 0x39a   :  { %2333 = vst.msk [vmem:[#allocation4 + $0x5] sm:$0x1f] %vm2330_vm9, %v2332_v20  ;;  %v2363_v28 = vld [vmem:[#allocation3 + $0x8] sm:$0x1f]  ;;  %v5430_v61 = vld [vmem:[#allocation18_spill] sm:$0xff] }
 0x39b   :  { %v2276_v49 = vadd.f32 %v2243_v30, %v2122_v21  ;;  %v2361_v30 = vld [vmem:[#allocation3 + $0x1] sm:$0x1f]  ;;  %v1357_v32 = vadd.f32 %v4822_v8, %v1194_v38  ;;  %v1972_v17 = vadd.f32 %v1947_v26, %v1818_v62  ;;  %v1197_v8 = vadd.f32 %v4738_v24, %v4759_v2  ;;  %v3482_v24 = vld [vmem:[%s5405_s11 + $0x58] sm:$0xff]  ;;  %v2513_v26 = vld [vmem:[#allocation3 + $0x9] sm:$0x1f] }
 0x39c   :  { %v3502_v2 = vld [vmem:[%s5405_s11 + $0x88] sm:$0xff]  ;;  %2576 = vmatpush.msrb.mxu0 %v3482_v24 }
 0x39d   :  { %v2293_v5 = vadd.f32 %v4910_v44, %v2276_v49  ;;  %v1796_v18 = vpop.f32.mrf.mxu0  ;;  %v1511_v42 = vadd.f32 %v4872_v54, %v1357_v32  ;;  %v1358_v0 = vadd.f32 %v4831_v13, %v1197_v8  ;;  %v3491_v13 = vld [vmem:[%s5405_s11 + $0x68] sm:$0xff]  ;;  %2774 = vmatpush.msra.mxu2 %v3502_v2  ;;  %v5434_v32 = vld [vmem:[#allocation12_spill] sm:$0xff]  ;;  %v5439_v2 = vld [vmem:[#allocation13_spill] sm:$0xff] }
 0x39e   :  { %2676 = vmatpush.msra.mxu1 %v3491_v13 }
 0x39f   :  { %v2306_v57 = vmax.f32 %v2293_v5, 0.0  ;;  %v2249_v48 = vpop.f32.mrf.mxu2  ;;  %v1665_v5 = vadd.f32 %v4861_v27, %v1511_v42  ;;  %v5425_v27 = vld [vmem:[#allocation16_spill] sm:$0xff] }
 0x3a0   :  { %v2092_v60 = vpop.f32.mrf.mxu1  ;;  %v2334_v43 = vld [vmem:[#allocation3 + $0xe] sm:$0x1f]  ;;  %v1950_v7 = vpop.f32.mrf.mxu3  ;;  %v1512_v4 = vadd.f32 %v5425_v27, %v1358_v0 }
 0x3a1   :  { %2319 = vst.msk [vmem:[#allocation3 + $0x18] sm:$0xff] %vm903_vm6, %v2306_v57  ;;  %v2123_v56 = vadd.f32 %v2092_v60, %v1969_v52  ;;  %v2350_v36 = vld [vmem:[#allocation4] sm:$0xff]  ;;  %v2511_v57 = vld [vmem:[#allocation3 + $0x2] sm:$0x1f]  ;;  %v1819_v60 = vadd.f32 %v1796_v18, %v1665_v5  ;;  %v2515_v40 = vld [vmem:[#allocation3 + $0x10] sm:$0x1f] }
 0x3a2   :  { %3472 = vmatmul.msk.f32.vlgmr.msra.gmra.mxu3 %vm903_vm6, %v2350_v36  ;;  %2335 = vst.msk [vmem:[#allocation4 + $0xa] sm:$0x1f] %vm2330_vm9, %v2334_v43  ;;  %v2365_v63 = vld [vmem:[#allocation3 + $0xf] sm:$0x1f]  ;;  %v5426_v43 = vld [vmem:[#allocation7_spill] sm:$0xff] }
 0x3a3   :  { %v2277_v50 = vadd.f32 %v2246_v19, %v2123_v56  ;;  %2362 = vst.msk [vmem:[#allocation4] sm:$0x1f] %vm2330_vm9, %v2361_v30  ;;  %v1973_v46 = vadd.f32 %v1950_v7, %v1819_v60  ;;  %v1666_v30 = vadd.f32 %v5428_v47, %v1512_v4  ;;  %v3481_v42 = vld [vmem:[%s5405_s11 + $0x50] sm:$0xff]  ;;  %v5438_v60 = vld [vmem:[#allocation17_spill] sm:$0xff] }
 0x3a4   :  { %2577 = vmatpush.msrb.mxu0 %v3481_v42 }
 0x3a5   :  { %v2294_v12 = vadd.f32 %v4910_v44, %v2277_v50  ;;  %v1799_v54 = vpop.f32.mrf.mxu0  ;;  %v5427_v50 = vld [vmem:[#allocation5_spill] sm:$0xff] }
 0x3a6   :  { %v1200_v33 = vadd.f32 %v5427_v50, %v5426_v43  ;;  %v5440_v43 = vld [vmem:[#allocation21_spill] sm:$0xff] }
 0x3a7   :  { %v2307_v14 = vmax.f32 %v2294_v12, 0.0  ;;  %v2252_v1 = vpop.f32.mrf.mxu2 }
 0x3a8   :  { %v2336_v23 = vld [vmem:[#allocation3 + $0x15] sm:$0x1f]  ;;  %v2095_v6 = vpop.f32.mrf.mxu1  ;;  %v1953_v36 = vpop.f32.mrf.mxu3 }
 0x3a9   :  { %2337 = vst.msk [vmem:[#allocation4 + $0xf] sm:$0x1f] %vm2330_vm9, %v2336_v23  ;;  %v2124_v34 = vadd.f32 %v2095_v6, %v1970_v35  ;;  %v2367_v29 = vld [vmem:[#allocation3 + $0x16] sm:$0x1f]  ;;  %v1820_v23 = vadd.f32 %v1799_v54, %v1666_v30 }
 0x3aa   :  { %2320 = vst.msk [vmem:[#allocation3 + $0x20] sm:$0xff] %vm903_vm6, %v2307_v14 }
 0x3ab   :  { %v2278_v39 = vadd.f32 %v2249_v48, %v2124_v34 }
 0x3ad   :  { %v2295_v19 = vadd.f32 %v4910_v44, %v2278_v39  ;;  %v1802_v6 = vpop.f32.mrf.mxu0 }
 0x3af   :  { %v2255_v16 = vpop.f32.mrf.mxu2  ;;  %v2308_v20 = vmax.f32 %v2295_v19, 0.0  ;;  %v1974_v19 = vadd.f32 %v1953_v36, %v1820_v23  ;;  %v3480_v36 = vld [vmem:[%s5405_s11 + $0x48] sm:$0xff] }
 0x3b0   :  { %v2351_v11 = vld [vmem:[#allocation4 + $0x8] sm:$0xff]  ;;  %v2098_v53 = vpop.f32.mrf.mxu1  ;;  %2578 = vmatpush.msrb.mxu0 %v3480_v36  ;;  %v5441_v23 = vld [vmem:[#allocation19_spill] sm:$0xff] }
 0x3b1   :  { %2364 = vst.msk [vmem:[#allocation4 + $0x5] sm:$0x1f] %vm2330_vm9, %v2363_v28  ;;  %v2125_v9 = vadd.f32 %v2098_v53, %v1971_v25  ;;  %3473 = vmatmul.msk.f32.gmra.mxu3 %vm903_vm6, %v2351_v11  ;;  %v2338_v55 = vld [vmem:[#allocation3 + $0x1c] sm:$0x1f]  ;;  %v5431_v28 = vld [vmem:[#allocation9_spill] sm:$0xff] }
 0x3b2   :  { %2339 = vst.msk [vmem:[#allocation4 + $0x14] sm:$0x1f] %vm2330_vm9, %v2338_v55  ;;  %v5432_v11 = vld [vmem:[#allocation6_spill] sm:$0xff]  ;;  %v5433_v53 = vld [vmem:[#allocation15_spill] sm:$0xff] }
 0x3b3   :  { %v2279_v21 = vadd.f32 %v2252_v1, %v2125_v9  ;;  %2366 = vst.msk [vmem:[#allocation4 + $0xa] sm:$0x1f] %vm2330_vm9, %v2365_v63  ;;  %v5429_v1 = vld [vmem:[#allocation11_spill] sm:$0xff]  ;;  %v1956_v9 = vpop.f32.mrf.mxu3  ;;  %v5435_v63 = vld [vmem:[#allocation20_spill] sm:$0xff] }
 0x3b4   :  { %2321 = vst.msk [vmem:[#allocation3 + $0x28] sm:$0xff] %vm903_vm6, %v2308_v20  ;;  %v1359_v35 = vadd.f32 %v5429_v1, %v1200_v33 }
 0x3b5   :  { %v2296_v31 = vadd.f32 %v4910_v44, %v2279_v21  ;;  %v1805_v7 = vpop.f32.mrf.mxu0 }
 0x3b6   :  { %v1513_v39 = vadd.f32 %v5430_v61, %v1359_v35  ;;  %v2517_v61 = vld [vmem:[#allocation3 + $0x17] sm:$0x1f] }
 0x3b7   :  { %v2309_v10 = vmax.f32 %v2296_v31, 0.0  ;;  %v2258_v52 = vpop.f32.mrf.mxu2 }
 0x3b8   :  { %v2101_v49 = vpop.f32.mrf.mxu1  ;;  %v2381_v59 = vld [vmem:[#allocation4] sm:$0xff]  ;;  %v1667_v38 = vadd.f32 %v5433_v53, %v1513_v39 }
 0x3b9   :  { %2322 = vst.msk [vmem:[#allocation3 + $0x30] sm:$0xff] %vm903_vm6, %v2309_v10  ;;  %v2126_v48 = vadd.f32 %v2101_v49, %v1972_v17  ;;  %3465 = vmatmul.msk.f32.vlgmr.msra.gmra.mxu0 %vm903_vm6, %v2381_v59  ;;  %v2352_v56 = vld [vmem:[#allocation4 + $0x10] sm:$0xff]  ;;  %v2609_v10 = vld [vmem:[#allocation3 + $0x7] sm:$0x1f] }
 0x3ba   :  { %2512 = vst.msk [vmem:[#allocation4] sm:$0x1f] %vm2330_vm9, %v2511_v57  ;;  %3474 = vmatmul.msk.f32.gmra.mxu3 %vm903_vm6, %v2352_v56  ;;  %v1821_v20 = vadd.f32 %v1802_v6, %v1667_v38  ;;  %v2369_v56 = vld [vmem:[#allocation3 + $0x1d] sm:$0x1f] }
 0x3bb   :  { %v2280_v58 = vadd.f32 %v2255_v16, %v2126_v48  ;;  %2368 = vst.msk [vmem:[#allocation4 + $0xf] sm:$0x1f] %vm2330_vm9, %v2367_v29  ;;  %v1203_v16 = vadd.f32 %v5432_v11, %v5431_v28  ;;  %v5436_v48 = vld [vmem:[#allocation10_spill] sm:$0xff] }
 0x3bc   :  { %v1975_v5 = vadd.f32 %v1956_v9, %v1821_v20 }
 0x3bd   :  { %v2297_v45 = vadd.f32 %v4910_v44, %v2280_v58  ;;  %v1360_v62 = vadd.f32 %v5434_v32, %v1203_v16  ;;  %v1808_v47 = vpop.f32.mrf.mxu0  ;;  %v3479_v16 = vld [vmem:[%s5405_s11 + $0x40] sm:$0xff] }
 0x3be   :  { %2579 = vmatpush.msrb.mxu0 %v3479_v16  ;;  %v2809_v16 = vld [vmem:[#allocation3 + $0x17] sm:$0x1f] }
 0x3bf   :  { %v2310_v12 = vmax.f32 %v2297_v45, 0.0  ;;  %v2261_v34 = vpop.f32.mrf.mxu2  ;;  %v1514_v31 = vadd.f32 %v5435_v63, %v1360_v62 }
 0x3c0   :  { %v2340_v51 = vld [vmem:[#allocation3 + $0x31] sm:$0x1f]  ;;  %v2104_v37 = vpop.f32.mrf.mxu1 }
 0x3c1   :  { %2341 = vst.msk [vmem:[#allocation4 + $0x19] sm:$0x1f] %vm2330_vm9, %v2340_v51  ;;  %v2127_v14 = vadd.f32 %v2104_v37, %v1973_v46  ;;  %v1668_v29 = vadd.f32 %v5438_v60, %v1514_v31  ;;  %v2371_v45 = vld [vmem:[#allocation3 + $0x32] sm:$0x1f]  ;;  %v1959_v46 = vpop.f32.mrf.mxu3  ;;  %v3501_v51 = vld [vmem:[%s5405_s11 + $0x80] sm:$0xff] }
 0x3c2   :  { %2323 = vst.msk [vmem:[#allocation3 + $0x38] sm:$0xff] %vm903_vm6, %v2310_v12  ;;  %v2382_v41 = vld [vmem:[#allocation4 + $0x8] sm:$0xff]  ;;  %v3490_v37 = vld [vmem:[%s5405_s11 + $0x60] sm:$0xff]  ;;  %2775 = vmatpush.msra.mxu2 %v3501_v51 }
 0x3c3   :  { %v2281_v22 = vadd.f32 %v2258_v52, %v2127_v14  ;;  %3466 = vmatmul.msk.f32.gmra.mxu0 %vm903_vm6, %v2382_v41  ;;  %2516 = vst.msk [vmem:[#allocation4 + $0xa] sm:$0x1f] %vm2330_vm9, %v2515_v40  ;;  %v5437_v52 = vld [vmem:[#allocation8_spill] sm:$0xff]  ;;  %v1822_v4 = vadd.f32 %v1805_v7, %v1668_v29  ;;  %2677 = vmatpush.msra.mxu1 %v3490_v37  ;;  %v2521_v32 = vld [vmem:[#allocation3 + $0x33] sm:$0x1f] }
 0x3c4   :  { %2514 = vst.msk [vmem:[#allocation4 + $0x5] sm:$0x1f] %vm2330_vm9, %v2513_v26  ;;  %v1206_v0 = vadd.f32 %v5437_v52, %v5436_v48  ;;  %v3515_v31 = vld [vmem:[%s5405_s11 + $0xb8] sm:$0xff]  ;;  %v3512_v48 = vld [vmem:[%s5405_s11 + $0xa0] sm:$0xff] }
 0x3c5   :  { %v2298_v3 = vadd.f32 %v4910_v44, %v2281_v22  ;;  %v1976_v30 = vadd.f32 %v1959_v46, %v1822_v4  ;;  %2870 = vmatpush.msrb.mxu3 %v3515_v31  ;;  %v2611_v52 = vld [vmem:[#allocation3 + $0xe] sm:$0x1f] }
 0x3c6   :  { %v1361_v27 = vadd.f32 %v5439_v2, %v1206_v0  ;;  %v2613_v0 = vld [vmem:[#allocation3 + $0x15] sm:$0x1f] }
 0x3c7   :  { %v2311_v18 = vmax.f32 %v2298_v3, 0.0  ;;  %v2264_v59 = vpop.f32.mrf.mxu2  ;;  %v3526_v60 = vld [vmem:[%s5405_s11 + $0xd8] sm:$0xff] }
 0x3c8   :  { %v2107_v25 = vpop.f32.mrf.mxu1  ;;  %v1515_v50 = vadd.f32 %v5440_v43, %v1361_v27  ;;  %v3537_v29 = vld [vmem:[%s5405_s11 + $0xf8] sm:$0xff]  ;;  %2968 = vmatpush.msra.mxu0 %v3526_v60 }
 0x3c9   :  { %2324 = vst.msk [vmem:[#allocation3 + $0x40] sm:$0xff] %vm903_vm6, %v2311_v18  ;;  %v2128_v15 = vadd.f32 %v2107_v25, %v1974_v19  ;;  %v2342_v55 = vld [vmem:[#allocation3 + $0x38] sm:$0x1f]  ;;  %v1962_v18 = vpop.f32.mrf.mxu3  ;;  %3066 = vmatpush.msrb.mxu1 %v3537_v29 }
 0x3ca   :  { %2343 = vst.msk [vmem:[#allocation4 + $0x1e] sm:$0x1f] %vm2330_vm9, %v2342_v55  ;;  %v1669_v6 = vadd.f32 %v5441_v23, %v1515_v50  ;;  %v2373_v26 = vld [vmem:[#allocation3 + $0x39] sm:$0x1f]  ;;  %v3547_v50 = vld [vmem:[%s5405_s11 + $0x110] sm:$0xff] }
 0x3cb   :  { %v2282_v21 = vadd.f32 %v2261_v34, %v2128_v15  ;;  %v5039_v49 = vld [vmem:[#allocation4] sm:$0xff]  ;;  %v2523_v63 = vld [vmem:[#allocation3 + $0x3a] sm:$0x1f] }
 0x3cc   :  { %2610 = vst.msk [vmem:[#allocation4] sm:$0x1f] %vm2330_vm9, %v2609_v10  ;;  %v1823_v34 = vadd.f32 %v1808_v47, %v1669_v6  ;;  %v2619_v27 = vld [vmem:[#allocation3 + $0x38] sm:$0x1f]  ;;  %v2715_v23 = vld [vmem:[#allocation3 + $0x24] sm:$0x1f] }
 0x3cd   :  { %v2299_v17 = vadd.f32 %v4910_v44, %v2282_v21  ;;  %v2519_v21 = vld [vmem:[#allocation3 + $0x1e] sm:$0x1f] }
 0x3ce   :  { %v1977_v28 = vadd.f32 %v1962_v18, %v1823_v34  ;;  %v2805_v18 = vld [vmem:[#allocation3 + $0x9] sm:$0x1f] }
 0x3cf   :  { %v2312_v8 = vmax.f32 %v2299_v17, 0.0  ;;  %v2267_v12 = vpop.f32.mrf.mxu2 }
 0x3d0   :  { %v2344_v54 = vld [vmem:[#allocation3 + $0x3f] sm:$0x1f]  ;;  %v2110_v57 = vpop.f32.mrf.mxu1 }
 0x3d1   :  { %2345 = vst.msk [vmem:[#allocation4 + $0x23] sm:$0x1f] %vm2330_vm9, %v2344_v54  ;;  %v2129_v58 = vadd.f32 %v2110_v57, %v1975_v5  ;;  %v2353_v24 = vld [vmem:[#allocation4 + $0x18] sm:$0xff] }
 0x3d2   :  { %2325 = vst.msk [vmem:[#allocation3 + $0x48] sm:$0xff] %vm903_vm6, %v2312_v8  ;;  %3475 = vmatmul.msk.f32.gmra.mxu3 %vm903_vm6, %v2353_v24  ;;  %v2375_v19 = vld [vmem:[#allocation3 + $0x40] sm:$0x1f]  ;;  %v3548_v8 = vld [vmem:[%s5405_s11 + $0x118] sm:$0xff] }
 0x3d3   :  { %2370 = vst.msk [vmem:[#allocation4 + $0x14] sm:$0x1f] %vm2330_vm9, %v2369_v56  ;;  %v2283_v13 = vadd.f32 %v2264_v59, %v2129_v58  ;;  %v2525_v7 = vld [vmem:[#allocation3 + $0x41] sm:$0x1f]  ;;  %3164 = vmatpush.msrb.mxu2 %v3548_v8  ;;  %v2615_v58 = vld [vmem:[#allocation3 + $0x1c] sm:$0x1f] }
 0x3d4   :  { %2372 = vst.msk [vmem:[#allocation4 + $0x19] sm:$0x1f] %vm2330_vm9, %v2371_v45  ;;  %v3513_v59 = vld [vmem:[%s5405_s11 + $0xa8] sm:$0xff]  ;;  %v2707_v45 = vld [vmem:[#allocation3 + $0x8] sm:$0x1f] }
 0x3d5   :  { %v2300_v33 = vadd.f32 %v4910_v44, %v2283_v13  ;;  %v2617_v24 = vld [vmem:[#allocation3 + $0x23] sm:$0x1f]  ;;  %3165 = vmatpush.msrb.mxu2 %v3547_v50  ;;  %v2907_v8 = vld [vmem:[#allocation3 + $0x1c] sm:$0x1f] }
 0x3d6   :  { %v2621_v13 = vld [vmem:[#allocation3 + $0x3f] sm:$0x1f] }
 0x3d7   :  { %v2313_v14 = vmax.f32 %v2300_v33, 0.0  ;;  %v2270_v38 = vpop.f32.mrf.mxu2  ;;  %v3525_v33 = vld [vmem:[%s5405_s11 + $0xd0] sm:$0xff]  ;;  %v2719_v34 = vld [vmem:[#allocation3 + $0x40] sm:$0x1f]  ;;  %v3545_v50 = vld [vmem:[%s5405_s11 + $0x100] sm:$0xff] }
 0x3d8   :  { %v2113_v1 = vpop.f32.mrf.mxu1  ;;  %v2354_v35 = vld [vmem:[#allocation4 + $0x20] sm:$0xff]  ;;  %2969 = vmatpush.msra.mxu0 %v3525_v33  ;;  %v2913_v29 = vld [vmem:[#allocation3 + $0x3f] sm:$0x1f] }
 0x3d9   :  { %v2346_v22 = vld [vmem:[#allocation3 + $0x46] sm:$0x1f]  ;;  %v2130_v40 = vadd.f32 %v2113_v1, %v1976_v30  ;;  %2326 = vst.msk [vmem:[#allocation3 + $0x50] sm:$0xff] %vm903_vm6, %v2313_v14  ;;  %v2709_v30 = vld [vmem:[#allocation3 + $0xf] sm:$0x1f]  ;;  %v3523_v33 = vld [vmem:[%s5405_s11 + $0xc0] sm:$0xff] }
 0x3da   :  { %2347 = vst.msk [vmem:[#allocation4 + $0x28] sm:$0x1f] %vm2330_vm9, %v2346_v22  ;;  %3476 = vmatmul.msk.f32.gmra.mxu3 %vm903_vm6, %v2354_v35  ;;  %v2383_v39 = vld [vmem:[#allocation4 + $0x10] sm:$0xff]  ;;  %v2377_v5 = vld [vmem:[#allocation3 + $0x47] sm:$0x1f] }
 0x3db   :  { %v2284_v41 = vadd.f32 %v2267_v12, %v2130_v40  ;;  %3467 = vmatmul.msk.f32.gmra.mxu0 %vm903_vm6, %v2383_v39  ;;  %2518 = vst.msk [vmem:[#allocation4 + $0xf] sm:$0x1f] %vm2330_vm9, %v2517_v61  ;;  %v2623_v46 = vld [vmem:[#allocation3 + $0x46] sm:$0x1f]  ;;  %v2711_v14 = vld [vmem:[#allocation3 + $0x16] sm:$0x1f] }
 0x3dc   :  { %2374 = vst.msk [vmem:[#allocation4 + $0x1e] sm:$0x1f] %vm2330_vm9, %v2373_v26  ;;  %v2527_v43 = vld [vmem:[#allocation3 + $0x48] sm:$0x1f]  ;;  %v2713_v35 = vld [vmem:[#allocation3 + $0x1d] sm:$0x1f] }
 0x3dd   :  { %v2301_v3 = vadd.f32 %v4910_v44, %v2284_v41  ;;  %2376 = vst.msk [vmem:[#allocation4 + $0x23] sm:$0x1f] %vm2330_vm9, %v2375_v19  ;;  %v2717_v22 = vld [vmem:[#allocation3 + $0x39] sm:$0x1f]  ;;  %v2721_v41 = vld [vmem:[#allocation3 + $0x47] sm:$0x1f] }
 0x3de   :  { %v3536_v39 = vld [vmem:[%s5405_s11 + $0xf0] sm:$0xff] }
 0x3df   :  { %v2314_v25 = vmax.f32 %v2301_v3, 0.0  ;;  %3067 = vmatpush.msrb.mxu1 %v3536_v39 }
 0x3e0   :  { %v2116_v11 = vpop.f32.mrf.mxu1  ;;  %v2348_v15 = vld [vmem:[#allocation3 + $0x4d] sm:$0x1f] }
 0x3e1   :  { %2327 = vst.msk [vmem:[#allocation3 + $0x58] sm:$0xff] %vm903_vm6, %v2314_v25  ;;  %v2131_v53 = vadd.f32 %v2116_v11, %v1977_v28  ;;  %v2379_v57 = vld [vmem:[#allocation3 + $0x4e] sm:$0x1f] }
 0x3e2   :  { %2349 = vst.msk [vmem:[#allocation4 + $0x2d] sm:$0x1f] %vm2330_vm9, %v2348_v15  ;;  %v5096_v54 = vld [vmem:[#allocation4 + $0x8] sm:$0xff]  ;;  %v2813_v15 = vld [vmem:[#allocation3 + $0x25] sm:$0x1f] }
 0x3e3   :  { %v2285_v9 = vadd.f32 %v2270_v38, %v2131_v53  ;;  %v2384_v62 = vld [vmem:[#allocation4 + $0x18] sm:$0xff]  ;;  %2612 = vst.msk [vmem:[#allocation4 + $0x5] sm:$0x1f] %vm2330_vm9, %v2611_v52  ;;  %v2529_v47 = vld [vmem:[#allocation3 + $0x4f] sm:$0x1f] }
 0x3e4   :  { %3468 = vmatmul.msk.f32.gmra.mxu0 %vm903_vm6, %v2384_v62  ;;  %2522 = vst.msk [vmem:[#allocation4 + $0x19] sm:$0x1f] %vm2330_vm9, %v2521_v32  ;;  %v2385_v42 = vld [vmem:[#allocation4 + $0x20] sm:$0xff]  ;;  %v2807_v28 = vld [vmem:[#allocation3 + $0x10] sm:$0x1f]  ;;  %v3546_v62 = vld [vmem:[%s5405_s11 + $0x108] sm:$0xff] }
 0x3e5   :  { %v2302_v55 = vadd.f32 %v4910_v44, %v2285_v9  ;;  %v3514_v44 = vld [vmem:[%s5405_s11 + $0xb0] sm:$0xff]  ;;  %2520 = vst.msk [vmem:[#allocation4 + $0x14] sm:$0x1f] %vm2330_vm9, %v2519_v21  ;;  %v2811_v38 = vld [vmem:[#allocation3 + $0x1e] sm:$0x1f]  ;;  %3166 = vmatpush.msrb.mxu2 %v3546_v62 }
 0x3e6   :  { %2524 = vst.msk [vmem:[#allocation4 + $0x1e] sm:$0x1f] %vm2330_vm9, %v2523_v63  ;;  %2871 = vmatpush.msrb.mxu3 %v3514_v44  ;;  %v2625_v61 = vld [vmem:[#allocation3 + $0x4d] sm:$0x1f]  ;;  %v2815_v9 = vld [vmem:[#allocation3 + $0x3a] sm:$0x1f] }
 0x3e7   :  { %v2315_v20 = vmax.f32 %v2302_v55, 0.0  ;;  %2526 = vst.msk [vmem:[#allocation4 + $0x23] sm:$0x1f] %vm2330_vm9, %v2525_v7  ;;  %v2817_v21 = vld [vmem:[#allocation3 + $0x41] sm:$0x1f]  ;;  %3167 = vmatpush.msrb.mxu2 %v3545_v50 }
 0x3e8   :  { %2872 = vmatpush.msrb.mxu3 %v3513_v59  ;;  %2614 = vst.msk [vmem:[#allocation4 + $0xa] sm:$0x1f] %vm2330_vm9, %v2613_v0  ;;  %v2627_v25 = vld [vmem:[#allocation3 + $0x54] sm:$0x1f]  ;;  %v2819_v63 = vld [vmem:[#allocation3 + $0x48] sm:$0x1f] }
 0x3e9   :  { %2328 = vst.msk [vmem:[#allocation3 + $0x60] sm:$0x3] %vm924_vm8, %v2315_v20  ;;  %v2355_v10 = vld [vmem:[#allocation4 + $0x28] sm:$0xff]  ;;  %v2356_v17 = vld [vmem:[#allocation4 + $0x30] sm:$0x3]  ;;  %v3524_v20 = vld [vmem:[%s5405_s11 + $0xc8] sm:$0xff] }
 0x3ea   :  { %3477 = vmatmul.msk.f32.gmra.mxu3 %vm903_vm6, %v2355_v10  ;;  %2378 = vst.msk [vmem:[#allocation4 + $0x28] sm:$0x1f] %vm2330_vm9, %v2377_v5  ;;  %v2629_v51 = vld [vmem:[#allocation4] sm:$0xff]  ;;  %2970 = vmatpush.msra.mxu0 %v3524_v20  ;;  %v2725_v59 = vld [vmem:[#allocation3 + $0x55] sm:$0x1f] }
 0x3eb   :  { %2380 = vst.msk [vmem:[#allocation4 + $0x2d] sm:$0x1f] %vm2330_vm9, %v2379_v57  ;;  %2873 = vmatpush.msrb.mxu3 %v3512_v48  ;;  %3494 = vmatmul.msk.f32.vlgmr.msra.gmra.mxu1 %vm903_vm6, %v2629_v51  ;;  %v2723_v31 = vld [vmem:[#allocation3 + $0x4e] sm:$0x1f]  ;;  %v2905_v57 = vld [vmem:[#allocation3 + $0x15] sm:$0x1f] }
 0x3ec   :  { %3469 = vmatmul.msk.f32.gmra.mxu0 %vm903_vm6, %v2385_v42  ;;  %v5112_v56 = vld [vmem:[#allocation4 + $0x10] sm:$0xff]  ;;  %2708 = vst.msk [vmem:[#allocation4] sm:$0x1f] %vm2330_vm9, %v2707_v45  ;;  %v2903_v10 = vld [vmem:[#allocation3 + $0xe] sm:$0x1f] }
 0x3ed   :  { %v5114_v2 = vld [vmem:[#allocation4 + $0x18] sm:$0xff]  ;;  %2616 = vst.msk [vmem:[#allocation4 + $0xf] sm:$0x1f] %vm2330_vm9, %v2615_v58  ;;  %v3534_v42 = vld [vmem:[%s5405_s11 + $0xe0] sm:$0xff]  ;;  %v2911_v0 = vld [vmem:[#allocation3 + $0x2a] sm:$0x1f]  ;;  %2971 = vmatpush.msra.mxu0 %v3523_v33 }
 0x3ee   :  { %v5117_v4 = vld [vmem:[#allocation4 + $0x20] sm:$0xff]  ;;  %2618 = vst.msk [vmem:[#allocation4 + $0x14] sm:$0x1f] %vm2330_vm9, %v2617_v24  ;;  %v2909_v52 = vld [vmem:[#allocation3 + $0x23] sm:$0x1f] }
 0x3ef   :  { %2620 = vst.msk [vmem:[#allocation4 + $0x19] sm:$0x1f] %vm2330_vm9, %v2619_v27  ;;  %v2821_v24 = vld [vmem:[#allocation3 + $0x4f] sm:$0x1f]  ;;  %v3005_v51 = vld [vmem:[#allocation3 + $0x1d] sm:$0x1f] }
 0x3f0   :  { %2622 = vst.msk [vmem:[#allocation4 + $0x1e] sm:$0x1f] %vm2330_vm9, %v2621_v13  ;;  %v2917_v27 = vld [vmem:[#allocation3 + $0x4d] sm:$0x1f]  ;;  %v3019_v20 = vld [vmem:[#allocation3 + $0x5c] sm:$0x1f] }
 0x3f1   :  { %2624 = vst.msk [vmem:[#allocation4 + $0x23] sm:$0x1f] %vm2330_vm9, %v2623_v46  ;;  %v3001_v46 = vld [vmem:[#allocation3 + $0xf] sm:$0x1f] }
 0x3f2   :  { %3478 = vmatmul.msk.f32.gmra.mxu3 %vm903_vm6, %v2356_v17  ;;  %v2386_v36 = vld [vmem:[#allocation4 + $0x28] sm:$0xff]  ;;  %v2387_v37 = vld [vmem:[#allocation4 + $0x30] sm:$0x3] }
 0x3f3   :  { %2528 = vst.msk [vmem:[#allocation4 + $0x28] sm:$0x1f] %vm2330_vm9, %v2527_v43  ;;  %v3113_v62 = vld [vmem:[#allocation3 + $0x4f] sm:$0x1f] }
 0x3f4   :  { %3470 = vmatmul.msk.f32.gmra.mxu0 %vm903_vm6, %v2386_v36  ;;  %v2630_v12 = vld [vmem:[#allocation4 + $0x8] sm:$0xff]  ;;  %2530 = vst.msk [vmem:[#allocation4 + $0x2d] sm:$0x1f] %vm2330_vm9, %v2529_v47 }
 0x3f5   :  { %2710 = vst.msk [vmem:[#allocation4 + $0x5] sm:$0x1f] %vm2330_vm9, %v2709_v30  ;;  %v2631_v1 = vld [vmem:[#allocation4 + $0x10] sm:$0xff]  ;;  %3495 = vmatmul.msk.f32.gmra.mxu1 %vm903_vm6, %v2630_v12  ;;  %v3009_v12 = vld [vmem:[#allocation3 + $0x2b] sm:$0x1f] }
 0x3f6   :  { %2712 = vst.msk [vmem:[#allocation4 + $0xa] sm:$0x1f] %vm2330_vm9, %v2711_v14  ;;  %v2823_v36 = vld [vmem:[#allocation3 + $0x56] sm:$0x1f] }
 0x3f7   :  { %2714 = vst.msk [vmem:[#allocation4 + $0xf] sm:$0x1f] %vm2330_vm9, %v2713_v35  ;;  %v5138_v6 = vld [vmem:[#allocation4 + $0x18] sm:$0xff]  ;;  %v3003_v30 = vld [vmem:[#allocation3 + $0x16] sm:$0x1f] }
 0x3f8   :  { %2716 = vst.msk [vmem:[#allocation4 + $0x14] sm:$0x1f] %vm2330_vm9, %v2715_v23  ;;  %v5141_v40 = vld [vmem:[#allocation4 + $0x20] sm:$0xff] }
 0x3f9   :  { %2718 = vst.msk [vmem:[#allocation4 + $0x19] sm:$0x1f] %vm2330_vm9, %v2717_v22  ;;  %v3013_v23 = vld [vmem:[#allocation3 + $0x47] sm:$0x1f] }
 0x3fa   :  { %2720 = vst.msk [vmem:[#allocation4 + $0x1e] sm:$0x1f] %vm2330_vm9, %v2719_v34  ;;  %v2919_v34 = vld [vmem:[#allocation3 + $0x54] sm:$0x1f] }
 0x3fb   :  { %v5150_v26 = vld [vmem:[#allocation4 + $0x30] sm:$0x3]  ;;  %2722 = vst.msk [vmem:[#allocation4 + $0x23] sm:$0x1f] %vm2330_vm9, %v2721_v41  ;;  %v5153_v3 = vld [vmem:[#allocation4 + $0x28] sm:$0xff] }
 0x3fc   :  { %3471 = vmatmul.msk.f32.gmra.mxu0 %vm903_vm6, %v2387_v37  ;;  %v2727_v19 = vld [vmem:[#allocation4] sm:$0xff]  ;;  %2626 = vst.msk [vmem:[#allocation4 + $0x28] sm:$0x1f] %vm2330_vm9, %v2625_v61  ;;  %v2921_v41 = vld [vmem:[#allocation3 + $0x5b] sm:$0x1f] }
 0x3fd   :  { %3505 = vmatmul.msk.f32.vlgmr.msra.gmra.mxu2 %vm903_vm6, %v2727_v19  ;;  %2806 = vst.msk [vmem:[#allocation4] sm:$0x1f] %vm2330_vm9, %v2805_v18  ;;  %3496 = vmatmul.msk.f32.gmra.mxu1 %vm903_vm6, %v2631_v1  ;;  %v3011_v1 = vld [vmem:[#allocation3 + $0x40] sm:$0x1f]  ;;  %v3099_v61 = vld [vmem:[#allocation3 + $0x10] sm:$0x1f] }
 0x3fe   :  { %v2728_v11 = vld [vmem:[#allocation4 + $0x8] sm:$0xff]  ;;  %2628 = vst.msk [vmem:[#allocation4 + $0x2d] sm:$0x1f] %vm2330_vm9, %v2627_v25  ;;  %v3103_v25 = vld [vmem:[#allocation3 + $0x1e] sm:$0x1f] }
 0x3ff   :  { %2808 = vst.msk [vmem:[#allocation4 + $0x5] sm:$0x1f] %vm2330_vm9, %v2807_v28  ;;  %v2729_v53 = vld [vmem:[#allocation4 + $0x10] sm:$0xff]  ;;  %v3105_v28 = vld [vmem:[#allocation3 + $0x25] sm:$0x1f] }
 0x400   :  { %2810 = vst.msk [vmem:[#allocation4 + $0xa] sm:$0x1f] %vm2330_vm9, %v2809_v16  ;;  %v3101_v19 = vld [vmem:[#allocation3 + $0x17] sm:$0x1f]  ;;  %v3107_v16 = vld [vmem:[#allocation3 + $0x2c] sm:$0x1f] }
 0x401   :  { %2812 = vst.msk [vmem:[#allocation4 + $0xf] sm:$0x1f] %vm2330_vm9, %v2811_v38  ;;  %v5164_v55 = vld [vmem:[#allocation4 + $0x18] sm:$0xff] }
 0x402   :  { %2814 = vst.msk [vmem:[#allocation4 + $0x14] sm:$0x1f] %vm2330_vm9, %v2813_v15  ;;  %v5168_v32 = vld [vmem:[#allocation4 + $0x20] sm:$0xff]  ;;  %v3017_v15 = vld [vmem:[#allocation3 + $0x55] sm:$0x1f] }
 0x403   :  { %2816 = vst.msk [vmem:[#allocation4 + $0x19] sm:$0x1f] %vm2330_vm9, %v2815_v9 }
 0x404   :  { %3483 = vmatmul.msk.f32.vlgmr.msrb.gmra.mxu0 %vm903_vm6, %v5039_v49  ;;  %v3535_v49 = vld [vmem:[%s5405_s11 + $0xe8] sm:$0xff]  ;;  %2818 = vst.msk [vmem:[#allocation4 + $0x1e] sm:$0x1f] %vm2330_vm9, %v2817_v21 }
 0x405   :  { %3068 = vmatpush.msrb.mxu1 %v3535_v49  ;;  %3506 = vmatmul.msk.f32.gmra.mxu2 %vm903_vm6, %v2728_v11  ;;  %v5185_v44 = vld [vmem:[#allocation4 + $0x28] sm:$0xff]  ;;  %v5187_v7 = vld [vmem:[#allocation4 + $0x30] sm:$0x3]  ;;  %2820 = vst.msk [vmem:[#allocation4 + $0x23] sm:$0x1f] %vm2330_vm9, %v2819_v63 }
 0x406   :  { %v2825_v17 = vld [vmem:[#allocation4] sm:$0xff]  ;;  %2724 = vst.msk [vmem:[#allocation4 + $0x28] sm:$0x1f] %vm2330_vm9, %v2723_v31  ;;  %3497 = vmatmul.msk.f32.gmra.mxu1 %vm903_vm6, %v5138_v6 }
 0x407   :  { %3069 = vmatpush.msrb.mxu1 %v3534_v42  ;;  %3516 = vmatmul.msk.f32.vlgmr.msrb.gmra.mxu3 %vm903_vm6, %v2825_v17  ;;  %2904 = vst.msk [vmem:[#allocation4] sm:$0x1f] %vm2330_vm9, %v2903_v10  ;;  %v3015_v6 = vld [vmem:[#allocation3 + $0x4e] sm:$0x1f]  ;;  %v3117_v42 = vld [vmem:[#allocation3 + $0x5d] sm:$0x1f] }
 0x408   :  { %v2826_v5 = vld [vmem:[#allocation4 + $0x8] sm:$0xff]  ;;  %2726 = vst.msk [vmem:[#allocation4 + $0x2d] sm:$0x1f] %vm2330_vm9, %v2725_v59 }
 0x409   :  { %2908 = vst.msk [vmem:[#allocation4 + $0xa] sm:$0x1f] %vm2330_vm9, %v2907_v8  ;;  %v2827_v48 = vld [vmem:[#allocation4 + $0x10] sm:$0xff] }
 0x40a   :  { %2906 = vst.msk [vmem:[#allocation4 + $0x5] sm:$0x1f] %vm2330_vm9, %v2905_v57 }
 0x40b   :  { %2910 = vst.msk [vmem:[#allocation4 + $0xf] sm:$0x1f] %vm2330_vm9, %v2909_v52  ;;  %v5201_v60 = vld [vmem:[#allocation4 + $0x18] sm:$0xff] }
 0x40c   :  { %3484 = vmatmul.msk.f32.gmra.mxu0 %vm903_vm6, %v5096_v54  ;;  %2912 = vst.msk [vmem:[#allocation4 + $0x14] sm:$0x1f] %vm2330_vm9, %v2911_v0  ;;  %v5204_v58 = vld [vmem:[#allocation4 + $0x20] sm:$0xff] }
 0x40d   :  { %v2915_v54 = vld [vmem:[#allocation3 + $0x46] sm:$0x1f]  ;;  %3507 = vmatmul.msk.f32.gmra.mxu2 %vm903_vm6, %v2729_v53  ;;  %2914 = vst.msk [vmem:[#allocation4 + $0x19] sm:$0x1f] %vm2330_vm9, %v2913_v29  ;;  %v3109_v53 = vld [vmem:[#allocation3 + $0x41] sm:$0x1f] }
 0x40e   :  { %2916 = vst.msk [vmem:[#allocation4 + $0x1e] sm:$0x1f] %vm2330_vm9, %v2915_v54  ;;  %3498 = vmatmul.msk.f32.gmra.mxu1 %vm903_vm6, %v5141_v40 }
 0x40f   :  { %3517 = vmatmul.msk.f32.gmra.mxu3 %vm903_vm6, %v2826_v5  ;;  %v5210_v45 = vld [vmem:[#allocation4 + $0x28] sm:$0xff]  ;;  %2918 = vst.msk [vmem:[#allocation4 + $0x23] sm:$0x1f] %vm2330_vm9, %v2917_v27  ;;  %v5213_v13 = vld [vmem:[#allocation4 + $0x30] sm:$0x3] }
 0x410   :  { %2822 = vst.msk [vmem:[#allocation4 + $0x28] sm:$0x1f] %vm2330_vm9, %v2821_v24 }
 0x411   :  { %v5218_v37 = vld [vmem:[#allocation4] sm:$0xff]  ;;  %2824 = vst.msk [vmem:[#allocation4 + $0x2d] sm:$0x1f] %vm2330_vm9, %v2823_v36 }
 0x412   :  { %v5223_v43 = vld [vmem:[#allocation4 + $0x8] sm:$0xff]  ;;  %3002 = vst.msk [vmem:[#allocation4] sm:$0x1f] %vm2330_vm9, %v3001_v46 }
 0x413   :  { %3006 = vst.msk [vmem:[#allocation4 + $0xa] sm:$0x1f] %vm2330_vm9, %v3005_v51  ;;  %v5233_v47 = vld [vmem:[#allocation4 + $0x10] sm:$0xff] }
 0x414   :  { %3485 = vmatmul.msk.f32.gmra.mxu0 %vm903_vm6, %v5112_v56  ;;  %v3007_v56 = vld [vmem:[#allocation3 + $0x24] sm:$0x1f]  ;;  %3004 = vst.msk [vmem:[#allocation4 + $0x5] sm:$0x1f] %vm2330_vm9, %v3003_v30 }
 0x415   :  { %3008 = vst.msk [vmem:[#allocation4 + $0xf] sm:$0x1f] %vm2330_vm9, %v3007_v56  ;;  %3508 = vmatmul.msk.f32.gmra.mxu2 %vm903_vm6, %v5164_v55  ;;  %v5238_v14 = vld [vmem:[#allocation4 + $0x18] sm:$0xff]  ;;  %v3111_v55 = vld [vmem:[#allocation3 + $0x48] sm:$0x1f] }
 0x416   :  { %v5241_v35 = vld [vmem:[#allocation4 + $0x20] sm:$0xff]  ;;  %3010 = vst.msk [vmem:[#allocation4 + $0x14] sm:$0x1f] %vm2330_vm9, %v3009_v12  ;;  %3499 = vmatmul.msk.f32.gmra.mxu1 %vm903_vm6, %v5185_v44 }
 0x417   :  { %3518 = vmatmul.msk.f32.gmra.mxu3 %vm903_vm6, %v2827_v48  ;;  %3012 = vst.msk [vmem:[#allocation4 + $0x19] sm:$0x1f] %vm2330_vm9, %v3011_v1 }
 0x418   :  { %3014 = vst.msk [vmem:[#allocation4 + $0x1e] sm:$0x1f] %vm2330_vm9, %v3013_v23  ;;  %v2830_v22 = vld [vmem:[#allocation4 + $0x28] sm:$0xff]  ;;  %v2831_v40 = vld [vmem:[#allocation4 + $0x30] sm:$0x3] }
 0x419   :  { %3016 = vst.msk [vmem:[#allocation4 + $0x23] sm:$0x1f] %vm2330_vm9, %v3015_v6 }
 0x41a   :  { %2920 = vst.msk [vmem:[#allocation4 + $0x28] sm:$0x1f] %vm2330_vm9, %v2919_v34 }
 0x41b   :  { %2922 = vst.msk [vmem:[#allocation4 + $0x2d] sm:$0x1f] %vm2330_vm9, %v2921_v41  ;;  %v3021_v39 = vld [vmem:[#allocation4] sm:$0xff] }
 0x41c   :  { %3486 = vmatmul.msk.f32.gmra.mxu0 %vm903_vm6, %v5114_v2  ;;  %v3022_v18 = vld [vmem:[#allocation4 + $0x8] sm:$0xff]  ;;  %3100 = vst.msk [vmem:[#allocation4] sm:$0x1f] %vm2330_vm9, %v3099_v61 }
 0x41d   :  { %3509 = vmatmul.msk.f32.gmra.mxu2 %vm903_vm6, %v5168_v32  ;;  %v3023_v2 = vld [vmem:[#allocation4 + $0x10] sm:$0xff]  ;;  %3102 = vst.msk [vmem:[#allocation4 + $0x5] sm:$0x1f] %vm2330_vm9, %v3101_v19 }
 0x41e   :  { %3104 = vst.msk [vmem:[#allocation4 + $0xa] sm:$0x1f] %vm2330_vm9, %v3103_v25  ;;  %3500 = vmatmul.msk.f32.gmra.mxu1 %vm903_vm6, %v5187_v7 }
 0x41f   :  { %3519 = vmatmul.msk.f32.gmra.mxu3 %vm903_vm6, %v5201_v60  ;;  %v3024_v11 = vld [vmem:[#allocation4 + $0x18] sm:$0xff]  ;;  %3106 = vst.msk [vmem:[#allocation4 + $0xf] sm:$0x1f] %vm2330_vm9, %v3105_v28 }
 0x420   :  { %3108 = vst.msk [vmem:[#allocation4 + $0x14] sm:$0x1f] %vm2330_vm9, %v3107_v16  ;;  %v3025_v38 = vld [vmem:[#allocation4 + $0x20] sm:$0xff] }
 0x421   :  { %3110 = vst.msk [vmem:[#allocation4 + $0x19] sm:$0x1f] %vm2330_vm9, %v3109_v53 }
 0x422   :  { %v2928_v9 = vld [vmem:[#allocation4 + $0x28] sm:$0xff]  ;;  %v2929_v32 = vld [vmem:[#allocation4 + $0x30] sm:$0x3]  ;;  %3112 = vst.msk [vmem:[#allocation4 + $0x1e] sm:$0x1f] %vm2330_vm9, %v3111_v55 }
 0x423   :  { %3018 = vst.msk [vmem:[#allocation4 + $0x28] sm:$0x1f] %vm2330_vm9, %v3017_v15 }
 0x424   :  { %3487 = vmatmul.msk.f32.gmra.mxu0 %vm903_vm6, %v5117_v4  ;;  %3114 = vst.msk [vmem:[#allocation4 + $0x23] sm:$0x1f] %vm2330_vm9, %v3113_v62  ;;  %v3115_v4 = vld [vmem:[#allocation3 + $0x56] sm:$0x1f] }
 0x425   :  { %3510 = vmatmul.msk.f32.gmra.mxu2 %vm903_vm6, %v5210_v45  ;;  %3020 = vst.msk [vmem:[#allocation4 + $0x2d] sm:$0x1f] %vm2330_vm9, %v3019_v20  ;;  %v2490_v48 = vpop.f32.mrf.mxu3 }
 0x426   :  { %3538 = vmatmul.msk.f32.vlgmr.msrb.gmra.mxu1 %vm903_vm6, %v3021_v39  ;;  %v3120_v63 = vld [vmem:[#allocation4 + $0x8] sm:$0xff] }
 0x427   :  { %3520 = vmatmul.msk.f32.gmra.mxu3 %vm903_vm6, %v5204_v58 }
 0x429   :  { %v3122_v7 = vld [vmem:[#allocation4 + $0x18] sm:$0xff] }
 0x42b   :  { %v3123_v10 = vld [vmem:[#allocation4 + $0x20] sm:$0xff] }
 0x42c   :  { %3488 = vmatmul.msk.f32.gmra.mxu0 %vm903_vm6, %v5153_v3  ;;  %v3026_v21 = vld [vmem:[#allocation4 + $0x28] sm:$0xff]  ;;  %v3027_v49 = vld [vmem:[#allocation4 + $0x30] sm:$0x3]  ;;  %v3119_v3 = vld [vmem:[#allocation4] sm:$0xff] }
 0x42d   :  { %3511 = vmatmul.msk.f32.gmra.mxu2 %vm903_vm6, %v5213_v13  ;;  %3116 = vst.msk [vmem:[#allocation4 + $0x28] sm:$0x1f] %vm2330_vm9, %v3115_v4 }
 0x42e   :  { %3118 = vst.msk [vmem:[#allocation4 + $0x2d] sm:$0x1f] %vm2330_vm9, %v3117_v42  ;;  %3539 = vmatmul.msk.f32.gmra.mxu1 %vm903_vm6, %v3022_v18 }
 0x42f   :  { %3521 = vmatmul.msk.f32.gmra.mxu3 %vm903_vm6, %v2830_v22 }
 0x434   :  { %3489 = vmatmul.msk.f32.gmra.mxu0 %vm903_vm6, %v5150_v26  ;;  %v3121_v26 = vld [vmem:[#allocation4 + $0x10] sm:$0xff]  ;;  %v2493_v60 = vpop.f32.mrf.mxu3 }
 0x435   :  { %3549 = vmatmul.msk.f32.vlgmr.msrb.gmra.mxu2 %vm903_vm6, %v3119_v3  ;;  %v3124_v59 = vld [vmem:[#allocation4 + $0x28] sm:$0xff]  ;;  %v3125_v5 = vld [vmem:[#allocation4 + $0x30] sm:$0x3] }
 0x436   :  { %3540 = vmatmul.msk.f32.gmra.mxu1 %vm903_vm6, %v3023_v2  ;;  %v2431_v31 = vpop.f32.mrf.mxu0 }
 0x437   :  { %3522 = vmatmul.msk.f32.gmra.mxu3 %vm903_vm6, %v2831_v40  ;;  %v2491_v40 = vadd.f32 %v2490_v48, %v2431_v31 }
 0x43c   :  { %3527 = vmatmul.msk.f32.vlgmr.msra.gmra.mxu0 %vm903_vm6, %v5218_v37 }
 0x43d   :  { %3550 = vmatmul.msk.f32.gmra.mxu2 %vm903_vm6, %v3120_v63  ;;  %v2496_v54 = vpop.f32.mrf.mxu3 }
 0x43e   :  { %3541 = vmatmul.msk.f32.gmra.mxu1 %vm903_vm6, %v3024_v11 }
 0x440   :  { %v2434_v44 = vpop.f32.mrf.mxu0 }
 0x441   :  { %v2494_v19 = vadd.f32 %v2493_v60, %v2434_v44 }
 0x444   :  { %3528 = vmatmul.msk.f32.gmra.mxu0 %vm903_vm6, %v5223_v43 }
 0x445   :  { %3551 = vmatmul.msk.f32.gmra.mxu2 %vm903_vm6, %v3121_v26 }
 0x446   :  { %3542 = vmatmul.msk.f32.gmra.mxu1 %vm903_vm6, %v3025_v38 }
 0x44c   :  { %3529 = vmatmul.msk.f32.gmra.mxu0 %vm903_vm6, %v5233_v47 }
 0x44d   :  { %3552 = vmatmul.msk.f32.gmra.mxu2 %vm903_vm6, %v3122_v7 }
 0x44e   :  { %3543 = vmatmul.msk.f32.gmra.mxu1 %vm903_vm6, %v3026_v21  ;;  %v5343_v21 = vld [vmem:[%s5406_s12] ss:$0 sm:$0xff] }
 0x454   :  { %3530 = vmatmul.msk.f32.gmra.mxu0 %vm903_vm6, %v5238_v14 }
 0x455   :  { %3553 = vmatmul.msk.f32.gmra.mxu2 %vm903_vm6, %v3123_v10  ;;  %v2499_v13 = vpop.f32.mrf.mxu3 }
 0x456   :  { %3544 = vmatmul.msk.f32.gmra.mxu1 %vm903_vm6, %v3027_v49 }
 0x458   :  { %v2437_v17 = vpop.f32.mrf.mxu0 }
 0x45c   :  { %3531 = vmatmul.msk.f32.gmra.mxu0 %vm903_vm6, %v5241_v35 }
 0x45d   :  { %3554 = vmatmul.msk.f32.gmra.mxu2 %vm903_vm6, %v3124_v59  ;;  %v2502_v37 = vpop.f32.mrf.mxu3 }
 0x461   :  { %v5309_v8 = vpop.f32.mrf.mxu0 }
 0x462   :  { %v2500_v44 = vadd.f32 %v2499_v13, %v5309_v8 }
 0x464   :  { %3532 = vmatmul.msk.f32.gmra.mxu0 %vm903_vm6, %v2928_v9  ;;  %v2497_v9 = vadd.f32 %v2496_v54, %v2437_v17 }
 0x465   :  { %3555 = vmatmul.msk.f32.gmra.mxu2 %vm903_vm6, %v3125_v5 }
 0x468   :  { %v2679_v0 = vpop.f32.mrf.mxu1 }
 0x469   :  { %v5313_v57 = vpop.f32.mrf.mxu0 }
 0x46a   :  { %v2503_v8 = vadd.f32 %v2502_v37, %v5313_v57 }
 0x46c   :  { %3533 = vmatmul.msk.f32.gmra.mxu0 %vm903_vm6, %v2929_v32 }
 0x46d   :  { %v5322_v56 = vpop.f32.mrf.mxu3 }
 0x471   :  { %v5316_v52 = vpop.f32.mrf.mxu0 }
 0x472   :  { %v2682_v58 = vpop.f32.mrf.mxu1  ;;  %v2506_v37 = vadd.f32 %v5322_v56, %v5316_v52 }
 0x475   :  { %v5326_v14 = vpop.f32.mrf.mxu3 }
 0x479   :  { %v5318_v29 = vpop.f32.mrf.mxu0 }
 0x47a   :  { %v2685_v27 = vpop.f32.mrf.mxu1 }
 0x480   :  { %v2777_v45 = vpop.f32.mrf.mxu2 }
 0x481   :  { %v2581_v24 = vpop.f32.mrf.mxu0 }
 0x482   :  { %v2602_v41 = vadd.f32 %v2581_v24, %v2491_v40 }
 0x483   :  { %v2688_v36 = vpop.f32.mrf.mxu1 }
 0x484   :  { %v2700_v39 = vadd.f32 %v2679_v0, %v2602_v41 }
 0x486   :  { %v2798_v28 = vadd.f32 %v2777_v45, %v2700_v39 }
 0x488   :  { %v2780_v51 = vpop.f32.mrf.mxu2 }
 0x489   :  { %v2584_v46 = vpop.f32.mrf.mxu0 }
 0x48a   :  { %v2875_v6 = vpop.f32.mrf.mxu3  ;;  %v2603_v11 = vadd.f32 %v2584_v46, %v2494_v19 }
 0x48b   :  { %v5320_v50 = vpop.f32.mrf.mxu1  ;;  %v2896_v16 = vadd.f32 %v2875_v6, %v2798_v28 }
 0x48c   :  { %v2701_v53 = vadd.f32 %v2682_v58, %v2603_v11 }
 0x48e   :  { %v2799_v62 = vadd.f32 %v2780_v51, %v2701_v53 }
 0x490   :  { %v2783_v33 = vpop.f32.mrf.mxu2 }
 0x491   :  { %v2587_v43 = vpop.f32.mrf.mxu0 }
 0x492   :  { %v2878_v2 = vpop.f32.mrf.mxu3  ;;  %v2604_v20 = vadd.f32 %v2587_v43, %v2497_v9 }
 0x493   :  { %v5324_v30 = vpop.f32.mrf.mxu1  ;;  %v2897_v3 = vadd.f32 %v2878_v2, %v2799_v62 }
 0x494   :  { %v2702_v63 = vadd.f32 %v2685_v27, %v2604_v20 }
 0x496   :  { %v2800_v5 = vadd.f32 %v2783_v33, %v2702_v63 }
 0x498   :  { %v2786_v12 = vpop.f32.mrf.mxu2 }
 0x499   :  { %v2590_v47 = vpop.f32.mrf.mxu0 }
 0x49a   :  { %v2881_v49 = vpop.f32.mrf.mxu3  ;;  %v2605_v48 = vadd.f32 %v2590_v47, %v2500_v44 }
 0x49b   :  { %v5330_v23 = vpop.f32.mrf.mxu1  ;;  %v2898_v54 = vadd.f32 %v2881_v49, %v2800_v5 }
 0x49c   :  { %v2703_v24 = vadd.f32 %v2688_v36, %v2605_v48 }
 0x49e   :  { %v2801_v43 = vadd.f32 %v2786_v12, %v2703_v24 }
 0x4a0   :  { %v5328_v35 = vpop.f32.mrf.mxu2 }
 0x4a1   :  { %v2593_v1 = vpop.f32.mrf.mxu0 }
 0x4a2   :  { %v2884_v58 = vpop.f32.mrf.mxu3  ;;  %v2606_v33 = vadd.f32 %v2593_v1, %v2503_v8 }
 0x4a3   :  { %v3071_v61 = vpop.f32.mrf.mxu1  ;;  %v2899_v41 = vadd.f32 %v2884_v58, %v2801_v43 }
 0x4a4   :  { %v2704_v36 = vadd.f32 %v5320_v50, %v2606_v33 }
 0x4a6   :  { %v2802_v2 = vadd.f32 %v5328_v35, %v2704_v36 }
 0x4a8   :  { %v5334_v34 = vpop.f32.mrf.mxu2 }
 0x4a9   :  { %v5332_v22 = vpop.f32.mrf.mxu0 }
 0x4aa   :  { %v2887_v39 = vpop.f32.mrf.mxu3  ;;  %v2607_v28 = vadd.f32 %v5332_v22, %v2506_v37 }
 0x4ab   :  { %v3074_v38 = vpop.f32.mrf.mxu1  ;;  %v2900_v53 = vadd.f32 %v2887_v39, %v2802_v2 }
 0x4b0   :  { %v5338_v25 = vpop.f32.mrf.mxu2 }
 0x4b1   :  { %v5336_v18 = vpop.f32.mrf.mxu0 }
 0x4b2   :  { %v2890_v22 = vpop.f32.mrf.mxu3 }
 0x4b3   :  { %v3077_v17 = vpop.f32.mrf.mxu1 }
 0x4b8   :  { %v3169_v32 = vpop.f32.mrf.mxu2 }
 0x4b9   :  { %v2973_v15 = vpop.f32.mrf.mxu0 }
 0x4ba   :  { %v2994_v55 = vadd.f32 %v2973_v15, %v2896_v16  ;;  %v2509_v15 = vadd.f32 %v5326_v14, %v5318_v29 }
 0x4bb   :  { %v3080_v6 = vpop.f32.mrf.mxu1 }
 0x4bc   :  { %v3092_v4 = vadd.f32 %v3071_v61, %v2994_v55  ;;  %v2608_v62 = vadd.f32 %v5336_v18, %v2509_v15 }
 0x4be   :  { %v3190_v42 = vadd.f32 %v3169_v32, %v3092_v4  ;;  %v2706_v49 = vadd.f32 %v5330_v23, %v2608_v62 }
 0x4c0   :  { %v3201_v31 = vadd.f32 %v5343_v21, %v3190_v42  ;;  %v3172_v59 = vpop.f32.mrf.mxu2 }
 0x4c1   :  { %v2976_v26 = vpop.f32.mrf.mxu0 }
 0x4c2   :  { %v3208_v7 = vmax.f32 %v3201_v31, 0.0  ;;  %v2995_v10 = vadd.f32 %v2976_v26, %v2897_v3  ;;  %v2893_v26 = vpop.f32.mrf.mxu3 }
 0x4c3   :  { %v3083_v16 = vpop.f32.mrf.mxu1 }
 0x4c4   :  { %3215 = vst.msk [vmem:[%s5407_s13] sm:$0xff] %vm903_vm6, %v3208_v7  ;;  %v3093_v0 = vadd.f32 %v3074_v38, %v2995_v10  ;;  %v2705_v38 = vadd.f32 %v5324_v30, %v2607_v28 }
 0x4c6   :  { %v3191_v60 = vadd.f32 %v3172_v59, %v3093_v0  ;;  %v2803_v32 = vadd.f32 %v5334_v34, %v2705_v38  ;;  %v2804_v34 = vadd.f32 %v5338_v25, %v2706_v49 }
 0x4c8   :  { %v3202_v27 = vadd.f32 %v5343_v21, %v3191_v60  ;;  %v3175_v51 = vpop.f32.mrf.mxu2  ;;  %v2901_v4 = vadd.f32 %v2890_v22, %v2803_v32  ;;  %v2902_v7 = vadd.f32 %v2893_v26, %v2804_v34 }
 0x4c9   :  { %v2979_v45 = vpop.f32.mrf.mxu0 }
 0x4ca   :  { %v3209_v13 = vmax.f32 %v3202_v27, 0.0  ;;  %v2996_v46 = vadd.f32 %v2979_v45, %v2898_v54 }
 0x4cb   :  { %v3086_v14 = vpop.f32.mrf.mxu1 }
 0x4cc   :  { %3216 = vst.msk [vmem:[%s5407_s13 + $0x8] sm:$0xff] %vm903_vm6, %v3209_v13  ;;  %v3094_v47 = vadd.f32 %v3077_v17, %v2996_v46 }
 0x4ce   :  { %v3192_v40 = vadd.f32 %v3175_v51, %v3094_v47 }
 0x4d0   :  { %v3203_v61 = vadd.f32 %v5343_v21, %v3192_v40  ;;  %v3178_v19 = vpop.f32.mrf.mxu2 }
 0x4d1   :  { %v2982_v57 = vpop.f32.mrf.mxu0 }
 0x4d2   :  { %v3210_v12 = vmax.f32 %v3203_v61, 0.0  ;;  %v2997_v1 = vadd.f32 %v2982_v57, %v2899_v41 }
 0x4d3   :  { %v3089_v5 = vpop.f32.mrf.mxu1 }
 0x4d4   :  { %3217 = vst.msk [vmem:[%s5407_s13 + $0x10] sm:$0xff] %vm903_vm6, %v3210_v12  ;;  %v3095_v50 = vadd.f32 %v3080_v6, %v2997_v1 }
 0x4d6   :  { %v3193_v11 = vadd.f32 %v3178_v19, %v3095_v50 }
 0x4d8   :  { %v3204_v52 = vadd.f32 %v5343_v21, %v3193_v11  ;;  %v3181_v55 = vpop.f32.mrf.mxu2 }
 0x4d9   :  { %v2985_v56 = vpop.f32.mrf.mxu0 }
 0x4da   :  { %v3211_v35 = vmax.f32 %v3204_v52, 0.0  ;;  %v2998_v9 = vadd.f32 %v2985_v56, %v2900_v53 }
 0x4dc   :  { %3218 = vst.msk [vmem:[%s5407_s13 + $0x18] sm:$0xff] %vm903_vm6, %v3211_v35  ;;  %v3096_v30 = vadd.f32 %v3083_v16, %v2998_v9 }
 0x4de   :  { %v3194_v20 = vadd.f32 %v3181_v55, %v3096_v30 }
 0x4e0   :  { %v3205_v29 = vadd.f32 %v5343_v21, %v3194_v20  ;;  %v3184_v31 = vpop.f32.mrf.mxu2 }
 0x4e1   :  { %v2988_v42 = vpop.f32.mrf.mxu0 }
 0x4e2   :  { %v3212_v3 = vmax.f32 %v3205_v29, 0.0  ;;  %v2999_v63 = vadd.f32 %v2988_v42, %v2901_v4 }
 0x4e4   :  { %3219 = vst.msk [vmem:[%s5407_s13 + $0x20] sm:$0xff] %vm903_vm6, %v3212_v3  ;;  %v3097_v18 = vadd.f32 %v3086_v14, %v2999_v63 }
 0x4e6   :  { %v3195_v44 = vadd.f32 %v3184_v31, %v3097_v18 }
 0x4e8   :  { %v3206_v23 = vadd.f32 %v5343_v21, %v3195_v44  ;;  %v3187_v48 = vpop.f32.mrf.mxu2 }
 0x4e9   :  { %v2991_v10 = vpop.f32.mrf.mxu0 }
 0x4ea   :  { %v3213_v17 = vmax.f32 %v3206_v23, 0.0  ;;  %v3000_v59 = vadd.f32 %v2991_v10, %v2902_v7 }
 0x4ec   :  { %3220 = vst.msk [vmem:[%s5407_s13 + $0x28] sm:$0xff] %vm903_vm6, %v3213_v17  ;;  %v3098_v25 = vadd.f32 %v3089_v5, %v3000_v59 }
 0x4ee   :  { %v3196_v0 = vadd.f32 %v3187_v48, %v3098_v25 }
 0x4f0   :  { %v3207_v60 = vadd.f32 %v5343_v21, %v3196_v0 }
 0x4f2   :  { %v3214_v58 = vmax.f32 %v3207_v60, 0.0 }
 0x4f4   :  { %3221 = vst.msk [vmem:[%s5407_s13 + $0x30] sm:$0x3] %vm924_vm8, %v3214_v58 }

</bundles_post_ra>
